<compile_context>
chip_gen: v6e
topology: v6e:2x2x1
jax: 0.10.0
libtpu: 0.0.40
codegen_flags: <defaults>
</compile_context>

<pallas_src>
import jax
import jax.numpy as jnp
import numpy as np
from jax.experimental import pallas as pl
from jax.experimental.pallas import tpu as pltpu


# ----------------------------- Pallas kernel --------------------------------


def _make_tower_kernel(depth, heads, d_k, d_v, b_tile, n, d_in, d_model, alpha,
                       eps=1e-5, approx_recip=True):
    m_rows = b_tile * n
    off_k = heads * d_k          # start of the K group in the regrouped QKV columns
    off_v = 2 * heads * d_k      # start of the V group

    def layernorm(y):            # LayerNorm, no affine, biased variance (PyTorch)
        mu = jnp.mean(y, axis=-1, keepdims=True)
        var = jnp.mean((y - mu) ** 2, axis=-1, keepdims=True)
        return (y - mu) * jax.lax.rsqrt(var + eps)

    def recip(d):
        # approx reciprocal rides the EUP slot (free next to the MXU work);
        # exact fallback kept for tight-tolerance use.
        return pl.reciprocal(d, approx=True) if approx_recip else 1.0 / d

    def kernel(tok_ref, we_ref, emb_ref, wqkv_ref, wout_ref, wff1_ref, wff2_ref,
               o_ref):
        # Batch folding: flatten the B_TILE batch elements into the matmul M dim.
        tok = tok_ref[...].reshape(m_rows, d_in)
        # Input expand (K = d_in is tiny and runs once per grid step -> keep f32).
        # TODO(synk): could be a VPU broadcast-MAC instead of a K=4 MXU matmul.
        x = jnp.dot(tok, we_ref[...], preferred_element_type=jnp.float32)
        x = (x.reshape(b_tile, n, d_model) + emb_ref[...][None]).reshape(m_rows, d_model)

        # depth is small & static here -> unrolled, whole bf16 weight stack resident.
        # TODO(synk): for deep/large configs (esp. v7x 64 MiB VMEM) move `depth`
        # onto an inner "arbitrary" grid axis and stream one layer's weights/step.
        for layer in range(depth):
            w_qkv = wqkv_ref[layer]     # [d_model, qkv_cols_padded]  bf16
            w_out = wout_ref[layer]     # [heads, d_v, d_model]       bf16
            w_ff1 = wff1_ref[layer]     # [d_model, d_ff]             bf16
            w_ff2 = wff2_ref[layer]     # [d_ff, d_model]             bf16

            # ---- multi-head attention: one fused lane-dense QKV matmul ----
            qkv = jnp.dot(x.astype(jnp.bfloat16), w_qkv,
                          preferred_element_type=jnp.float32)  # [m_rows, padded]

            att_proj = jnp.zeros((m_rows, d_model), jnp.float32)
            for h in range(heads):      # heads is small & static -> unrolled
                q = qkv[:, h * d_k:(h + 1) * d_k]
                k = qkv[:, off_k + h * d_k:off_k + (h + 1) * d_k]
                v = qkv[:, off_v + h * d_v:off_v + (h + 1) * d_v]
                q3 = q.reshape(b_tile, n, d_k).astype(jnp.bfloat16)
                k3 = k.reshape(b_tile, n, d_k).astype(jnp.bfloat16)
                v3 = v.reshape(b_tile, n, d_v).astype(jnp.bfloat16)
                # NOTE: the reference applies NO 1/sqrt(d_k) scaling -> reproduce it.
                logits = jnp.einsum("bnd,bmd->bnm", q3, k3,
                                    preferred_element_type=jnp.float32)
                logits = logits - jnp.max(logits, axis=-1, keepdims=True)
                p = jnp.exp(logits)
                p = p * recip(jnp.sum(p, axis=-1, keepdims=True))
                att = jnp.einsum("bnm,bmd->bnd", p.astype(jnp.bfloat16), v3,
                                 preferred_element_type=jnp.float32)
                # Per-head output-projection accumulation: no 4-way lane concat.
                att_proj = att_proj + jnp.dot(
                    att.reshape(m_rows, d_v).astype(jnp.bfloat16), w_out[h],
                    preferred_element_type=jnp.float32)

            # TODO(synk): nn.Dropout omitted (identity in eval mode); no RNG mask.
            att_result = layernorm(x * alpha + att_proj)

            # ---- feed-forward ----
            ffh = jnp.maximum(
                jnp.dot(att_result.astype(jnp.bfloat16), w_ff1,
                        preferred_element_type=jnp.float32), 0.0)
            ff = jnp.dot(ffh.astype(jnp.bfloat16), w_ff2,
                         preferred_element_type=jnp.float32)
            x = layernorm(att_result * alpha + ff)

        # TODO(synk): at large b*n*d_model emit [b_tile, d_model, n] here so the
        # NCHW permute outside disappears and the HBM store is lane-denser.
        o_ref[...] = x.reshape(b_tile, n, d_model)

    return kernel


# ------------------------------- wrapper -------------------------------------


def _pick_batch_tile(b, n, max_rows=512):
    """Largest divisor of b such that the folded slab has <= max_rows rows.

    (On v7x, also prefer a grid extent that is a multiple of 2 so both
    TensorCores get work; at the toy shapes here the grid is one step anyway.)
    """
    best = 1
    for t in range(1, b + 1):
        if b % t == 0 and t * n <= max_rows:
            best = t
    return best


def _invariant_spec(shape):
    # Grid-invariant input: constant index_map; single buffer (double-buffering
    # a never-changing block only doubles its VMEM footprint).
    ndim = len(shape)
    return pl.BlockSpec(shape, lambda *_: (0,) * ndim, pipeline_mode=pl.Buffered(1))


def attention_tower_forward(x, prepared, *, heads, d_k, d_v, approx_reciprocal=True):
    """x: NCHW [b, d_in, h, w] -> NCHW [b, d_model, h, w]."""
    b, d_in, hh, ww = x.shape
    n = hh * ww
    we_t = prepared["we_t"]       # [d_in, d_model]                 f32
    emb = prepared["emb"]         # [n, d_model]                    f32
    wqkv_t = prepared["wqkv_t"]   # [depth, d_model, qkv_padded]    bf16 (regrouped + padded)
    wout_t = prepared["wout_t"]   # [depth, heads, d_v, d_model]    bf16
    wff1_t = prepared["wff1_t"]   # [depth, d_model, d_ff]          bf16
    wff2_t = prepared["wff2_t"]   # [depth, d_ff, d_model]          bf16
    depth = wqkv_t.shape[0]
    d_model = we_t.shape[1]
    d_ff = wff1_t.shape[2]
    qkv_cols = wqkv_t.shape[2]
    alpha = (2 * depth) ** 0.25   # matches AttentionTower.__init__

    b_tile = _pick_batch_tile(b, n)
    grid = (b // b_tile,)

    # NCHW -> [b, n, d_in]; token order = row-major over (h, w), same as
    # x.permute(2,3,0,1).view(h*w, b, d_in) per batch element.
    tokens = jnp.transpose(x, (0, 2, 3, 1)).reshape(b, n, d_in)

    kernel = _make_tower_kernel(depth, heads, d_k, d_v, b_tile, n, d_in, d_model,
                                float(alpha), approx_recip=approx_reciprocal)

    out = pl.pallas_call(
        kernel,
        out_shape=jax.ShapeDtypeStruct((b, n, d_model), jnp.float32),
        grid=grid,
        in_specs=[
            pl.BlockSpec((b_tile, n, d_in), lambda i: (i, 0, 0)),
            _invariant_spec((d_in, d_model)),
            _invariant_spec((n, d_model)),
            _invariant_spec((depth, d_model, qkv_cols)),
            _invariant_spec((depth, heads, d_v, d_model)),
            _invariant_spec((depth, d_model, d_ff)),
            _invariant_spec((depth, d_ff, d_model)),
        ],
        out_specs=pl.BlockSpec((b_tile, n, d_model), lambda i: (i, 0, 0)),
        compiler_params=pltpu.CompilerParams(
            dimension_semantics=("parallel",),
            vmem_limit_bytes=32 * 1024 * 1024,
        ),
    )(tokens, we_t, emb, wqkv_t, wout_t, wff1_t, wff2_t)

    # [b, n, d_model] -> NCHW [b, d_model, h, w]
    return jnp.transpose(out.reshape(b, hh, ww, d_model), (0, 3, 1, 2))


# -------------------------- parameter construction --------------------------


def xavier_normal(key, shape, gain=1.0):
    fan_out, fan_in = shape
    std = gain * np.sqrt(2.0 / (fan_in + fan_out))
    return std * jax.random.normal(key, shape, dtype=jnp.float32)


def init_params(key, *, board_size, input_channels, depth, d_model, heads, d_k, d_v, d_ff):
    """PyTorch-layout parameters (as AttentionTower stores them)."""
    alpha = (2 * depth) ** 0.25
    beta = (8 * depth) ** (-0.25)
    n = board_size * board_size
    keys = jax.random.split(key, 2 + 6 * depth)
    we = xavier_normal(keys[0], (d_model, input_channels), 1.0)   # expand.weight [d_model, d_in]
    emb = jax.random.normal(keys[1], (n, d_model), dtype=jnp.float32)
    d_k_total = heads * d_k
    d_v_total = heads * d_v
    layers = []
    kidx = 2
    for _ in range(depth):
        wq_blk = xavier_normal(keys[kidx + 0], (d_k_total, d_model), 1.0)
        wk_blk = xavier_normal(keys[kidx + 1], (d_k_total, d_model), 1.0)
        wv_blk = xavier_normal(keys[kidx + 2], (d_v_total, d_model), beta)
        wqkv = jnp.concatenate([wq_blk, wk_blk, wv_blk], axis=0)  # [heads*d_kqv, d_model]
        wout = xavier_normal(keys[kidx + 3], (d_model, d_v_total), beta)
        wff1 = xavier_normal(keys[kidx + 4], (d_ff, d_model), beta)
        wff2 = xavier_normal(keys[kidx + 5], (d_model, d_ff), beta)
        layers.append((wqkv, wout, wff1, wff2))
        kidx += 6
    return dict(we=we, emb=emb, layers=layers, alpha=alpha)


def prepare_params(params, *, heads, d_k, d_v, matmul_dtype=jnp.bfloat16):
    """One-time re-layout of PyTorch-layout weights into the kernel layout.

    Hoisted out of the forward path (runs once):
      * every Linear weight transposed,
      * fused QKV columns re-grouped from per-head [q_h|k_h|v_h] blocks (the
        PyTorch head split is by contiguous d_kqv column blocks of
        project_qkv's output) into [Q_allheads|K_allheads|V_allheads] and
        zero-padded to a 128-lane multiple — a pure column permutation, the
        kernel slice offsets are adjusted to match, numerics are identical,
      * out-projection reshaped to [depth, heads, d_v, d_model] for per-head
        accumulation,
      * matmul weights cast to bf16 (f32 accumulation stays in the kernel).
    """
    d_kqv = 2 * d_k + d_v
    ncols = heads * d_kqv
    perm = []
    for h in range(heads):                                        # Q group
        perm.extend(range(h * d_kqv, h * d_kqv + d_k))
    for h in range(heads):                                        # K group
        perm.extend(range(h * d_kqv + d_k, h * d_kqv + 2 * d_k))
    for h in range(heads):                                        # V group
        perm.extend(range(h * d_kqv + 2 * d_k, (h + 1) * d_kqv))
    perm = np.asarray(perm, dtype=np.int32)
    padded_cols = ((ncols + 127) // 128) * 128

    wqkv_l, wout_l, wff1_l, wff2_l = [], [], [], []
    for (wqkv, wout, wff1, wff2) in params["layers"]:
        d_model = wout.shape[0]
        wq = jnp.transpose(wqkv)[:, perm]                         # [d_model, ncols]
        wq = jnp.pad(wq, ((0, 0), (0, padded_cols - ncols)))
        wqkv_l.append(wq.astype(matmul_dtype))
        wout_l.append(jnp.transpose(wout)                         # [heads*d_v, d_model]
                      .reshape(heads, d_v, d_model).astype(matmul_dtype))
        wff1_l.append(jnp.transpose(wff1).astype(matmul_dtype))   # [d_model, d_ff]
        wff2_l.append(jnp.transpose(wff2).astype(matmul_dtype))   # [d_ff, d_model]
    return dict(
        we_t=jnp.transpose(params["we"]),    # [d_in, d_model] f32 (tiny, once per step)
        emb=params["emb"],                   # [n, d_model]    f32
        wqkv_t=jnp.stack(wqkv_l),
        wout_t=jnp.stack(wout_l),
        wff1_t=jnp.stack(wff1_l),
        wff2_t=jnp.stack(wff2_l),
    )


# ------------------------- pure-JAX reference (check) ------------------------


def _ref_layernorm(y, eps=1e-5):
    mu = y.mean(-1, keepdims=True)
    var = ((y - mu) ** 2).mean(-1, keepdims=True)
    return (y - mu) / jnp.sqrt(var + eps)


def _ref_encoder(x_nbc, wqkv, wout, wff1, wff2, heads, d_k, d_v, alpha):
    n, b, c = x_nbc.shape
    d_kqv = 2 * d_k + d_v
    qkv = (x_nbc.reshape(n * b, c) @ wqkv.T).reshape(n, b * heads, d_kqv)
    q = qkv[:, :, :d_k]
    k = qkv[:, :, d_k:2 * d_k]
    v = qkv[:, :, 2 * d_k:]
    logits = jnp.einsum("nbd,mbd->bnm", q, k)
    w = jax.nn.softmax(logits, axis=-1)
    att = jnp.einsum("bnm,mbd->nbd", w, v)                         # (n, b*heads, d_v)
    att_proj = (att.reshape(n * b, -1) @ wout.T).reshape(n, b, c)
    att_result = _ref_layernorm(x_nbc * alpha + att_proj)
    ff = jnp.maximum(att_result.reshape(n * b, c) @ wff1.T, 0.0) @ wff2.T
    return _ref_layernorm(att_result * alpha + ff.reshape(n, b, c))


def ref_tower(x, params, *, heads, d_k, d_v):
    b, d_in, hh, ww = x.shape
    n = hh * ww
    d_model = params["we"].shape[0]
    alpha = params["alpha"]
    shaped = jnp.transpose(x, (2, 3, 0, 1)).reshape(n, b, d_in)
    expanded = (shaped.reshape(n * b, d_in) @ params["we"].T).reshape(n, b, d_model)
    curr = expanded + params["emb"][:, None, :]
    for (wqkv, wout, wff1, wff2) in params["layers"]:
        curr = _ref_encoder(curr, wqkv, wout, wff1, wff2, heads, d_k, d_v, alpha)
    return jnp.transpose(curr.reshape(hh, ww, b, d_model), (2, 3, 0, 1))


# ----------------------------------- main ------------------------------------

if __name__ == "__main__":
    board_size, input_channels, depth = 8, 4, 2
    d_model, heads, d_k, d_v, d_ff = 32, 4, 8, 8, 64
    batch = 2

    key = jax.random.PRNGKey(0)
    pkey, xkey = jax.random.split(key)
    params = init_params(
        pkey,
        board_size=board_size,
        input_channels=input_channels,
        depth=depth,
        d_model=d_model,
        heads=heads,
        d_k=d_k,
        d_v=d_v,
        d_ff=d_ff,
    )
    # Weight re-layout + bf16 cast done once, outside the forward path.
    prepared = jax.tree_util.tree_map(
        jax.block_until_ready,
        prepare_params(params, heads=heads, d_k=d_k, d_v=d_v),
    )

    x = jax.random.normal(
        xkey, (batch, input_channels, board_size, board_size), dtype=jnp.float32
    )

    fwd = jax.jit(
        attention_tower_forward,
        static_argnames=("heads", "d_k", "d_v", "approx_reciprocal"),
    )
    out = fwd(x, prepared, heads=heads, d_k=d_k, d_v=d_v)
    out = jax.block_until_ready(out)
    assert out.shape == (batch, d_model, board_size, board_size)

    ref = ref_tower(x, params, heads=heads, d_k=d_k, d_v=d_v)
    np.testing.assert_allclose(np.asarray(out), np.asarray(ref), rtol=5e-2, atol=5e-2)

    print("KERNEL_OK")
</pallas_src>

<mosaic_0001>
module attributes {stable_mosaic.version = 11 : i64} {
  func.func @kernel(%arg0: i32, %arg1: memref<2x64x4xf32, #tpu.memory_space<vmem>>, %arg2: memref<4x32xf32, #tpu.memory_space<vmem>>, %arg3: memref<64x32xf32, #tpu.memory_space<vmem>>, %arg4: memref<2x32x128xbf16, #tpu.memory_space<vmem>>, %arg5: memref<2x4x8x32xbf16, #tpu.memory_space<vmem>>, %arg6: memref<2x32x64xbf16, #tpu.memory_space<vmem>>, %arg7: memref<2x64x32xbf16, #tpu.memory_space<vmem>>, %arg8: memref<2x64x32xf32, #tpu.memory_space<vmem>>) attributes {dimension_semantics = [#tpu.dimension_semantics<parallel>], iteration_bounds = array<i64: 1>, scalar_prefetch = 0 : i64, scratch_operands = 0 : i64, tpu.core_type = #tpu.core_type<tc>, window_params = [{transform_indices = @transform_0, window_bounds = array<i64: 2, 64, 4>}, {pipeline_mode = #tpu.pipeline_mode<synchronous>, transform_indices = @transform_1, window_bounds = array<i64: 4, 32>}, {pipeline_mode = #tpu.pipeline_mode<synchronous>, transform_indices = @transform_2, window_bounds = array<i64: 64, 32>}, {pipeline_mode = #tpu.pipeline_mode<synchronous>, transform_indices = @transform_3, window_bounds = array<i64: 2, 32, 128>}, {pipeline_mode = #tpu.pipeline_mode<synchronous>, transform_indices = @transform_4, window_bounds = array<i64: 2, 4, 8, 32>}, {pipeline_mode = #tpu.pipeline_mode<synchronous>, transform_indices = @transform_5, window_bounds = array<i64: 2, 32, 64>}, {pipeline_mode = #tpu.pipeline_mode<synchronous>, transform_indices = @transform_6, window_bounds = array<i64: 2, 64, 32>}, {transform_indices = @transform_7, window_bounds = array<i64: 2, 64, 32>}]} {
    %c0 = arith.constant 0 : index
    %c0_0 = arith.constant 0 : index
    %c0_1 = arith.constant 0 : index
    %0 = vector.load %arg1[%c0, %c0_0, %c0_1] : memref<2x64x4xf32, #tpu.memory_space<vmem>>, vector<2x64x4xf32>
    %1 = vector.shape_cast %0 : vector<2x64x4xf32> to vector<128x4xf32>
    %c0_2 = arith.constant 0 : index
    %c0_3 = arith.constant 0 : index
    %2 = vector.load %arg2[%c0_2, %c0_3] : memref<4x32xf32, #tpu.memory_space<vmem>>, vector<4x32xf32>
    %cst = arith.constant dense<0.000000e+00> : vector<128x32xf32>
    %3 = tpu.matmul %1, %2, %cst {dimension_numbers = #tpu.dot_dimension_numbers<[1], [0], [0], [1], [0, 0, 1, 1], [], []>} : vector<128x4xf32>, vector<4x32xf32>, vector<128x32xf32> -> vector<128x32xf32>
    %4 = vector.shape_cast %3 : vector<128x32xf32> to vector<2x64x32xf32>
    %c0_4 = arith.constant 0 : index
    %c0_5 = arith.constant 0 : index
    %5 = vector.load %arg3[%c0_4, %c0_5] : memref<64x32xf32, #tpu.memory_space<vmem>>, vector<64x32xf32>
    %6 = vector.shape_cast %5 : vector<64x32xf32> to vector<1x64x32xf32>
    %7 = vector.broadcast %6 : vector<1x64x32xf32> to vector<2x64x32xf32>
    %8 = arith.addf %4, %7 : vector<2x64x32xf32>
    %9 = vector.shape_cast %8 : vector<2x64x32xf32> to vector<128x32xf32>
    %c0_6 = arith.constant 0 : index
    %c0_7 = arith.constant 0 : index
    %c0_8 = arith.constant 0 : index
    %10 = vector.load %arg4[%c0_6, %c0_7, %c0_8] : memref<2x32x128xbf16, #tpu.memory_space<vmem>>, vector<1x32x128xbf16>
    %11 = vector.shape_cast %10 : vector<1x32x128xbf16> to vector<32x128xbf16>
    %c0_9 = arith.constant 0 : index
    %c0_10 = arith.constant 0 : index
    %c0_11 = arith.constant 0 : index
    %c0_12 = arith.constant 0 : index
    %12 = vector.load %arg5[%c0_9, %c0_10, %c0_11, %c0_12] : memref<2x4x8x32xbf16, #tpu.memory_space<vmem>>, vector<1x4x8x32xbf16>
    %13 = vector.shape_cast %12 : vector<1x4x8x32xbf16> to vector<4x8x32xbf16>
    %c0_13 = arith.constant 0 : index
    %c0_14 = arith.constant 0 : index
    %c0_15 = arith.constant 0 : index
    %14 = vector.load %arg6[%c0_13, %c0_14, %c0_15] : memref<2x32x64xbf16, #tpu.memory_space<vmem>>, vector<1x32x64xbf16>
    %15 = vector.shape_cast %14 : vector<1x32x64xbf16> to vector<32x64xbf16>
    %c0_16 = arith.constant 0 : index
    %c0_17 = arith.constant 0 : index
    %c0_18 = arith.constant 0 : index
    %16 = vector.load %arg7[%c0_16, %c0_17, %c0_18] : memref<2x64x32xbf16, #tpu.memory_space<vmem>>, vector<1x64x32xbf16>
    %17 = vector.shape_cast %16 : vector<1x64x32xbf16> to vector<64x32xbf16>
    %18 = arith.truncf %9 : vector<128x32xf32> to vector<128x32xbf16>
    %cst_19 = arith.constant dense<0.000000e+00> : vector<128x128xf32>
    %19 = tpu.matmul %18, %11, %cst_19 {dimension_numbers = #tpu.dot_dimension_numbers<[1], [0], [0], [1], [0, 0, 1, 1], [], []>} : vector<128x32xbf16>, vector<32x128xbf16>, vector<128x128xf32> -> vector<128x128xf32>
    %cst_20 = arith.constant 0.000000e+00 : f32
    %20 = vector.broadcast %cst_20 : f32 to vector<128x32xf32>
    %21 = vector.extract_strided_slice %19 {offsets = [0, 0], sizes = [128, 8], strides = [1, 1]} : vector<128x128xf32> to vector<128x8xf32>
    %22 = vector.extract_strided_slice %19 {offsets = [0, 32], sizes = [128, 8], strides = [1, 1]} : vector<128x128xf32> to vector<128x8xf32>
    %23 = vector.extract_strided_slice %19 {offsets = [0, 64], sizes = [128, 8], strides = [1, 1]} : vector<128x128xf32> to vector<128x8xf32>
    %24 = vector.shape_cast %21 : vector<128x8xf32> to vector<2x64x8xf32>
    %25 = arith.truncf %24 : vector<2x64x8xf32> to vector<2x64x8xbf16>
    %26 = vector.shape_cast %22 : vector<128x8xf32> to vector<2x64x8xf32>
    %27 = arith.truncf %26 : vector<2x64x8xf32> to vector<2x64x8xbf16>
    %28 = vector.shape_cast %23 : vector<128x8xf32> to vector<2x64x8xf32>
    %29 = arith.truncf %28 : vector<2x64x8xf32> to vector<2x64x8xbf16>
    "tpu.trace_start"() <{level = 10 : i32, message = "bnd,bmd->bnm"}> : () -> ()
    %cst_21 = arith.constant dense<0.000000e+00> : vector<2x64x64xf32>
    %30 = tpu.matmul %25, %27, %cst_21 {dimension_numbers = #tpu.dot_dimension_numbers<[2], [2], [1], [1], [0, 0, 0, 1, 1, 1], [0], [0]>} : vector<2x64x8xbf16>, vector<2x64x8xbf16>, vector<2x64x64xf32> -> vector<2x64x64xf32>
    "tpu.trace_stop"() : () -> ()
    %cst_22 = arith.constant dense<0xFF800000> : vector<2x64xf32>
    %31 = vector.multi_reduction <maximumf>, %30, %cst_22 [2] : vector<2x64x64xf32> to vector<2x64xf32>
    %32 = vector.shape_cast %31 : vector<2x64xf32> to vector<2x64x1xf32>
    %33 = vector.broadcast %32 : vector<2x64x1xf32> to vector<2x64x64xf32>
    %34 = arith.subf %30, %33 : vector<2x64x64xf32>
    %35 = math.exp %34 : vector<2x64x64xf32>
    %cst_23 = arith.constant dense<0.000000e+00> : vector<2x64xf32>
    %36 = vector.multi_reduction <add>, %35, %cst_23 [2] : vector<2x64x64xf32> to vector<2x64xf32>
    %37 = vector.shape_cast %36 : vector<2x64xf32> to vector<2x64x1xf32>
    %38 = tpu.reciprocal %37 {approx = true} : vector<2x64x1xf32> -> vector<2x64x1xf32>
    %39 = vector.broadcast %38 : vector<2x64x1xf32> to vector<2x64x64xf32>
    %40 = arith.mulf %35, %39 : vector<2x64x64xf32>
    %41 = arith.truncf %40 : vector<2x64x64xf32> to vector<2x64x64xbf16>
    "tpu.trace_start"() <{level = 10 : i32, message = "bnm,bmd->bnd"}> : () -> ()
    %cst_24 = arith.constant dense<0.000000e+00> : vector<2x64x8xf32>
    %42 = tpu.matmul %41, %29, %cst_24 {dimension_numbers = #tpu.dot_dimension_numbers<[2], [1], [1], [2], [0, 0, 0, 1, 1, 2], [0], [0]>} : vector<2x64x64xbf16>, vector<2x64x8xbf16>, vector<2x64x8xf32> -> vector<2x64x8xf32>
    "tpu.trace_stop"() : () -> ()
    %43 = vector.shape_cast %42 : vector<2x64x8xf32> to vector<128x8xf32>
    %44 = arith.truncf %43 : vector<128x8xf32> to vector<128x8xbf16>
    %45 = vector.extract_strided_slice %13 {offsets = [0, 0, 0], sizes = [1, 8, 32], strides = [1, 1, 1]} : vector<4x8x32xbf16> to vector<1x8x32xbf16>
    %46 = vector.shape_cast %45 : vector<1x8x32xbf16> to vector<8x32xbf16>
    %cst_25 = arith.constant dense<0.000000e+00> : vector<128x32xf32>
    %47 = tpu.matmul %44, %46, %cst_25 {dimension_numbers = #tpu.dot_dimension_numbers<[1], [0], [0], [1], [0, 0, 1, 1], [], []>} : vector<128x8xbf16>, vector<8x32xbf16>, vector<128x32xf32> -> vector<128x32xf32>
    %48 = arith.addf %20, %47 : vector<128x32xf32>
    %49 = vector.extract_strided_slice %19 {offsets = [0, 8], sizes = [128, 8], strides = [1, 1]} : vector<128x128xf32> to vector<128x8xf32>
    %50 = vector.extract_strided_slice %19 {offsets = [0, 40], sizes = [128, 8], strides = [1, 1]} : vector<128x128xf32> to vector<128x8xf32>
    %51 = vector.extract_strided_slice %19 {offsets = [0, 72], sizes = [128, 8], strides = [1, 1]} : vector<128x128xf32> to vector<128x8xf32>
    %52 = vector.shape_cast %49 : vector<128x8xf32> to vector<2x64x8xf32>
    %53 = arith.truncf %52 : vector<2x64x8xf32> to vector<2x64x8xbf16>
    %54 = vector.shape_cast %50 : vector<128x8xf32> to vector<2x64x8xf32>
    %55 = arith.truncf %54 : vector<2x64x8xf32> to vector<2x64x8xbf16>
    %56 = vector.shape_cast %51 : vector<128x8xf32> to vector<2x64x8xf32>
    %57 = arith.truncf %56 : vector<2x64x8xf32> to vector<2x64x8xbf16>
    "tpu.trace_start"() <{level = 10 : i32, message = "bnd,bmd->bnm"}> : () -> ()
    %cst_26 = arith.constant dense<0.000000e+00> : vector<2x64x64xf32>
    %58 = tpu.matmul %53, %55, %cst_26 {dimension_numbers = #tpu.dot_dimension_numbers<[2], [2], [1], [1], [0, 0, 0, 1, 1, 1], [0], [0]>} : vector<2x64x8xbf16>, vector<2x64x8xbf16>, vector<2x64x64xf32> -> vector<2x64x64xf32>
    "tpu.trace_stop"() : () -> ()
    %cst_27 = arith.constant dense<0xFF800000> : vector<2x64xf32>
    %59 = vector.multi_reduction <maximumf>, %58, %cst_27 [2] : vector<2x64x64xf32> to vector<2x64xf32>
    %60 = vector.shape_cast %59 : vector<2x64xf32> to vector<2x64x1xf32>
    %61 = vector.broadcast %60 : vector<2x64x1xf32> to vector<2x64x64xf32>
    %62 = arith.subf %58, %61 : vector<2x64x64xf32>
    %63 = math.exp %62 : vector<2x64x64xf32>
    %cst_28 = arith.constant dense<0.000000e+00> : vector<2x64xf32>
    %64 = vector.multi_reduction <add>, %63, %cst_28 [2] : vector<2x64x64xf32> to vector<2x64xf32>
    %65 = vector.shape_cast %64 : vector<2x64xf32> to vector<2x64x1xf32>
    %66 = tpu.reciprocal %65 {approx = true} : vector<2x64x1xf32> -> vector<2x64x1xf32>
    %67 = vector.broadcast %66 : vector<2x64x1xf32> to vector<2x64x64xf32>
    %68 = arith.mulf %63, %67 : vector<2x64x64xf32>
    %69 = arith.truncf %68 : vector<2x64x64xf32> to vector<2x64x64xbf16>
    "tpu.trace_start"() <{level = 10 : i32, message = "bnm,bmd->bnd"}> : () -> ()
    %cst_29 = arith.constant dense<0.000000e+00> : vector<2x64x8xf32>
    %70 = tpu.matmul %69, %57, %cst_29 {dimension_numbers = #tpu.dot_dimension_numbers<[2], [1], [1], [2], [0, 0, 0, 1, 1, 2], [0], [0]>} : vector<2x64x64xbf16>, vector<2x64x8xbf16>, vector<2x64x8xf32> -> vector<2x64x8xf32>
    "tpu.trace_stop"() : () -> ()
    %71 = vector.shape_cast %70 : vector<2x64x8xf32> to vector<128x8xf32>
    %72 = arith.truncf %71 : vector<128x8xf32> to vector<128x8xbf16>
    %73 = vector.extract_strided_slice %13 {offsets = [1, 0, 0], sizes = [1, 8, 32], strides = [1, 1, 1]} : vector<4x8x32xbf16> to vector<1x8x32xbf16>
    %74 = vector.shape_cast %73 : vector<1x8x32xbf16> to vector<8x32xbf16>
    %cst_30 = arith.constant dense<0.000000e+00> : vector<128x32xf32>
    %75 = tpu.matmul %72, %74, %cst_30 {dimension_numbers = #tpu.dot_dimension_numbers<[1], [0], [0], [1], [0, 0, 1, 1], [], []>} : vector<128x8xbf16>, vector<8x32xbf16>, vector<128x32xf32> -> vector<128x32xf32>
    %76 = arith.addf %48, %75 : vector<128x32xf32>
    %77 = vector.extract_strided_slice %19 {offsets = [0, 16], sizes = [128, 8], strides = [1, 1]} : vector<128x128xf32> to vector<128x8xf32>
    %78 = vector.extract_strided_slice %19 {offsets = [0, 48], sizes = [128, 8], strides = [1, 1]} : vector<128x128xf32> to vector<128x8xf32>
    %79 = vector.extract_strided_slice %19 {offsets = [0, 80], sizes = [128, 8], strides = [1, 1]} : vector<128x128xf32> to vector<128x8xf32>
    %80 = vector.shape_cast %77 : vector<128x8xf32> to vector<2x64x8xf32>
    %81 = arith.truncf %80 : vector<2x64x8xf32> to vector<2x64x8xbf16>
    %82 = vector.shape_cast %78 : vector<128x8xf32> to vector<2x64x8xf32>
    %83 = arith.truncf %82 : vector<2x64x8xf32> to vector<2x64x8xbf16>
    %84 = vector.shape_cast %79 : vector<128x8xf32> to vector<2x64x8xf32>
    %85 = arith.truncf %84 : vector<2x64x8xf32> to vector<2x64x8xbf16>
    "tpu.trace_start"() <{level = 10 : i32, message = "bnd,bmd->bnm"}> : () -> ()
    %cst_31 = arith.constant dense<0.000000e+00> : vector<2x64x64xf32>
    %86 = tpu.matmul %81, %83, %cst_31 {dimension_numbers = #tpu.dot_dimension_numbers<[2], [2], [1], [1], [0, 0, 0, 1, 1, 1], [0], [0]>} : vector<2x64x8xbf16>, vector<2x64x8xbf16>, vector<2x64x64xf32> -> vector<2x64x64xf32>
    "tpu.trace_stop"() : () -> ()
    %cst_32 = arith.constant dense<0xFF800000> : vector<2x64xf32>
    %87 = vector.multi_reduction <maximumf>, %86, %cst_32 [2] : vector<2x64x64xf32> to vector<2x64xf32>
    %88 = vector.shape_cast %87 : vector<2x64xf32> to vector<2x64x1xf32>
    %89 = vector.broadcast %88 : vector<2x64x1xf32> to vector<2x64x64xf32>
    %90 = arith.subf %86, %89 : vector<2x64x64xf32>
    %91 = math.exp %90 : vector<2x64x64xf32>
    %cst_33 = arith.constant dense<0.000000e+00> : vector<2x64xf32>
    %92 = vector.multi_reduction <add>, %91, %cst_33 [2] : vector<2x64x64xf32> to vector<2x64xf32>
    %93 = vector.shape_cast %92 : vector<2x64xf32> to vector<2x64x1xf32>
    %94 = tpu.reciprocal %93 {approx = true} : vector<2x64x1xf32> -> vector<2x64x1xf32>
    %95 = vector.broadcast %94 : vector<2x64x1xf32> to vector<2x64x64xf32>
    %96 = arith.mulf %91, %95 : vector<2x64x64xf32>
    %97 = arith.truncf %96 : vector<2x64x64xf32> to vector<2x64x64xbf16>
    "tpu.trace_start"() <{level = 10 : i32, message = "bnm,bmd->bnd"}> : () -> ()
    %cst_34 = arith.constant dense<0.000000e+00> : vector<2x64x8xf32>
    %98 = tpu.matmul %97, %85, %cst_34 {dimension_numbers = #tpu.dot_dimension_numbers<[2], [1], [1], [2], [0, 0, 0, 1, 1, 2], [0], [0]>} : vector<2x64x64xbf16>, vector<2x64x8xbf16>, vector<2x64x8xf32> -> vector<2x64x8xf32>
    "tpu.trace_stop"() : () -> ()
    %99 = vector.shape_cast %98 : vector<2x64x8xf32> to vector<128x8xf32>
    %100 = arith.truncf %99 : vector<128x8xf32> to vector<128x8xbf16>
    %101 = vector.extract_strided_slice %13 {offsets = [2, 0, 0], sizes = [1, 8, 32], strides = [1, 1, 1]} : vector<4x8x32xbf16> to vector<1x8x32xbf16>
    %102 = vector.shape_cast %101 : vector<1x8x32xbf16> to vector<8x32xbf16>
    %cst_35 = arith.constant dense<0.000000e+00> : vector<128x32xf32>
    %103 = tpu.matmul %100, %102, %cst_35 {dimension_numbers = #tpu.dot_dimension_numbers<[1], [0], [0], [1], [0, 0, 1, 1], [], []>} : vector<128x8xbf16>, vector<8x32xbf16>, vector<128x32xf32> -> vector<128x32xf32>
    %104 = arith.addf %76, %103 : vector<128x32xf32>
    %105 = vector.extract_strided_slice %19 {offsets = [0, 24], sizes = [128, 8], strides = [1, 1]} : vector<128x128xf32> to vector<128x8xf32>
    %106 = vector.extract_strided_slice %19 {offsets = [0, 56], sizes = [128, 8], strides = [1, 1]} : vector<128x128xf32> to vector<128x8xf32>
    %107 = vector.extract_strided_slice %19 {offsets = [0, 88], sizes = [128, 8], strides = [1, 1]} : vector<128x128xf32> to vector<128x8xf32>
    %108 = vector.shape_cast %105 : vector<128x8xf32> to vector<2x64x8xf32>
    %109 = arith.truncf %108 : vector<2x64x8xf32> to vector<2x64x8xbf16>
    %110 = vector.shape_cast %106 : vector<128x8xf32> to vector<2x64x8xf32>
    %111 = arith.truncf %110 : vector<2x64x8xf32> to vector<2x64x8xbf16>
    %112 = vector.shape_cast %107 : vector<128x8xf32> to vector<2x64x8xf32>
    %113 = arith.truncf %112 : vector<2x64x8xf32> to vector<2x64x8xbf16>
    "tpu.trace_start"() <{level = 10 : i32, message = "bnd,bmd->bnm"}> : () -> ()
    %cst_36 = arith.constant dense<0.000000e+00> : vector<2x64x64xf32>
    %114 = tpu.matmul %109, %111, %cst_36 {dimension_numbers = #tpu.dot_dimension_numbers<[2], [2], [1], [1], [0, 0, 0, 1, 1, 1], [0], [0]>} : vector<2x64x8xbf16>, vector<2x64x8xbf16>, vector<2x64x64xf32> -> vector<2x64x64xf32>
    "tpu.trace_stop"() : () -> ()
    %cst_37 = arith.constant dense<0xFF800000> : vector<2x64xf32>
    %115 = vector.multi_reduction <maximumf>, %114, %cst_37 [2] : vector<2x64x64xf32> to vector<2x64xf32>
    %116 = vector.shape_cast %115 : vector<2x64xf32> to vector<2x64x1xf32>
    %117 = vector.broadcast %116 : vector<2x64x1xf32> to vector<2x64x64xf32>
    %118 = arith.subf %114, %117 : vector<2x64x64xf32>
    %119 = math.exp %118 : vector<2x64x64xf32>
    %cst_38 = arith.constant dense<0.000000e+00> : vector<2x64xf32>
    %120 = vector.multi_reduction <add>, %119, %cst_38 [2] : vector<2x64x64xf32> to vector<2x64xf32>
    %121 = vector.shape_cast %120 : vector<2x64xf32> to vector<2x64x1xf32>
    %122 = tpu.reciprocal %121 {approx = true} : vector<2x64x1xf32> -> vector<2x64x1xf32>
    %123 = vector.broadcast %122 : vector<2x64x1xf32> to vector<2x64x64xf32>
    %124 = arith.mulf %119, %123 : vector<2x64x64xf32>
    %125 = arith.truncf %124 : vector<2x64x64xf32> to vector<2x64x64xbf16>
    "tpu.trace_start"() <{level = 10 : i32, message = "bnm,bmd->bnd"}> : () -> ()
    %cst_39 = arith.constant dense<0.000000e+00> : vector<2x64x8xf32>
    %126 = tpu.matmul %125, %113, %cst_39 {dimension_numbers = #tpu.dot_dimension_numbers<[2], [1], [1], [2], [0, 0, 0, 1, 1, 2], [0], [0]>} : vector<2x64x64xbf16>, vector<2x64x8xbf16>, vector<2x64x8xf32> -> vector<2x64x8xf32>
    "tpu.trace_stop"() : () -> ()
    %127 = vector.shape_cast %126 : vector<2x64x8xf32> to vector<128x8xf32>
    %128 = arith.truncf %127 : vector<128x8xf32> to vector<128x8xbf16>
    %129 = vector.extract_strided_slice %13 {offsets = [3, 0, 0], sizes = [1, 8, 32], strides = [1, 1, 1]} : vector<4x8x32xbf16> to vector<1x8x32xbf16>
    %130 = vector.shape_cast %129 : vector<1x8x32xbf16> to vector<8x32xbf16>
    %cst_40 = arith.constant dense<0.000000e+00> : vector<128x32xf32>
    %131 = tpu.matmul %128, %130, %cst_40 {dimension_numbers = #tpu.dot_dimension_numbers<[1], [0], [0], [1], [0, 0, 1, 1], [], []>} : vector<128x8xbf16>, vector<8x32xbf16>, vector<128x32xf32> -> vector<128x32xf32>
    %132 = arith.addf %104, %131 : vector<128x32xf32>
    %cst_41 = arith.constant 1.41421354 : f32
    %133 = vector.broadcast %cst_41 : f32 to vector<128x32xf32>
    %134 = arith.mulf %9, %133 : vector<128x32xf32>
    %135 = arith.addf %134, %132 : vector<128x32xf32>
    %cst_42 = arith.constant dense<0.000000e+00> : vector<128xf32>
    %136 = vector.multi_reduction <add>, %135, %cst_42 [1] : vector<128x32xf32> to vector<128xf32>
    %137 = vector.shape_cast %136 : vector<128xf32> to vector<128x1xf32>
    %cst_43 = arith.constant 3.200000e+01 : f32
    %138 = vector.broadcast %cst_43 : f32 to vector<128x1xf32>
    %139 = arith.divf %137, %138 : vector<128x1xf32>
    %140 = vector.broadcast %139 : vector<128x1xf32> to vector<128x32xf32>
    %141 = arith.subf %135, %140 : vector<128x32xf32>
    %142 = arith.mulf %141, %141 : vector<128x32xf32>
    %cst_44 = arith.constant dense<0.000000e+00> : vector<128xf32>
    %143 = vector.multi_reduction <add>, %142, %cst_44 [1] : vector<128x32xf32> to vector<128xf32>
    %144 = vector.shape_cast %143 : vector<128xf32> to vector<128x1xf32>
    %cst_45 = arith.constant 3.200000e+01 : f32
    %145 = vector.broadcast %cst_45 : f32 to vector<128x1xf32>
    %146 = arith.divf %144, %145 : vector<128x1xf32>
    %147 = vector.broadcast %139 : vector<128x1xf32> to vector<128x32xf32>
    %148 = arith.subf %135, %147 : vector<128x32xf32>
    %cst_46 = arith.constant 9.99999974E-6 : f32
    %149 = vector.broadcast %cst_46 : f32 to vector<128x1xf32>
    %150 = arith.addf %146, %149 : vector<128x1xf32>
    %151 = math.rsqrt %150 : vector<128x1xf32>
    %152 = vector.broadcast %151 : vector<128x1xf32> to vector<128x32xf32>
    %153 = arith.mulf %148, %152 : vector<128x32xf32>
    %154 = arith.truncf %153 : vector<128x32xf32> to vector<128x32xbf16>
    %cst_47 = arith.constant dense<0.000000e+00> : vector<128x64xf32>
    %155 = tpu.matmul %154, %15, %cst_47 {dimension_numbers = #tpu.dot_dimension_numbers<[1], [0], [0], [1], [0, 0, 1, 1], [], []>} : vector<128x32xbf16>, vector<32x64xbf16>, vector<128x64xf32> -> vector<128x64xf32>
    %cst_48 = arith.constant 0.000000e+00 : f32
    %156 = vector.broadcast %cst_48 : f32 to vector<128x64xf32>
    %157 = arith.maximumf %155, %156 : vector<128x64xf32>
    %158 = arith.truncf %157 : vector<128x64xf32> to vector<128x64xbf16>
    %cst_49 = arith.constant dense<0.000000e+00> : vector<128x32xf32>
    %159 = tpu.matmul %158, %17, %cst_49 {dimension_numbers = #tpu.dot_dimension_numbers<[1], [0], [0], [1], [0, 0, 1, 1], [], []>} : vector<128x64xbf16>, vector<64x32xbf16>, vector<128x32xf32> -> vector<128x32xf32>
    %cst_50 = arith.constant 1.41421354 : f32
    %160 = vector.broadcast %cst_50 : f32 to vector<128x32xf32>
    %161 = arith.mulf %153, %160 : vector<128x32xf32>
    %162 = arith.addf %161, %159 : vector<128x32xf32>
    %cst_51 = arith.constant dense<0.000000e+00> : vector<128xf32>
    %163 = vector.multi_reduction <add>, %162, %cst_51 [1] : vector<128x32xf32> to vector<128xf32>
    %164 = vector.shape_cast %163 : vector<128xf32> to vector<128x1xf32>
    %cst_52 = arith.constant 3.200000e+01 : f32
    %165 = vector.broadcast %cst_52 : f32 to vector<128x1xf32>
    %166 = arith.divf %164, %165 : vector<128x1xf32>
    %167 = vector.broadcast %166 : vector<128x1xf32> to vector<128x32xf32>
    %168 = arith.subf %162, %167 : vector<128x32xf32>
    %169 = arith.mulf %168, %168 : vector<128x32xf32>
    %cst_53 = arith.constant dense<0.000000e+00> : vector<128xf32>
    %170 = vector.multi_reduction <add>, %169, %cst_53 [1] : vector<128x32xf32> to vector<128xf32>
    %171 = vector.shape_cast %170 : vector<128xf32> to vector<128x1xf32>
    %cst_54 = arith.constant 3.200000e+01 : f32
    %172 = vector.broadcast %cst_54 : f32 to vector<128x1xf32>
    %173 = arith.divf %171, %172 : vector<128x1xf32>
    %174 = vector.broadcast %166 : vector<128x1xf32> to vector<128x32xf32>
    %175 = arith.subf %162, %174 : vector<128x32xf32>
    %cst_55 = arith.constant 9.99999974E-6 : f32
    %176 = vector.broadcast %cst_55 : f32 to vector<128x1xf32>
    %177 = arith.addf %173, %176 : vector<128x1xf32>
    %178 = math.rsqrt %177 : vector<128x1xf32>
    %179 = vector.broadcast %178 : vector<128x1xf32> to vector<128x32xf32>
    %180 = arith.mulf %175, %179 : vector<128x32xf32>
    %c1 = arith.constant 1 : index
    %c0_56 = arith.constant 0 : index
    %c0_57 = arith.constant 0 : index
    %181 = vector.load %arg4[%c1, %c0_56, %c0_57] : memref<2x32x128xbf16, #tpu.memory_space<vmem>>, vector<1x32x128xbf16>
    %182 = vector.shape_cast %181 : vector<1x32x128xbf16> to vector<32x128xbf16>
    %c1_58 = arith.constant 1 : index
    %c0_59 = arith.constant 0 : index
    %c0_60 = arith.constant 0 : index
    %c0_61 = arith.constant 0 : index
    %183 = vector.load %arg5[%c1_58, %c0_59, %c0_60, %c0_61] : memref<2x4x8x32xbf16, #tpu.memory_space<vmem>>, vector<1x4x8x32xbf16>
    %184 = vector.shape_cast %183 : vector<1x4x8x32xbf16> to vector<4x8x32xbf16>
    %c1_62 = arith.constant 1 : index
    %c0_63 = arith.constant 0 : index
    %c0_64 = arith.constant 0 : index
    %185 = vector.load %arg6[%c1_62, %c0_63, %c0_64] : memref<2x32x64xbf16, #tpu.memory_space<vmem>>, vector<1x32x64xbf16>
    %186 = vector.shape_cast %185 : vector<1x32x64xbf16> to vector<32x64xbf16>
    %c1_65 = arith.constant 1 : index
    %c0_66 = arith.constant 0 : index
    %c0_67 = arith.constant 0 : index
    %187 = vector.load %arg7[%c1_65, %c0_66, %c0_67] : memref<2x64x32xbf16, #tpu.memory_space<vmem>>, vector<1x64x32xbf16>
    %188 = vector.shape_cast %187 : vector<1x64x32xbf16> to vector<64x32xbf16>
    %189 = arith.truncf %180 : vector<128x32xf32> to vector<128x32xbf16>
    %cst_68 = arith.constant dense<0.000000e+00> : vector<128x128xf32>
    %190 = tpu.matmul %189, %182, %cst_68 {dimension_numbers = #tpu.dot_dimension_numbers<[1], [0], [0], [1], [0, 0, 1, 1], [], []>} : vector<128x32xbf16>, vector<32x128xbf16>, vector<128x128xf32> -> vector<128x128xf32>
    %cst_69 = arith.constant 0.000000e+00 : f32
    %191 = vector.broadcast %cst_69 : f32 to vector<128x32xf32>
    %192 = vector.extract_strided_slice %190 {offsets = [0, 0], sizes = [128, 8], strides = [1, 1]} : vector<128x128xf32> to vector<128x8xf32>
    %193 = vector.extract_strided_slice %190 {offsets = [0, 32], sizes = [128, 8], strides = [1, 1]} : vector<128x128xf32> to vector<128x8xf32>
    %194 = vector.extract_strided_slice %190 {offsets = [0, 64], sizes = [128, 8], strides = [1, 1]} : vector<128x128xf32> to vector<128x8xf32>
    %195 = vector.shape_cast %192 : vector<128x8xf32> to vector<2x64x8xf32>
    %196 = arith.truncf %195 : vector<2x64x8xf32> to vector<2x64x8xbf16>
    %197 = vector.shape_cast %193 : vector<128x8xf32> to vector<2x64x8xf32>
    %198 = arith.truncf %197 : vector<2x64x8xf32> to vector<2x64x8xbf16>
    %199 = vector.shape_cast %194 : vector<128x8xf32> to vector<2x64x8xf32>
    %200 = arith.truncf %199 : vector<2x64x8xf32> to vector<2x64x8xbf16>
    "tpu.trace_start"() <{level = 10 : i32, message = "bnd,bmd->bnm"}> : () -> ()
    %cst_70 = arith.constant dense<0.000000e+00> : vector<2x64x64xf32>
    %201 = tpu.matmul %196, %198, %cst_70 {dimension_numbers = #tpu.dot_dimension_numbers<[2], [2], [1], [1], [0, 0, 0, 1, 1, 1], [0], [0]>} : vector<2x64x8xbf16>, vector<2x64x8xbf16>, vector<2x64x64xf32> -> vector<2x64x64xf32>
    "tpu.trace_stop"() : () -> ()
    %cst_71 = arith.constant dense<0xFF800000> : vector<2x64xf32>
    %202 = vector.multi_reduction <maximumf>, %201, %cst_71 [2] : vector<2x64x64xf32> to vector<2x64xf32>
    %203 = vector.shape_cast %202 : vector<2x64xf32> to vector<2x64x1xf32>
    %204 = vector.broadcast %203 : vector<2x64x1xf32> to vector<2x64x64xf32>
    %205 = arith.subf %201, %204 : vector<2x64x64xf32>
    %206 = math.exp %205 : vector<2x64x64xf32>
    %cst_72 = arith.constant dense<0.000000e+00> : vector<2x64xf32>
    %207 = vector.multi_reduction <add>, %206, %cst_72 [2] : vector<2x64x64xf32> to vector<2x64xf32>
    %208 = vector.shape_cast %207 : vector<2x64xf32> to vector<2x64x1xf32>
    %209 = tpu.reciprocal %208 {approx = true} : vector<2x64x1xf32> -> vector<2x64x1xf32>
    %210 = vector.broadcast %209 : vector<2x64x1xf32> to vector<2x64x64xf32>
    %211 = arith.mulf %206, %210 : vector<2x64x64xf32>
    %212 = arith.truncf %211 : vector<2x64x64xf32> to vector<2x64x64xbf16>
    "tpu.trace_start"() <{level = 10 : i32, message = "bnm,bmd->bnd"}> : () -> ()
    %cst_73 = arith.constant dense<0.000000e+00> : vector<2x64x8xf32>
    %213 = tpu.matmul %212, %200, %cst_73 {dimension_numbers = #tpu.dot_dimension_numbers<[2], [1], [1], [2], [0, 0, 0, 1, 1, 2], [0], [0]>} : vector<2x64x64xbf16>, vector<2x64x8xbf16>, vector<2x64x8xf32> -> vector<2x64x8xf32>
    "tpu.trace_stop"() : () -> ()
    %214 = vector.shape_cast %213 : vector<2x64x8xf32> to vector<128x8xf32>
    %215 = arith.truncf %214 : vector<128x8xf32> to vector<128x8xbf16>
    %216 = vector.extract_strided_slice %184 {offsets = [0, 0, 0], sizes = [1, 8, 32], strides = [1, 1, 1]} : vector<4x8x32xbf16> to vector<1x8x32xbf16>
    %217 = vector.shape_cast %216 : vector<1x8x32xbf16> to vector<8x32xbf16>
    %cst_74 = arith.constant dense<0.000000e+00> : vector<128x32xf32>
    %218 = tpu.matmul %215, %217, %cst_74 {dimension_numbers = #tpu.dot_dimension_numbers<[1], [0], [0], [1], [0, 0, 1, 1], [], []>} : vector<128x8xbf16>, vector<8x32xbf16>, vector<128x32xf32> -> vector<128x32xf32>
    %219 = arith.addf %191, %218 : vector<128x32xf32>
    %220 = vector.extract_strided_slice %190 {offsets = [0, 8], sizes = [128, 8], strides = [1, 1]} : vector<128x128xf32> to vector<128x8xf32>
    %221 = vector.extract_strided_slice %190 {offsets = [0, 40], sizes = [128, 8], strides = [1, 1]} : vector<128x128xf32> to vector<128x8xf32>
    %222 = vector.extract_strided_slice %190 {offsets = [0, 72], sizes = [128, 8], strides = [1, 1]} : vector<128x128xf32> to vector<128x8xf32>
    %223 = vector.shape_cast %220 : vector<128x8xf32> to vector<2x64x8xf32>
    %224 = arith.truncf %223 : vector<2x64x8xf32> to vector<2x64x8xbf16>
    %225 = vector.shape_cast %221 : vector<128x8xf32> to vector<2x64x8xf32>
    %226 = arith.truncf %225 : vector<2x64x8xf32> to vector<2x64x8xbf16>
    %227 = vector.shape_cast %222 : vector<128x8xf32> to vector<2x64x8xf32>
    %228 = arith.truncf %227 : vector<2x64x8xf32> to vector<2x64x8xbf16>
    "tpu.trace_start"() <{level = 10 : i32, message = "bnd,bmd->bnm"}> : () -> ()
    %cst_75 = arith.constant dense<0.000000e+00> : vector<2x64x64xf32>
    %229 = tpu.matmul %224, %226, %cst_75 {dimension_numbers = #tpu.dot_dimension_numbers<[2], [2], [1], [1], [0, 0, 0, 1, 1, 1], [0], [0]>} : vector<2x64x8xbf16>, vector<2x64x8xbf16>, vector<2x64x64xf32> -> vector<2x64x64xf32>
    "tpu.trace_stop"() : () -> ()
    %cst_76 = arith.constant dense<0xFF800000> : vector<2x64xf32>
    %230 = vector.multi_reduction <maximumf>, %229, %cst_76 [2] : vector<2x64x64xf32> to vector<2x64xf32>
    %231 = vector.shape_cast %230 : vector<2x64xf32> to vector<2x64x1xf32>
    %232 = vector.broadcast %231 : vector<2x64x1xf32> to vector<2x64x64xf32>
    %233 = arith.subf %229, %232 : vector<2x64x64xf32>
    %234 = math.exp %233 : vector<2x64x64xf32>
    %cst_77 = arith.constant dense<0.000000e+00> : vector<2x64xf32>
    %235 = vector.multi_reduction <add>, %234, %cst_77 [2] : vector<2x64x64xf32> to vector<2x64xf32>
    %236 = vector.shape_cast %235 : vector<2x64xf32> to vector<2x64x1xf32>
    %237 = tpu.reciprocal %236 {approx = true} : vector<2x64x1xf32> -> vector<2x64x1xf32>
    %238 = vector.broadcast %237 : vector<2x64x1xf32> to vector<2x64x64xf32>
    %239 = arith.mulf %234, %238 : vector<2x64x64xf32>
    %240 = arith.truncf %239 : vector<2x64x64xf32> to vector<2x64x64xbf16>
    "tpu.trace_start"() <{level = 10 : i32, message = "bnm,bmd->bnd"}> : () -> ()
    %cst_78 = arith.constant dense<0.000000e+00> : vector<2x64x8xf32>
    %241 = tpu.matmul %240, %228, %cst_78 {dimension_numbers = #tpu.dot_dimension_numbers<[2], [1], [1], [2], [0, 0, 0, 1, 1, 2], [0], [0]>} : vector<2x64x64xbf16>, vector<2x64x8xbf16>, vector<2x64x8xf32> -> vector<2x64x8xf32>
    "tpu.trace_stop"() : () -> ()
    %242 = vector.shape_cast %241 : vector<2x64x8xf32> to vector<128x8xf32>
    %243 = arith.truncf %242 : vector<128x8xf32> to vector<128x8xbf16>
    %244 = vector.extract_strided_slice %184 {offsets = [1, 0, 0], sizes = [1, 8, 32], strides = [1, 1, 1]} : vector<4x8x32xbf16> to vector<1x8x32xbf16>
    %245 = vector.shape_cast %244 : vector<1x8x32xbf16> to vector<8x32xbf16>
    %cst_79 = arith.constant dense<0.000000e+00> : vector<128x32xf32>
    %246 = tpu.matmul %243, %245, %cst_79 {dimension_numbers = #tpu.dot_dimension_numbers<[1], [0], [0], [1], [0, 0, 1, 1], [], []>} : vector<128x8xbf16>, vector<8x32xbf16>, vector<128x32xf32> -> vector<128x32xf32>
    %247 = arith.addf %219, %246 : vector<128x32xf32>
    %248 = vector.extract_strided_slice %190 {offsets = [0, 16], sizes = [128, 8], strides = [1, 1]} : vector<128x128xf32> to vector<128x8xf32>
    %249 = vector.extract_strided_slice %190 {offsets = [0, 48], sizes = [128, 8], strides = [1, 1]} : vector<128x128xf32> to vector<128x8xf32>
    %250 = vector.extract_strided_slice %190 {offsets = [0, 80], sizes = [128, 8], strides = [1, 1]} : vector<128x128xf32> to vector<128x8xf32>
    %251 = vector.shape_cast %248 : vector<128x8xf32> to vector<2x64x8xf32>
    %252 = arith.truncf %251 : vector<2x64x8xf32> to vector<2x64x8xbf16>
    %253 = vector.shape_cast %249 : vector<128x8xf32> to vector<2x64x8xf32>
    %254 = arith.truncf %253 : vector<2x64x8xf32> to vector<2x64x8xbf16>
    %255 = vector.shape_cast %250 : vector<128x8xf32> to vector<2x64x8xf32>
    %256 = arith.truncf %255 : vector<2x64x8xf32> to vector<2x64x8xbf16>
    "tpu.trace_start"() <{level = 10 : i32, message = "bnd,bmd->bnm"}> : () -> ()
    %cst_80 = arith.constant dense<0.000000e+00> : vector<2x64x64xf32>
    %257 = tpu.matmul %252, %254, %cst_80 {dimension_numbers = #tpu.dot_dimension_numbers<[2], [2], [1], [1], [0, 0, 0, 1, 1, 1], [0], [0]>} : vector<2x64x8xbf16>, vector<2x64x8xbf16>, vector<2x64x64xf32> -> vector<2x64x64xf32>
    "tpu.trace_stop"() : () -> ()
    %cst_81 = arith.constant dense<0xFF800000> : vector<2x64xf32>
    %258 = vector.multi_reduction <maximumf>, %257, %cst_81 [2] : vector<2x64x64xf32> to vector<2x64xf32>
    %259 = vector.shape_cast %258 : vector<2x64xf32> to vector<2x64x1xf32>
    %260 = vector.broadcast %259 : vector<2x64x1xf32> to vector<2x64x64xf32>
    %261 = arith.subf %257, %260 : vector<2x64x64xf32>
    %262 = math.exp %261 : vector<2x64x64xf32>
    %cst_82 = arith.constant dense<0.000000e+00> : vector<2x64xf32>
    %263 = vector.multi_reduction <add>, %262, %cst_82 [2] : vector<2x64x64xf32> to vector<2x64xf32>
    %264 = vector.shape_cast %263 : vector<2x64xf32> to vector<2x64x1xf32>
    %265 = tpu.reciprocal %264 {approx = true} : vector<2x64x1xf32> -> vector<2x64x1xf32>
    %266 = vector.broadcast %265 : vector<2x64x1xf32> to vector<2x64x64xf32>
    %267 = arith.mulf %262, %266 : vector<2x64x64xf32>
    %268 = arith.truncf %267 : vector<2x64x64xf32> to vector<2x64x64xbf16>
    "tpu.trace_start"() <{level = 10 : i32, message = "bnm,bmd->bnd"}> : () -> ()
    %cst_83 = arith.constant dense<0.000000e+00> : vector<2x64x8xf32>
    %269 = tpu.matmul %268, %256, %cst_83 {dimension_numbers = #tpu.dot_dimension_numbers<[2], [1], [1], [2], [0, 0, 0, 1, 1, 2], [0], [0]>} : vector<2x64x64xbf16>, vector<2x64x8xbf16>, vector<2x64x8xf32> -> vector<2x64x8xf32>
    "tpu.trace_stop"() : () -> ()
    %270 = vector.shape_cast %269 : vector<2x64x8xf32> to vector<128x8xf32>
    %271 = arith.truncf %270 : vector<128x8xf32> to vector<128x8xbf16>
    %272 = vector.extract_strided_slice %184 {offsets = [2, 0, 0], sizes = [1, 8, 32], strides = [1, 1, 1]} : vector<4x8x32xbf16> to vector<1x8x32xbf16>
    %273 = vector.shape_cast %272 : vector<1x8x32xbf16> to vector<8x32xbf16>
    %cst_84 = arith.constant dense<0.000000e+00> : vector<128x32xf32>
    %274 = tpu.matmul %271, %273, %cst_84 {dimension_numbers = #tpu.dot_dimension_numbers<[1], [0], [0], [1], [0, 0, 1, 1], [], []>} : vector<128x8xbf16>, vector<8x32xbf16>, vector<128x32xf32> -> vector<128x32xf32>
    %275 = arith.addf %247, %274 : vector<128x32xf32>
    %276 = vector.extract_strided_slice %190 {offsets = [0, 24], sizes = [128, 8], strides = [1, 1]} : vector<128x128xf32> to vector<128x8xf32>
    %277 = vector.extract_strided_slice %190 {offsets = [0, 56], sizes = [128, 8], strides = [1, 1]} : vector<128x128xf32> to vector<128x8xf32>
    %278 = vector.extract_strided_slice %190 {offsets = [0, 88], sizes = [128, 8], strides = [1, 1]} : vector<128x128xf32> to vector<128x8xf32>
    %279 = vector.shape_cast %276 : vector<128x8xf32> to vector<2x64x8xf32>
    %280 = arith.truncf %279 : vector<2x64x8xf32> to vector<2x64x8xbf16>
    %281 = vector.shape_cast %277 : vector<128x8xf32> to vector<2x64x8xf32>
    %282 = arith.truncf %281 : vector<2x64x8xf32> to vector<2x64x8xbf16>
    %283 = vector.shape_cast %278 : vector<128x8xf32> to vector<2x64x8xf32>
    %284 = arith.truncf %283 : vector<2x64x8xf32> to vector<2x64x8xbf16>
    "tpu.trace_start"() <{level = 10 : i32, message = "bnd,bmd->bnm"}> : () -> ()
    %cst_85 = arith.constant dense<0.000000e+00> : vector<2x64x64xf32>
    %285 = tpu.matmul %280, %282, %cst_85 {dimension_numbers = #tpu.dot_dimension_numbers<[2], [2], [1], [1], [0, 0, 0, 1, 1, 1], [0], [0]>} : vector<2x64x8xbf16>, vector<2x64x8xbf16>, vector<2x64x64xf32> -> vector<2x64x64xf32>
    "tpu.trace_stop"() : () -> ()
    %cst_86 = arith.constant dense<0xFF800000> : vector<2x64xf32>
    %286 = vector.multi_reduction <maximumf>, %285, %cst_86 [2] : vector<2x64x64xf32> to vector<2x64xf32>
    %287 = vector.shape_cast %286 : vector<2x64xf32> to vector<2x64x1xf32>
    %288 = vector.broadcast %287 : vector<2x64x1xf32> to vector<2x64x64xf32>
    %289 = arith.subf %285, %288 : vector<2x64x64xf32>
    %290 = math.exp %289 : vector<2x64x64xf32>
    %cst_87 = arith.constant dense<0.000000e+00> : vector<2x64xf32>
    %291 = vector.multi_reduction <add>, %290, %cst_87 [2] : vector<2x64x64xf32> to vector<2x64xf32>
    %292 = vector.shape_cast %291 : vector<2x64xf32> to vector<2x64x1xf32>
    %293 = tpu.reciprocal %292 {approx = true} : vector<2x64x1xf32> -> vector<2x64x1xf32>
    %294 = vector.broadcast %293 : vector<2x64x1xf32> to vector<2x64x64xf32>
    %295 = arith.mulf %290, %294 : vector<2x64x64xf32>
    %296 = arith.truncf %295 : vector<2x64x64xf32> to vector<2x64x64xbf16>
    "tpu.trace_start"() <{level = 10 : i32, message = "bnm,bmd->bnd"}> : () -> ()
    %cst_88 = arith.constant dense<0.000000e+00> : vector<2x64x8xf32>
    %297 = tpu.matmul %296, %284, %cst_88 {dimension_numbers = #tpu.dot_dimension_numbers<[2], [1], [1], [2], [0, 0, 0, 1, 1, 2], [0], [0]>} : vector<2x64x64xbf16>, vector<2x64x8xbf16>, vector<2x64x8xf32> -> vector<2x64x8xf32>
    "tpu.trace_stop"() : () -> ()
    %298 = vector.shape_cast %297 : vector<2x64x8xf32> to vector<128x8xf32>
    %299 = arith.truncf %298 : vector<128x8xf32> to vector<128x8xbf16>
    %300 = vector.extract_strided_slice %184 {offsets = [3, 0, 0], sizes = [1, 8, 32], strides = [1, 1, 1]} : vector<4x8x32xbf16> to vector<1x8x32xbf16>
    %301 = vector.shape_cast %300 : vector<1x8x32xbf16> to vector<8x32xbf16>
    %cst_89 = arith.constant dense<0.000000e+00> : vector<128x32xf32>
    %302 = tpu.matmul %299, %301, %cst_89 {dimension_numbers = #tpu.dot_dimension_numbers<[1], [0], [0], [1], [0, 0, 1, 1], [], []>} : vector<128x8xbf16>, vector<8x32xbf16>, vector<128x32xf32> -> vector<128x32xf32>
    %303 = arith.addf %275, %302 : vector<128x32xf32>
    %cst_90 = arith.constant 1.41421354 : f32
    %304 = vector.broadcast %cst_90 : f32 to vector<128x32xf32>
    %305 = arith.mulf %180, %304 : vector<128x32xf32>
    %306 = arith.addf %305, %303 : vector<128x32xf32>
    %cst_91 = arith.constant dense<0.000000e+00> : vector<128xf32>
    %307 = vector.multi_reduction <add>, %306, %cst_91 [1] : vector<128x32xf32> to vector<128xf32>
    %308 = vector.shape_cast %307 : vector<128xf32> to vector<128x1xf32>
    %cst_92 = arith.constant 3.200000e+01 : f32
    %309 = vector.broadcast %cst_92 : f32 to vector<128x1xf32>
    %310 = arith.divf %308, %309 : vector<128x1xf32>
    %311 = vector.broadcast %310 : vector<128x1xf32> to vector<128x32xf32>
    %312 = arith.subf %306, %311 : vector<128x32xf32>
    %313 = arith.mulf %312, %312 : vector<128x32xf32>
    %cst_93 = arith.constant dense<0.000000e+00> : vector<128xf32>
    %314 = vector.multi_reduction <add>, %313, %cst_93 [1] : vector<128x32xf32> to vector<128xf32>
    %315 = vector.shape_cast %314 : vector<128xf32> to vector<128x1xf32>
    %cst_94 = arith.constant 3.200000e+01 : f32
    %316 = vector.broadcast %cst_94 : f32 to vector<128x1xf32>
    %317 = arith.divf %315, %316 : vector<128x1xf32>
    %318 = vector.broadcast %310 : vector<128x1xf32> to vector<128x32xf32>
    %319 = arith.subf %306, %318 : vector<128x32xf32>
    %cst_95 = arith.constant 9.99999974E-6 : f32
    %320 = vector.broadcast %cst_95 : f32 to vector<128x1xf32>
    %321 = arith.addf %317, %320 : vector<128x1xf32>
    %322 = math.rsqrt %321 : vector<128x1xf32>
    %323 = vector.broadcast %322 : vector<128x1xf32> to vector<128x32xf32>
    %324 = arith.mulf %319, %323 : vector<128x32xf32>
    %325 = arith.truncf %324 : vector<128x32xf32> to vector<128x32xbf16>
    %cst_96 = arith.constant dense<0.000000e+00> : vector<128x64xf32>
    %326 = tpu.matmul %325, %186, %cst_96 {dimension_numbers = #tpu.dot_dimension_numbers<[1], [0], [0], [1], [0, 0, 1, 1], [], []>} : vector<128x32xbf16>, vector<32x64xbf16>, vector<128x64xf32> -> vector<128x64xf32>
    %cst_97 = arith.constant 0.000000e+00 : f32
    %327 = vector.broadcast %cst_97 : f32 to vector<128x64xf32>
    %328 = arith.maximumf %326, %327 : vector<128x64xf32>
    %329 = arith.truncf %328 : vector<128x64xf32> to vector<128x64xbf16>
    %cst_98 = arith.constant dense<0.000000e+00> : vector<128x32xf32>
    %330 = tpu.matmul %329, %188, %cst_98 {dimension_numbers = #tpu.dot_dimension_numbers<[1], [0], [0], [1], [0, 0, 1, 1], [], []>} : vector<128x64xbf16>, vector<64x32xbf16>, vector<128x32xf32> -> vector<128x32xf32>
    %cst_99 = arith.constant 1.41421354 : f32
    %331 = vector.broadcast %cst_99 : f32 to vector<128x32xf32>
    %332 = arith.mulf %324, %331 : vector<128x32xf32>
    %333 = arith.addf %332, %330 : vector<128x32xf32>
    %cst_100 = arith.constant dense<0.000000e+00> : vector<128xf32>
    %334 = vector.multi_reduction <add>, %333, %cst_100 [1] : vector<128x32xf32> to vector<128xf32>
    %335 = vector.shape_cast %334 : vector<128xf32> to vector<128x1xf32>
    %cst_101 = arith.constant 3.200000e+01 : f32
    %336 = vector.broadcast %cst_101 : f32 to vector<128x1xf32>
    %337 = arith.divf %335, %336 : vector<128x1xf32>
    %338 = vector.broadcast %337 : vector<128x1xf32> to vector<128x32xf32>
    %339 = arith.subf %333, %338 : vector<128x32xf32>
    %340 = arith.mulf %339, %339 : vector<128x32xf32>
    %cst_102 = arith.constant dense<0.000000e+00> : vector<128xf32>
    %341 = vector.multi_reduction <add>, %340, %cst_102 [1] : vector<128x32xf32> to vector<128xf32>
    %342 = vector.shape_cast %341 : vector<128xf32> to vector<128x1xf32>
    %cst_103 = arith.constant 3.200000e+01 : f32
    %343 = vector.broadcast %cst_103 : f32 to vector<128x1xf32>
    %344 = arith.divf %342, %343 : vector<128x1xf32>
    %345 = vector.broadcast %337 : vector<128x1xf32> to vector<128x32xf32>
    %346 = arith.subf %333, %345 : vector<128x32xf32>
    %cst_104 = arith.constant 9.99999974E-6 : f32
    %347 = vector.broadcast %cst_104 : f32 to vector<128x1xf32>
    %348 = arith.addf %344, %347 : vector<128x1xf32>
    %349 = math.rsqrt %348 : vector<128x1xf32>
    %350 = vector.broadcast %349 : vector<128x1xf32> to vector<128x32xf32>
    %351 = arith.mulf %346, %350 : vector<128x32xf32>
    %352 = vector.shape_cast %351 : vector<128x32xf32> to vector<2x64x32xf32>
    %c0_105 = arith.constant 0 : index
    %c0_106 = arith.constant 0 : index
    %c0_107 = arith.constant 0 : index
    %353 = vector.load %arg8[%c0_105, %c0_106, %c0_107] : memref<2x64x32xf32, #tpu.memory_space<vmem>>, vector<2x64x32xf32>
    tpu.vector_store %arg8[%c0_105, %c0_106, %c0_107], %352 {strides = array<i32>} : memref<2x64x32xf32, #tpu.memory_space<vmem>>, vector<2x64x32xf32>,
    return
  }
  func.func @transform_0(%arg0: i32) -> (i32, i32, i32) {
    %c0_i32 = arith.constant 0 : i32
    %c0_i32_0 = arith.constant 0 : i32
    %c0_i32_1 = arith.constant 0 : i32
    return %arg0, %c0_i32, %c0_i32_0 : i32, i32, i32
  }
  func.func @transform_1(%arg0: i32) -> (i32, i32) {
    %c0_i32 = arith.constant 0 : i32
    %c0_i32_0 = arith.constant 0 : i32
    %c0_i32_1 = arith.constant 0 : i32
    return %c0_i32, %c0_i32_0 : i32, i32
  }
  func.func @transform_2(%arg0: i32) -> (i32, i32) {
    %c0_i32 = arith.constant 0 : i32
    %c0_i32_0 = arith.constant 0 : i32
    %c0_i32_1 = arith.constant 0 : i32
    return %c0_i32, %c0_i32_0 : i32, i32
  }
  func.func @transform_3(%arg0: i32) -> (i32, i32, i32) {
    %c0_i32 = arith.constant 0 : i32
    %c0_i32_0 = arith.constant 0 : i32
    %c0_i32_1 = arith.constant 0 : i32
    %c0_i32_2 = arith.constant 0 : i32
    return %c0_i32, %c0_i32_0, %c0_i32_1 : i32, i32, i32
  }
  func.func @transform_4(%arg0: i32) -> (i32, i32, i32, i32) {
    %c0_i32 = arith.constant 0 : i32
    %c0_i32_0 = arith.constant 0 : i32
    %c0_i32_1 = arith.constant 0 : i32
    %c0_i32_2 = arith.constant 0 : i32
    %c0_i32_3 = arith.constant 0 : i32
    return %c0_i32, %c0_i32_0, %c0_i32_1, %c0_i32_2 : i32, i32, i32, i32
  }
  func.func @transform_5(%arg0: i32) -> (i32, i32, i32) {
    %c0_i32 = arith.constant 0 : i32
    %c0_i32_0 = arith.constant 0 : i32
    %c0_i32_1 = arith.constant 0 : i32
    %c0_i32_2 = arith.constant 0 : i32
    return %c0_i32, %c0_i32_0, %c0_i32_1 : i32, i32, i32
  }
  func.func @transform_6(%arg0: i32) -> (i32, i32, i32) {
    %c0_i32 = arith.constant 0 : i32
    %c0_i32_0 = arith.constant 0 : i32
    %c0_i32_1 = arith.constant 0 : i32
    %c0_i32_2 = arith.constant 0 : i32
    return %c0_i32, %c0_i32_0, %c0_i32_1 : i32, i32, i32
  }
  func.func @transform_7(%arg0: i32) -> (i32, i32, i32) {
    %c0_i32 = arith.constant 0 : i32
    %c0_i32_0 = arith.constant 0 : i32
    %c0_i32_1 = arith.constant 0 : i32
    return %arg0, %c0_i32, %c0_i32_0 : i32, i32, i32
  }
}

</mosaic_0001>

<bundles_post_ra>
// kernel: attention_tower_forward.1
= control target key start
LH: loop header
LB: loop body
LE: loop exit
PB: predicated region body
PF: predicated region fallthrough
CT: control target
= control target key end

     0   :  { %vm94_vm0 = vcmask 1043456   ;;  %vm45_vm1 = vcmask 31744   ;;  %s13606_s0 = inlined_call_operand.vmem [shape: f32[2,64,4], index: 0, kind: input, shape index: {}]   ;;  %s13607_s1 = inlined_call_operand.vmem [shape: f32[4,32], index: 1, kind: input, shape index: {}]   ;;  %s13608_s2 = inlined_call_operand.vmem [shape: f32[64,32], index: 2, kind: input, shape index: {}]   ;;  %s13609_s3 = inlined_call_operand.vmem [shape: bf16[2,32,128], index: 3, kind: input, shape index: {}]   ;;  %s13610_s4 = inlined_call_operand.vmem [shape: bf16[2,4,8,32], index: 4, kind: input, shape index: {}]   ;;  %s13611_s5 = inlined_call_operand.vmem [shape: bf16[2,32,64], index: 5, kind: input, shape index: {}]   ;;  %s13612_s6 = inlined_call_operand.vmem [shape: bf16[2,64,32], index: 6, kind: input, shape index: {}]   ;;  %s13613_s7 = inlined_call_operand.hbm [shape: f32[2,64,32], index: 7, kind: output, shape index: {}]  }
   0x1   :  { %v44_v0 = vld [vmem:[%s13607_s1] sm:$0xf]  ;;  %v29_v2 = vld [vmem:[%s13606_s0 + $0x8] sm:$0xff]  ;;  %v30_v3 = vld [vmem:[%s13606_s0 + $0x10] sm:$0xff] }
   0x2   :  { %v28_v1 = vld [vmem:[%s13606_s0] sm:$0xff]  ;;  %8607 = vmatprep.subr.msk.mxu0 %vm94_vm0, %v44_v0  ;;  %v31_v4 = vld [vmem:[%s13606_s0 + $0x18] sm:$0xff]  ;;  %v33_v6 = vld [vmem:[%s13606_s0 + $0x28] sm:$0xff] }
   0x3   :  { %8609 = vmatprep.mubr.msk.f32.mxu0 %vm45_vm1, %v28_v1  ;;  %8608 = vmatpush3.msk.msra.mxu0 %vm94_vm0, %v44_v0  ;;  %v32_v5 = vld [vmem:[%s13606_s0 + $0x20] sm:$0xff]  ;;  %v34_v7 = vld [vmem:[%s13606_s0 + $0x30] sm:$0xff]  ;;  %v35_v8 = vld [vmem:[%s13606_s0 + $0x38] sm:$0xff] }
   0x4   :  { %8610 = vmatmul.mubr.msk.f32.vlgmr.msra.gmra.mxu0 %vm45_vm1, %v29_v2  ;;  %v36_v9 = vld [vmem:[%s13606_s0 + $0x40] sm:$0xff]  ;;  %v37_v10 = vld [vmem:[%s13606_s0 + $0x48] sm:$0xff] }
   0x5   :  { %8612 = vmatprep.mubr.msk.f32.mxu0 %vm45_vm1, %v30_v3 }
   0x8   :  { %8613 = vmatmul.mubr.msk.f32.gmra.mxu0 %vm45_vm1, %v31_v4 }
   0x9   :  { %8615 = vmatprep.mubr.msk.f32.mxu0 %vm45_vm1, %v32_v5 }
   0xc   :  { %8616 = vmatmul.mubr.msk.f32.gmra.mxu0 %vm45_vm1, %v33_v6 }
   0xd   :  { %8618 = vmatprep.mubr.msk.f32.mxu0 %vm45_vm1, %v34_v7 }
  0x10   :  { %8619 = vmatmul.mubr.msk.f32.gmra.mxu0 %vm45_vm1, %v35_v8 }
  0x11   :  { %8621 = vmatprep.mubr.msk.f32.mxu0 %vm45_vm1, %v36_v9 }
  0x12   :  { %12 = vsyncpa [#allocation3], 0  ;;  %v38_v11 = vld [vmem:[%s13606_s0 + $0x50] sm:$0xff]  ;;  %v39_v12 = vld [vmem:[%s13606_s0 + $0x58] sm:$0xff]  ;;  %vm307_vm2 = vcmask 261120   ;;  %vm449_vm3 = vcmask 64512  }
  0x13   :  { %v40_v13 = vld [vmem:[%s13606_s0 + $0x60] sm:$0xff]  ;;  %v41_v14 = vld [vmem:[%s13606_s0 + $0x68] sm:$0xff]  ;;  %v42_v15 = vld [vmem:[%s13606_s0 + $0x70] sm:$0xff]  ;;  %s10182_s29 = smov 64   ;;  %s10183_s30 = smov 88   ;;  %vm640_vm4 = vcmask 523264  }
  0x14   :  { %8622 = vmatmul.mubr.msk.f32.gmra.mxu0 %vm45_vm1, %v37_v10  ;;  %v43_v16 = vld [vmem:[%s13606_s0 + $0x78] sm:$0xff]  ;;  %v9503_v17 = vld [vmem:[%s13609_s3 + $0x8] sm:$0xff]   ;;  %v9504_v18 = vld [vmem:[%s13609_s3] sm:$0xff]   ;;  %s10184_s8 = smov 120   ;;  %s10185_s1 = smov 56  }
  0x15   :  { %8624 = vmatprep.mubr.msk.f32.mxu0 %vm45_vm1, %v38_v11  ;;  %8633 = vmatprep.subr.bf16.mxu1 %v9503_v17  ;;  %v244_v20 = vld [vmem:[%s13608_s2 + $0x8] sm:$0xff]  ;;  %v243_v21 = vld [vmem:[%s13608_s2] sm:$0xff]  ;;  %v246_v26 = vld [vmem:[%s13608_s2 + $0x18] sm:$0xff]  ;;  %s10186_s11 = smov 80   ;;  %s10187_s12 = smov 112  }
  0x16   :  { %8634 = vmatpush3.bf16.msra.mxu1 %v9503_v17  ;;  %v245_v27 = vld [vmem:[%s13608_s2 + $0x10] sm:$0xff]  ;;  %v248_v33 = vld [vmem:[%s13608_s2 + $0x28] sm:$0xff]  ;;  %v247_v34 = vld [vmem:[%s13608_s2 + $0x20] sm:$0xff]  ;;  %s10188_s13 = smov 48   ;;  %s10189_s0 = smov 72  }
  0x17   :  { %8635 = vmatprep.subr.bf16.mxu1 %v9504_v18  ;;  %v250_v40 = vld [vmem:[%s13608_s2 + $0x38] sm:$0xff]  ;;  %v249_v41 = vld [vmem:[%s13608_s2 + $0x30] sm:$0xff]  ;;  %s10181_s2 = smov 96   ;;  %s10190_s16 = smov 104  }
  0x18   :  { %8625 = vmatmul.mubr.msk.f32.gmra.mxu0 %vm45_vm1, %v39_v12  ;;  %s10191_s19 = smov 40  }
  0x19   :  { %8627 = vmatprep.mubr.msk.f32.mxu0 %vm45_vm1, %v40_v13 }
  0x1a   :  { %8636 = vmatpush3.bf16.msra.mxu1 %v9504_v18 }
  0x1c   :  { %8628 = vmatmul.mubr.msk.f32.gmra.mxu0 %vm45_vm1, %v41_v14 }
  0x1d   :  { %8630 = vmatprep.mubr.msk.f32.mxu0 %vm45_vm1, %v42_v15 }
  0x20   :  { %8631 = vmatmul.mubr.msk.f32.gmra.mxu0 %vm45_vm1, %v43_v16 }
  0xc4   :  { %v8611_v19 = vpop.f32.mrf.mxu0 }
  0xc5   :  { %v10316_v23 = vadd.f32 %v8611_v19, %v244_v20 }
  0xc6   :  { %v164_v22 = vpop.f32.mrf.mxu0 }
  0xc7   :  { %13646 = vst [vmem:[#allocation5_spill] sm:$0xff] %v10316_v23  ;;  %v10318_v24 = vadd.f32 %v243_v21, %v164_v22 }
  0xc8   :  { %v8614_v25 = vpop.f32.mrf.mxu0 }
  0xc9   :  { %v287_v28 = vpack.c.bf16 %v10316_v23, %v10318_v24  ;;  %v10328_v30 = vadd.f32 %v8614_v25, %v246_v26 }
  0xca   :  { %v174_v29 = vpop.f32.mrf.mxu0 }
  0xcb   :  { %13647 = vst [vmem:[#allocation6_spill] sm:$0xff] %v10328_v30  ;;  %v10330_v31 = vadd.f32 %v245_v27, %v174_v29  ;;  %8637 = vmatprep.mubr.msk.bf16.mxu1 %vm307_vm2, %v287_v28 }
  0xcc   :  { %v8617_v32 = vpop.f32.mrf.mxu0 }
  0xcd   :  { %v288_v35 = vpack.c.bf16 %v10328_v30, %v10330_v31  ;;  %v10341_v37 = vadd.f32 %v8617_v32, %v248_v33 }
  0xce   :  { %v184_v36 = vpop.f32.mrf.mxu0 }
  0xcf   :  { %13648 = vst [vmem:[#allocation7_spill] sm:$0xff] %v10341_v37  ;;  %v10343_v38 = vadd.f32 %v247_v34, %v184_v36  ;;  %8638 = vmatmul.mubr.msk.bf16.vlgmr.msra.gmra.mxu1 %vm307_vm2, %v288_v35 }
  0xd0   :  { %v8620_v39 = vpop.f32.mrf.mxu0 }
  0xd1   :  { %13649 = vst [vmem:[#allocation8_spill] sm:$0xff] %v10343_v38  ;;  %v289_v42 = vpack.c.bf16 %v10341_v37, %v10343_v38  ;;  %v10354_v44 = vadd.f32 %v8620_v39, %v250_v40 }
  0xd2   :  { %v194_v43 = vpop.f32.mrf.mxu0 }
  0xd3   :  { %13650 = vst [vmem:[#allocation9_spill] sm:$0xff] %v10354_v44  ;;  %v10356_v45 = vadd.f32 %v249_v41, %v194_v43  ;;  %8641 = vmatprep.mubr.msk.bf16.mxu1 %vm307_vm2, %v289_v42 }
  0xd4   :  { %v8623_v46 = vpop.f32.mrf.mxu0 }
  0xd5   :  { %13651 = vst [vmem:[#allocation10_spill] sm:$0xff] %v10356_v45  ;;  %v290_v47 = vpack.c.bf16 %v10354_v44, %v10356_v45  ;;  %v10361_v48 = vadd.f32 %v8623_v46, %v244_v20 }
  0xd6   :  { %v204_v49 = vpop.f32.mrf.mxu0 }
  0xd7   :  { %13652 = vst [vmem:[#allocation11_spill] sm:$0xff] %v10361_v48  ;;  %v10363_v50 = vadd.f32 %v243_v21, %v204_v49  ;;  %8642 = vmatmul.mubr.msk.bf16.gmra.mxu1 %vm307_vm2, %v290_v47 }
  0xd8   :  { %v8626_v51 = vpop.f32.mrf.mxu0 }
  0xd9   :  { %13653 = vst [vmem:[#allocation12_spill] sm:$0xff] %v10363_v50  ;;  %v291_v52 = vpack.c.bf16 %v10361_v48, %v10363_v50  ;;  %v10368_v53 = vadd.f32 %v8626_v51, %v246_v26 }
  0xda   :  { %v214_v54 = vpop.f32.mrf.mxu0 }
  0xdb   :  { %13654 = vst [vmem:[#allocation13_spill] sm:$0xff] %v10368_v53  ;;  %v10370_v55 = vadd.f32 %v245_v27, %v214_v54  ;;  %8645 = vmatprep.mubr.msk.bf16.mxu1 %vm307_vm2, %v291_v52 }
  0xdc   :  { %v8629_v56 = vpop.f32.mrf.mxu0 }
  0xdd   :  { %13655 = vst [vmem:[#allocation14_spill] sm:$0xff] %v10370_v55  ;;  %v292_v57 = vpack.c.bf16 %v10368_v53, %v10370_v55  ;;  %v10375_v58 = vadd.f32 %v8629_v56, %v248_v33 }
  0xde   :  { %v224_v59 = vpop.f32.mrf.mxu0 }
  0xdf   :  { %13656 = vst [vmem:[#allocation15_spill] sm:$0xff] %v10375_v58  ;;  %v10377_v60 = vadd.f32 %v247_v34, %v224_v59  ;;  %8646 = vmatmul.mubr.msk.bf16.gmra.mxu1 %vm307_vm2, %v292_v57 }
  0xe0   :  { %v8632_v61 = vpop.f32.mrf.mxu0 }
  0xe1   :  { %13657 = vst [vmem:[#allocation16_spill] sm:$0xff] %v10377_v60  ;;  %v293_v62 = vpack.c.bf16 %v10375_v58, %v10377_v60  ;;  %v10382_v63 = vadd.f32 %v8632_v61, %v250_v40 }
  0xe2   :  { %v234_v0 = vpop.f32.mrf.mxu0 }
  0xe3   :  { %13658 = vst [vmem:[#allocation17_spill] sm:$0xff] %v10382_v63  ;;  %v10384_v1 = vadd.f32 %v249_v41, %v234_v0  ;;  %8649 = vmatprep.mubr.msk.bf16.mxu1 %vm307_vm2, %v293_v62 }
  0xe5   :  { %13659 = vst [vmem:[#allocation18_spill] sm:$0xff] %v10384_v1  ;;  %v294_v2 = vpack.c.bf16 %v10382_v63, %v10384_v1 }
  0xe7   :  { %8650 = vmatmul.mubr.msk.bf16.gmra.mxu1 %vm307_vm2, %v294_v2 }
 0x18f   :  { %v8639_v3 = vpop.f32.mrf.mxu1 }
 0x191   :  { %v366_v4 = vpop.f32.mrf.mxu1 }
 0x193   :  { %v8640_v5 = vpop.f32.mrf.mxu1 }
 0x194   :  { %v10390_v6 = vpack.c.bf16 %v8640_v5, %v8639_v3 }
 0x195   :  { %v369_v7 = vpop.f32.mrf.mxu1 }
 0x196   :  { %v10392_v8 = vpack.c.bf16 %v369_v7, %v366_v4  ;;  %443 = vrot.lane.b32.xlu1 %v10390_v6, %s10181_s2 }
 0x197   :  { %v8643_v9 = vpop.f32.mrf.mxu1 }
 0x198   :  { %8661 = vmatprep.mubr.msk.bf16.mxu0 %vm449_vm3, %v10392_v8 }
 0x199   :  { %v382_v10 = vpop.f32.mrf.mxu1 }
 0x19b   :  { %v8644_v11 = vpop.f32.mrf.mxu1 }
 0x19c   :  { %v10398_v12 = vpack.c.bf16 %v8644_v11, %v8643_v9 }
 0x19d   :  { %v385_v13 = vpop.f32.mrf.mxu1 }
 0x19e   :  { %447 = vrot.lane.b32.xlu0 %v10398_v12, %s10181_s2  ;;  %v10402_v15 = vpack.c.bf16 %v385_v13, %v382_v10 }
 0x19f   :  { %v8647_v14 = vpop.f32.mrf.mxu1 }
 0x1a1   :  { %v398_v16 = vpop.f32.mrf.mxu1 }
 0x1a2   :  { %445 = vrot.lane.b32.xlu0 %v10402_v15, %s10181_s2 }
 0x1a3   :  { %v8648_v17 = vpop.f32.mrf.mxu1 }
 0x1a4   :  { %v10410_v21 = vpack.c.bf16 %v8648_v17, %v8647_v14 }
 0x1a5   :  { %v401_v18 = vpop.f32.mrf.mxu1 }
 0x1a6   :  { %v10406_v19 = vpack.c.bf16 %v401_v18, %v398_v16  ;;  %441 = vrot.lane.b32.xlu0 %v10392_v8, %s10181_s2 }
 0x1a7   :  { %v8651_v20 = vpop.f32.mrf.mxu1 }
 0x1a8   :  { %8677 = vmatprep.mubr.msk.bf16.mxu1 %vm449_vm3, %v10406_v19 }
 0x1a9   :  { %v414_v22 = vpop.f32.mrf.mxu1 }
 0x1aa   :  { %545 = vrot.lane.b32.xlu0 %v10410_v21, %s10181_s2 }
 0x1ab   :  { %v8652_v25 = vpop.f32.mrf.mxu1 }
 0x1ac   :  { %v10416_v26 = vpack.c.bf16 %v8652_v25, %v8651_v20 }
 0x1ad   :  { %v417_v27 = vpop.f32.mrf.mxu1 }
 0x1ae   :  { %827 = vrot.lane.b32.xlu0 %v10390_v6, %s10182_s29  ;;  %549 = vrot.lane.b32.xlu1 %v10416_v26, %s10181_s2  ;;  %v10422_v28 = vpack.c.bf16 %v417_v27, %v414_v22 }
 0x1b2   :  { %1023 = vrot.lane.b32.xlu0 %v10402_v15, %s10183_s30  ;;  %547 = vrot.lane.b32.xlu1 %v10422_v28, %s10181_s2 }
 0x1b6   :  { %914 = vrot.lane.b32.xlu0 %v10406_v19, %s10182_s29  ;;  %543 = vrot.lane.b32.xlu1 %v10406_v19, %s10181_s2 }
 0x1ba   :  { %1019 = vrot.lane.b32.xlu0 %v10392_v8, %s10183_s30  ;;  %831 = vrot.lane.b32.xlu1 %v10398_v12, %s10182_s29 }
 0x1be   :  { %829 = vrot.lane.b32.xlu1 %v10402_v15, %s10182_s29 }
 0x1c2   :  { %825 = vrot.lane.b32.xlu1 %v10392_v8, %s10182_s29 }
 0x1c6   :  { %920 = vrot.lane.b32.xlu1 %v10416_v26, %s10182_s29 }
 0x1ca   :  { %1025 = vrot.lane.b32.xlu1 %v10398_v12, %s10183_s30 }
 0x1ce   :  { %916 = vrot.lane.b32.xlu1 %v10410_v21, %s10182_s29 }
 0x1d2   :  { %1021 = vrot.lane.b32.xlu1 %v10390_v6, %s10183_s30 }
 0x1d6   :  { %1130 = vrot.lane.b32.xlu1 %v10416_v26, %s10183_s30 }
 0x1da   :  { %918 = vrot.lane.b32.xlu1 %v10422_v28, %s10182_s29 }
 0x1de   :  { %1128 = vrot.lane.b32.xlu1 %v10422_v28, %s10183_s30 }
 0x208   :  { %v444_v35 = vpop.permute.xlu1 %443 }
 0x209   :  { %v466_v39 = vsel %vm449_vm3, %v444_v35, 0 }
 0x210   :  { %v448_v29 = vpop.permute.xlu0 %447 }
 0x211   :  { %9417 = vmatprep.subr.msk.bf16.mxu0 %vm449_vm3, %v448_v29  ;;  %v472_v32 = vsel %vm449_vm3, %v448_v29, 0 }
 0x212   :  { %8654 = vmatpush3.bf16.xpose.msra.mxu0 %v472_v32 }
 0x214   :  { %v446_v33 = vpop.permute.xlu0 %445 }
 0x215   :  { %9418 = vmatprep.subr.msk.bf16.mxu0 %vm449_vm3, %v446_v33  ;;  %v469_v34 = vsel %vm449_vm3, %v446_v33, 0 }
 0x218   :  { %v442_v41 = vpop.permute.xlu0 %441 }
 0x219   :  { %v463_v46 = vsel %vm449_vm3, %v442_v41, 0 }
 0x21a   :  { %8656 = vmatpush3.bf16.xpose.msra.mxu0 %v469_v34 }
 0x21b   :  { %9419 = vmatprep.subr.msk.bf16.mxu0 %vm449_vm3, %v444_v35 }
 0x21c   :  { %v546_v49 = vpop.permute.xlu0 %545 }
 0x21d   :  { %v567_v54 = vsel %vm449_vm3, %v546_v49, 0 }
 0x220   :  { %v550_v36 = vpop.permute.xlu1 %549  ;;  %v828_v57 = vpop.permute.xlu0 %827 }
 0x221   :  { %9421 = vmatprep.subr.msk.bf16.mxu1 %vm449_vm3, %v550_v36  ;;  %v573_v40 = vsel %vm449_vm3, %v550_v36, 0 }
 0x222   :  { %8658 = vmatpush3.bf16.xpose.msra.mxu0 %v466_v39  ;;  %8670 = vmatpush3.bf16.xpose.msra.mxu1 %v573_v40 }
 0x223   :  { %9420 = vmatprep.subr.msk.bf16.mxu0 %vm449_vm3, %v442_v41 }
 0x224   :  { %v548_v42 = vpop.permute.xlu1 %547  ;;  %v1024_v2 = vpop.permute.xlu0 %1023 }
 0x225   :  { %9422 = vmatprep.subr.msk.bf16.mxu1 %vm449_vm3, %v548_v42  ;;  %v570_v47 = vsel %vm449_vm3, %v548_v42, 0  ;;  %v1046_v4 = vsel %vm449_vm3, %v1024_v2, 0 }
 0x228   :  { %v544_v43 = vpop.permute.xlu1 %543  ;;  %v10489_v7 = vpop.permute.xlu0 %914 }
 0x229   :  { %v564_v61 = vsel %vm449_vm3, %v544_v43, 0 }
 0x22a   :  { %8660 = vmatpush3.bf16.xpose.msra.mxu0 %v463_v46  ;;  %8672 = vmatpush3.bf16.xpose.msra.mxu1 %v570_v47 }
 0x22b   :  { %9423 = vmatprep.subr.msk.bf16.mxu1 %vm449_vm3, %v546_v49 }
 0x22c   :  { %v832_v51 = vpop.permute.xlu1 %831  ;;  %v1020_v10 = vpop.permute.xlu0 %1019 }
 0x22d   :  { %v1040_v11 = vsel %vm449_vm3, %v1020_v10, 0 }
 0x230   :  { %v830_v52 = vpop.permute.xlu1 %829 }
 0x231   :  { %8662 = vmatmul.mubr.msk.bf16.vlgmr.msra.gmra.mxu0 %vm449_vm3, %v10390_v6 }
 0x232   :  { %8665 = vmatprep.mubr.msk.bf16.mxu0 %vm449_vm3, %v10402_v15  ;;  %8674 = vmatpush3.bf16.xpose.msra.mxu1 %v567_v54 }
 0x233   :  { %9424 = vmatprep.subr.msk.bf16.mxu1 %vm449_vm3, %v544_v43 }
 0x234   :  { %v826_v56 = vpop.permute.xlu1 %825 }
 0x238   :  { %v10473_v59 = vpop.permute.xlu1 %920 }
 0x239   :  { %8666 = vmatmul.mubr.msk.bf16.gmra.mxu0 %vm449_vm3, %v10398_v12 }
 0x23a   :  { %8676 = vmatpush3.bf16.xpose.msra.mxu1 %v564_v61 }
 0x23b   :  { %8685 = vmatprep.subr.bf16.mxu1 %v832_v51 }
 0x23c   :  { %v1026_v62 = vpop.permute.xlu1 %1025 }
 0x23d   :  { %9425 = vmatprep.subr.msk.bf16.mxu0 %vm449_vm3, %v1026_v62  ;;  %v1049_v0 = vsel %vm449_vm3, %v1026_v62, 0 }
 0x23e   :  { %8718 = vmatpush3.bf16.xpose.msra.mxu0 %v1049_v0 }
 0x23f   :  { %9426 = vmatprep.subr.msk.bf16.mxu0 %vm449_vm3, %v1024_v2 }
 0x240   :  { %v10481_v3 = vpop.permute.xlu1 %916 }
 0x241   :  { %8678 = vmatmul.mubr.msk.bf16.vlgmr.msra.gmra.mxu1 %vm449_vm3, %v10410_v21 }
 0x242   :  { %8681 = vmatprep.mubr.msk.bf16.mxu1 %vm449_vm3, %v10422_v28  ;;  %8686 = vmatpush3.bf16.msra.mxu1 %v832_v51 }
 0x243   :  { %8687 = vmatprep.subr.bf16.mxu1 %v830_v52 }
 0x244   :  { %v1022_v5 = vpop.permute.xlu1 %1021 }
 0x245   :  { %v1043_v9 = vsel %vm449_vm3, %v1022_v5, 0 }
 0x246   :  { %8688 = vmatpush3.bf16.msra.mxu1 %v830_v52  ;;  %8720 = vmatpush3.bf16.xpose.msra.mxu0 %v1046_v4 }
 0x247   :  { %8689 = vmatprep.subr.bf16.mxu1 %v828_v57  ;;  %9427 = vmatprep.subr.msk.bf16.mxu0 %vm449_vm3, %v1022_v5 }
 0x248   :  { %v10553_v4 = vpop.permute.xlu1 %1130 }
 0x249   :  { %8682 = vmatmul.mubr.msk.bf16.gmra.mxu1 %vm449_vm3, %v10416_v26 }
 0x24a   :  { %8690 = vmatpush3.bf16.msra.mxu1 %v828_v57 }
 0x24b   :  { %8691 = vmatprep.subr.bf16.mxu1 %v826_v56 }
 0x24c   :  { %v10555_v5 = vpop.permute.xlu1 %918 }
 0x24e   :  { %8692 = vmatpush3.bf16.msra.mxu1 %v826_v56  ;;  %8722 = vmatpush3.bf16.xpose.msra.mxu0 %v1043_v9 }
 0x24f   :  { %8701 = vmatprep.subr.bf16.mxu1 %v10473_v59  ;;  %9428 = vmatprep.subr.msk.bf16.mxu0 %vm449_vm3, %v1020_v10 }
 0x256   :  { %8724 = vmatpush3.bf16.xpose.msra.mxu0 %v1040_v11  ;;  %v10557_v11 = vpop.permute.xlu1 %1128 }
 0x2f1   :  { %v8663_v13 = vpop.f32.mrf.mxu0 }
 0x2f2   :  { %v647_v14 = vsel %vm640_vm4, %v8663_v13, -inf }
 0x2f3   :  { %648 = vmax.xlane.f32.xlu0 %v647_v14  ;;  %v508_v16 = vpop.f32.mrf.mxu0 }
 0x2f4   :  { %v641_v18 = vsel %vm640_vm4, %v508_v16, -inf }
 0x2f5   :  { %v10498_v17 = vpop.f32.mrf.mxu0 }
 0x2f6   :  { %v650_v27 = vsel %vm640_vm4, %v10498_v17, -inf }
 0x2f7   :  { %642 = vmax.xlane.f32.xlu0 %v641_v18  ;;  %v511_v20 = vpop.f32.mrf.mxu0 }
 0x2f8   :  { %v644_v22 = vsel %vm640_vm4, %v511_v20, -inf }
 0x2f9   :  { %v10502_v25 = vpop.f32.mrf.mxu0  ;;  %645 = vmax.xlane.f32.xlu1 %v644_v22 }
 0x2fa   :  { %v659_v32 = vsel %vm640_vm4, %v10502_v25, -inf }
 0x2fb   :  { %651 = vmax.xlane.f32.xlu0 %v650_v27  ;;  %v10506_v29 = vpop.f32.mrf.mxu0 }
 0x2fc   :  { %v653_v36 = vsel %vm640_vm4, %v10506_v29, -inf }
 0x2fd   :  { %v8668_v33 = vpop.f32.mrf.mxu0  ;;  %660 = vmax.xlane.f32.xlu1 %v659_v32 }
 0x2fe   :  { %v662_v34 = vsel %vm640_vm4, %v8668_v33, -inf }
 0x2ff   :  { %663 = vmax.xlane.f32.xlu0 %v662_v34  ;;  %v10511_v35 = vpop.f32.mrf.mxu0 }
 0x300   :  { %v656_v40 = vsel %vm640_vm4, %v10511_v35, -inf }
 0x301   :  { %654 = vmax.xlane.f32.xlu1 %v653_v36  ;;  %v10515_v39 = vpop.f32.mrf.mxu1 }
 0x302   :  { %v671_v42 = vsel %vm640_vm4, %v10515_v39, -inf }
 0x303   :  { %657 = vmax.xlane.f32.xlu0 %v656_v40  ;;  %v10519_v41 = vpop.f32.mrf.mxu1 }
 0x304   :  { %v665_v49 = vsel %vm640_vm4, %v10519_v41, -inf }
 0x305   :  { %672 = vmax.xlane.f32.xlu1 %v671_v42  ;;  %v10523_v43 = vpop.f32.mrf.mxu1 }
 0x306   :  { %v674_v46 = vsel %vm640_vm4, %v10523_v43, -inf }
 0x307   :  { %675 = vmax.xlane.f32.xlu0 %v674_v46  ;;  %v10527_v47 = vpop.f32.mrf.mxu1 }
 0x308   :  { %v668_v52 = vsel %vm640_vm4, %v10527_v47, -inf }
 0x309   :  { %666 = vmax.xlane.f32.xlu1 %v665_v49  ;;  %v10531_v51 = vpop.f32.mrf.mxu1 }
 0x30a   :  { %v683_v54 = vsel %vm640_vm4, %v10531_v51, -inf }
 0x30b   :  { %669 = vmax.xlane.f32.xlu0 %v668_v52  ;;  %v10537_v56 = vpop.f32.mrf.mxu1 }
 0x30c   :  { %v677_v57 = vsel %vm640_vm4, %v10537_v56, -inf }
 0x30d   :  { %684 = vmax.xlane.f32.xlu1 %v683_v54  ;;  %v10545_v61 = vpop.f32.mrf.mxu1 }
 0x30e   :  { %v686_v62 = vsel %vm640_vm4, %v10545_v61, -inf }
 0x30f   :  { %v10549_v0 = vpop.f32.mrf.mxu1 }
 0x310   :  { %v680_v2 = vsel %vm640_vm4, %v10549_v0, -inf }
 0x311   :  { %678 = vmax.xlane.f32.xlu1 %v677_v57 }
 0x321   :  { %1011 = vrot.lane.b32.xlu0 %v10392_v8, %s10184_s8 }
 0x322   :  { %1013 = vrot.lane.b32.xlu1 %v10390_v6, %s10184_s8 }
 0x340   :  { %687 = vmax.xlane.f32.xlu0 %v686_v62 }
 0x344   :  { %681 = vmax.xlane.f32.xlu0 %v680_v2 }
 0x37c   :  { %v649_v9 = vpop.xlane.xlu0 %648 }
 0x37d   :  { %v691_v10 = vsub.f32 %v8663_v13, %v649_v9 }
 0x37f   :  { %v709_v14 = vmul.f32 1.442695, %v691_v10 }
 0x380   :  { %v643_v18 = vpop.xlane.xlu0 %642 }
 0x381   :  { %9519 = vpow2.f32 %v709_v14  ;;  %v689_v22 = vsub.f32 %v508_v16, %v643_v18 }
 0x382   :  { %v646_v27 = vpop.xlane.xlu1 %645 }
 0x383   :  { %v705_v32 = vmul.f32 1.442695, %v689_v22  ;;  %v690_v34 = vsub.f32 %v511_v20, %v646_v27 }
 0x384   :  { %v652_v36 = vpop.xlane.xlu0 %651 }
 0x385   :  { %9521 = vpow2.f32 %v705_v32  ;;  %v692_v40 = vsub.f32 %v10498_v17, %v652_v36  ;;  %v707_v42 = vmul.f32 1.442695, %v690_v34 }
 0x386   :  { %v661_v46 = vpop.xlane.xlu1 %660 }
 0x387   :  { %v711_v49 = vmul.f32 1.442695, %v692_v40  ;;  %v695_v52 = vsub.f32 %v10502_v25, %v661_v46 }
 0x388   :  { %v664_v54 = vpop.xlane.xlu0 %663 }
 0x389   :  { %9523 = vpow2.f32 %v711_v49  ;;  %v717_v13 = vmul.f32 1.442695, %v695_v52  ;;  %v696_v57 = vsub.f32 %v8668_v33, %v664_v54 }
 0x38a   :  { %9525 = vpow2.f32 %v707_v42  ;;  %v655_v62 = vpop.xlane.xlu1 %654 }
 0x38b   :  { %9527 = vpow2.f32 %v717_v13  ;;  %v719_v16 = vmul.f32 1.442695, %v696_v57  ;;  %v693_v2 = vsub.f32 %v10506_v29, %v655_v62 }
 0x38c   :  { %v658_v20 = vpop.xlane.xlu0 %657 }
 0x38d   :  { %v713_v9 = vmul.f32 1.442695, %v693_v2  ;;  %v694_v10 = vsub.f32 %v10511_v35, %v658_v20  ;;  %9529 = vpow2.f32 %v719_v16 }
 0x38e   :  { %v10563_v17 = vpop.eup %9519  ;;  %v673_v14 = vpop.xlane.xlu1 %672 }
 0x38f   :  { %9531 = vpow2.f32 %v713_v9  ;;  %v715_v25 = vmul.f32 1.442695, %v694_v10  ;;  %v699_v18 = vsub.f32 %v10515_v39, %v673_v14  ;;  %v743_v33 = vsel %vm640_vm4, %v10563_v17, 0.0 }
 0x390   :  { %v676_v22 = vpop.xlane.xlu0 %675  ;;  %744 = vadd.xlane.f32.xlu1 %v743_v33 }
 0x391   :  { %9533 = vpow2.f32 %v715_v25  ;;  %v725_v32 = vmul.f32 1.442695, %v699_v18  ;;  %v700_v46 = vsub.f32 %v10523_v43, %v676_v22 }
 0x392   :  { %v10568_v27 = vpop.eup %9521  ;;  %v667_v29 = vpop.xlane.xlu1 %666 }
 0x393   :  { %v697_v35 = vsub.f32 %v10519_v41, %v667_v29  ;;  %v737_v34 = vsel %vm640_vm4, %v10568_v27, 0.0  ;;  %9535 = vpow2.f32 %v725_v32  ;;  %v727_v16 = vmul.f32 1.442695, %v700_v46 }
 0x394   :  { %v670_v36 = vpop.xlane.xlu0 %669  ;;  %738 = vadd.xlane.f32.xlu1 %v737_v34 }
 0x395   :  { %v721_v49 = vmul.f32 1.442695, %v697_v35  ;;  %v698_v43 = vsub.f32 %v10527_v47, %v670_v36 }
 0x396   :  { %v10573_v40 = vpop.eup %9523  ;;  %v685_v39 = vpop.xlane.xlu1 %684 }
 0x397   :  { %v10575_v42 = vpop.eup %9525  ;;  %v746_v52 = vsel %vm640_vm4, %v10573_v40, 0.0  ;;  %9537 = vpow2.f32 %v721_v49  ;;  %v723_v14 = vmul.f32 1.442695, %v698_v43 }
 0x398   :  { %v10580_v54 = vpop.eup %9527  ;;  %v1012_v41 = vpop.permute.xlu0 %1011  ;;  %747 = vadd.xlane.f32.xlu0 %v746_v52  ;;  %v740_v2 = vsel %vm640_vm4, %v10575_v42, 0.0  ;;  %9539 = vpow2.f32 %v727_v16 }
 0x399   :  { %8725 = vmatprep.mubr.msk.bf16.mxu0 %vm449_vm3, %v1012_v41  ;;  %v755_v13 = vsel %vm640_vm4, %v10580_v54, 0.0  ;;  %9541 = vpow2.f32 %v723_v14 }
 0x39a   :  { %756 = vadd.xlane.f32.xlu1 %v755_v13  ;;  %v679_v57 = vpop.xlane.xlu1 %678  ;;  %v10585_v62 = vpop.eup %9529 }
 0x39b   :  { %v758_v25 = vsel %vm640_vm4, %v10585_v62, 0.0  ;;  %v701_v49 = vsub.f32 %v10537_v56, %v679_v57 }
 0x39c   :  { %v10590_v20 = vpop.eup %9531  ;;  %741 = vadd.xlane.f32.xlu0 %v740_v2  ;;  %v703_v2 = vsub.f32 %v10531_v51, %v685_v39 }
 0x39d   :  { %v749_v9 = vsel %vm640_vm4, %v10590_v20, 0.0  ;;  %v729_v52 = vmul.f32 1.442695, %v701_v49 }
 0x39e   :  { %750 = vadd.xlane.f32.xlu1 %v749_v9  ;;  %v1014_v10 = vpop.permute.xlu1 %1013  ;;  %v10597_v18 = vpop.eup %9533  ;;  %v733_v56 = vmul.f32 1.442695, %v703_v2 }
 0x39f   :  { %8726 = vmatmul.mubr.msk.bf16.vlgmr.msra.gmra.mxu0 %vm449_vm3, %v1014_v10  ;;  %v752_v47 = vsel %vm640_vm4, %v10597_v18, 0.0  ;;  %9543 = vpow2.f32 %v729_v52 }
 0x3a0   :  { %759 = vadd.xlane.f32.xlu0 %v758_v25  ;;  %v10601_v33 = vpop.eup %9535 }
 0x3a1   :  { %v767_v22 = vsel %vm640_vm4, %v10601_v33, 0.0 }
 0x3a4   :  { %753 = vadd.xlane.f32.xlu0 %v752_v47  ;;  %v10605_v29 = vpop.eup %9537 }
 0x3a5   :  { %v761_v32 = vsel %vm640_vm4, %v10605_v29, 0.0  ;;  %v10609_v35 = vpop.eup %9539 }
 0x3a6   :  { %v770_v34 = vsel %vm640_vm4, %v10609_v35, 0.0  ;;  %v10615_v36 = vpop.eup %9541 }
 0x3a7   :  { %v764_v46 = vsel %vm640_vm4, %v10615_v36, 0.0 }
 0x3a8   :  { %768 = vadd.xlane.f32.xlu0 %v767_v22 }
 0x3ac   :  { %762 = vadd.xlane.f32.xlu0 %v761_v32  ;;  %v10623_v43 = vpop.eup %9543 }
 0x3ad   :  { %v773_v10 = vsel %vm640_vm4, %v10623_v43, 0.0 }
 0x3af   :  { %1015 = vrot.lane.b32.xlu1 %v10402_v15, %s10184_s8 }
 0x3b0   :  { %771 = vadd.xlane.f32.xlu0 %v770_v34 }
 0x3b4   :  { %765 = vadd.xlane.f32.xlu0 %v764_v46 }
 0x3c9   :  { %v688_v41 = vpop.xlane.xlu0 %687 }
 0x3ca   :  { %v704_v13 = vsub.f32 %v10545_v61, %v688_v41  ;;  %1126 = vrot.lane.b32.xlu0 %v10410_v21, %s10183_s30 }
 0x3cc   :  { %v735_v16 = vmul.f32 1.442695, %v704_v13 }
 0x3cd   :  { %v682_v9 = vpop.xlane.xlu0 %681 }
 0x3ce   :  { %9545 = vpow2.f32 %v735_v16  ;;  %v702_v57 = vsub.f32 %v10549_v0, %v682_v9 }
 0x3cf   :  { %9547 = vpow2.f32 %v733_v56 }
 0x3d0   :  { %v731_v14 = vmul.f32 1.442695, %v702_v57 }
 0x3d2   :  { %9549 = vpow2.f32 %v731_v14 }
 0x3d3   :  { %774 = vadd.xlane.f32.xlu1 %v773_v10 }
 0x3db   :  { %v10629_v61 = vpop.eup %9545 }
 0x3dc   :  { %v782_v25 = vsel %vm640_vm4, %v10629_v61, 0.0  ;;  %v10633_v47 = vpop.eup %9547 }
 0x3dd   :  { %783 = vadd.xlane.f32.xlu1 %v782_v25  ;;  %v779_v51 = vsel %vm640_vm4, %v10633_v47, 0.0 }
 0x3df   :  { %v10637_v39 = vpop.eup %9549 }
 0x3e0   :  { %v776_v0 = vsel %vm640_vm4, %v10637_v39, 0.0 }
 0x3e9   :  { %780 = vadd.xlane.f32.xlu0 %v779_v51 }
 0x3ed   :  { %777 = vadd.xlane.f32.xlu0 %v776_v0 }
 0x3ee   :  { %1124 = vrot.lane.b32.xlu1 %v10406_v19, %s10183_s30 }
 0x3f2   :  { %1118 = vrot.lane.b32.xlu1 %v10410_v21, %s10184_s8 }
 0x3f6   :  { %1122 = vrot.lane.b32.xlu1 %v10416_v26, %s10184_s8 }
 0x403   :  { %1017 = vrot.lane.b32.xlu0 %v10398_v12, %s10184_s8 }
 0x407   :  { %1116 = vrot.lane.b32.xlu0 %v10406_v19, %s10184_s8 }
 0x40b   :  { %1120 = vrot.lane.b32.xlu0 %v10422_v28, %s10184_s8 }
 0x419   :  { %v745_v22 = vpop.xlane.xlu1 %744 }
 0x41d   :  { %v739_v32 = vpop.xlane.xlu1 %738 }
 0x421   :  { %v748_v34 = vpop.xlane.xlu0 %747 }
 0x422   :  { %9551 = vrcp.f32 %v748_v34 }
 0x423   :  { %v757_v46 = vpop.xlane.xlu1 %756  ;;  %9553 = vrcp.f32 %v739_v32 }
 0x424   :  { %9555 = vrcp.f32 %v745_v22 }
 0x425   :  { %v742_v49 = vpop.xlane.xlu0 %741 }
 0x426   :  { %9557 = vrcp.f32 %v742_v49 }
 0x427   :  { %v751_v52 = vpop.xlane.xlu1 %750 }
 0x429   :  { %v760_v41 = vpop.xlane.xlu0 %759 }
 0x42a   :  { %9559 = vrcp.f32 %v760_v41 }
 0x42b   :  { %v1016_v13 = vpop.permute.xlu1 %1015  ;;  %9561 = vrcp.f32 %v751_v52 }
 0x42c   :  { %8729 = vmatprep.mubr.msk.bf16.mxu0 %vm449_vm3, %v1016_v13  ;;  %9563 = vrcp.f32 %v757_v46 }
 0x42d   :  { %v754_v16 = vpop.xlane.xlu0 %753 }
 0x42e   :  { %9565 = vrcp.f32 %v754_v16 }
 0x42f   :  { %v9552_v2 = vpop.eup %9551 }
 0x430   :  { %v9554_v9 = vpop.eup %9553  ;;  %v804_v14 = vmul.f32 %v9552_v2, %v10573_v40 }
 0x431   :  { %v769_v10 = vpop.xlane.xlu0 %768  ;;  %v9556_v56 = vpop.eup %9555  ;;  %v801_v25 = vmul.f32 %v9554_v9, %v10568_v27 }
 0x432   :  { %v803_v0 = vmul.f32 %v9556_v56, %v10563_v17 }
 0x433   :  { %v9558_v57 = vpop.eup %9557 }
 0x434   :  { %v802_v51 = vmul.f32 %v9558_v57, %v10575_v42  ;;  %v818_v34 = vpack.c.bf16 %v804_v14, %v803_v0 }
 0x435   :  { %v763_v22 = vpop.xlane.xlu0 %762 }
 0x436   :  { %v817_v32 = vpack.c.bf16 %v802_v51, %v801_v25 }
 0x437   :  { %v9560_v49 = vpop.eup %9559 }
 0x438   :  { %8693 = vmatprep.mubr.msk.bf16.mxu1 %vm640_vm4, %v817_v32  ;;  %v9562_v46 = vpop.eup %9561  ;;  %v808_v27 = vmul.f32 %v9560_v49, %v10585_v62 }
 0x439   :  { %v772_v52 = vpop.xlane.xlu0 %771  ;;  %8694 = vmatmul.mubr.msk.bf16.vlgmr.msra.gmra.mxu1 %vm640_vm4, %v818_v34  ;;  %v9564_v41 = vpop.eup %9563  ;;  %v805_v17 = vmul.f32 %v9562_v46, %v10590_v20 }
 0x43a   :  { %8702 = vmatpush3.bf16.msra.mxu1 %v10473_v59  ;;  %9567 = vrcp.f32 %v772_v52  ;;  %v807_v16 = vmul.f32 %v9564_v41, %v10580_v54 }
 0x43b   :  { %v9566_v40 = vpop.eup %9565  ;;  %8703 = vmatprep.subr.bf16.mxu1 %v10555_v5  ;;  %9569 = vrcp.f32 %v763_v22 }
 0x43c   :  { %v806_v42 = vmul.f32 %v9566_v40, %v10597_v18  ;;  %9571 = vrcp.f32 %v769_v10  ;;  %v820_v59 = vpack.c.bf16 %v808_v27, %v807_v16 }
 0x43d   :  { %v766_v13 = vpop.xlane.xlu0 %765 }
 0x43e   :  { %9573 = vrcp.f32 %v766_v13  ;;  %8704 = vmatpush3.bf16.msra.mxu1 %v10555_v5  ;;  %v819_v2 = vpack.c.bf16 %v806_v42, %v805_v17 }
 0x43f   :  { %8705 = vmatprep.subr.bf16.mxu1 %v10481_v3 }
 0x440   :  { %8697 = vmatprep.mubr.msk.bf16.mxu1 %vm640_vm4, %v819_v2 }
 0x441   :  { %8698 = vmatmul.mubr.msk.bf16.gmra.mxu1 %vm640_vm4, %v820_v59 }
 0x442   :  { %8706 = vmatpush3.bf16.msra.mxu1 %v10481_v3 }
 0x443   :  { %8707 = vmatprep.subr.bf16.mxu1 %v10489_v7 }
 0x446   :  { %8708 = vmatpush3.bf16.msra.mxu1 %v10489_v7  ;;  %v1154_v7 = vsel %vm449_vm3, %v10553_v4, 0 }
 0x447   :  { %9429 = vmatprep.subr.msk.bf16.mxu1 %vm449_vm3, %v10553_v4  ;;  %v9568_v54 = vpop.eup %9567 }
 0x448   :  { %v9570_v62 = vpop.eup %9569  ;;  %v812_v18 = vmul.f32 %v9568_v54, %v10609_v35  ;;  %v1127_v35 = vpop.permute.xlu0 %1126 }
 0x449   :  { %v9572_v5 = vpop.eup %9571  ;;  %v809_v9 = vmul.f32 %v9570_v62, %v10605_v29  ;;  %v1151_v29 = vsel %vm449_vm3, %v10557_v11, 0  ;;  %v1148_v14 = vsel %vm449_vm3, %v1127_v35, 0 }
 0x44a   :  { %v811_v56 = vmul.f32 %v9572_v5, %v10601_v33 }
 0x44b   :  { %v9574_v20 = vpop.eup %9573 }
 0x44c   :  { %v810_v10 = vmul.f32 %v9574_v20, %v10615_v36  ;;  %v822_v57 = vpack.c.bf16 %v812_v18, %v811_v56 }
 0x44e   :  { %v821_v3 = vpack.c.bf16 %v810_v10, %v809_v9 }
 0x450   :  { %8709 = vmatprep.mubr.msk.bf16.mxu1 %vm640_vm4, %v821_v3 }
 0x451   :  { %8710 = vmatmul.mubr.msk.bf16.vlgmr.msra.gmra.mxu1 %vm640_vm4, %v822_v57 }
 0x452   :  { %8734 = vmatpush3.bf16.xpose.msra.mxu1 %v1154_v7 }
 0x453   :  { %9430 = vmatprep.subr.msk.bf16.mxu1 %vm449_vm3, %v10557_v11 }
 0x45a   :  { %8736 = vmatpush3.bf16.xpose.msra.mxu1 %v1151_v29 }
 0x45b   :  { %9431 = vmatprep.subr.msk.bf16.mxu1 %vm449_vm3, %v1127_v35 }
 0x45c   :  { %v775_v25 = vpop.xlane.xlu1 %774 }
 0x45f   :  { %v10688_v33 = vpop.f32.mrf.mxu0 }
 0x460   :  { %v1227_v11 = vsel %vm640_vm4, %v10688_v33, -inf }
 0x461   :  { %v10690_v36 = vpop.f32.mrf.mxu0 }
 0x462   :  { %8738 = vmatpush3.bf16.xpose.msra.mxu1 %v1148_v14  ;;  %v1221_v4 = vsel %vm640_vm4, %v10690_v36, -inf }
 0x463   :  { %1222 = vmax.xlane.f32.xlu0 %v1221_v4  ;;  %v8728_v51 = vpop.f32.mrf.mxu0 }
 0x464   :  { %v1230_v49 = vsel %vm640_vm4, %v8728_v51, -inf }
 0x465   :  { %v1088_v0 = vpop.f32.mrf.mxu0 }
 0x466   :  { %v784_v22 = vpop.xlane.xlu1 %783  ;;  %v1224_v32 = vsel %vm640_vm4, %v1088_v0, -inf }
 0x467   :  { %1228 = vmax.xlane.f32.xlu0 %v1227_v11  ;;  %1225 = vmax.xlane.f32.xlu1 %v1224_v32 }
 0x46a   :  { %v1125_v34 = vpop.permute.xlu1 %1124 }
 0x46b   :  { %1231 = vmax.xlane.f32.xlu0 %v1230_v49  ;;  %9432 = vmatprep.subr.msk.bf16.mxu1 %vm449_vm3, %v1125_v34  ;;  %v1145_v46 = vsel %vm449_vm3, %v1125_v34, 0 }
 0x46c   :  { %8740 = vmatpush3.bf16.xpose.msra.mxu1 %v1145_v46 }
 0x46e   :  { %v1119_v18 = vpop.permute.xlu1 %1118 }
 0x472   :  { %v781_v52 = vpop.xlane.xlu0 %780 }
 0x473   :  { %9575 = vrcp.f32 %v781_v52 }
 0x474   :  { %9577 = vrcp.f32 %v775_v25 }
 0x475   :  { %9579 = vrcp.f32 %v784_v22 }
 0x476   :  { %v778_v41 = vpop.xlane.xlu0 %777 }
 0x477   :  { %9581 = vrcp.f32 %v778_v41 }
 0x47a   :  { %v1018_v40 = vpop.permute.xlu0 %1017 }
 0x47b   :  { %8730 = vmatmul.mubr.msk.bf16.gmra.mxu0 %vm449_vm3, %v1018_v40 }
 0x47e   :  { %v1117_v20 = vpop.permute.xlu0 %1116 }
 0x480   :  { %v9576_v27 = vpop.eup %9575 }
 0x481   :  { %v9578_v17 = vpop.eup %9577  ;;  %v815_v16 = vmul.f32 %v9576_v27, %v10633_v47 }
 0x482   :  { %v9580_v42 = vpop.eup %9579  ;;  %v813_v2 = vmul.f32 %v9578_v17, %v10623_v43  ;;  %v1121_v9 = vpop.permute.xlu0 %1120 }
 0x483   :  { %v816_v54 = vmul.f32 %v9580_v42, %v10629_v61  ;;  %v1123_v43 = vpop.permute.xlu1 %1122 }
 0x484   :  { %v9582_v13 = vpop.eup %9581 }
 0x485   :  { %v814_v59 = vmul.f32 %v9582_v13, %v10637_v39  ;;  %v824_v5 = vpack.c.bf16 %v816_v54, %v815_v16 }
 0x487   :  { %v823_v62 = vpack.c.bf16 %v814_v59, %v813_v2 }
 0x489   :  { %8713 = vmatprep.mubr.msk.bf16.mxu1 %vm640_vm4, %v823_v62 }
 0x48a   :  { %8714 = vmatmul.mubr.msk.bf16.gmra.mxu1 %vm640_vm4, %v824_v5 }
 0x48b   :  { %8741 = vmatprep.mubr.msk.bf16.mxu1 %vm449_vm3, %v1117_v20 }
 0x492   :  { %8742 = vmatmul.mubr.msk.bf16.vlgmr.msra.gmra.mxu1 %vm449_vm3, %v1119_v18 }
 0x493   :  { %8745 = vmatprep.mubr.msk.bf16.mxu1 %vm449_vm3, %v1121_v9 }
 0x49a   :  { %8746 = vmatmul.mubr.msk.bf16.gmra.mxu1 %vm449_vm3, %v1123_v43 }
 0x4ec   :  { %v1223_v11 = vpop.xlane.xlu0 %1222 }
 0x4f0   :  { %v1229_v32 = vpop.xlane.xlu0 %1228  ;;  %v1226_v46 = vpop.xlane.xlu1 %1225 }
 0x4f1   :  { %v1270_v52 = vsub.f32 %v1088_v0, %v1226_v46  ;;  %v1269_v46 = vsub.f32 %v10690_v36, %v1223_v11 }
 0x4f3   :  { %v1287_v40 = vmul.f32 1.442695, %v1270_v52 }
 0x4f4   :  { %v1232_v34 = vpop.xlane.xlu0 %1231 }
 0x4f5   :  { %v1272_v49 = vsub.f32 %v8728_v51, %v1232_v34 }
 0x4f7   :  { %v1291_v41 = vmul.f32 1.442695, %v1272_v49  ;;  %v1271_v49 = vsub.f32 %v10688_v33, %v1229_v32 }
 0x4f9   :  { %v10712_v47 = vpop.f32.mrf.mxu1  ;;  %9583 = vpow2.f32 %v1291_v41  ;;  %v1289_v52 = vmul.f32 1.442695, %v1271_v49  ;;  %v1285_v41 = vmul.f32 1.442695, %v1269_v46 }
 0x4fa   :  { %9585 = vpow2.f32 %v1287_v40 }
 0x4fb   :  { %v10714_v61 = vpop.f32.mrf.mxu1  ;;  %9587 = vpow2.f32 %v1289_v52 }
 0x4fc   :  { %9589 = vpow2.f32 %v1285_v41 }
 0x4fd   :  { %v10716_v39 = vpop.f32.mrf.mxu1 }
 0x4ff   :  { %v10720_v56 = vpop.f32.mrf.mxu1 }
 0x501   :  { %v10722_v3 = vpop.f32.mrf.mxu1 }
 0x503   :  { %v10724_v57 = vpop.f32.mrf.mxu1 }
 0x505   :  { %v10726_v7 = vpop.f32.mrf.mxu1 }
 0x506   :  { %v10744_v0 = vpop.eup %9583 }
 0x507   :  { %v10730_v35 = vpop.f32.mrf.mxu1  ;;  %v1326_v5 = vsel %vm640_vm4, %v10744_v0, 0.0  ;;  %v10752_v20 = vpop.eup %9585 }
 0x508   :  { %v1320_v43 = vsel %vm640_vm4, %v10752_v20, 0.0  ;;  %v10766_v40 = vpop.eup %9587 }
 0x511   :  { %v10732_v14 = vpop.f32.mrf.mxu1 }
 0x513   :  { %v10734_v25 = vpop.f32.mrf.mxu1 }
 0x515   :  { %v10736_v4 = vpop.f32.mrf.mxu1 }
 0x517   :  { %v10746_v54 = vpop.f32.mrf.mxu1 }
 0x53b   :  { %v8731_v27 = vpop.f32.mrf.mxu0 }
 0x53c   :  { %v1239_v2 = vsel %vm640_vm4, %v8731_v27, -inf }
 0x53d   :  { %v1101_v17 = vpop.f32.mrf.mxu0 }
 0x53e   :  { %v1233_v42 = vsel %vm640_vm4, %v1101_v17, -inf }
 0x53f   :  { %1234 = vmax.xlane.f32.xlu1 %v1233_v42  ;;  %v8732_v13 = vpop.f32.mrf.mxu0  ;;  %v1323_v42 = vsel %vm640_vm4, %v10766_v40, 0.0 }
 0x540   :  { %v1242_v51 = vsel %vm640_vm4, %v8732_v13, -inf }
 0x541   :  { %v1104_v16 = vpop.f32.mrf.mxu0 }
 0x542   :  { %v1236_v59 = vsel %vm640_vm4, %v1104_v16, -inf }
 0x543   :  { %1240 = vmax.xlane.f32.xlu1 %v1239_v2  ;;  %1237 = vmax.xlane.f32.xlu0 %v1236_v59  ;;  %v10770_v2 = vpop.eup %9589 }
 0x544   :  { %v1317_v59 = vsel %vm640_vm4, %v10770_v2, 0.0 }
 0x547   :  { %1243 = vmax.xlane.f32.xlu0 %v1242_v51 }
 0x54a   :  { %v10748_v62 = vpop.f32.mrf.mxu1 }
 0x54b   :  { %1327 = vadd.xlane.f32.xlu0 %v1326_v5 }
 0x54c   :  { %v10754_v18 = vpop.f32.mrf.mxu1 }
 0x54e   :  { %v10756_v9 = vpop.f32.mrf.mxu1 }
 0x54f   :  { %1321 = vadd.xlane.f32.xlu0 %v1320_v43 }
 0x550   :  { %v10774_v22 = vpop.f32.mrf.mxu1 }
 0x554   :  { %1411 = vrot.lane.b32.xlu1 %v10398_v12, %s10185_s1 }
 0x578   :  { %1324 = vadd.xlane.f32.xlu1 %v1323_v42 }
 0x57c   :  { %1318 = vadd.xlane.f32.xlu1 %v1317_v59 }
 0x5c8   :  { %v1235_v51 = vpop.xlane.xlu1 %1234 }
 0x5c9   :  { %v1273_v33 = vsub.f32 %v1101_v17, %v1235_v51  ;;  %v8743_v17 = vpop.f32.mrf.mxu1 }
 0x5cb   :  { %v1293_v49 = vmul.f32 1.442695, %v1273_v33  ;;  %v10776_v59 = vpop.f32.mrf.mxu1 }
 0x5cc   :  { %v1238_v32 = vpop.xlane.xlu0 %1237  ;;  %v1241_v36 = vpop.xlane.xlu1 %1240 }
 0x5cd   :  { %v1275_v11 = vsub.f32 %v8731_v27, %v1241_v36  ;;  %v1274_v5 = vsub.f32 %v1104_v16, %v1238_v32  ;;  %v8744_v16 = vpop.f32.mrf.mxu1 }
 0x5cf   :  { %v1297_v43 = vmul.f32 1.442695, %v1275_v11  ;;  %v1295_v34 = vmul.f32 1.442695, %v1274_v5 }
 0x5d0   :  { %v1244_v46 = vpop.xlane.xlu0 %1243  ;;  %v1412_v52 = vpop.permute.xlu1 %1411 }
 0x5d1   :  { %v1276_v41 = vsub.f32 %v8732_v13, %v1244_v46  ;;  %8749 = vmatprep.subr.bf16.mxu0 %v1412_v52  ;;  %9591 = vpow2.f32 %v1297_v43  ;;  %v1254_v46 = vsel %vm640_vm4, %v8744_v16, -inf }
 0x5d2   :  { %8750 = vmatpush3.bf16.msra.mxu0 %v1412_v52  ;;  %9593 = vpow2.f32 %v1293_v49  ;;  %v1251_v49 = vsel %vm640_vm4, %v8743_v17, -inf }
 0x5d3   :  { %v1299_v42 = vmul.f32 1.442695, %v1276_v41  ;;  %v1245_v41 = vsel %vm640_vm4, %v10776_v59, -inf }
 0x5d5   :  { %9595 = vpow2.f32 %v1299_v42 }
 0x5d6   :  { %9597 = vpow2.f32 %v1295_v34  ;;  %v10790_v34 = vpop.f32.mrf.mxu1 }
 0x5d7   :  { %v1248_v42 = vsel %vm640_vm4, %v10790_v34, -inf }
 0x5d8   :  { %v8747_v43 = vpop.f32.mrf.mxu1 }
 0x5da   :  { %v10798_v52 = vpop.f32.mrf.mxu1 }
 0x5de   :  { %v10778_v27 = vpop.eup %9591 }
 0x5df   :  { %v1335_v51 = vsel %vm640_vm4, %v10778_v27, 0.0  ;;  %v10782_v13 = vpop.eup %9593 }
 0x5e0   :  { %1336 = vadd.xlane.f32.xlu1 %v1335_v51  ;;  %v1329_v11 = vsel %vm640_vm4, %v10782_v13, 0.0  ;;  %v8748_v51 = vpop.f32.mrf.mxu1 }
 0x5e2   :  { %v10784_v33 = vpop.eup %9595 }
 0x5e3   :  { %v1338_v32 = vsel %vm640_vm4, %v10784_v33, 0.0  ;;  %v10788_v36 = vpop.eup %9597 }
 0x5e4   :  { %1339 = vadd.xlane.f32.xlu0 %v1338_v32  ;;  %1330 = vadd.xlane.f32.xlu1 %v1329_v11  ;;  %v1332_v5 = vsel %vm640_vm4, %v10788_v36, 0.0  ;;  %v1263_v32 = vsel %vm640_vm4, %v8747_v43, -inf  ;;  %v1266_v11 = vsel %vm640_vm4, %v8748_v51, -inf }
 0x5e8   :  { %1333 = vadd.xlane.f32.xlu0 %v1332_v5  ;;  %1252 = vmax.xlane.f32.xlu1 %v1251_v49  ;;  %v10806_v5 = vpop.f32.mrf.mxu1  ;;  %v1257_v49 = vsel %vm640_vm4, %v10798_v52, -inf }
 0x5ec   :  { %1255 = vmax.xlane.f32.xlu0 %v1254_v46  ;;  %1246 = vmax.xlane.f32.xlu1 %v1245_v41  ;;  %v1260_v46 = vsel %vm640_vm4, %v10806_v5, -inf  ;;  %v1328_v41 = vpop.xlane.xlu0 %1327 }
 0x5f0   :  { %1249 = vmax.xlane.f32.xlu0 %v1248_v42  ;;  %1264 = vmax.xlane.f32.xlu1 %v1263_v32  ;;  %v1322_v29 = vpop.xlane.xlu0 %1321 }
 0x5f1   :  { %9599 = vrcp.f32 %v1322_v29 }
 0x5f4   :  { %1267 = vmax.xlane.f32.xlu0 %v1266_v11  ;;  %1258 = vmax.xlane.f32.xlu1 %v1257_v49 }
 0x5f8   :  { %1261 = vmax.xlane.f32.xlu0 %v1260_v46 }
 0x5fe   :  { %v9600_v32 = vpop.eup %9599 }
 0x5ff   :  { %v1382_v46 = vmul.f32 %v9600_v32, %v10752_v20 }
 0x601   :  { %v1325_v10 = vpop.xlane.xlu1 %1324 }
 0x605   :  { %v1319_v42 = vpop.xlane.xlu1 %1318  ;;  %1409 = vrot.lane.b32.xlu1 %v10402_v15, %s10185_s1 }
 0x606   :  { %9601 = vrcp.f32 %v1319_v42 }
 0x609   :  { %1405 = vrot.lane.b32.xlu1 %v10392_v8, %s10185_s1 }
 0x60e   :  { %1407 = vrot.lane.b32.xlu0 %v10390_v6, %s10185_s1 }
 0x613   :  { %v9602_v11 = vpop.eup %9601 }
 0x614   :  { %v1381_v49 = vmul.f32 %v9602_v11, %v10770_v2 }
 0x616   :  { %v1397_v58 = vpack.c.bf16 %v1382_v46, %v1381_v49 }
 0x618   :  { %8757 = vmatprep.mubr.msk.bf16.mxu0 %vm640_vm4, %v1397_v58 }
 0x669   :  { %v1337_v29 = vpop.xlane.xlu1 %1336 }
 0x66d   :  { %v1340_v63 = vpop.xlane.xlu0 %1339  ;;  %v1331_v60 = vpop.xlane.xlu1 %1330 }
 0x671   :  { %v1334_v1 = vpop.xlane.xlu0 %1333  ;;  %v1253_v42 = vpop.xlane.xlu1 %1252 }
 0x672   :  { %v1279_v48 = vsub.f32 %v8743_v17, %v1253_v42 }
 0x674   :  { %v1305_v53 = vmul.f32 1.442695, %v1279_v48 }
 0x675   :  { %v1256_v50 = vpop.xlane.xlu0 %1255  ;;  %v1247_v37 = vpop.xlane.xlu1 %1246 }
 0x676   :  { %v1280_v55 = vsub.f32 %v8744_v16, %v1256_v50  ;;  %9603 = vpow2.f32 %v1305_v53  ;;  %v1277_v44 = vsub.f32 %v10776_v59, %v1247_v37 }
 0x677   :  { %9605 = vrcp.f32 %v1328_v41 }
 0x678   :  { %9607 = vrcp.f32 %v1325_v10  ;;  %v1307_v2 = vmul.f32 1.442695, %v1280_v55  ;;  %v1301_v20 = vmul.f32 1.442695, %v1277_v44 }
 0x679   :  { %v1250_v32 = vpop.xlane.xlu0 %1249  ;;  %9609 = vrcp.f32 %v1334_v1  ;;  %v1265_v11 = vpop.xlane.xlu1 %1264 }
 0x67a   :  { %v1278_v58 = vsub.f32 %v10790_v34, %v1250_v32  ;;  %9611 = vpow2.f32 %v1301_v20  ;;  %v1283_v49 = vsub.f32 %v8747_v43, %v1265_v11 }
 0x67b   :  { %9613 = vrcp.f32 %v1331_v60 }
 0x67c   :  { %9615 = vpow2.f32 %v1307_v2  ;;  %v1303_v48 = vmul.f32 1.442695, %v1278_v58  ;;  %v1313_v17 = vmul.f32 1.442695, %v1283_v49 }
 0x67d   :  { %v1268_v50 = vpop.xlane.xlu0 %1267  ;;  %v1259_v53 = vpop.xlane.xlu1 %1258 }
 0x67e   :  { %v1284_v16 = vsub.f32 %v8748_v51, %v1268_v50  ;;  %9617 = vpow2.f32 %v1313_v17  ;;  %v1281_v37 = vsub.f32 %v10798_v52, %v1259_v53 }
 0x67f   :  { %9619 = vrcp.f32 %v1340_v63 }
 0x680   :  { %9621 = vpow2.f32 %v1303_v48  ;;  %v1315_v44 = vmul.f32 1.442695, %v1284_v16  ;;  %v1309_v55 = vmul.f32 1.442695, %v1281_v37 }
 0x681   :  { %v1262_v1 = vpop.xlane.xlu0 %1261  ;;  %9623 = vrcp.f32 %v1337_v29  ;;  %v1410_v59 = vpop.permute.xlu1 %1409 }
 0x682   :  { %v1282_v10 = vsub.f32 %v10806_v5, %v1262_v1  ;;  %9625 = vpow2.f32 %v1309_v55  ;;  %8751 = vmatprep.subr.bf16.mxu0 %v1410_v59 }
 0x683   :  { %v10825_v60 = vpop.eup %9603  ;;  %8752 = vmatpush3.bf16.msra.mxu0 %v1410_v59  ;;  %9627 = vpow2.f32 %v1315_v44 }
 0x684   :  { %v1311_v34 = vmul.f32 1.442695, %v1282_v10  ;;  %v9606_v43 = vpop.eup %9605  ;;  %v1347_v63 = vsel %vm640_vm4, %v10825_v60, 0.0 }
 0x685   :  { %v1408_v51 = vpop.permute.xlu0 %1407  ;;  %v9608_v52 = vpop.eup %9607  ;;  %1348 = vadd.xlane.f32.xlu0 %v1347_v63  ;;  %v1384_v58 = vmul.f32 %v9606_v43, %v10744_v0 }
 0x686   :  { %9629 = vpow2.f32 %v1311_v34  ;;  %8753 = vmatprep.subr.bf16.mxu0 %v1408_v51  ;;  %v9610_v41 = vpop.eup %9609  ;;  %v1406_v5 = vpop.permute.xlu1 %1405  ;;  %v1383_v42 = vmul.f32 %v9608_v52, %v10766_v40 }
 0x687   :  { %v10829_v46 = vpop.eup %9611  ;;  %8754 = vmatpush3.bf16.msra.mxu0 %v1408_v51  ;;  %v1386_v32 = vmul.f32 %v9610_v41, %v10788_v36 }
 0x688   :  { %v9614_v29 = vpop.eup %9613  ;;  %8755 = vmatprep.subr.bf16.mxu0 %v1406_v5  ;;  %v1341_v2 = vsel %vm640_vm4, %v10829_v46, 0.0  ;;  %v1398_v50 = vpack.c.bf16 %v1384_v58, %v1383_v42 }
 0x689   :  { %v10834_v20 = vpop.eup %9615  ;;  %1342 = vadd.xlane.f32.xlu0 %v1341_v2  ;;  %v1385_v49 = vmul.f32 %v9614_v29, %v10782_v13 }
 0x68a   :  { %v1350_v40 = vsel %vm640_vm4, %v10834_v20, 0.0 }
 0x68b   :  { %v10838_v11 = vpop.eup %9617  ;;  %8756 = vmatpush3.bf16.msra.mxu0 %v1406_v5  ;;  %v1399_v36 = vpack.c.bf16 %v1386_v32, %v1385_v49 }
 0x68c   :  { %v9620_v48 = vpop.eup %9619  ;;  %v1359_v17 = vsel %vm640_vm4, %v10838_v11, 0.0 }
 0x68d   :  { %v10845_v16 = vpop.eup %9621  ;;  %1351 = vadd.xlane.f32.xlu0 %v1350_v40  ;;  %1360 = vadd.xlane.f32.xlu1 %v1359_v17  ;;  %v1388_v44 = vmul.f32 %v9620_v48, %v10784_v33  ;;  %v272_v33 = vld [vmem:[%s13610_s4 + $0x4] sm:$0xf] }
 0x68e   :  { %v9624_v53 = vpop.eup %9623  ;;  %8758 = vmatmul.mubr.msk.bf16.vlgmr.msra.gmra.mxu0 %vm640_vm4, %v1398_v50  ;;  %v1344_v13 = vsel %vm640_vm4, %v10845_v16, 0.0  ;;  %9433 = vmatprep.subr.msk.bf16.mxu0 %vm94_vm0, %v272_v33 }
 0x68f   :  { %v10848_v0 = vpop.eup %9625  ;;  %8761 = vmatprep.mubr.msk.bf16.mxu0 %vm640_vm4, %v1399_v36  ;;  %v1387_v10 = vmul.f32 %v9624_v53, %v10778_v27  ;;  %v1616_v27 = vsel %vm94_vm0, %v272_v33, 0 }
 0x690   :  { %v1353_v37 = vsel %vm640_vm4, %v10848_v0, 0.0  ;;  %v10856_v55 = vpop.eup %9627  ;;  %8782 = vmatpush3.bf16.msra.mxu0 %v1616_v27 }
 0x691   :  { %1345 = vadd.xlane.f32.xlu0 %v1344_v13  ;;  %1354 = vadd.xlane.f32.xlu1 %v1353_v37  ;;  %v1362_v34 = vsel %vm640_vm4, %v10856_v55, 0.0  ;;  %v1400_v43 = vpack.c.bf16 %v1388_v44, %v1387_v10 }
 0x693   :  { %v10858_v1 = vpop.eup %9629 }
 0x694   :  { %v1356_v59 = vsel %vm640_vm4, %v10858_v1, 0.0 }
 0x695   :  { %1357 = vadd.xlane.f32.xlu0 %v1356_v59  ;;  %1363 = vadd.xlane.f32.xlu1 %v1362_v34 }
 0x696   :  { %8762 = vmatmul.mubr.msk.bf16.gmra.mxu0 %vm640_vm4, %v1400_v43 }
 0x6a6   :  { %1498 = vrot.lane.b32.xlu1 %v10422_v28, %s10185_s1 }
 0x6aa   :  { %1496 = vrot.lane.b32.xlu1 %v10410_v21, %s10185_s1 }
 0x6ab   :  { %1500 = vrot.lane.b32.xlu0 %v10416_v26, %s10185_s1 }
 0x6ae   :  { %1494 = vrot.lane.b32.xlu1 %v10406_v19, %s10185_s1 }
 0x6af   :  { %1853 = vrot.lane.b32.xlu0 %v10398_v12, %s10186_s11 }
 0x6b2   :  { %1851 = vrot.lane.b32.xlu1 %v10402_v15, %s10186_s11 }
 0x6b3   :  { %1849 = vrot.lane.b32.xlu0 %v10390_v6, %s10186_s11 }
 0x6b6   :  { %1958 = vrot.lane.b32.xlu1 %v10416_v26, %s10186_s11 }
 0x6b7   :  { %1847 = vrot.lane.b32.xlu0 %v10392_v8, %s10186_s11 }
 0x6ba   :  { %1956 = vrot.lane.b32.xlu1 %v10422_v28, %s10186_s11 }
 0x6bb   :  { %1839 = vrot.lane.b32.xlu0 %v10392_v8, %s10187_s12 }
 0x6be   :  { %1841 = vrot.lane.b32.xlu1 %v10390_v6, %s10187_s12 }
 0x6bf   :  { %1954 = vrot.lane.b32.xlu0 %v10410_v21, %s10186_s11 }
 0x6c2   :  { %1843 = vrot.lane.b32.xlu1 %v10402_v15, %s10187_s12 }
 0x6c3   :  { %1845 = vrot.lane.b32.xlu0 %v10398_v12, %s10187_s12 }
 0x6c6   :  { %1952 = vrot.lane.b32.xlu1 %v10406_v19, %s10186_s11 }
 0x6c7   :  { %1944 = vrot.lane.b32.xlu0 %v10406_v19, %s10187_s12 }
 0x6ca   :  { %1946 = vrot.lane.b32.xlu1 %v10410_v21, %s10187_s12 }
 0x6cb   :  { %1948 = vrot.lane.b32.xlu0 %v10422_v28, %s10187_s12 }
 0x6ce   :  { %1950 = vrot.lane.b32.xlu1 %v10416_v26, %s10187_s12 }
 0x6d2   :  { %2239 = vrot.lane.b32.xlu1 %v10398_v12, %s10188_s13 }
 0x70e   :  { %v1349_v51 = vpop.xlane.xlu0 %1348 }
 0x712   :  { %v1343_v63 = vpop.xlane.xlu0 %1342 }
 0x713   :  { %9631 = vrcp.f32 %v1343_v63 }
 0x716   :  { %v1352_v52 = vpop.xlane.xlu0 %1351  ;;  %v1361_v41 = vpop.xlane.xlu1 %1360 }
 0x71a   :  { %v1346_v5 = vpop.xlane.xlu0 %1345  ;;  %v1355_v29 = vpop.xlane.xlu1 %1354 }
 0x71b   :  { %9633 = vrcp.f32 %v1346_v5 }
 0x71c   :  { %9635 = vrcp.f32 %v1352_v52 }
 0x71d   :  { %9637 = vrcp.f32 %v1349_v51 }
 0x71e   :  { %v1358_v42 = vpop.xlane.xlu0 %1357  ;;  %v1364_v2 = vpop.xlane.xlu1 %1363 }
 0x71f   :  { %9639 = vrcp.f32 %v1358_v42 }
 0x720   :  { %9641 = vrcp.f32 %v1355_v29  ;;  %v9632_v49 = vpop.eup %9631  ;;  %v1003_v29 = vpack.c.bf16 %v10720_v56, %v10714_v61 }
 0x721   :  { %9643 = vrcp.f32 %v1364_v2  ;;  %v1389_v50 = vmul.f32 %v9632_v49, %v10829_v46  ;;  %v271_v46 = vld [vmem:[%s13610_s4] sm:$0xf]  ;;  %v13660_v49 = vpack.c.bf16 %v10716_v39, %v10712_v47 }
 0x722   :  { %v1501_v32 = vpop.permute.xlu0 %1500  ;;  %v1499_v58 = vpop.permute.xlu1 %1498  ;;  %9645 = vrcp.f32 %v1361_v41 }
 0x723   :  { %8765 = vmatprep.subr.bf16.mxu1 %v1501_v32 }
 0x724   :  { %8766 = vmatpush3.bf16.msra.mxu1 %v1501_v32  ;;  %v1005_v32 = vpack.c.bf16 %v10730_v35, %v10724_v57  ;;  %v1007_v57 = vpack.c.bf16 %v10746_v54, %v10734_v25  ;;  %v13661_v35 = vpack.c.bf16 %v10726_v7, %v10722_v3  ;;  %v1009_v25 = vpack.c.bf16 %v10774_v22, %v10754_v18 }
 0x725   :  { %8767 = vmatprep.subr.bf16.mxu1 %v1499_v58  ;;  %v13662_v3 = vpack.c.bf16 %v10736_v4, %v10732_v14 }
 0x726   :  { %v10913_v48 = vpop.permute.xlu0 %1853  ;;  %v1497_v40 = vpop.permute.xlu1 %1496 }
 0x727   :  { %9435 = vmatprep.subr.msk.bf16.mxu0 %vm449_vm3, %v10913_v48  ;;  %v1877_v14 = vsel %vm449_vm3, %v10913_v48, 0 }
 0x728   :  { %v9634_v17 = vpop.eup %9633  ;;  %8768 = vmatpush3.bf16.msra.mxu1 %v1499_v58 }
 0x729   :  { %8769 = vmatprep.subr.bf16.mxu1 %v1497_v40  ;;  %v1390_v36 = vmul.f32 %v9634_v17, %v10845_v16  ;;  %v9636_v53 = vpop.eup %9635 }
 0x72a   :  { %v1495_v13 = vpop.permute.xlu1 %1494  ;;  %v9638_v37 = vpop.eup %9637  ;;  %v1392_v34 = vmul.f32 %v9636_v53, %v10834_v20  ;;  %v1740_v20 = vsel %vm94_vm0, %v271_v46, 0 }
 0x72b   :  { %v1401_v44 = vpack.c.bf16 %v1390_v36, %v1389_v50  ;;  %v1391_v33 = vmul.f32 %v9638_v37, %v10825_v60  ;;  %v1850_v42 = vpop.permute.xlu0 %1849 }
 0x72c   :  { %v9640_v10 = vpop.eup %9639  ;;  %8770 = vmatpush3.bf16.msra.mxu1 %v1497_v40 }
 0x72d   :  { %v9642_v59 = vpop.eup %9641  ;;  %8771 = vmatprep.subr.bf16.mxu1 %v1495_v13  ;;  %8773 = vmatprep.mubr.msk.bf16.mxu1 %vm640_vm4, %v1401_v44  ;;  %v1394_v16 = vmul.f32 %v9640_v10, %v10858_v1  ;;  %v1402_v51 = vpack.c.bf16 %v1392_v34, %v1391_v33  ;;  %v13663_v10 = vpack.c.bf16 %v10756_v9, %v10748_v62  ;;  %v1871_v9 = vsel %vm449_vm3, %v1850_v42, 0 }
 0x72e   :  { %v10921_v43 = vpop.permute.xlu1 %1851  ;;  %v1393_v27 = vmul.f32 %v9642_v59, %v10848_v0  ;;  %v9644_v63 = vpop.eup %9643 }
 0x72f   :  { %v9646_v41 = vpop.eup %9645  ;;  %v1396_v60 = vmul.f32 %v9644_v63, %v10856_v55  ;;  %v1848_v2 = vpop.permute.xlu0 %1847  ;;  %v1874_v48 = vsel %vm449_vm3, %v10921_v43, 0 }
 0x730   :  { %8772 = vmatpush3.bf16.msra.mxu1 %v1495_v13  ;;  %v1403_v52 = vpack.c.bf16 %v1394_v16, %v1393_v27  ;;  %v1395_v0 = vmul.f32 %v9646_v41, %v10838_v11 }
 0x731   :  { %9434 = vmatprep.subr.msk.bf16.mxu1 %vm94_vm0, %v271_v46 }
 0x732   :  { %v1959_v5 = vpop.permute.xlu1 %1958  ;;  %v1404_v1 = vpack.c.bf16 %v1396_v60, %v1395_v0 }
 0x733   :  { %8774 = vmatmul.mubr.msk.bf16.vlgmr.msra.gmra.mxu1 %vm640_vm4, %v1402_v51  ;;  %v1982_v11 = vsel %vm449_vm3, %v1959_v5, 0  ;;  %v10949_v61 = vpop.permute.xlu0 %1839  ;;  %v1868_v51 = vsel %vm449_vm3, %v1848_v2, 0 }
 0x734   :  { %8777 = vmatprep.mubr.msk.bf16.mxu1 %vm640_vm4, %v1403_v52  ;;  %8800 = vmatpush3.bf16.msra.mxu1 %v1740_v20 }
 0x735   :  { %9439 = vmatprep.subr.msk.bf16.mxu1 %vm449_vm3, %v1959_v5 }
 0x736   :  { %v1957_v58 = vpop.permute.xlu1 %1956 }
 0x737   :  { %v1979_v47 = vsel %vm449_vm3, %v1957_v58, 0  ;;  %v1955_v39 = vpop.permute.xlu0 %1954 }
 0x738   :  { %v1976_v7 = vsel %vm449_vm3, %v1955_v39, 0 }
 0x73a   :  { %v10951_v56 = vpop.permute.xlu1 %1841 }
 0x73b   :  { %8778 = vmatmul.mubr.msk.bf16.gmra.mxu1 %vm640_vm4, %v1404_v1  ;;  %v10972_v53 = vpop.permute.xlu0 %1845 }
 0x73c   :  { %8801 = vmatprep.mubr.msk.bf16.mxu1 %vm449_vm3, %v1003_v29 }
 0x73e   :  { %v10962_v55 = vpop.permute.xlu1 %1843 }
 0x73f   :  { %v1945_v44 = vpop.permute.xlu0 %1944 }
 0x742   :  { %v1953_v50 = vpop.permute.xlu1 %1952 }
 0x743   :  { %8802 = vmatmul.mubr.msk.bf16.vlgmr.msra.gmra.mxu1 %vm449_vm3, %v13660_v49  ;;  %v1973_v59 = vsel %vm449_vm3, %v1953_v50, 0  ;;  %v1949_v62 = vpop.permute.xlu0 %1948 }
 0x744   :  { %8834 = vmatpush3.bf16.xpose.msra.mxu1 %v1982_v11  ;;  %8805 = vmatprep.mubr.msk.bf16.mxu1 %vm449_vm3, %v1005_v32 }
 0x745   :  { %9440 = vmatprep.subr.msk.bf16.mxu1 %vm449_vm3, %v1957_v58 }
 0x746   :  { %v1947_v33 = vpop.permute.xlu1 %1946 }
 0x74a   :  { %v1951_v27 = vpop.permute.xlu1 %1950 }
 0x74b   :  { %8806 = vmatmul.mubr.msk.bf16.gmra.mxu1 %vm449_vm3, %v13661_v35 }
 0x74c   :  { %8836 = vmatpush3.bf16.xpose.msra.mxu1 %v1979_v47  ;;  %8809 = vmatprep.mubr.msk.bf16.mxu1 %vm449_vm3, %v1007_v57 }
 0x74d   :  { %9441 = vmatprep.subr.msk.bf16.mxu1 %vm449_vm3, %v1955_v39 }
 0x74e   :  { %v8759_v40 = vpop.f32.mrf.mxu0 }
 0x750   :  { %v1463_v17 = vpop.f32.mrf.mxu0 }
 0x752   :  { %v8760_v54 = vpop.f32.mrf.mxu0 }
 0x753   :  { %8810 = vmatmul.mubr.msk.bf16.gmra.mxu1 %vm449_vm3, %v13662_v3  ;;  %v1584_v37 = vpack.c.bf16 %v8760_v54, %v8759_v40 }
 0x754   :  { %8838 = vmatpush3.bf16.xpose.msra.mxu1 %v1976_v7  ;;  %v1466_v36 = vpop.f32.mrf.mxu0  ;;  %8813 = vmatprep.mubr.msk.bf16.mxu1 %vm449_vm3, %v1009_v25 }
 0x755   :  { %v1583_v13 = vpack.c.bf16 %v1466_v36, %v1463_v17  ;;  %9442 = vmatprep.subr.msk.bf16.mxu1 %vm449_vm3, %v1953_v50 }
 0x756   :  { %v8763_v22 = vpop.f32.mrf.mxu0 }
 0x757   :  { %8783 = vmatprep.mubr.msk.bf16.mxu0 %vm449_vm3, %v1583_v13 }
 0x758   :  { %v1479_v18 = vpop.f32.mrf.mxu0  ;;  %8784 = vmatmul.mubr.msk.bf16.vlgmr.msra.gmra.mxu0 %vm449_vm3, %v1584_v37 }
 0x759   :  { %8818 = vmatpush3.bf16.xpose.msra.mxu0 %v1877_v14 }
 0x75a   :  { %9436 = vmatprep.subr.msk.bf16.mxu0 %vm449_vm3, %v10921_v43  ;;  %v8764_v4 = vpop.f32.mrf.mxu0  ;;  %v2240_v43 = vpop.permute.xlu1 %2239 }
 0x75b   :  { %8814 = vmatmul.mubr.msk.bf16.gmra.mxu1 %vm449_vm3, %v13663_v10  ;;  %v1586_v16 = vpack.c.bf16 %v8764_v4, %v8763_v22 }
 0x75c   :  { %8840 = vmatpush3.bf16.xpose.msra.mxu1 %v1973_v59  ;;  %v1482_v34 = vpop.f32.mrf.mxu0  ;;  %8841 = vmatprep.mubr.msk.bf16.mxu1 %vm449_vm3, %v1945_v44 }
 0x75d   :  { %v1585_v46 = vpack.c.bf16 %v1482_v34, %v1479_v18 }
 0x75f   :  { %8787 = vmatprep.mubr.msk.bf16.mxu0 %vm449_vm3, %v1585_v46 }
 0x760   :  { %8788 = vmatmul.mubr.msk.bf16.gmra.mxu0 %vm449_vm3, %v1586_v16 }
 0x761   :  { %8820 = vmatpush3.bf16.xpose.msra.mxu0 %v1874_v48 }
 0x762   :  { %9437 = vmatprep.subr.msk.bf16.mxu0 %vm449_vm3, %v1850_v42 }
 0x763   :  { %8842 = vmatmul.mubr.msk.bf16.vlgmr.msra.gmra.mxu1 %vm449_vm3, %v1947_v33 }
 0x764   :  { %8845 = vmatprep.mubr.msk.bf16.mxu1 %vm449_vm3, %v1949_v62 }
 0x769   :  { %8822 = vmatpush3.bf16.xpose.msra.mxu0 %v1871_v9 }
 0x76a   :  { %9438 = vmatprep.subr.msk.bf16.mxu0 %vm449_vm3, %v1848_v2 }
 0x76b   :  { %8846 = vmatmul.mubr.msk.bf16.gmra.mxu1 %vm449_vm3, %v1951_v27 }
 0x771   :  { %8824 = vmatpush3.bf16.xpose.msra.mxu0 %v1868_v51 }
 0x772   :  { %8849 = vmatprep.subr.bf16.mxu0 %v2240_v43 }
 0x7f3   :  { %v8775_v20 = vpop.f32.mrf.mxu1 }
 0x7f5   :  { %v1552_v63 = vpop.f32.mrf.mxu1 }
 0x7f7   :  { %v8776_v52 = vpop.f32.mrf.mxu1 }
 0x7f8   :  { %v1588_v60 = vpack.c.bf16 %v8776_v52, %v8775_v20 }
 0x7f9   :  { %v1555_v41 = vpop.f32.mrf.mxu1 }
 0x7fa   :  { %v1587_v5 = vpack.c.bf16 %v1555_v41, %v1552_v63 }
 0x7fb   :  { %v8779_v0 = vpop.f32.mrf.mxu1 }
 0x7fc   :  { %8791 = vmatprep.mubr.msk.bf16.mxu0 %vm449_vm3, %v1587_v5 }
 0x7fd   :  { %v1568_v1 = vpop.f32.mrf.mxu1  ;;  %8792 = vmatmul.mubr.msk.bf16.gmra.mxu0 %vm449_vm3, %v1588_v60 }
 0x7ff   :  { %v8780_v29 = vpop.f32.mrf.mxu1 }
 0x800   :  { %v1590_v58 = vpack.c.bf16 %v8780_v29, %v8779_v0 }
 0x801   :  { %v1571_v42 = vpop.f32.mrf.mxu1 }
 0x802   :  { %v1589_v32 = vpack.c.bf16 %v1571_v42, %v1568_v1 }
 0x803   :  { %v8803_v2 = vpop.f32.mrf.mxu1 }
 0x804   :  { %8795 = vmatprep.mubr.msk.bf16.mxu0 %vm449_vm3, %v1589_v32 }
 0x805   :  { %8796 = vmatmul.mubr.msk.bf16.gmra.mxu0 %vm449_vm3, %v1590_v58  ;;  %v1776_v49 = vpop.f32.mrf.mxu1 }
 0x806   :  { %8825 = vmatprep.mubr.msk.bf16.mxu0 %vm449_vm3, %v10949_v61 }
 0x807   :  { %v8804_v11 = vpop.f32.mrf.mxu1 }
 0x809   :  { %v11004_v57 = vpop.f32.mrf.mxu1 }
 0x80b   :  { %v8807_v35 = vpop.f32.mrf.mxu1 }
 0x80d   :  { %v1792_v47 = vpop.f32.mrf.mxu1  ;;  %8826 = vmatmul.mubr.msk.bf16.vlgmr.msra.gmra.mxu0 %vm449_vm3, %v10951_v56 }
 0x80e   :  { %8850 = vmatpush3.bf16.msra.mxu0 %v2240_v43  ;;  %8829 = vmatprep.mubr.msk.bf16.mxu0 %vm449_vm3, %v10962_v55 }
 0x80f   :  { %v8808_v39 = vpop.f32.mrf.mxu1 }
 0x811   :  { %v11010_v40 = vpop.f32.mrf.mxu1 }
 0x812   :  { %13664 = vst [vmem:[#allocation19_spill] sm:$0xff] %v11010_v40 }
 0x813   :  { %v11012_v17 = vpop.f32.mrf.mxu1 }
 0x815   :  { %v11014_v25 = vpop.f32.mrf.mxu1  ;;  %8830 = vmatmul.mubr.msk.bf16.gmra.mxu0 %vm449_vm3, %v10972_v53 }
 0x817   :  { %v11018_v61 = vpop.f32.mrf.mxu1 }
 0x818   :  { %v8785_v54 = vpop.f32.mrf.mxu0 }
 0x819   :  { %v11020_v3 = vadd.f32 %v8803_v2, %v8785_v54  ;;  %v11022_v56 = vpop.f32.mrf.mxu1 }
 0x81a   :  { %13665 = vst [vmem:[#allocation20_spill] sm:$0xff] %v11022_v56  ;;  %v1652_v7 = vpop.f32.mrf.mxu0 }
 0x81b   :  { %v11024_v50 = vadd.f32 %v1776_v49, %v1652_v7  ;;  %v11026_v55 = vpop.f32.mrf.mxu1 }
 0x81c   :  { %v8786_v36 = vpop.f32.mrf.mxu0 }
 0x81d   :  { %v11028_v13 = vadd.f32 %v8804_v11, %v8786_v36  ;;  %v11030_v37 = vpop.f32.mrf.mxu1 }
 0x81e   :  { %v11032_v22 = vpop.f32.mrf.mxu0 }
 0x81f   :  { %v11034_v53 = vpop.f32.mrf.mxu1 }
 0x820   :  { %v8789_v18 = vpop.f32.mrf.mxu0 }
 0x821   :  { %v11036_v14 = vadd.f32 %v8807_v35, %v8789_v18  ;;  %v11038_v4 = vpop.f32.mrf.mxu1 }
 0x822   :  { %13666 = vst [vmem:[#allocation21_spill] sm:$0xff] %v11038_v4  ;;  %v1668_v44 = vpop.f32.mrf.mxu0 }
 0x823   :  { %v11040_v10 = vadd.f32 %v1792_v47, %v1668_v44  ;;  %v8843_v59 = vpop.f32.mrf.mxu1 }
 0x824   :  { %v8790_v34 = vpop.f32.mrf.mxu0  ;;  %v2079_v46 = vsel %vm640_vm4, %v8843_v59, -inf }
 0x825   :  { %v11043_v16 = vadd.f32 %v8808_v39, %v8790_v34  ;;  %2080 = vmax.xlane.f32.xlu1 %v2079_v46  ;;  %v2018_v48 = vpop.f32.mrf.mxu1 }
 0x826   :  { %v2073_v62 = vsel %vm640_vm4, %v2018_v48, -inf  ;;  %v11064_v58 = vpop.f32.mrf.mxu0 }
 0x827   :  { %v8844_v33 = vpop.f32.mrf.mxu1  ;;  %13667 = vst [vmem:[#allocation22_spill] sm:$0xff] %v11064_v58 }
 0x828   :  { %v2082_v9 = vsel %vm640_vm4, %v8844_v33, -inf }
 0x829   :  { %2074 = vmax.xlane.f32.xlu1 %v2073_v62  ;;  %2083 = vmax.xlane.f32.xlu0 %v2082_v9  ;;  %v2021_v27 = vpop.f32.mrf.mxu1 }
 0x82a   :  { %v2076_v43 = vsel %vm640_vm4, %v2021_v27, -inf }
 0x82b   :  { %v11047_v51 = vpop.f32.mrf.mxu1 }
 0x82c   :  { %v2091_v20 = vsel %vm640_vm4, %v11047_v51, -inf }
 0x82d   :  { %2077 = vmax.xlane.f32.xlu0 %v2076_v43  ;;  %2092 = vmax.xlane.f32.xlu1 %v2091_v20  ;;  %v11052_v63 = vpop.f32.mrf.mxu1 }
 0x82e   :  { %v2085_v41 = vsel %vm640_vm4, %v11052_v63, -inf }
 0x82f   :  { %v11054_v52 = vpop.f32.mrf.mxu1 }
 0x830   :  { %v2094_v5 = vsel %vm640_vm4, %v11054_v52, -inf }
 0x831   :  { %2086 = vmax.xlane.f32.xlu1 %v2085_v41  ;;  %2095 = vmax.xlane.f32.xlu0 %v2094_v5  ;;  %v11060_v60 = vpop.f32.mrf.mxu1 }
 0x832   :  { %v2088_v0 = vsel %vm640_vm4, %v11060_v60, -inf }
 0x835   :  { %2089 = vmax.xlane.f32.xlu0 %v2088_v0 }
 0x8ae   :  { %v2081_v1 = vpop.xlane.xlu1 %2080 }
 0x8af   :  { %v2107_v62 = vsub.f32 %v8843_v59, %v2081_v1 }
 0x8b1   :  { %v2133_v5 = vmul.f32 1.442695, %v2107_v62 }
 0x8b2   :  { %v2075_v29 = vpop.xlane.xlu1 %2074  ;;  %v2084_v11 = vpop.xlane.xlu0 %2083 }
 0x8b3   :  { %v2105_v42 = vsub.f32 %v2018_v48, %v2075_v29  ;;  %v2108_v0 = vsub.f32 %v8844_v33, %v2084_v11 }
 0x8b5   :  { %v2129_v32 = vmul.f32 1.442695, %v2105_v42  ;;  %v2135_v42 = vmul.f32 1.442695, %v2108_v0 }
 0x8b6   :  { %v2078_v36 = vpop.xlane.xlu0 %2077 }
 0x8b7   :  { %9647 = vpow2.f32 %v2129_v32  ;;  %v2106_v34 = vsub.f32 %v2021_v27, %v2078_v36 }
 0x8b9   :  { %v2131_v9 = vmul.f32 1.442695, %v2106_v34 }
 0x8bb   :  { %9649 = vpow2.f32 %v2131_v9 }
 0x8bc   :  { %9651 = vpow2.f32 %v2133_v5 }
 0x8bd   :  { %v11066_v2 = vpop.f32.mrf.mxu0  ;;  %9653 = vpow2.f32 %v2135_v42 }
 0x8bf   :  { %v11068_v49 = vpop.f32.mrf.mxu0 }
 0x8c1   :  { %v11070_v35 = vpop.f32.mrf.mxu0 }
 0x8c3   :  { %v11072_v47 = vpop.f32.mrf.mxu0 }
 0x8c4   :  { %13668 = vst [vmem:[#allocation23_spill] sm:$0xff] %v11072_v47  ;;  %v11074_v39 = vpop.eup %9647 }
 0x8c5   :  { %v11076_v54 = vpop.f32.mrf.mxu0  ;;  %v2169_v7 = vsel %vm640_vm4, %v11074_v39, 0.0 }
 0x8c6   :  { %2170 = vadd.xlane.f32.xlu0 %v2169_v7 }
 0x8c7   :  { %v11080_v18 = vpop.f32.mrf.mxu0 }
 0x8c9   :  { %v11082_v44 = vpop.f32.mrf.mxu0 }
 0x8cb   :  { %v11084_v46 = vpop.f32.mrf.mxu0 }
 0x8cc   :  { %13669 = vst [vmem:[#allocation24_spill] sm:$0xff] %v11084_v46 }
 0x8cd   :  { %v11086_v48 = vpop.f32.mrf.mxu0 }
 0x8ce   :  { %v2055_v43 = vsel %vm640_vm4, %v11086_v48, -inf }
 0x8cf   :  { %v11090_v20 = vpop.f32.mrf.mxu0  ;;  %2056 = vmax.xlane.f32.xlu0 %v2055_v43  ;;  %v11118_v43 = vpop.eup %9649 }
 0x8d0   :  { %v2049_v27 = vsel %vm640_vm4, %v11090_v20, -inf  ;;  %v2172_v5 = vsel %vm640_vm4, %v11118_v43, 0.0  ;;  %v11122_v0 = vpop.eup %9651 }
 0x8d1   :  { %v11092_v41 = vpop.f32.mrf.mxu0 }
 0x8d2   :  { %v2058_v32 = vsel %vm640_vm4, %v11092_v41, -inf }
 0x8d3   :  { %v11096_v29 = vpop.f32.mrf.mxu0  ;;  %2050 = vmax.xlane.f32.xlu0 %v2049_v27  ;;  %v2175_v27 = vsel %vm640_vm4, %v11122_v0, 0.0 }
 0x8d4   :  { %v2052_v59 = vsel %vm640_vm4, %v11096_v29, -inf }
 0x8d5   :  { %v11100_v1 = vpop.f32.mrf.mxu0  ;;  %2053 = vmax.xlane.f32.xlu1 %v2052_v59  ;;  %v11126_v59 = vpop.eup %9653 }
 0x8d6   :  { %v2067_v33 = vsel %vm640_vm4, %v11100_v1, -inf  ;;  %v2178_v42 = vsel %vm640_vm4, %v11126_v59, 0.0 }
 0x8d7   :  { %v11104_v7 = vpop.f32.mrf.mxu0  ;;  %2059 = vmax.xlane.f32.xlu0 %v2058_v32  ;;  %v2093_v32 = vpop.xlane.xlu1 %2092 }
 0x8d8   :  { %v2061_v62 = vsel %vm640_vm4, %v11104_v7, -inf }
 0x8d9   :  { %v11108_v11 = vpop.f32.mrf.mxu0  ;;  %2068 = vmax.xlane.f32.xlu1 %v2067_v33 }
 0x8da   :  { %v2070_v36 = vsel %vm640_vm4, %v11108_v11, -inf }
 0x8db   :  { %v11112_v34 = vpop.f32.mrf.mxu0  ;;  %2071 = vmax.xlane.f32.xlu0 %v2070_v36  ;;  %v2087_v33 = vpop.xlane.xlu1 %2086 }
 0x8dc   :  { %v2064_v9 = vsel %vm640_vm4, %v11112_v34, -inf  ;;  %v2109_v36 = vsub.f32 %v11052_v63, %v2087_v33 }
 0x8dd   :  { %2062 = vmax.xlane.f32.xlu1 %v2061_v62  ;;  %v2111_v62 = vsub.f32 %v11047_v51, %v2093_v32 }
 0x8df   :  { %2065 = vmax.xlane.f32.xlu0 %v2064_v9  ;;  %v2137_v9 = vmul.f32 1.442695, %v2109_v36  ;;  %v2141_v4 = vmul.f32 1.442695, %v2111_v62 }
 0x8e1   :  { %9655 = vpow2.f32 %v2137_v9 }
 0x8e2   :  { %9657 = vpow2.f32 %v2141_v4 }
 0x8e3   :  { %2173 = vadd.xlane.f32.xlu0 %v2172_v5  ;;  %v2096_v5 = vpop.xlane.xlu0 %2095 }
 0x8e4   :  { %v2112_v46 = vsub.f32 %v11054_v52, %v2096_v5 }
 0x8e7   :  { %2176 = vadd.xlane.f32.xlu0 %v2175_v27  ;;  %v2090_v27 = vpop.xlane.xlu0 %2089 }
 0x8e8   :  { %v2110_v56 = vsub.f32 %v11060_v60, %v2090_v27 }
 0x8ea   :  { %v2139_v47 = vmul.f32 1.442695, %v2110_v56 }
 0x8eb   :  { %2179 = vadd.xlane.f32.xlu0 %v2178_v42  ;;  %v2143_v42 = vmul.f32 1.442695, %v2112_v46 }
 0x8ed   :  { %9659 = vpow2.f32 %v2143_v42 }
 0x8ee   :  { %2237 = vrot.lane.b32.xlu1 %v10402_v15, %s10188_s13  ;;  %v11138_v40 = vpop.eup %9655  ;;  %9661 = vpow2.f32 %v2139_v47 }
 0x8ef   :  { %v2181_v51 = vsel %vm640_vm4, %v11138_v40, 0.0  ;;  %v11142_v63 = vpop.eup %9657 }
 0x8f0   :  { %v2187_v52 = vsel %vm640_vm4, %v11142_v63, 0.0 }
 0x8fa   :  { %v11146_v32 = vpop.eup %9659 }
 0x8fb   :  { %v2190_v4 = vsel %vm640_vm4, %v11146_v32, 0.0  ;;  %v11150_v56 = vpop.eup %9661 }
 0x8fc   :  { %v2184_v60 = vsel %vm640_vm4, %v11150_v56, 0.0 }
 0x901   :  { %2235 = vrot.lane.b32.xlu0 %v10390_v6, %s10188_s13 }
 0x912   :  { %2182 = vadd.xlane.f32.xlu1 %v2181_v51 }
 0x916   :  { %2188 = vadd.xlane.f32.xlu1 %v2187_v52 }
 0x91a   :  { %2191 = vadd.xlane.f32.xlu1 %v2190_v4 }
 0x920   :  { %2185 = vadd.xlane.f32.xlu0 %v2184_v60 }
 0x92b   :  { %2233 = vrot.lane.b32.xlu1 %v10392_v8, %s10188_s13 }
 0x94f   :  { %v2171_v47 = vpop.xlane.xlu0 %2170 }
 0x958   :  { %v2057_v46 = vpop.xlane.xlu0 %2056 }
 0x959   :  { %v2099_v33 = vsub.f32 %v11086_v48, %v2057_v46 }
 0x95b   :  { %v2117_v36 = vmul.f32 1.442695, %v2099_v33 }
 0x95c   :  { %v2051_v62 = vpop.xlane.xlu0 %2050 }
 0x95d   :  { %9663 = vpow2.f32 %v2117_v36  ;;  %v2097_v9 = vsub.f32 %v11090_v20, %v2051_v62 }
 0x95e   :  { %v2054_v5 = vpop.xlane.xlu1 %2053 }
 0x95f   :  { %v2113_v27 = vmul.f32 1.442695, %v2097_v9  ;;  %v2098_v42 = vsub.f32 %v11096_v29, %v2054_v5 }
 0x960   :  { %v2060_v51 = vpop.xlane.xlu0 %2059 }
 0x961   :  { %9665 = vpow2.f32 %v2113_v27  ;;  %v2100_v52 = vsub.f32 %v11092_v41, %v2060_v51  ;;  %v2115_v4 = vmul.f32 1.442695, %v2098_v42 }
 0x962   :  { %v2069_v60 = vpop.xlane.xlu1 %2068 }
 0x963   :  { %v2119_v58 = vmul.f32 1.442695, %v2100_v52  ;;  %v2103_v38 = vsub.f32 %v11100_v1, %v2069_v60 }
 0x964   :  { %v2072_v45 = vpop.xlane.xlu0 %2071 }
 0x965   :  { %9667 = vpow2.f32 %v2119_v58  ;;  %v2125_v48 = vmul.f32 1.442695, %v2103_v38  ;;  %v2104_v46 = vsub.f32 %v11108_v11, %v2072_v45 }
 0x966   :  { %9669 = vpow2.f32 %v2115_v4  ;;  %v2063_v20 = vpop.xlane.xlu1 %2062 }
 0x967   :  { %9671 = vpow2.f32 %v2125_v48  ;;  %v2127_v33 = vmul.f32 1.442695, %v2104_v46  ;;  %v2101_v29 = vsub.f32 %v11104_v7, %v2063_v20 }
 0x968   :  { %v2066_v36 = vpop.xlane.xlu0 %2065 }
 0x969   :  { %v2121_v62 = vmul.f32 1.442695, %v2101_v29  ;;  %v2102_v41 = vsub.f32 %v11112_v34, %v2066_v36  ;;  %9673 = vpow2.f32 %v2127_v33 }
 0x96a   :  { %v11164_v9 = vpop.eup %9663  ;;  %v2238_v5 = vpop.permute.xlu1 %2237 }
 0x96b   :  { %9675 = vpow2.f32 %v2121_v62  ;;  %v2123_v1 = vmul.f32 1.442695, %v2102_v41  ;;  %8851 = vmatprep.subr.bf16.mxu0 %v2238_v5  ;;  %v2151_v38 = vsel %vm640_vm4, %v11164_v9, 0.0 }
 0x96c   :  { %9677 = vrcp.f32 %v2171_v47  ;;  %v2174_v45 = vpop.xlane.xlu0 %2173  ;;  %2152 = vadd.xlane.f32.xlu1 %v2151_v38  ;;  %8852 = vmatpush3.bf16.msra.mxu0 %v2238_v5 }
 0x96d   :  { %9679 = vrcp.f32 %v2174_v45 }
 0x96e   :  { %v11168_v58 = vpop.eup %9665  ;;  %9681 = vpow2.f32 %v2123_v1 }
 0x96f   :  { %v2145_v7 = vsel %vm640_vm4, %v11168_v58, 0.0 }
 0x970   :  { %v11172_v11 = vpop.xlane.xlu0 %2176  ;;  %2146 = vadd.xlane.f32.xlu1 %v2145_v7 }
 0x972   :  { %v11174_v34 = vpop.eup %9667 }
 0x973   :  { %v11176_v27 = vpop.eup %9669  ;;  %v2154_v47 = vsel %vm640_vm4, %v11174_v34, 0.0 }
 0x974   :  { %v11180_v42 = vpop.eup %9671  ;;  %2155 = vadd.xlane.f32.xlu0 %v2154_v47  ;;  %v11182_v51 = vpop.xlane.xlu0 %2179  ;;  %v2148_v60 = vsel %vm640_vm4, %v11176_v27, 0.0  ;;  %v273_v47 = vld [vmem:[%s13610_s4 + $0x8] sm:$0xf] }
 0x975   :  { %v2163_v52 = vsel %vm640_vm4, %v11180_v42, 0.0 }
 0x976   :  { %2164 = vadd.xlane.f32.xlu1 %v2163_v52  ;;  %v11186_v4 = vpop.eup %9673 }
 0x977   :  { %v2166_v36 = vsel %vm640_vm4, %v11186_v4, 0.0 }
 0x978   :  { %v11190_v48 = vpop.eup %9675  ;;  %v2236_v46 = vpop.permute.xlu0 %2235  ;;  %2149 = vadd.xlane.f32.xlu0 %v2148_v60 }
 0x979   :  { %v9678_v20 = vpop.eup %9677  ;;  %8853 = vmatprep.subr.bf16.mxu0 %v2236_v46  ;;  %v2157_v33 = vsel %vm640_vm4, %v11190_v48, 0.0 }
 0x97a   :  { %2158 = vadd.xlane.f32.xlu1 %v2157_v33  ;;  %8854 = vmatpush3.bf16.msra.mxu0 %v2236_v46  ;;  %v9680_v29 = vpop.eup %9679  ;;  %v2217_v41 = vmul.f32 %v9678_v20, %v11074_v39 }
 0x97b   :  { %v11196_v62 = vpop.eup %9681  ;;  %v2218_v5 = vmul.f32 %v9680_v29, %v11118_v43 }
 0x97c   :  { %2167 = vadd.xlane.f32.xlu0 %v2166_v36  ;;  %v2160_v38 = vsel %vm640_vm4, %v11196_v62, 0.0 }
 0x97d   :  { %v2229_v1 = vpack.c.bf16 %v2218_v5, %v2217_v41 }
 0x97f   :  { %8873 = vmatprep.mubr.msk.bf16.mxu1 %vm640_vm4, %v2229_v1 }
 0x980   :  { %2161 = vadd.xlane.f32.xlu0 %v2160_v38 }
 0x98b   :  { %2326 = vrot.lane.b32.xlu1 %v10422_v28, %s10188_s13 }
 0x98f   :  { %2324 = vrot.lane.b32.xlu1 %v10410_v21, %s10188_s13 }
 0x993   :  { %2322 = vrot.lane.b32.xlu1 %v10406_v19, %s10188_s13 }
 0x996   :  { %2328 = vrot.lane.b32.xlu0 %v10416_v26, %s10188_s13 }
 0x997   :  { %2571 = vrot.lane.b32.xlu1 %v10402_v15, %s10189_s0 }
 0x99a   :  { %2573 = vrot.lane.b32.xlu0 %v10398_v12, %s10189_s0 }
 0x99b   :  { %2678 = vrot.lane.b32.xlu1 %v10416_v26, %s10189_s0  ;;  %v2183_v39 = vpop.xlane.xlu1 %2182 }
 0x99e   :  { %2569 = vrot.lane.b32.xlu0 %v10390_v6, %s10189_s0 }
 0x99f   :  { %2676 = vrot.lane.b32.xlu1 %v10422_v28, %s10189_s0  ;;  %v2189_v43 = vpop.xlane.xlu1 %2188 }
 0x9a2   :  { %2567 = vrot.lane.b32.xlu0 %v10392_v8, %s10189_s0 }
 0x9a3   :  { %2561 = vrot.lane.b32.xlu1 %v10390_v6, %s10190_s16  ;;  %v2192_v45 = vpop.xlane.xlu1 %2191 }
 0x9a6   :  { %2559 = vrot.lane.b32.xlu0 %v10392_v8, %s10190_s16 }
 0x9a7   :  { %2563 = vrot.lane.b32.xlu1 %v10402_v15, %s10190_s16  ;;  %v2234_v7 = vpop.permute.xlu1 %2233 }
 0x9a8   :  { %8855 = vmatprep.subr.bf16.mxu0 %v2234_v7 }
 0x9a9   :  { %8856 = vmatpush3.bf16.msra.mxu0 %v2234_v7  ;;  %v2186_v60 = vpop.xlane.xlu0 %2185 }
 0x9aa   :  { %2674 = vrot.lane.b32.xlu0 %v10410_v21, %s10189_s0  ;;  %9443 = vmatprep.subr.msk.bf16.mxu0 %vm94_vm0, %v273_v47 }
 0x9ab   :  { %2672 = vrot.lane.b32.xlu1 %v10406_v19, %s10189_s0 }
 0x9ae   :  { %2565 = vrot.lane.b32.xlu0 %v10398_v12, %s10190_s16 }
 0x9af   :  { %2666 = vrot.lane.b32.xlu1 %v10410_v21, %s10190_s16 }
 0x9b2   :  { %2664 = vrot.lane.b32.xlu0 %v10406_v19, %s10190_s16 }
 0x9b3   :  { %2670 = vrot.lane.b32.xlu1 %v10416_v26, %s10190_s16 }
 0x9b6   :  { %2668 = vrot.lane.b32.xlu0 %v10422_v28, %s10190_s16 }
 0x9b7   :  { %2959 = vrot.lane.b32.xlu1 %v10398_v12, %s10191_s19 }
 0x9f5   :  { %v2153_v52 = vpop.xlane.xlu1 %2152 }
 0x9f9   :  { %v2147_v46 = vpop.xlane.xlu1 %2146 }
 0x9fd   :  { %v2156_v20 = vpop.xlane.xlu0 %2155 }
 0x9fe   :  { %9683 = vrcp.f32 %v2156_v20 }
 0x9ff   :  { %v2165_v33 = vpop.xlane.xlu1 %2164  ;;  %9685 = vrcp.f32 %v2147_v46 }
 0xa00   :  { %9687 = vrcp.f32 %v2153_v52 }
 0xa01   :  { %v2150_v29 = vpop.xlane.xlu0 %2149 }
 0xa02   :  { %9689 = vrcp.f32 %v2150_v29 }
 0xa03   :  { %v2159_v36 = vpop.xlane.xlu1 %2158  ;;  %9691 = vrcp.f32 %v11172_v11 }
 0xa04   :  { %9693 = vrcp.f32 %v11182_v51 }
 0xa05   :  { %v2168_v41 = vpop.xlane.xlu0 %2167  ;;  %9695 = vrcp.f32 %v2186_v60 }
 0xa06   :  { %9697 = vrcp.f32 %v2168_v41 }
 0xa07   :  { %v2327_v5 = vpop.permute.xlu1 %2326  ;;  %9699 = vrcp.f32 %v2159_v36 }
 0xa08   :  { %9701 = vrcp.f32 %v2165_v33 }
 0xa09   :  { %v2162_v12 = vpop.xlane.xlu0 %2161 }
 0xa0a   :  { %9703 = vrcp.f32 %v2162_v12 }
 0xa0b   :  { %9705 = vrcp.f32 %v2183_v39  ;;  %v2325_v1 = vpop.permute.xlu1 %2324  ;;  %v9684_v38 = vpop.eup %9683 }
 0xa0c   :  { %v9686_v7 = vpop.eup %9685  ;;  %v2212_v11 = vmul.f32 %v9684_v38, %v11174_v34  ;;  %9707 = vrcp.f32 %v2192_v45  ;;  %v2444_v34 = vsel %vm94_vm0, %v273_v47, 0 }
 0xa0d   :  { %v2329_v52 = vpop.permute.xlu0 %2328  ;;  %v9688_v46 = vpop.eup %9687  ;;  %v2209_v60 = vmul.f32 %v9686_v7, %v11168_v58  ;;  %9709 = vrcp.f32 %v2189_v43 }
 0xa0e   :  { %8865 = vmatprep.subr.bf16.mxu1 %v2329_v52  ;;  %v2211_v39 = vmul.f32 %v9688_v46, %v11164_v9 }
 0xa0f   :  { %v9690_v20 = vpop.eup %9689  ;;  %8866 = vmatpush3.bf16.msra.mxu1 %v2329_v52  ;;  %v2323_v51 = vpop.permute.xlu1 %2322 }
 0xa10   :  { %8867 = vmatprep.subr.bf16.mxu1 %v2327_v5  ;;  %v2210_v33 = vmul.f32 %v9690_v20, %v11176_v27  ;;  %v9692_v29 = vpop.eup %9691  ;;  %v2226_v30 = vpack.c.bf16 %v2212_v11, %v2211_v39 }
 0xa11   :  { %v9694_v36 = vpop.eup %9693  ;;  %v2574_v52 = vpop.permute.xlu0 %2573 }
 0xa12   :  { %v2225_v41 = vpack.c.bf16 %v2210_v33, %v2209_v60  ;;  %v9696_v12 = vpop.eup %9695  ;;  %v2220_v7 = vmul.f32 %v9694_v36, %v11126_v59 }
 0xa13   :  { %8868 = vmatpush3.bf16.msra.mxu1 %v2327_v5  ;;  %v2572_v23 = vpop.permute.xlu1 %2571  ;;  %v9698_v38 = vpop.eup %9697  ;;  %v2222_v20 = vmul.f32 %v9696_v12, %v11150_v56 }
 0xa14   :  { %8857 = vmatprep.mubr.msk.bf16.mxu0 %vm640_vm4, %v2225_v41  ;;  %8869 = vmatprep.subr.bf16.mxu1 %v2325_v1  ;;  %v9700_v58 = vpop.eup %9699  ;;  %v2216_v45 = vmul.f32 %v9698_v38, %v11186_v4 }
 0xa15   :  { %8858 = vmatmul.mubr.msk.bf16.vlgmr.msra.gmra.mxu0 %vm640_vm4, %v2226_v30  ;;  %v9702_v27 = vpop.eup %9701  ;;  %v2213_v47 = vmul.f32 %v9700_v58, %v11190_v48  ;;  %v2570_v11 = vpop.permute.xlu0 %2569 }
 0xa16   :  { %8882 = vmatpush3.bf16.msra.mxu0 %v2444_v34  ;;  %v2215_v30 = vmul.f32 %v9702_v27, %v11180_v42  ;;  %v2594_v34 = vsel %vm449_vm3, %v2572_v23, 0  ;;  %v2591_v58 = vsel %vm449_vm3, %v2570_v11, 0 }
 0xa17   :  { %v9704_v9 = vpop.eup %9703  ;;  %8870 = vmatpush3.bf16.msra.mxu1 %v2325_v1  ;;  %v11258_v43 = vpop.permute.xlu1 %2678  ;;  %v2219_v1 = vmul.f32 %v9692_v29, %v11122_v0  ;;  %v2597_v0 = vsel %vm449_vm3, %v2574_v52, 0 }
 0xa18   :  { %v9706_v5 = vpop.eup %9705  ;;  %8871 = vmatprep.subr.bf16.mxu1 %v2323_v51  ;;  %9448 = vmatprep.subr.msk.bf16.mxu0 %vm449_vm3, %v11258_v43  ;;  %v2214_v46 = vmul.f32 %v9704_v9, %v11196_v62  ;;  %v2228_v59 = vpack.c.bf16 %v2216_v45, %v2215_v30 }
 0xa19   :  { %v2221_v33 = vmul.f32 %v9706_v5, %v11138_v40  ;;  %v2230_v48 = vpack.c.bf16 %v2220_v7, %v2219_v1  ;;  %v9708_v62 = vpop.eup %9707  ;;  %v2568_v29 = vpop.permute.xlu0 %2567 }
 0xa1a   :  { %v2227_v60 = vpack.c.bf16 %v2214_v46, %v2213_v47  ;;  %v9710_v56 = vpop.eup %9709  ;;  %v2224_v40 = vmul.f32 %v9708_v62, %v11146_v32  ;;  %v2588_v32 = vsel %vm449_vm3, %v2568_v29, 0 }
 0xa1b   :  { %8872 = vmatpush3.bf16.msra.mxu1 %v2323_v51  ;;  %v11269_v4 = vpop.permute.xlu1 %2676  ;;  %v2231_v42 = vpack.c.bf16 %v2222_v20, %v2221_v33  ;;  %v2223_v39 = vmul.f32 %v9710_v56, %v11142_v63 }
 0xa1c   :  { %8861 = vmatprep.mubr.msk.bf16.mxu0 %vm640_vm4, %v2227_v60  ;;  %9444 = vmatprep.subr.msk.bf16.mxu1 %vm449_vm3, %v2574_v52  ;;  %v2702_v60 = vsel %vm449_vm3, %v11258_v43, 0  ;;  %v2699_v43 = vsel %vm449_vm3, %v11269_v4, 0 }
 0xa1d   :  { %8862 = vmatmul.mubr.msk.bf16.gmra.mxu0 %vm640_vm4, %v2228_v59  ;;  %v2232_v41 = vpack.c.bf16 %v2224_v40, %v2223_v39  ;;  %v2560_v12 = vpop.permute.xlu0 %2559 }
 0xa1e   :  { %8874 = vmatmul.mubr.msk.bf16.vlgmr.msra.gmra.mxu1 %vm640_vm4, %v2230_v48 }
 0xa1f   :  { %8877 = vmatprep.mubr.msk.bf16.mxu1 %vm640_vm4, %v2231_v42  ;;  %8900 = vmatpush3.bf16.xpose.msra.mxu1 %v2597_v0  ;;  %v2562_v51 = vpop.permute.xlu1 %2561 }
 0xa20   :  { %9445 = vmatprep.subr.msk.bf16.mxu1 %vm449_vm3, %v2572_v23 }
 0xa21   :  { %v2675_v23 = vpop.permute.xlu0 %2674 }
 0xa23   :  { %v2564_v36 = vpop.permute.xlu1 %2563 }
 0xa25   :  { %v2566_v9 = vpop.permute.xlu0 %2565 }
 0xa26   :  { %8878 = vmatmul.mubr.msk.bf16.gmra.mxu1 %vm640_vm4, %v2232_v41 }
 0xa27   :  { %8902 = vmatpush3.bf16.xpose.msra.mxu1 %v2594_v34  ;;  %8907 = vmatprep.mubr.msk.bf16.mxu1 %vm449_vm3, %v2560_v12  ;;  %v2673_v38 = vpop.permute.xlu1 %2672  ;;  %v2696_v34 = vsel %vm449_vm3, %v2675_v23, 0 }
 0xa28   :  { %9446 = vmatprep.subr.msk.bf16.mxu1 %vm449_vm3, %v2570_v11 }
 0xa2b   :  { %v2667_v52 = vpop.permute.xlu1 %2666 }
 0xa2f   :  { %8904 = vmatpush3.bf16.xpose.msra.mxu1 %v2591_v58  ;;  %v11287_v63 = vpop.permute.xlu1 %2670  ;;  %v2665_v58 = vpop.permute.xlu0 %2664 }
 0xa30   :  { %9447 = vmatprep.subr.msk.bf16.mxu1 %vm449_vm3, %v2568_v29 }
 0xa33   :  { %v2960_v27 = vpop.permute.xlu1 %2959 }
 0xa37   :  { %8906 = vmatpush3.bf16.xpose.msra.mxu1 %v2588_v32  ;;  %v2693_v32 = vsel %vm449_vm3, %v2673_v38, 0 }
 0xa38   :  { %8931 = vmatprep.subr.bf16.mxu1 %v2960_v27 }
 0xa3e   :  { %8908 = vmatmul.mubr.msk.bf16.vlgmr.msra.gmra.mxu1 %vm449_vm3, %v2562_v51 }
 0xa3f   :  { %8911 = vmatprep.mubr.msk.bf16.mxu1 %vm449_vm3, %v2564_v36  ;;  %8932 = vmatpush3.bf16.msra.mxu1 %v2960_v27 }
 0xa46   :  { %8912 = vmatmul.mubr.msk.bf16.gmra.mxu1 %vm449_vm3, %v2566_v9  ;;  %v2669_v9 = vpop.permute.xlu0 %2668 }
 0xad5   :  { %v8859_v45 = vpop.f32.mrf.mxu0 }
 0xad7   :  { %v2291_v5 = vpop.f32.mrf.mxu0 }
 0xad9   :  { %v8860_v7 = vpop.f32.mrf.mxu0 }
 0xada   :  { %v2412_v30 = vpack.c.bf16 %v8860_v7, %v8859_v45 }
 0xadb   :  { %v2294_v47 = vpop.f32.mrf.mxu0 }
 0xadc   :  { %v2411_v46 = vpack.c.bf16 %v2294_v47, %v2291_v5 }
 0xadd   :  { %v8863_v20 = vpop.f32.mrf.mxu0 }
 0xade   :  { %v8875_v1 = vpop.f32.mrf.mxu1  ;;  %8883 = vmatprep.mubr.msk.bf16.mxu0 %vm449_vm3, %v2411_v46 }
 0xadf   :  { %v2307_v11 = vpop.f32.mrf.mxu0  ;;  %8884 = vmatmul.mubr.msk.bf16.vlgmr.msra.gmra.mxu0 %vm449_vm3, %v2412_v30 }
 0xae0   :  { %8916 = vmatpush3.bf16.xpose.msra.mxu0 %v2702_v60  ;;  %v2380_v59 = vpop.f32.mrf.mxu1 }
 0xae1   :  { %9449 = vmatprep.subr.msk.bf16.mxu0 %vm449_vm3, %v11269_v4  ;;  %v8864_v33 = vpop.f32.mrf.mxu0 }
 0xae2   :  { %v8876_v48 = vpop.f32.mrf.mxu1  ;;  %v2414_v56 = vpack.c.bf16 %v8864_v33, %v8863_v20 }
 0xae3   :  { %v2310_v62 = vpop.f32.mrf.mxu0  ;;  %v2416_v41 = vpack.c.bf16 %v8876_v48, %v8875_v1 }
 0xae4   :  { %v2413_v42 = vpack.c.bf16 %v2310_v62, %v2307_v11  ;;  %v2383_v0 = vpop.f32.mrf.mxu1 }
 0xae5   :  { %v2415_v51 = vpack.c.bf16 %v2383_v0, %v2380_v59 }
 0xae6   :  { %v8879_v29 = vpop.f32.mrf.mxu1  ;;  %8887 = vmatprep.mubr.msk.bf16.mxu0 %vm449_vm3, %v2413_v42 }
 0xae7   :  { %8888 = vmatmul.mubr.msk.bf16.gmra.mxu0 %vm449_vm3, %v2414_v56 }
 0xae8   :  { %8918 = vmatpush3.bf16.xpose.msra.mxu0 %v2699_v43  ;;  %v2396_v40 = vpop.f32.mrf.mxu1  ;;  %8891 = vmatprep.mubr.msk.bf16.mxu0 %vm449_vm3, %v2415_v51 }
 0xae9   :  { %9450 = vmatprep.subr.msk.bf16.mxu0 %vm449_vm3, %v2675_v23 }
 0xaea   :  { %v8880_v39 = vpop.f32.mrf.mxu1 }
 0xaeb   :  { %v2418_v4 = vpack.c.bf16 %v8880_v39, %v8879_v29 }
 0xaec   :  { %v2399_v36 = vpop.f32.mrf.mxu1 }
 0xaed   :  { %v2417_v12 = vpack.c.bf16 %v2399_v36, %v2396_v40 }
 0xaef   :  { %8892 = vmatmul.mubr.msk.bf16.gmra.mxu0 %vm449_vm3, %v2416_v41 }
 0xaf0   :  { %8920 = vmatpush3.bf16.xpose.msra.mxu0 %v2696_v34  ;;  %8895 = vmatprep.mubr.msk.bf16.mxu0 %vm449_vm3, %v2417_v12 }
 0xaf1   :  { %9451 = vmatprep.subr.msk.bf16.mxu0 %vm449_vm3, %v2673_v38 }
 0xaf7   :  { %8896 = vmatmul.mubr.msk.bf16.gmra.mxu0 %vm449_vm3, %v2418_v4 }
 0xaf8   :  { %8922 = vmatpush3.bf16.xpose.msra.mxu0 %v2693_v32  ;;  %8923 = vmatprep.mubr.msk.bf16.mxu0 %vm449_vm3, %v2665_v58 }
 0xafe   :  { %v8909_v27 = vpop.f32.mrf.mxu1 }
 0xaff   :  { %8924 = vmatmul.mubr.msk.bf16.vlgmr.msra.gmra.mxu0 %vm449_vm3, %v2667_v52  ;;  %v2775_v23 = vsel %vm640_vm4, %v8909_v27, -inf }
 0xb00   :  { %2776 = vmax.xlane.f32.xlu0 %v2775_v23  ;;  %v2633_v45 = vpop.f32.mrf.mxu1  ;;  %8927 = vmatprep.mubr.msk.bf16.mxu0 %vm449_vm3, %v2669_v9 }
 0xb01   :  { %v2769_v7 = vsel %vm640_vm4, %v2633_v45, -inf }
 0xb02   :  { %v8910_v5 = vpop.f32.mrf.mxu1 }
 0xb03   :  { %v2778_v52 = vsel %vm640_vm4, %v8910_v5, -inf }
 0xb04   :  { %2770 = vmax.xlane.f32.xlu0 %v2769_v7  ;;  %v2636_v47 = vpop.f32.mrf.mxu1 }
 0xb05   :  { %v2772_v38 = vsel %vm640_vm4, %v2636_v47, -inf }
 0xb06   :  { %2773 = vmax.xlane.f32.xlu1 %v2772_v38  ;;  %v8913_v46 = vpop.f32.mrf.mxu1 }
 0xb07   :  { %8928 = vmatmul.mubr.msk.bf16.gmra.mxu0 %vm449_vm3, %v11287_v63  ;;  %v2787_v20 = vsel %vm640_vm4, %v8913_v46, -inf }
 0xb08   :  { %2779 = vmax.xlane.f32.xlu0 %v2778_v52  ;;  %v2649_v30 = vpop.f32.mrf.mxu1 }
 0xb09   :  { %v2781_v59 = vsel %vm640_vm4, %v2649_v30, -inf }
 0xb0a   :  { %2788 = vmax.xlane.f32.xlu1 %v2787_v20  ;;  %v8914_v1 = vpop.f32.mrf.mxu1 }
 0xb0b   :  { %v2790_v11 = vsel %vm640_vm4, %v8914_v1, -inf }
 0xb0c   :  { %2791 = vmax.xlane.f32.xlu0 %v2790_v11  ;;  %v2652_v60 = vpop.f32.mrf.mxu1 }
 0xb0d   :  { %v2784_v33 = vsel %vm640_vm4, %v2652_v60, -inf }
 0xb0e   :  { %2782 = vmax.xlane.f32.xlu1 %v2781_v59 }
 0xb10   :  { %2785 = vmax.xlane.f32.xlu0 %v2784_v33 }
 0xb89   :  { %v2777_v48 = vpop.xlane.xlu0 %2776 }
 0xb8a   :  { %v2819_v63 = vsub.f32 %v8909_v27, %v2777_v48 }
 0xb8c   :  { %v2837_v62 = vmul.f32 1.442695, %v2819_v63 }
 0xb8d   :  { %v2771_v42 = vpop.xlane.xlu0 %2770 }
 0xb8e   :  { %9711 = vpow2.f32 %v2837_v62  ;;  %v2817_v0 = vsub.f32 %v2633_v45, %v2771_v42 }
 0xb8f   :  { %v2774_v56 = vpop.xlane.xlu1 %2773 }
 0xb90   :  { %v2833_v51 = vmul.f32 1.442695, %v2817_v0  ;;  %v2818_v29 = vsub.f32 %v2636_v47, %v2774_v56 }
 0xb91   :  { %v2780_v43 = vpop.xlane.xlu0 %2779 }
 0xb92   :  { %9713 = vpow2.f32 %v2833_v51  ;;  %v2820_v40 = vsub.f32 %v8910_v5, %v2780_v43  ;;  %v2835_v39 = vmul.f32 1.442695, %v2818_v29 }
 0xb93   :  { %v2789_v36 = vpop.xlane.xlu1 %2788 }
 0xb94   :  { %v2839_v41 = vmul.f32 1.442695, %v2820_v40  ;;  %v2823_v12 = vsub.f32 %v8913_v46, %v2789_v36 }
 0xb95   :  { %v2792_v34 = vpop.xlane.xlu0 %2791 }
 0xb96   :  { %9715 = vpow2.f32 %v2839_v41  ;;  %v2845_v4 = vmul.f32 1.442695, %v2823_v12  ;;  %v2824_v58 = vsub.f32 %v8914_v1, %v2792_v34 }
 0xb97   :  { %9717 = vpow2.f32 %v2835_v39  ;;  %v2783_v32 = vpop.xlane.xlu1 %2782 }
 0xb98   :  { %9719 = vpow2.f32 %v2845_v4  ;;  %v2847_v27 = vmul.f32 1.442695, %v2824_v58  ;;  %v2821_v9 = vsub.f32 %v2649_v30, %v2783_v32  ;;  %v1809_v4 = vadd.f32 %v11014_v25, %v11068_v49 }
 0xb99   :  { %v2786_v23 = vpop.xlane.xlu0 %2785  ;;  %v1833_v25 = vadd.f32 %v11026_v55, %v11076_v54  ;;  %v1825_v49 = vadd.f32 %v11030_v37, %v11080_v18 }
 0xb9a   :  { %v2841_v45 = vmul.f32 1.442695, %v2821_v9  ;;  %v2822_v7 = vsub.f32 %v2652_v60, %v2786_v23  ;;  %9721 = vpow2.f32 %v2847_v27  ;;  %v1820_v27 = vadd.f32 %v11018_v61, %v11070_v35 }
 0xb9b   :  { %v11324_v47 = vpop.eup %9711  ;;  %v1836_v61 = vadd.f32 %v11034_v53, %v11082_v44 }
 0xb9c   :  { %9723 = vpow2.f32 %v2841_v45  ;;  %v2843_v5 = vmul.f32 1.442695, %v2822_v7  ;;  %v2871_v38 = vsel %vm640_vm4, %v11324_v47, 0.0 }
 0xb9d   :  { %2872 = vadd.xlane.f32.xlu1 %v2871_v38 }
 0xb9e   :  { %9725 = vpow2.f32 %v2843_v5 }
 0xb9f   :  { %v11328_v46 = vpop.eup %9713  ;;  %v8885_v52 = vpop.f32.mrf.mxu0 }
 0xba0   :  { %v11331_v20 = vadd.f32 %v8885_v52, %v11020_v3  ;;  %v2865_v30 = vsel %vm640_vm4, %v11328_v46, 0.0 }
 0xba1   :  { %v2480_v1 = vpop.f32.mrf.mxu0  ;;  %2866 = vadd.xlane.f32.xlu1 %v2865_v30 }
 0xba2   :  { %v11336_v11 = vadd.f32 %v2480_v1, %v11024_v50 }
 0xba3   :  { %v11338_v60 = vpop.eup %9715  ;;  %v8886_v59 = vpop.f32.mrf.mxu0 }
 0xba4   :  { %v11340_v33 = vpop.eup %9717  ;;  %v11343_v48 = vadd.f32 %v8886_v59, %v11028_v13  ;;  %v2874_v3 = vsel %vm640_vm4, %v11338_v60, 0.0 }
 0xba5   :  { %v11347_v63 = vpop.eup %9719  ;;  %v11349_v62 = vpop.f32.mrf.mxu0  ;;  %2875 = vadd.xlane.f32.xlu0 %v2874_v3  ;;  %v2868_v13 = vsel %vm640_vm4, %v11340_v33, 0.0 }
 0xba6   :  { %v2883_v50 = vsel %vm640_vm4, %v11347_v63, 0.0 }
 0xba7   :  { %v8889_v42 = vpop.f32.mrf.mxu0  ;;  %2884 = vadd.xlane.f32.xlu1 %v2883_v50  ;;  %v11353_v0 = vpop.eup %9721 }
 0xba8   :  { %v11356_v56 = vadd.f32 %v8889_v42, %v11036_v14  ;;  %v2886_v14 = vsel %vm640_vm4, %v11353_v0, 0.0 }
 0xba9   :  { %v11360_v51 = vpop.eup %9723  ;;  %v2496_v29 = vpop.f32.mrf.mxu0  ;;  %2869 = vadd.xlane.f32.xlu0 %v2868_v13 }
 0xbaa   :  { %v11363_v43 = vadd.f32 %v2496_v29, %v11040_v10  ;;  %v2877_v40 = vsel %vm640_vm4, %v11360_v51, 0.0  ;;  %v1817_v10 = vadd.f32 %v11012_v17, %v11066_v2 }
 0xbab   :  { %v8890_v39 = vpop.f32.mrf.mxu0  ;;  %2878 = vadd.xlane.f32.xlu1 %v2877_v40  ;;  %v11372_v41 = vpop.eup %9725 }
 0xbac   :  { %v11368_v36 = vadd.f32 %v8890_v39, %v11043_v16  ;;  %v2880_v16 = vsel %vm640_vm4, %v11372_v41, 0.0 }
 0xbad   :  { %v11374_v12 = vpop.f32.mrf.mxu0  ;;  %2887 = vadd.xlane.f32.xlu0 %v2886_v14 }
 0xbaf   :  { %v8893_v34 = vpop.f32.mrf.mxu0 }
 0xbb0   :  { %v11380_v58 = vadd.f32 %v8893_v34, %v1817_v10 }
 0xbb1   :  { %v2512_v32 = vpop.f32.mrf.mxu0  ;;  %2881 = vadd.xlane.f32.xlu0 %v2880_v16 }
 0xbb2   :  { %v11386_v9 = vadd.f32 %v2512_v32, %v1809_v4 }
 0xbb3   :  { %v8894_v23 = vpop.f32.mrf.mxu0 }
 0xbb4   :  { %v11388_v45 = vadd.f32 %v8894_v23, %v1820_v27 }
 0xbb5   :  { %v11390_v17 = vpop.f32.mrf.mxu0 }
 0xbb7   :  { %v8897_v2 = vpop.f32.mrf.mxu0 }
 0xbb8   :  { %v11396_v7 = vadd.f32 %v8897_v2, %v1833_v25 }
 0xbb9   :  { %v2528_v5 = vpop.f32.mrf.mxu0 }
 0xbba   :  { %v11400_v35 = vadd.f32 %v2528_v5, %v1825_v49 }
 0xbbb   :  { %v8898_v38 = vpop.f32.mrf.mxu0 }
 0xbbc   :  { %v11402_v52 = vadd.f32 %v8898_v38, %v1836_v61 }
 0xbbd   :  { %v11404_v30 = vpop.f32.mrf.mxu0 }
 0xbbf   :  { %v8925_v1 = vpop.f32.mrf.mxu0 }
 0xbc0   :  { %v2799_v55 = vsel %vm640_vm4, %v8925_v1, -inf }
 0xbc1   :  { %v2738_v54 = vpop.f32.mrf.mxu0  ;;  %2800 = vmax.xlane.f32.xlu1 %v2799_v55 }
 0xbc2   :  { %v2793_v18 = vsel %vm640_vm4, %v2738_v54, -inf }
 0xbc3   :  { %v8926_v59 = vpop.f32.mrf.mxu0 }
 0xbc4   :  { %v2802_v37 = vsel %vm640_vm4, %v8926_v59, -inf }
 0xbc5   :  { %v2741_v3 = vpop.f32.mrf.mxu0  ;;  %2803 = vmax.xlane.f32.xlu0 %v2802_v37  ;;  %2794 = vmax.xlane.f32.xlu1 %v2793_v18 }
 0xbc6   :  { %v2796_v44 = vsel %vm640_vm4, %v2741_v3, -inf }
 0xbc7   :  { %v8929_v53 = vpop.f32.mrf.mxu0 }
 0xbc8   :  { %v2811_v50 = vsel %vm640_vm4, %v8929_v53, -inf }
 0xbc9   :  { %v2754_v42 = vpop.f32.mrf.mxu0  ;;  %2797 = vmax.xlane.f32.xlu0 %v2796_v44  ;;  %2812 = vmax.xlane.f32.xlu1 %v2811_v50 }
 0xbca   :  { %v2805_v40 = vsel %vm640_vm4, %v2754_v42, -inf }
 0xbcb   :  { %v8930_v13 = vpop.f32.mrf.mxu0 }
 0xbcc   :  { %v2814_v29 = vsel %vm640_vm4, %v8930_v13, -inf }
 0xbcd   :  { %v11413_v39 = vpop.f32.mrf.mxu0  ;;  %2815 = vmax.xlane.f32.xlu0 %v2814_v29  ;;  %2806 = vmax.xlane.f32.xlu1 %v2805_v40 }
 0xbce   :  { %v2808_v14 = vsel %vm640_vm4, %v11413_v39, -inf }
 0xbd1   :  { %2809 = vmax.xlane.f32.xlu0 %v2808_v14 }
 0xbde   :  { %2957 = vrot.lane.b32.xlu1 %v10402_v15, %s10191_s19 }
 0xbe2   :  { %2953 = vrot.lane.b32.xlu1 %v10392_v8, %s10191_s19 }
 0xbe7   :  { %2955 = vrot.lane.b32.xlu0 %v10390_v6, %s10191_s19 }
 0xc26   :  { %v2873_v10 = vpop.xlane.xlu1 %2872 }
 0xc2a   :  { %v2867_v34 = vpop.xlane.xlu1 %2866 }
 0xc2b   :  { %9727 = vrcp.f32 %v2867_v34 }
 0xc2e   :  { %v2876_v4 = vpop.xlane.xlu0 %2875 }
 0xc30   :  { %v2885_v23 = vpop.xlane.xlu1 %2884 }
 0xc32   :  { %v2870_v16 = vpop.xlane.xlu0 %2869 }
 0xc33   :  { %9729 = vrcp.f32 %v2870_v16 }
 0xc34   :  { %v2879_v8 = vpop.xlane.xlu1 %2878 }
 0xc36   :  { %v2888_v49 = vpop.xlane.xlu0 %2887 }
 0xc38   :  { %v9728_v32 = vpop.eup %9727 }
 0xc39   :  { %v2929_v25 = vmul.f32 %v9728_v32, %v11328_v46 }
 0xc3a   :  { %v2882_v5 = vpop.xlane.xlu0 %2881 }
 0xc40   :  { %v9730_v27 = vpop.eup %9729 }
 0xc41   :  { %v2930_v2 = vmul.f32 %v9730_v27, %v11340_v33 }
 0xc43   :  { %v2945_v15 = vpack.c.bf16 %v2930_v2, %v2929_v25 }
 0xc45   :  { %8939 = vmatprep.mubr.msk.bf16.mxu1 %vm640_vm4, %v2945_v15 }
 0xc4a   :  { %v2801_v6 = vpop.xlane.xlu1 %2800 }
 0xc4b   :  { %v2827_v61 = vsub.f32 %v8925_v1, %v2801_v6 }
 0xc4d   :  { %v2853_v38 = vmul.f32 1.442695, %v2827_v61 }
 0xc4e   :  { %v2804_v55 = vpop.xlane.xlu0 %2803  ;;  %v2795_v37 = vpop.xlane.xlu1 %2794 }
 0xc4f   :  { %9731 = vpow2.f32 %v2853_v38  ;;  %v2828_v18 = vsub.f32 %v8926_v59, %v2804_v55  ;;  %v2825_v44 = vsub.f32 %v2738_v54, %v2795_v37 }
 0xc50   :  { %9733 = vrcp.f32 %v2873_v10 }
 0xc51   :  { %v2849_v50 = vmul.f32 1.442695, %v2825_v44  ;;  %9735 = vrcp.f32 %v2876_v4  ;;  %v2855_v46 = vmul.f32 1.442695, %v2828_v18 }
 0xc52   :  { %v2798_v29 = vpop.xlane.xlu0 %2797  ;;  %v2813_v33 = vpop.xlane.xlu1 %2812  ;;  %9737 = vrcp.f32 %v2882_v5 }
 0xc53   :  { %v2826_v40 = vsub.f32 %v2741_v3, %v2798_v29  ;;  %v2831_v14 = vsub.f32 %v8929_v53, %v2813_v33  ;;  %9739 = vpow2.f32 %v2849_v50 }
 0xc54   :  { %9741 = vrcp.f32 %v2879_v8 }
 0xc55   :  { %v2861_v34 = vmul.f32 1.442695, %v2831_v14  ;;  %9743 = vpow2.f32 %v2855_v46  ;;  %v2851_v1 = vmul.f32 1.442695, %v2826_v40 }
 0xc56   :  { %v2816_v16 = vpop.xlane.xlu0 %2815  ;;  %v2807_v32 = vpop.xlane.xlu1 %2806 }
 0xc57   :  { %v2832_v27 = vsub.f32 %v8930_v13, %v2816_v16  ;;  %v2829_v25 = vsub.f32 %v2754_v42, %v2807_v32  ;;  %9745 = vpow2.f32 %v2861_v34 }
 0xc58   :  { %9747 = vrcp.f32 %v2888_v49 }
 0xc59   :  { %v2857_v54 = vmul.f32 1.442695, %v2829_v25  ;;  %9749 = vpow2.f32 %v2851_v1  ;;  %v2863_v59 = vmul.f32 1.442695, %v2832_v27 }
 0xc5a   :  { %v2810_v10 = vpop.xlane.xlu0 %2809  ;;  %v2958_v4 = vpop.permute.xlu1 %2957  ;;  %9751 = vrcp.f32 %v2885_v23 }
 0xc5b   :  { %v2830_v3 = vsub.f32 %v11413_v39, %v2810_v10  ;;  %8933 = vmatprep.subr.bf16.mxu1 %v2958_v4  ;;  %9753 = vpow2.f32 %v2857_v54 }
 0xc5c   :  { %v11427_v53 = vpop.eup %9731  ;;  %8934 = vmatpush3.bf16.msra.mxu1 %v2958_v4  ;;  %9755 = vpow2.f32 %v2863_v59 }
 0xc5d   :  { %v2859_v2 = vmul.f32 1.442695, %v2830_v3  ;;  %v2895_v13 = vsel %vm640_vm4, %v11427_v53, 0.0  ;;  %v9734_v42 = vpop.eup %9733 }
 0xc5e   :  { %v2956_v15 = vpop.permute.xlu0 %2955  ;;  %2896 = vadd.xlane.f32.xlu0 %v2895_v13  ;;  %v9736_v49 = vpop.eup %9735  ;;  %v2931_v37 = vmul.f32 %v9734_v42, %v11324_v47 }
 0xc5f   :  { %9757 = vpow2.f32 %v2859_v2  ;;  %8935 = vmatprep.subr.bf16.mxu1 %v2956_v15  ;;  %v9738_v8 = vpop.eup %9737  ;;  %v2954_v23 = vpop.permute.xlu1 %2953  ;;  %v2932_v6 = vmul.f32 %v9736_v49, %v11338_v60 }
 0xc60   :  { %8936 = vmatpush3.bf16.msra.mxu1 %v2956_v15  ;;  %v11431_v39 = vpop.eup %9739  ;;  %v2934_v55 = vmul.f32 %v9738_v8, %v11372_v41 }
 0xc61   :  { %8937 = vmatprep.subr.bf16.mxu1 %v2954_v23  ;;  %v9742_v5 = vpop.eup %9741  ;;  %v2889_v61 = vsel %vm640_vm4, %v11431_v39, 0.0  ;;  %v2946_v29 = vpack.c.bf16 %v2932_v6, %v2931_v37 }
 0xc62   :  { %v11436_v38 = vpop.eup %9743  ;;  %2890 = vadd.xlane.f32.xlu0 %v2889_v61  ;;  %v2933_v44 = vmul.f32 %v9742_v5, %v11360_v51 }
 0xc63   :  { %v2898_v46 = vsel %vm640_vm4, %v11436_v38, 0.0 }
 0xc64   :  { %8938 = vmatpush3.bf16.msra.mxu1 %v2954_v23  ;;  %v11440_v18 = vpop.eup %9745  ;;  %v2947_v40 = vpack.c.bf16 %v2934_v55, %v2933_v44 }
 0xc65   :  { %v9748_v50 = vpop.eup %9747  ;;  %v2907_v60 = vsel %vm640_vm4, %v11440_v18, 0.0 }
 0xc66   :  { %v9750_v33 = vpop.eup %9749  ;;  %2899 = vadd.xlane.f32.xlu0 %v2898_v46  ;;  %2908 = vadd.xlane.f32.xlu1 %v2907_v60  ;;  %v2936_v34 = vmul.f32 %v9748_v50, %v11353_v0 }
 0xc67   :  { %v9752_v41 = vpop.eup %9751  ;;  %8940 = vmatmul.mubr.msk.bf16.vlgmr.msra.gmra.mxu1 %vm640_vm4, %v2946_v29  ;;  %v2892_v51 = vsel %vm640_vm4, %v9750_v33, 0.0 }
 0xc68   :  { %v11448_v47 = vpop.eup %9753  ;;  %8943 = vmatprep.mubr.msk.bf16.mxu1 %vm640_vm4, %v2947_v40  ;;  %v2935_v32 = vmul.f32 %v9752_v41, %v11347_v63  ;;  %v274_v63 = vld [vmem:[%s13610_s4 + $0xc] sm:$0xf] }
 0xc69   :  { %v2901_v14 = vsel %vm640_vm4, %v11448_v47, 0.0  ;;  %v11455_v1 = vpop.eup %9755  ;;  %9452 = vmatprep.subr.msk.bf16.mxu1 %vm94_vm0, %v274_v63  ;;  %v3164_v0 = vsel %vm94_vm0, %v274_v63, 0 }
 0xc6a   :  { %2893 = vadd.xlane.f32.xlu0 %v2892_v51  ;;  %2902 = vadd.xlane.f32.xlu1 %v2901_v14  ;;  %v2910_v25 = vsel %vm640_vm4, %v11455_v1, 0.0  ;;  %v2948_v54 = vpack.c.bf16 %v2936_v34, %v2935_v32 }
 0xc6b   :  { %8964 = vmatpush3.bf16.msra.mxu1 %v3164_v0 }
 0xc6c   :  { %v9758_v16 = vpop.eup %9757 }
 0xc6d   :  { %v2904_v27 = vsel %vm640_vm4, %v9758_v16, 0.0 }
 0xc6e   :  { %2905 = vadd.xlane.f32.xlu0 %v2904_v27  ;;  %2911 = vadd.xlane.f32.xlu1 %v2910_v25 }
 0xc6f   :  { %8944 = vmatmul.mubr.msk.bf16.gmra.mxu1 %vm640_vm4, %v2948_v54 }
 0xc7f   :  { %3046 = vrot.lane.b32.xlu1 %v10422_v28, %s10191_s19 }
 0xc83   :  { %3044 = vrot.lane.b32.xlu1 %v10410_v21, %s10191_s19 }
 0xc84   :  { %3048 = vrot.lane.b32.xlu0 %v10416_v26, %s10191_s19 }
 0xc87   :  { %3042 = vrot.lane.b32.xlu1 %v10406_v19, %s10191_s19 }
 0xce7   :  { %v2897_v59 = vpop.xlane.xlu0 %2896 }
 0xceb   :  { %v2891_v28 = vpop.xlane.xlu0 %2890 }
 0xcec   :  { %9759 = vrcp.f32 %v2891_v28 }
 0xcef   :  { %v2900_v10 = vpop.xlane.xlu0 %2899  ;;  %v2909_v4 = vpop.xlane.xlu1 %2908 }
 0xcf3   :  { %v2894_v21 = vpop.xlane.xlu0 %2893  ;;  %v2903_v3 = vpop.xlane.xlu1 %2902 }
 0xcf4   :  { %9761 = vrcp.f32 %v2894_v21 }
 0xcf5   :  { %9763 = vrcp.f32 %v2900_v10 }
 0xcf6   :  { %9765 = vrcp.f32 %v2897_v59 }
 0xcf7   :  { %v2906_v19 = vpop.xlane.xlu0 %2905  ;;  %v2912_v26 = vpop.xlane.xlu1 %2911 }
 0xcf8   :  { %9767 = vrcp.f32 %v2906_v19 }
 0xcf9   :  { %9769 = vrcp.f32 %v2903_v3  ;;  %v9760_v42 = vpop.eup %9759 }
 0xcfa   :  { %9771 = vrcp.f32 %v2912_v26  ;;  %v2937_v8 = vmul.f32 %v9760_v42, %v11431_v39 }
 0xcfb   :  { %v3049_v2 = vpop.permute.xlu0 %3048  ;;  %v3047_v13 = vpop.permute.xlu1 %3046  ;;  %9773 = vrcp.f32 %v2909_v4 }
 0xcfc   :  { %8947 = vmatprep.subr.bf16.mxu0 %v3049_v2 }
 0xcfd   :  { %8948 = vmatpush3.bf16.msra.mxu0 %v3049_v2 }
 0xcfe   :  { %8949 = vmatprep.subr.bf16.mxu0 %v3047_v13 }
 0xcff   :  { %v3045_v15 = vpop.permute.xlu1 %3044 }
 0xd01   :  { %v9762_v49 = vpop.eup %9761  ;;  %8950 = vmatpush3.bf16.msra.mxu0 %v3047_v13 }
 0xd02   :  { %8951 = vmatprep.subr.bf16.mxu0 %v3045_v15  ;;  %v2938_v23 = vmul.f32 %v9762_v49, %v9750_v33  ;;  %v9764_v5 = vpop.eup %9763 }
 0xd03   :  { %v9766_v6 = vpop.eup %9765  ;;  %v3043_v37 = vpop.permute.xlu1 %3042  ;;  %v2940_v50 = vmul.f32 %v9764_v5, %v11436_v38 }
 0xd04   :  { %v2949_v61 = vpack.c.bf16 %v2938_v23, %v2937_v8  ;;  %v2939_v60 = vmul.f32 %v9766_v6, %v11427_v53  ;;  %v3281_v8 = vmul.f32 1.4142135, %v10330_v31  ;;  %v3279_v6 = vmul.f32 1.4142135, %v10318_v24 }
 0xd05   :  { %v9768_v55 = vpop.eup %9767  ;;  %8952 = vmatpush3.bf16.msra.mxu0 %v3045_v15 }
 0xd06   :  { %v9770_v44 = vpop.eup %9769  ;;  %8953 = vmatprep.subr.bf16.mxu0 %v3043_v37  ;;  %8955 = vmatprep.mubr.msk.bf16.mxu0 %vm640_vm4, %v2949_v61  ;;  %v2942_v46 = vmul.f32 %v9768_v55, %v9758_v16  ;;  %v2950_v39 = vpack.c.bf16 %v2940_v50, %v2939_v60  ;;  %v1780_v61 = vadd.f32 %v11004_v57, %v11032_v22  ;;  %v13670_v50 = vld [vmem:[#allocation6_spill] sm:$0xff] }
 0xd07   :  { %v2941_v29 = vmul.f32 %v9770_v44, %v11448_v47  ;;  %v9772_v33 = vpop.eup %9771 }
 0xd08   :  { %v9774_v41 = vpop.eup %9773  ;;  %v2944_v51 = vmul.f32 %v9772_v33, %v11455_v1  ;;  %v2544_v60 = vadd.f32 %v11349_v62, %v1780_v61  ;;  %v13681_v61 = vld [vmem:[#allocation20_spill] sm:$0xff] }
 0xd09   :  { %8954 = vmatpush3.bf16.msra.mxu0 %v3043_v37  ;;  %v2951_v40 = vpack.c.bf16 %v2942_v46, %v2941_v29  ;;  %v2943_v38 = vmul.f32 %v9774_v41, %v11440_v18  ;;  %v3282_v46 = vmul.f32 1.4142135, %v13670_v50 }
 0xd0b   :  { %v2952_v14 = vpack.c.bf16 %v2944_v51, %v2943_v38  ;;  %v13673_v38 = vld [vmem:[#allocation8_spill] sm:$0xff] }
 0xd0c   :  { %8956 = vmatmul.mubr.msk.bf16.vlgmr.msra.gmra.mxu0 %vm640_vm4, %v2950_v39  ;;  %v13671_v39 = vld [vmem:[#allocation5_spill] sm:$0xff] }
 0xd0d   :  { %8959 = vmatprep.mubr.msk.bf16.mxu0 %vm640_vm4, %v2951_v40  ;;  %v3280_v33 = vmul.f32 1.4142135, %v13671_v39 }
 0xd14   :  { %8960 = vmatmul.mubr.msk.bf16.gmra.mxu0 %vm640_vm4, %v2952_v14  ;;  %v3283_v14 = vmul.f32 1.4142135, %v13673_v38 }
 0xd27   :  { %v8941_v34 = vpop.f32.mrf.mxu1 }
 0xd29   :  { %v3011_v53 = vpop.f32.mrf.mxu1 }
 0xd2b   :  { %v8942_v16 = vpop.f32.mrf.mxu1 }
 0xd2c   :  { %v3132_v27 = vpack.c.bf16 %v8942_v16, %v8941_v34  ;;  %v13675_v34 = vld [vmem:[#allocation19_spill] sm:$0xff] }
 0xd2d   :  { %v3014_v32 = vpop.f32.mrf.mxu1 }
 0xd2e   :  { %v3131_v47 = vpack.c.bf16 %v3014_v32, %v3011_v53 }
 0xd2f   :  { %v8945_v25 = vpop.f32.mrf.mxu1 }
 0xd30   :  { %8965 = vmatprep.mubr.msk.bf16.mxu1 %vm449_vm3, %v3131_v47 }
 0xd31   :  { %v3027_v54 = vpop.f32.mrf.mxu1  ;;  %8966 = vmatmul.mubr.msk.bf16.vlgmr.msra.gmra.mxu1 %vm449_vm3, %v3132_v27 }
 0xd33   :  { %v8946_v63 = vpop.f32.mrf.mxu1 }
 0xd34   :  { %v3134_v59 = vpack.c.bf16 %v8946_v63, %v8945_v25 }
 0xd35   :  { %v3030_v0 = vpop.f32.mrf.mxu1 }
 0xd36   :  { %v3133_v1 = vpack.c.bf16 %v3030_v0, %v3027_v54  ;;  %v13676_v54 = vld [vmem:[#allocation9_spill] sm:$0xff] }
 0xd37   :  { %v3286_v63 = vmul.f32 1.4142135, %v13676_v54 }
 0xd38   :  { %8969 = vmatprep.mubr.msk.bf16.mxu1 %vm449_vm3, %v3133_v1 }
 0xd39   :  { %8970 = vmatmul.mubr.msk.bf16.gmra.mxu1 %vm449_vm3, %v3134_v59 }
 0xdcc   :  { %v8957_v18 = vpop.f32.mrf.mxu0 }
 0xdce   :  { %v3100_v28 = vpop.f32.mrf.mxu0 }
 0xdd0   :  { %v8958_v10 = vpop.f32.mrf.mxu0 }
 0xdd1   :  { %v3136_v3 = vpack.c.bf16 %v8958_v10, %v8957_v18  ;;  %v13677_v18 = vld [vmem:[#allocation7_spill] sm:$0xff] }
 0xdd2   :  { %v3103_v4 = vpop.f32.mrf.mxu0 }
 0xdd3   :  { %v3135_v21 = vpack.c.bf16 %v3103_v4, %v3100_v28  ;;  %v3284_v28 = vmul.f32 1.4142135, %v13677_v18 }
 0xdd4   :  { %v8961_v19 = vpop.f32.mrf.mxu0 }
 0xdd5   :  { %8973 = vmatprep.mubr.msk.bf16.mxu1 %vm449_vm3, %v3135_v21 }
 0xdd6   :  { %v3116_v26 = vpop.f32.mrf.mxu0  ;;  %8974 = vmatmul.mubr.msk.bf16.gmra.mxu1 %vm449_vm3, %v3136_v3 }
 0xdd8   :  { %v8962_v2 = vpop.f32.mrf.mxu0 }
 0xdd9   :  { %v3138_v15 = vpack.c.bf16 %v8962_v2, %v8961_v19 }
 0xdda   :  { %v3119_v13 = vpop.f32.mrf.mxu0 }
 0xddb   :  { %v3137_v42 = vpack.c.bf16 %v3119_v13, %v3116_v26 }
 0xddd   :  { %8977 = vmatprep.mubr.msk.bf16.mxu1 %vm449_vm3, %v3137_v42  ;;  %v13678_v42 = vld [vmem:[#allocation14_spill] sm:$0xff] }
 0xdde   :  { %8978 = vmatmul.mubr.msk.bf16.gmra.mxu1 %vm449_vm3, %v3138_v15  ;;  %v3289_v15 = vmul.f32 1.4142135, %v13678_v42 }
 0xdf1   :  { %v8967_v49 = vpop.f32.mrf.mxu1 }
 0xdf2   :  { %v3265_v23 = vadd.f32 %v8967_v49, %v11331_v20 }
 0xdf3   :  { %v3200_v5 = vpop.f32.mrf.mxu1 }
 0xdf4   :  { %v11498_v55 = vadd.f32 %v3281_v8, %v3265_v23  ;;  %v3263_v37 = vadd.f32 %v3200_v5, %v11336_v11  ;;  %v13672_v11 = vld [vmem:[#allocation10_spill] sm:$0xff]  ;;  %v13679_v23 = vld [vmem:[#allocation12_spill] sm:$0xff] }
 0xdf5   :  { %v8968_v44 = vpop.f32.mrf.mxu1  ;;  %v3285_v41 = vmul.f32 1.4142135, %v13672_v11  ;;  %v3287_v5 = vmul.f32 1.4142135, %v13679_v23 }
 0xdf6   :  { %v11503_v29 = vadd.f32 %v3279_v6, %v3263_v37  ;;  %v3266_v31 = vadd.f32 %v8968_v44, %v11343_v48  ;;  %v13674_v48 = vld [vmem:[#allocation22_spill] sm:$0xff]  ;;  %v3317_v27 = vsel %vm307_vm2, %v11498_v55, 0.0  ;;  %v13680_v6 = vld [vmem:[#allocation23_spill] sm:$0xff] }
 0xdf7   :  { %v3203_v20 = vpop.f32.mrf.mxu1  ;;  %v1796_v53 = vadd.f32 %v13675_v34, %v13674_v48  ;;  %v1812_v37 = vadd.f32 %v13681_v61, %v13680_v6 }
 0xdf8   :  { %v11507_v24 = vadd.f32 %v3282_v46, %v3266_v31  ;;  %v3264_v40 = vadd.f32 %v3203_v20, %v2544_v60  ;;  %v3311_v57 = vsel %vm307_vm2, %v11503_v29, 0.0  ;;  %v13682_v60 = vld [vmem:[#allocation13_spill] sm:$0xff] }
 0xdf9   :  { %3312 = vadd.xlane.f32.xlu0 %v3311_v57  ;;  %v8971_v22 = vpop.f32.mrf.mxu1  ;;  %v2548_v0 = vadd.f32 %v11374_v12, %v1796_v53  ;;  %v3290_v31 = vmul.f32 1.4142135, %v13682_v60  ;;  %v2552_v20 = vadd.f32 %v11390_v17, %v1812_v37  ;;  %v13683_v57 = vld [vmem:[#allocation11_spill] sm:$0xff] }
 0xdfa   :  { %v3269_v51 = vadd.f32 %v8971_v22, %v11356_v56  ;;  %v11513_v62 = vadd.f32 %v3280_v33, %v3264_v40  ;;  %v3320_v21 = vsel %vm307_vm2, %v11507_v24, 0.0  ;;  %v3288_v22 = vmul.f32 1.4142135, %v13683_v57 }
 0xdfb   :  { %v3216_v16 = vpop.f32.mrf.mxu1 }
 0xdfc   :  { %v11518_v32 = vadd.f32 %v3285_v41, %v3269_v51  ;;  %v3267_v47 = vadd.f32 %v3216_v16, %v11363_v43  ;;  %v3314_v25 = vsel %vm307_vm2, %v11513_v62, 0.0  ;;  %v13686_v16 = vld [vmem:[#allocation24_spill] sm:$0xff] }
 0xdfd   :  { %3318 = vadd.xlane.f32.xlu0 %v3317_v27  ;;  %3315 = vadd.xlane.f32.xlu1 %v3314_v25  ;;  %v8972_v56 = vpop.f32.mrf.mxu1 }
 0xdfe   :  { %v11527_v1 = vadd.f32 %v3283_v14, %v3267_v47  ;;  %v3270_v59 = vadd.f32 %v8972_v56, %v11368_v36  ;;  %v3329_v12 = vsel %vm307_vm2, %v11518_v32, 0.0  ;;  %v13684_v14 = vld [vmem:[#allocation18_spill] sm:$0xff]  ;;  %v13687_v47 = vld [vmem:[#allocation21_spill] sm:$0xff] }
 0xdff   :  { %v3219_v43 = vpop.f32.mrf.mxu1  ;;  %v3293_v48 = vmul.f32 1.4142135, %v13684_v14  ;;  %v1828_v27 = vadd.f32 %v13687_v47, %v13686_v16 }
 0xe00   :  { %v11531_v10 = vadd.f32 %v3286_v63, %v3270_v59  ;;  %v3268_v4 = vadd.f32 %v3219_v43, %v2548_v0  ;;  %v3323_v3 = vsel %vm307_vm2, %v11527_v1, 0.0 }
 0xe01   :  { %3321 = vadd.xlane.f32.xlu0 %v3320_v21  ;;  %3324 = vadd.xlane.f32.xlu1 %v3323_v3 }
 0xe02   :  { %v11537_v19 = vadd.f32 %v3284_v28, %v3268_v4  ;;  %v3332_v26 = vsel %vm307_vm2, %v11531_v10, 0.0  ;;  %v13688_v28 = vld [vmem:[#allocation17_spill] sm:$0xff]  ;;  %v2556_v4 = vadd.f32 %v11404_v30, %v1828_v27  ;;  %v9505_v27 = vld [vmem:[%s13611_s5 + $0x8] sm:$0xff]  }
 0xe03   :  { %v3294_v43 = vmul.f32 1.4142135, %v13688_v28  ;;  %8981 = vmatprep.subr.bf16.mxu0 %v9505_v27 }
 0xe04   :  { %v3326_v36 = vsel %vm307_vm2, %v11537_v19, 0.0  ;;  %8982 = vmatpush3.bf16.msra.mxu0 %v9505_v27 }
 0xe05   :  { %3330 = vadd.xlane.f32.xlu1 %v3329_v12  ;;  %3327 = vadd.xlane.f32.xlu0 %v3326_v36  ;;  %v13689_v12 = vld [vmem:[#allocation15_spill] sm:$0xff] }
 0xe09   :  { %3333 = vadd.xlane.f32.xlu0 %v3332_v26 }
 0xe82   :  { %v3313_v2 = vpop.xlane.xlu0 %3312 }
 0xe83   :  { %v3360_v25 = vmul.f32 0.03125, %v3313_v2 }
 0xe85   :  { %v11584_v36 = vsub.f32 %v11503_v29, %v3360_v25  ;;  %v9506_v25 = vld [vmem:[%s13611_s5] sm:$0xff]  }
 0xe86   :  { %8983 = vmatprep.subr.bf16.mxu0 %v9506_v25 }
 0xe87   :  { %v3392_v61 = vmul.f32 %v11584_v36, %v11584_v36  ;;  %8984 = vmatpush3.bf16.msra.mxu0 %v9506_v25 }
 0xe96   :  { %v8975_v13 = vpop.f32.mrf.mxu1 }
 0xe97   :  { %v3273_v49 = vadd.f32 %v8975_v13, %v11380_v58  ;;  %v3319_v58 = vpop.xlane.xlu0 %3318 }
 0xe98   :  { %v3232_v8 = vpop.f32.mrf.mxu1  ;;  %v3362_v26 = vmul.f32 0.03125, %v3319_v58 }
 0xe99   :  { %v11550_v44 = vadd.f32 %v3289_v15, %v3273_v49  ;;  %v3271_v50 = vadd.f32 %v3232_v8, %v11386_v9  ;;  %v3316_v9 = vpop.xlane.xlu1 %3315 }
 0xe9a   :  { %v8976_v46 = vpop.f32.mrf.mxu1  ;;  %v3361_v2 = vmul.f32 0.03125, %v3316_v9  ;;  %v11595_v29 = vsub.f32 %v11498_v55, %v3362_v26 }
 0xe9b   :  { %v11555_v39 = vadd.f32 %v3287_v5, %v3271_v50  ;;  %v3274_v33 = vadd.f32 %v8976_v46, %v11388_v45  ;;  %v13685_v45 = vld [vmem:[#allocation16_spill] sm:$0xff]  ;;  %v3341_v0 = vsel %vm307_vm2, %v11550_v44, 0.0 }
 0xe9c   :  { %v3235_v40 = vpop.f32.mrf.mxu1  ;;  %v3291_v53 = vmul.f32 1.4142135, %v13685_v45  ;;  %v11598_v23 = vsub.f32 %v11513_v62, %v3361_v2  ;;  %v3408_v62 = vsel %vm307_vm2, %v3392_v61, 0.0 }
 0xe9d   :  { %v11559_v11 = vadd.f32 %v3290_v31, %v3274_v33  ;;  %v3272_v41 = vadd.f32 %v3235_v40, %v2552_v20  ;;  %v3335_v51 = vsel %vm307_vm2, %v11555_v39, 0.0  ;;  %v3325_v13 = vpop.xlane.xlu1 %3324  ;;  %v3394_v31 = vmul.f32 %v11595_v29, %v11595_v29 }
 0xe9e   :  { %3336 = vadd.xlane.f32.xlu1 %v3335_v51  ;;  %v8979_v38 = vpop.f32.mrf.mxu1  ;;  %v3364_v37 = vmul.f32 0.03125, %v3325_v13  ;;  %v3393_v20 = vmul.f32 %v11598_v23, %v11598_v23 }
 0xe9f   :  { %v3277_v17 = vadd.f32 %v8979_v38, %v11396_v7  ;;  %v11565_v34 = vadd.f32 %v3288_v22, %v3272_v41  ;;  %v3322_v7 = vpop.xlane.xlu0 %3321  ;;  %v3344_v8 = vsel %vm307_vm2, %v11559_v11, 0.0 }
 0xea0   :  { %v3248_v56 = vpop.f32.mrf.mxu1  ;;  %v3363_v5 = vmul.f32 0.03125, %v3322_v7  ;;  %v11615_v33 = vsub.f32 %v11527_v1, %v3364_v37  ;;  %v3411_v41 = vsel %vm307_vm2, %v3393_v20, 0.0 }
 0xea1   :  { %v11570_v54 = vadd.f32 %v3293_v48, %v3277_v17  ;;  %v3275_v63 = vadd.f32 %v3248_v56, %v11400_v35  ;;  %v3338_v59 = vsel %vm307_vm2, %v11565_v34, 0.0  ;;  %v3292_v35 = vmul.f32 1.4142135, %v13689_v12  ;;  %v3331_v60 = vpop.xlane.xlu1 %3330 }
 0xea2   :  { %3342 = vadd.xlane.f32.xlu1 %v3341_v0  ;;  %3339 = vadd.xlane.f32.xlu0 %v3338_v59  ;;  %v8980_v18 = vpop.f32.mrf.mxu1  ;;  %v11607_v55 = vsub.f32 %v11507_v24, %v3363_v5  ;;  %v3366_v40 = vmul.f32 0.03125, %v3331_v60  ;;  %v3414_v24 = vsel %vm307_vm2, %v3394_v31, 0.0  ;;  %v3396_v14 = vmul.f32 %v11615_v33, %v11615_v33 }
 0xea3   :  { %v11579_v21 = vadd.f32 %v3291_v53, %v3275_v63  ;;  %v3278_v3 = vadd.f32 %v8980_v18, %v11402_v52  ;;  %v3328_v6 = vpop.xlane.xlu0 %3327  ;;  %v3353_v50 = vsel %vm307_vm2, %v11570_v54, 0.0 }
 0xea4   :  { %v3251_v42 = vpop.f32.mrf.mxu1  ;;  %v3365_v58 = vmul.f32 0.03125, %v3328_v6  ;;  %v3395_v51 = vmul.f32 %v11607_v55, %v11607_v55  ;;  %v11627_v1 = vsub.f32 %v11518_v32, %v3366_v40  ;;  %v3420_v45 = vsel %vm307_vm2, %v3396_v14, 0.0 }
 0xea5   :  { %v11586_v15 = vadd.f32 %v3294_v43, %v3278_v3  ;;  %v3276_v49 = vadd.f32 %v3251_v42, %v2556_v4  ;;  %v3347_v30 = vsel %vm307_vm2, %v11579_v21, 0.0 }
 0xea6   :  { %3345 = vadd.xlane.f32.xlu0 %v3344_v8  ;;  %3348 = vadd.xlane.f32.xlu1 %v3347_v30  ;;  %v11624_v9 = vsub.f32 %v11537_v19, %v3365_v58  ;;  %v3417_v48 = vsel %vm307_vm2, %v3395_v51, 0.0  ;;  %v3398_v32 = vmul.f32 %v11627_v1, %v11627_v1 }
 0xea7   :  { %v11592_v52 = vadd.f32 %v3292_v35, %v3276_v49  ;;  %v3356_v57 = vsel %vm307_vm2, %v11586_v15, 0.0  ;;  %v3334_v22 = vpop.xlane.xlu0 %3333 }
 0xea8   :  { %v3367_v38 = vmul.f32 0.03125, %v3334_v22  ;;  %v3397_v19 = vmul.f32 %v11624_v9, %v11624_v9  ;;  %v3426_v16 = vsel %vm307_vm2, %v3398_v32, 0.0 }
 0xea9   :  { %v3350_v46 = vsel %vm307_vm2, %v11592_v52, 0.0 }
 0xeaa   :  { %3354 = vadd.xlane.f32.xlu1 %v3353_v50  ;;  %3351 = vadd.xlane.f32.xlu0 %v3350_v46  ;;  %v11633_v17 = vsub.f32 %v11531_v10, %v3367_v38  ;;  %v3423_v53 = vsel %vm307_vm2, %v3397_v19, 0.0 }
 0xeac   :  { %v3399_v47 = vmul.f32 %v11633_v17, %v11633_v17 }
 0xeae   :  { %3409 = vadd.xlane.f32.xlu1 %v3408_v62  ;;  %3357 = vadd.xlane.f32.xlu0 %v3356_v57  ;;  %v3429_v10 = vsel %vm307_vm2, %v3399_v47, 0.0 }
 0xeb2   :  { %3415 = vadd.xlane.f32.xlu1 %v3414_v24  ;;  %3412 = vadd.xlane.f32.xlu0 %v3411_v41 }
 0xeb6   :  { %3418 = vadd.xlane.f32.xlu0 %v3417_v48  ;;  %3421 = vadd.xlane.f32.xlu1 %v3420_v45 }
 0xeba   :  { %3424 = vadd.xlane.f32.xlu0 %v3423_v53  ;;  %3427 = vadd.xlane.f32.xlu1 %v3426_v16 }
 0xebe   :  { %3430 = vadd.xlane.f32.xlu0 %v3429_v10 }
 0xf27   :  { %v3337_v56 = vpop.xlane.xlu1 %3336 }
 0xf28   :  { %v3368_v63 = vmul.f32 0.03125, %v3337_v56 }
 0xf2a   :  { %v11652_v0 = vsub.f32 %v11555_v39, %v3368_v63 }
 0xf2b   :  { %v3340_v59 = vpop.xlane.xlu0 %3339  ;;  %v3343_v7 = vpop.xlane.xlu1 %3342 }
 0xf2c   :  { %v3369_v18 = vmul.f32 0.03125, %v3340_v59  ;;  %v3370_v28 = vmul.f32 0.03125, %v3343_v7  ;;  %v3400_v43 = vmul.f32 %v11652_v0, %v11652_v0 }
 0xf2e   :  { %v11657_v4 = vsub.f32 %v11565_v34, %v3369_v18  ;;  %v11660_v3 = vsub.f32 %v11550_v44, %v3370_v28  ;;  %v3432_v12 = vsel %vm307_vm2, %v3400_v43, 0.0 }
 0xf2f   :  { %v3346_v35 = vpop.xlane.xlu0 %3345  ;;  %3433 = vadd.xlane.f32.xlu1 %v3432_v12  ;;  %v3349_v26 = vpop.xlane.xlu1 %3348 }
 0xf30   :  { %v3371_v39 = vmul.f32 0.03125, %v3346_v35  ;;  %v3372_v2 = vmul.f32 0.03125, %v3349_v26  ;;  %v3401_v13 = vmul.f32 %v11657_v4, %v11657_v4  ;;  %v3402_v42 = vmul.f32 %v11660_v3, %v11660_v3 }
 0xf32   :  { %v11668_v49 = vsub.f32 %v11559_v11, %v3371_v39  ;;  %v11671_v34 = vsub.f32 %v11579_v21, %v3372_v2  ;;  %v3435_v44 = vsel %vm307_vm2, %v3401_v13, 0.0  ;;  %v3438_v8 = vsel %vm307_vm2, %v3402_v42, 0.0 }
 0xf33   :  { %v3352_v30 = vpop.xlane.xlu0 %3351  ;;  %3436 = vadd.xlane.f32.xlu0 %v3435_v44  ;;  %3439 = vadd.xlane.f32.xlu1 %v3438_v8  ;;  %v3355_v5 = vpop.xlane.xlu1 %3354 }
 0xf34   :  { %v3373_v6 = vmul.f32 0.03125, %v3352_v30  ;;  %v3374_v61 = vmul.f32 0.03125, %v3355_v5  ;;  %v3403_v37 = vmul.f32 %v11668_v49, %v11668_v49  ;;  %v3404_v11 = vmul.f32 %v11671_v34, %v11671_v34 }
 0xf36   :  { %v11680_v50 = vsub.f32 %v11592_v52, %v3373_v6  ;;  %v11683_v21 = vsub.f32 %v11570_v54, %v3374_v61  ;;  %v3441_v46 = vsel %vm307_vm2, %v3403_v37, 0.0  ;;  %v3444_v60 = vsel %vm307_vm2, %v3404_v11, 0.0 }
 0xf37   :  { %v3358_v62 = vpop.xlane.xlu0 %3357  ;;  %3442 = vadd.xlane.f32.xlu0 %v3441_v46  ;;  %3445 = vadd.xlane.f32.xlu1 %v3444_v60  ;;  %v3410_v31 = vpop.xlane.xlu1 %3409  ;;  %v9508_v60 = vld [vmem:[%s13612_s6 + $0x10] sm:$0xff]  }
 0xf38   :  { %v3375_v20 = vmul.f32 0.03125, %v3358_v62  ;;  %v3456_v58 = vmul.f32 0.03125, %v3410_v31  ;;  %v3405_v40 = vmul.f32 %v11680_v50, %v11680_v50  ;;  %v3406_v52 = vmul.f32 %v11683_v21, %v11683_v21 }
 0xf3a   :  { %v11692_v57 = vsub.f32 %v11586_v15, %v3375_v20  ;;  %v3472_v54 = vadd.f32 1e-05, %v3456_v58  ;;  %v3447_v22 = vsel %vm307_vm2, %v3405_v40, 0.0  ;;  %v3450_v24 = vsel %vm307_vm2, %v3406_v52, 0.0 }
 0xf3b   :  { %3448 = vadd.xlane.f32.xlu0 %v3447_v22  ;;  %v3413_v41 = vpop.xlane.xlu0 %3412  ;;  %3451 = vadd.xlane.f32.xlu1 %v3450_v24  ;;  %v3416_v51 = vpop.xlane.xlu1 %3415 }
 0xf3c   :  { %v3457_v38 = vmul.f32 0.03125, %v3413_v41  ;;  %v3458_v14 = vmul.f32 0.03125, %v3416_v51  ;;  %v3407_v48 = vmul.f32 %v11692_v57, %v11692_v57  ;;  %9775 = vrsqrt.f32 %v3472_v54 }
 0xf3e   :  { %v3473_v45 = vadd.f32 1e-05, %v3457_v38  ;;  %v3474_v19 = vadd.f32 1e-05, %v3458_v14  ;;  %v3453_v15 = vsel %vm307_vm2, %v3407_v48, 0.0 }
 0xf3f   :  { %3454 = vadd.xlane.f32.xlu0 %v3453_v15  ;;  %v3419_v32 = vpop.xlane.xlu0 %3418  ;;  %v3422_v53 = vpop.xlane.xlu1 %3421 }
 0xf40   :  { %9777 = vrsqrt.f32 %v3473_v45  ;;  %v3459_v16 = vmul.f32 0.03125, %v3419_v32  ;;  %v3460_v47 = vmul.f32 0.03125, %v3422_v53 }
 0xf41   :  { %9779 = vrsqrt.f32 %v3474_v19 }
 0xf42   :  { %v3475_v10 = vadd.f32 1e-05, %v3459_v16  ;;  %v3476_v27 = vadd.f32 1e-05, %v3460_v47 }
 0xf43   :  { %v3425_v25 = vpop.xlane.xlu0 %3424  ;;  %v3428_v56 = vpop.xlane.xlu1 %3427 }
 0xf44   :  { %9781 = vrsqrt.f32 %v3475_v10  ;;  %v3461_v63 = vmul.f32 0.03125, %v3425_v25  ;;  %v3462_v59 = vmul.f32 0.03125, %v3428_v56 }
 0xf45   :  { %9783 = vrsqrt.f32 %v3476_v27 }
 0xf46   :  { %v3477_v7 = vadd.f32 1e-05, %v3461_v63  ;;  %v3478_v18 = vadd.f32 1e-05, %v3462_v59 }
 0xf47   :  { %v3431_v28 = vpop.xlane.xlu0 %3430 }
 0xf48   :  { %9785 = vrsqrt.f32 %v3477_v7  ;;  %v3463_v43 = vmul.f32 0.03125, %v3431_v28 }
 0xf49   :  { %9787 = vrsqrt.f32 %v3478_v18  ;;  %v9776_v35 = vpop.eup %9775 }
 0xf4a   :  { %v3479_v12 = vadd.f32 1e-05, %v3463_v43  ;;  %v11700_v39 = vmul.f32 %v9776_v35, %v11584_v36 }
 0xf4c   :  { %9789 = vrsqrt.f32 %v3479_v12 }
 0xf4d   :  { %v9778_v26 = vpop.eup %9777 }
 0xf4e   :  { %v11703_v2 = vmul.f32 %v9778_v26, %v11598_v23  ;;  %v9780_v13 = vpop.eup %9779 }
 0xf4f   :  { %v11708_v8 = vmul.f32 %v9780_v13, %v11595_v29 }
 0xf50   :  { %v3520_v42 = vpack.c.bf16 %v11703_v2, %v11700_v39 }
 0xf51   :  { %v9782_v44 = vpop.eup %9781 }
 0xf52   :  { %v11711_v30 = vmul.f32 %v9782_v44, %v11607_v55  ;;  %8985 = vmatprep.mubr.msk.bf16.mxu0 %vm307_vm2, %v3520_v42  ;;  %v9784_v5 = vpop.eup %9783 }
 0xf53   :  { %v11718_v23 = vmul.f32 %v9784_v5, %v11615_v33 }
 0xf54   :  { %v3521_v36 = vpack.c.bf16 %v11711_v30, %v11708_v8 }
 0xf55   :  { %v9786_v6 = vpop.eup %9785 }
 0xf56   :  { %8986 = vmatmul.mubr.msk.bf16.vlgmr.msra.gmra.mxu0 %vm307_vm2, %v3521_v36  ;;  %v11721_v61 = vmul.f32 %v9786_v6, %v11624_v9  ;;  %v9788_v29 = vpop.eup %9787  ;;  %v9507_v9 = vld [vmem:[%s13612_s6 + $0x18] sm:$0xff]  }
 0xf57   :  { %v11727_v11 = vmul.f32 %v9788_v29, %v11627_v1  ;;  %9001 = vmatprep.subr.bf16.mxu1 %v9507_v9  ;;  %v9509_v1 = vld [vmem:[%s13612_s6 + $0x8] sm:$0xff]  }
 0xf58   :  { %v3522_v55 = vpack.c.bf16 %v11721_v61, %v11718_v23  ;;  %9002 = vmatpush3.bf16.msra.mxu1 %v9507_v9 }
 0xf59   :  { %v9790_v37 = vpop.eup %9789  ;;  %9003 = vmatprep.subr.bf16.mxu1 %v9508_v60 }
 0xf5a   :  { %8989 = vmatprep.mubr.msk.bf16.mxu0 %vm307_vm2, %v3522_v55  ;;  %v11730_v46 = vmul.f32 %v9790_v37, %v11633_v17  ;;  %v9510_v17 = vld [vmem:[%s13612_s6] sm:$0xff]  }
 0xf5c   :  { %v3523_v33 = vpack.c.bf16 %v11730_v46, %v11727_v11  ;;  %9004 = vmatpush3.bf16.msra.mxu1 %v9508_v60 }
 0xf5d   :  { %9005 = vmatprep.subr.bf16.mxu1 %v9509_v1 }
 0xf5e   :  { %8990 = vmatmul.mubr.msk.bf16.gmra.mxu0 %vm307_vm2, %v3523_v33 }
 0xf60   :  { %9006 = vmatpush3.bf16.msra.mxu1 %v9509_v1 }
 0xf61   :  { %9007 = vmatprep.subr.bf16.mxu1 %v9510_v17 }
 0xf64   :  { %9008 = vmatpush3.bf16.msra.mxu1 %v9510_v17 }
 0xfb8   :  { %v3434_v62 = vpop.xlane.xlu1 %3433 }
 0xfb9   :  { %v3464_v31 = vmul.f32 0.03125, %v3434_v62 }
 0xfbb   :  { %v3480_v20 = vadd.f32 1e-05, %v3464_v31 }
 0xfbc   :  { %v3437_v58 = vpop.xlane.xlu0 %3436  ;;  %v3440_v40 = vpop.xlane.xlu1 %3439 }
 0xfbd   :  { %v3465_v52 = vmul.f32 0.03125, %v3437_v58  ;;  %v3466_v54 = vmul.f32 0.03125, %v3440_v40  ;;  %9791 = vrsqrt.f32 %v3480_v20 }
 0xfbf   :  { %v3481_v22 = vadd.f32 1e-05, %v3465_v52  ;;  %v3482_v24 = vadd.f32 1e-05, %v3466_v54 }
 0xfc0   :  { %v3443_v41 = vpop.xlane.xlu0 %3442  ;;  %v3446_v51 = vpop.xlane.xlu1 %3445 }
 0xfc1   :  { %9793 = vrsqrt.f32 %v3481_v22  ;;  %v3467_v38 = vmul.f32 0.03125, %v3443_v41  ;;  %v3468_v14 = vmul.f32 0.03125, %v3446_v51 }
 0xfc2   :  { %9795 = vrsqrt.f32 %v3482_v24 }
 0xfc3   :  { %v3483_v48 = vadd.f32 1e-05, %v3467_v38  ;;  %v3484_v45 = vadd.f32 1e-05, %v3468_v14 }
 0xfc4   :  { %v3449_v19 = vpop.xlane.xlu0 %3448  ;;  %v3452_v15 = vpop.xlane.xlu1 %3451 }
 0xfc5   :  { %9797 = vrsqrt.f32 %v3483_v48  ;;  %v3469_v32 = vmul.f32 0.03125, %v3449_v19  ;;  %v3470_v53 = vmul.f32 0.03125, %v3452_v15 }
 0xfc6   :  { %9799 = vrsqrt.f32 %v3484_v45 }
 0xfc7   :  { %v3485_v16 = vadd.f32 1e-05, %v3469_v32  ;;  %v3486_v47 = vadd.f32 1e-05, %v3470_v53 }
 0xfc8   :  { %v3455_v10 = vpop.xlane.xlu0 %3454 }
 0xfc9   :  { %9801 = vrsqrt.f32 %v3485_v16  ;;  %v3471_v27 = vmul.f32 0.03125, %v3455_v10 }
 0xfca   :  { %9803 = vrsqrt.f32 %v3486_v47  ;;  %v9792_v56 = vpop.eup %9791 }
 0xfcb   :  { %v3487_v25 = vadd.f32 1e-05, %v3471_v27  ;;  %v11748_v59 = vmul.f32 %v9792_v56, %v11652_v0 }
 0xfcd   :  { %9805 = vrsqrt.f32 %v3487_v25 }
 0xfce   :  { %v9794_v63 = vpop.eup %9793 }
 0xfcf   :  { %v11751_v7 = vmul.f32 %v9794_v63, %v11657_v4  ;;  %v9796_v18 = vpop.eup %9795 }
 0xfd0   :  { %v11757_v12 = vmul.f32 %v9796_v18, %v11660_v3 }
 0xfd1   :  { %v3524_v28 = vpack.c.bf16 %v11751_v7, %v11748_v59 }
 0xfd2   :  { %v9798_v43 = vpop.eup %9797 }
 0xfd3   :  { %8993 = vmatprep.mubr.msk.bf16.mxu0 %vm307_vm2, %v3524_v28  ;;  %v11760_v35 = vmul.f32 %v9798_v43, %v11668_v49  ;;  %v9800_v26 = vpop.eup %9799 }
 0xfd4   :  { %v11766_v4 = vmul.f32 %v9800_v26, %v11671_v34  ;;  %v3830_v26 = vmul.f32 1.4142135, %v11700_v39 }
 0xfd5   :  { %v3525_v0 = vpack.c.bf16 %v11760_v35, %v11757_v12 }
 0xfd6   :  { %v9802_v13 = vpop.eup %9801 }
 0xfd7   :  { %8994 = vmatmul.mubr.msk.bf16.gmra.mxu0 %vm307_vm2, %v3525_v0  ;;  %v11769_v42 = vmul.f32 %v9802_v13, %v11680_v50  ;;  %v9804_v44 = vpop.eup %9803  ;;  %v3832_v13 = vmul.f32 1.4142135, %v11708_v8 }
 0xfd8   :  { %v11775_v49 = vmul.f32 %v9804_v44, %v11683_v21 }
 0xfd9   :  { %v3526_v3 = vpack.c.bf16 %v11769_v42, %v11766_v4 }
 0xfda   :  { %v9806_v5 = vpop.eup %9805 }
 0xfdb   :  { %8997 = vmatprep.mubr.msk.bf16.mxu0 %vm307_vm2, %v3526_v3  ;;  %v11778_v36 = vmul.f32 %v9806_v5, %v11692_v57 }
 0xfdd   :  { %v3527_v34 = vpack.c.bf16 %v11778_v36, %v11775_v49 }
 0xfdf   :  { %8998 = vmatmul.mubr.msk.bf16.gmra.mxu0 %vm307_vm2, %v3527_v34 }
0x1016   :  { %v8987_v50 = vpop.f32.mrf.mxu0 }
0x1017   :  { %v3663_v60 = vmax.f32 %v8987_v50, 0.0  ;;  %v3831_v50 = vmul.f32 1.4142135, %v11703_v2 }
0x1018   :  { %v3598_v6 = vpop.f32.mrf.mxu0 }
0x1019   :  { %v3661_v33 = vmax.f32 %v3598_v6, 0.0 }
0x101a   :  { %v8988_v29 = vpop.f32.mrf.mxu0 }
0x101b   :  { %v3664_v55 = vmax.f32 %v8988_v29, 0.0  ;;  %v3833_v29 = vmul.f32 1.4142135, %v11711_v30 }
0x101c   :  { %v3601_v37 = vpop.f32.mrf.mxu0 }
0x101d   :  { %v3662_v9 = vmax.f32 %v3601_v37, 0.0  ;;  %v3678_v21 = vpack.c.bf16 %v3664_v55, %v3663_v60  ;;  %v3836_v60 = vmul.f32 1.4142135, %v11727_v11 }
0x101e   :  { %v8991_v1 = vpop.f32.mrf.mxu0 }
0x101f   :  { %v3677_v17 = vpack.c.bf16 %v3662_v9, %v3661_v33  ;;  %v3667_v52 = vmax.f32 %v8991_v1, 0.0  ;;  %v3834_v9 = vmul.f32 1.4142135, %v11718_v23 }
0x1020   :  { %v3614_v62 = vpop.f32.mrf.mxu0 }
0x1021   :  { %9009 = vmatprep.mubr.msk.bf16.mxu1 %vm640_vm4, %v3677_v17  ;;  %v3665_v58 = vmax.f32 %v3614_v62, 0.0 }
0x1022   :  { %v8992_v57 = vpop.f32.mrf.mxu0  ;;  %9010 = vmatmul.mubr.msk.bf16.vlgmr.msra.gmra.mxu1 %vm640_vm4, %v3678_v21 }
0x1023   :  { %v3668_v31 = vmax.f32 %v8992_v57, 0.0  ;;  %v3835_v57 = vmul.f32 1.4142135, %v11721_v61 }
0x1024   :  { %v3617_v20 = vpop.f32.mrf.mxu0 }
0x1025   :  { %v3666_v40 = vmax.f32 %v3617_v20, 0.0  ;;  %v3680_v22 = vpack.c.bf16 %v3668_v31, %v3667_v52  ;;  %v3837_v31 = vmul.f32 1.4142135, %v11730_v46 }
0x1027   :  { %v3679_v54 = vpack.c.bf16 %v3666_v40, %v3665_v58 }
0x1029   :  { %9013 = vmatprep.mubr.msk.bf16.mxu1 %vm640_vm4, %v3679_v54  ;;  %v3838_v54 = vmul.f32 1.4142135, %v11748_v59 }
0x102a   :  { %9014 = vmatmul.mubr.msk.bf16.gmra.mxu1 %vm640_vm4, %v3680_v22  ;;  %v3840_v22 = vmul.f32 1.4142135, %v11757_v12 }
0x1097   :  { %v8995_v24 = vpop.f32.mrf.mxu0 }
0x1098   :  { %v3671_v19 = vmax.f32 %v8995_v24, 0.0 }
0x1099   :  { %v3630_v41 = vpop.f32.mrf.mxu0 }
0x109a   :  { %v3669_v48 = vmax.f32 %v3630_v41, 0.0 }
0x109b   :  { %v8996_v51 = vpop.f32.mrf.mxu0 }
0x109c   :  { %v3672_v38 = vmax.f32 %v8996_v51, 0.0 }
0x109d   :  { %v3633_v14 = vpop.f32.mrf.mxu0 }
0x109e   :  { %v3670_v45 = vmax.f32 %v3633_v14, 0.0  ;;  %v3682_v53 = vpack.c.bf16 %v3672_v38, %v3671_v19  ;;  %v3839_v14 = vmul.f32 1.4142135, %v11751_v7 }
0x109f   :  { %v8999_v15 = vpop.f32.mrf.mxu0 }
0x10a0   :  { %v3681_v32 = vpack.c.bf16 %v3670_v45, %v3669_v48  ;;  %v3675_v63 = vmax.f32 %v8999_v15, 0.0  ;;  %v3841_v45 = vmul.f32 1.4142135, %v11760_v35 }
0x10a1   :  { %v3646_v16 = vpop.f32.mrf.mxu0 }
0x10a2   :  { %9017 = vmatprep.mubr.msk.bf16.mxu1 %vm640_vm4, %v3681_v32  ;;  %v3673_v25 = vmax.f32 %v3646_v16, 0.0  ;;  %v3844_v16 = vmul.f32 1.4142135, %v11775_v49 }
0x10a3   :  { %v9000_v47 = vpop.f32.mrf.mxu0  ;;  %9018 = vmatmul.mubr.msk.bf16.gmra.mxu1 %vm640_vm4, %v3682_v53  ;;  %v3842_v53 = vmul.f32 1.4142135, %v11766_v4 }
0x10a4   :  { %v3676_v10 = vmax.f32 %v9000_v47, 0.0 }
0x10a5   :  { %v3649_v27 = vpop.f32.mrf.mxu0 }
0x10a6   :  { %v3674_v56 = vmax.f32 %v3649_v27, 0.0  ;;  %v3684_v28 = vpack.c.bf16 %v3676_v10, %v3675_v63 }
0x10a8   :  { %v3683_v18 = vpack.c.bf16 %v3674_v56, %v3673_v25  ;;  %v3843_v56 = vmul.f32 1.4142135, %v11769_v42 }
0x10aa   :  { %9021 = vmatprep.mubr.msk.bf16.mxu1 %vm640_vm4, %v3683_v18  ;;  %v3845_v18 = vmul.f32 1.4142135, %v11778_v36 }
0x10ab   :  { %9022 = vmatmul.mubr.msk.bf16.gmra.mxu1 %vm640_vm4, %v3684_v28 }
0x10e2   :  { %v9011_v43 = vpop.f32.mrf.mxu1 }
0x10e3   :  { %v11795_v5 = vadd.f32 %v9011_v43, %v3832_v13 }
0x10e4   :  { %v3767_v0 = vpop.f32.mrf.mxu1 }
0x10e5   :  { %v11793_v44 = vadd.f32 %v3830_v26, %v3767_v0  ;;  %v3868_v8 = vsel %vm307_vm2, %v11795_v5, 0.0 }
0x10e6   :  { %v9012_v3 = vpop.f32.mrf.mxu1 }
0x10e7   :  { %v3862_v34 = vsel %vm307_vm2, %v11793_v44, 0.0  ;;  %v11803_v37 = vadd.f32 %v9012_v3, %v3833_v29 }
0x10e8   :  { %3863 = vadd.xlane.f32.xlu1 %v3862_v34  ;;  %v3770_v6 = vpop.f32.mrf.mxu1 }
0x10e9   :  { %v11801_v55 = vadd.f32 %v3831_v50, %v3770_v6  ;;  %v3871_v21 = vsel %vm307_vm2, %v11803_v37, 0.0 }
0x10ea   :  { %v9015_v39 = vpop.f32.mrf.mxu1 }
0x10eb   :  { %v3865_v33 = vsel %vm307_vm2, %v11801_v55, 0.0  ;;  %v11813_v17 = vadd.f32 %v9015_v39, %v3836_v60 }
0x10ec   :  { %3869 = vadd.xlane.f32.xlu1 %v3868_v8  ;;  %3866 = vadd.xlane.f32.xlu0 %v3865_v33  ;;  %v3783_v2 = vpop.f32.mrf.mxu1 }
0x10ed   :  { %v11811_v1 = vadd.f32 %v3834_v9, %v3783_v2  ;;  %v3880_v58 = vsel %vm307_vm2, %v11813_v17, 0.0 }
0x10ee   :  { %v9016_v30 = vpop.f32.mrf.mxu1 }
0x10ef   :  { %v3874_v62 = vsel %vm307_vm2, %v11811_v1, 0.0  ;;  %v11823_v11 = vadd.f32 %v9016_v30, %v3837_v31 }
0x10f0   :  { %3872 = vadd.xlane.f32.xlu0 %v3871_v21  ;;  %3875 = vadd.xlane.f32.xlu1 %v3874_v62  ;;  %v3786_v23 = vpop.f32.mrf.mxu1 }
0x10f1   :  { %v11821_v20 = vadd.f32 %v3835_v57, %v3786_v23  ;;  %v3883_v61 = vsel %vm307_vm2, %v11823_v11, 0.0 }
0x10f3   :  { %v3877_v40 = vsel %vm307_vm2, %v11821_v20, 0.0 }
0x10f4   :  { %3881 = vadd.xlane.f32.xlu1 %v3880_v58  ;;  %3878 = vadd.xlane.f32.xlu0 %v3877_v40 }
0x10f8   :  { %3884 = vadd.xlane.f32.xlu0 %v3883_v61 }
0x1163   :  { %v9019_v52 = vpop.f32.mrf.mxu1 }
0x1164   :  { %v11835_v51 = vadd.f32 %v9019_v52, %v3840_v22  ;;  %v9511_v22 = vld [vmem:[%s13609_s3 + $0x18] sm:$0xff]  }
0x1165   :  { %v3799_v46 = vpop.f32.mrf.mxu1  ;;  %9025 = vmatprep.subr.bf16.mxu0 %v9511_v22 }
0x1166   :  { %v11833_v24 = vadd.f32 %v3838_v54, %v3799_v46  ;;  %v3892_v12 = vsel %vm307_vm2, %v11835_v51, 0.0  ;;  %9026 = vmatpush3.bf16.msra.mxu0 %v9511_v22 }
0x1167   :  { %v9020_v41 = vpop.f32.mrf.mxu1 }
0x1168   :  { %v3886_v38 = vsel %vm307_vm2, %v11833_v24, 0.0  ;;  %v11843_v15 = vadd.f32 %v9020_v41, %v3841_v45 }
0x1169   :  { %3887 = vadd.xlane.f32.xlu1 %v3886_v38  ;;  %v3802_v48 = vpop.f32.mrf.mxu1 }
0x116a   :  { %v11841_v19 = vadd.f32 %v3839_v14, %v3802_v48  ;;  %v3895_v27 = vsel %vm307_vm2, %v11843_v15, 0.0 }
0x116b   :  { %v9023_v59 = vpop.f32.mrf.mxu1 }
0x116c   :  { %v3889_v32 = vsel %vm307_vm2, %v11841_v19, 0.0  ;;  %v11853_v10 = vadd.f32 %v9023_v59, %v3844_v16 }
0x116d   :  { %3893 = vadd.xlane.f32.xlu1 %v3892_v12  ;;  %3890 = vadd.xlane.f32.xlu0 %v3889_v32  ;;  %v3815_v7 = vpop.f32.mrf.mxu1  ;;  %v9512_v12 = vld [vmem:[%s13609_s3 + $0x10] sm:$0xff]  }
0x116e   :  { %v11851_v47 = vadd.f32 %v3842_v53, %v3815_v7  ;;  %v3904_v0 = vsel %vm307_vm2, %v11853_v10, 0.0  ;;  %9027 = vmatprep.subr.bf16.mxu0 %v9512_v12 }
0x116f   :  { %v9024_v35 = vpop.f32.mrf.mxu1  ;;  %9028 = vmatpush3.bf16.msra.mxu0 %v9512_v12 }
0x1170   :  { %v3898_v25 = vsel %vm307_vm2, %v11851_v47, 0.0  ;;  %v11863_v43 = vadd.f32 %v9024_v35, %v3845_v18 }
0x1171   :  { %3896 = vadd.xlane.f32.xlu0 %v3895_v27  ;;  %3899 = vadd.xlane.f32.xlu1 %v3898_v25  ;;  %v3818_v4 = vpop.f32.mrf.mxu1  ;;  %v3864_v63 = vpop.xlane.xlu1 %3863 }
0x1172   :  { %v11861_v49 = vadd.f32 %v3843_v56, %v3818_v4  ;;  %v3910_v28 = vmul.f32 0.03125, %v3864_v63  ;;  %v3907_v29 = vsel %vm307_vm2, %v11863_v43, 0.0 }
0x1174   :  { %v11866_v26 = vsub.f32 %v11793_v44, %v3910_v28  ;;  %v3901_v42 = vsel %vm307_vm2, %v11861_v49, 0.0 }
0x1175   :  { %v3867_v13 = vpop.xlane.xlu0 %3866  ;;  %3905 = vadd.xlane.f32.xlu1 %v3904_v0  ;;  %3902 = vadd.xlane.f32.xlu0 %v3901_v42  ;;  %v3870_v3 = vpop.xlane.xlu1 %3869 }
0x1176   :  { %v3911_v34 = vmul.f32 0.03125, %v3867_v13  ;;  %v3912_v36 = vmul.f32 0.03125, %v3870_v3  ;;  %v3942_v50 = vmul.f32 %v11866_v26, %v11866_v26 }
0x1178   :  { %v11875_v6 = vsub.f32 %v11801_v55, %v3911_v34  ;;  %v11878_v44 = vsub.f32 %v11795_v5, %v3912_v36  ;;  %v3958_v39 = vsel %vm307_vm2, %v3942_v50, 0.0 }
0x1179   :  { %v3873_v8 = vpop.xlane.xlu0 %3872  ;;  %3908 = vadd.xlane.f32.xlu0 %v3907_v29  ;;  %3959 = vadd.xlane.f32.xlu1 %v3958_v39  ;;  %v3876_v33 = vpop.xlane.xlu1 %3875 }
0x117a   :  { %v3913_v9 = vmul.f32 0.03125, %v3873_v8  ;;  %v3914_v2 = vmul.f32 0.03125, %v3876_v33  ;;  %v3943_v60 = vmul.f32 %v11875_v6, %v11875_v6  ;;  %v3944_v55 = vmul.f32 %v11878_v44, %v11878_v44 }
0x117c   :  { %v11888_v5 = vsub.f32 %v11803_v37, %v3913_v9  ;;  %v11891_v30 = vsub.f32 %v11811_v1, %v3914_v2  ;;  %v3961_v21 = vsel %vm307_vm2, %v3943_v60, 0.0  ;;  %v3964_v62 = vsel %vm307_vm2, %v3944_v55, 0.0 }
0x117d   :  { %v3879_v57 = vpop.xlane.xlu0 %3878  ;;  %3962 = vadd.xlane.f32.xlu0 %v3961_v21  ;;  %3965 = vadd.xlane.f32.xlu1 %v3964_v62  ;;  %v3882_v23 = vpop.xlane.xlu1 %3881 }
0x117e   :  { %v3915_v31 = vmul.f32 0.03125, %v3879_v57  ;;  %v3916_v58 = vmul.f32 0.03125, %v3882_v23  ;;  %v3945_v40 = vmul.f32 %v11888_v5, %v11888_v5  ;;  %v3946_v37 = vmul.f32 %v11891_v30, %v11891_v30 }
0x1180   :  { %v11900_v61 = vsub.f32 %v11821_v20, %v3915_v31  ;;  %v11903_v1 = vsub.f32 %v11813_v17, %v3916_v58  ;;  %v3967_v52 = vsel %vm307_vm2, %v3945_v40, 0.0  ;;  %v3970_v54 = vsel %vm307_vm2, %v3946_v37, 0.0 }
0x1181   :  { %v3885_v46 = vpop.xlane.xlu0 %3884  ;;  %3968 = vadd.xlane.f32.xlu0 %v3967_v52  ;;  %3971 = vadd.xlane.f32.xlu1 %v3970_v54 }
0x1182   :  { %v3917_v41 = vmul.f32 0.03125, %v3885_v46  ;;  %v3947_v38 = vmul.f32 %v11900_v61, %v11900_v61  ;;  %v3948_v20 = vmul.f32 %v11903_v1, %v11903_v1 }
0x1184   :  { %v11915_v17 = vsub.f32 %v11823_v11, %v3917_v41  ;;  %v3973_v14 = vsel %vm307_vm2, %v3947_v38, 0.0  ;;  %v3976_v48 = vsel %vm307_vm2, %v3948_v20, 0.0 }
0x1185   :  { %3974 = vadd.xlane.f32.xlu0 %v3973_v14  ;;  %3977 = vadd.xlane.f32.xlu1 %v3976_v48 }
0x1186   :  { %v3949_v45 = vmul.f32 %v11915_v17, %v11915_v17 }
0x1188   :  { %v3979_v59 = vsel %vm307_vm2, %v3949_v45, 0.0 }
0x1189   :  { %3980 = vadd.xlane.f32.xlu0 %v3979_v59 }
0x11f2   :  { %v3888_v11 = vpop.xlane.xlu1 %3887 }
0x11f3   :  { %v3918_v32 = vmul.f32 0.03125, %v3888_v11 }
0x11f5   :  { %v11926_v53 = vsub.f32 %v11833_v24, %v3918_v32 }
0x11f6   :  { %v3891_v7 = vpop.xlane.xlu0 %3890  ;;  %v3894_v16 = vpop.xlane.xlu1 %3893 }
0x11f7   :  { %v3919_v35 = vmul.f32 0.03125, %v3891_v7  ;;  %v3920_v27 = vmul.f32 0.03125, %v3894_v16  ;;  %v3950_v25 = vmul.f32 %v11926_v53, %v11926_v53 }
0x11f9   :  { %v11931_v56 = vsub.f32 %v11841_v19, %v3919_v35  ;;  %v11934_v4 = vsub.f32 %v11835_v51, %v3920_v27  ;;  %v3982_v63 = vsel %vm307_vm2, %v3950_v25, 0.0 }
0x11fa   :  { %v3897_v18 = vpop.xlane.xlu0 %3896  ;;  %3983 = vadd.xlane.f32.xlu1 %v3982_v63  ;;  %v3900_v28 = vpop.xlane.xlu1 %3899 }
0x11fb   :  { %v3921_v24 = vmul.f32 0.03125, %v3897_v18  ;;  %v3922_v0 = vmul.f32 0.03125, %v3900_v28  ;;  %v3951_v42 = vmul.f32 %v11931_v56, %v11931_v56  ;;  %v3952_v13 = vmul.f32 %v11934_v4, %v11934_v4 }
0x11fd   :  { %v11942_v3 = vsub.f32 %v11843_v15, %v3921_v24  ;;  %v11945_v19 = vsub.f32 %v11851_v47, %v3922_v0  ;;  %v3985_v51 = vsel %vm307_vm2, %v3951_v42, 0.0  ;;  %v3988_v34 = vsel %vm307_vm2, %v3952_v13, 0.0 }
0x11fe   :  { %3986 = vadd.xlane.f32.xlu0 %v3985_v51  ;;  %v3903_v36 = vpop.xlane.xlu0 %3902  ;;  %3989 = vadd.xlane.f32.xlu1 %v3988_v34  ;;  %v3906_v50 = vpop.xlane.xlu1 %3905 }
0x11ff   :  { %v3923_v29 = vmul.f32 0.03125, %v3903_v36  ;;  %v3924_v39 = vmul.f32 0.03125, %v3906_v50  ;;  %v3953_v8 = vmul.f32 %v11942_v3, %v11942_v3  ;;  %v3954_v15 = vmul.f32 %v11945_v19, %v11945_v19 }
0x1201   :  { %v11954_v33 = vsub.f32 %v11861_v49, %v3923_v29  ;;  %v11957_v47 = vsub.f32 %v11853_v10, %v3924_v39  ;;  %v3991_v9 = vsel %vm307_vm2, %v3953_v8, 0.0  ;;  %v3994_v2 = vsel %vm307_vm2, %v3954_v15, 0.0 }
0x1202   :  { %3992 = vadd.xlane.f32.xlu0 %v3991_v9  ;;  %v3909_v60 = vpop.xlane.xlu0 %3908  ;;  %3995 = vadd.xlane.f32.xlu1 %v3994_v2  ;;  %v3960_v55 = vpop.xlane.xlu1 %3959 }
0x1203   :  { %v3925_v21 = vmul.f32 0.03125, %v3909_v60  ;;  %v4006_v62 = vmul.f32 0.03125, %v3960_v55  ;;  %v3955_v57 = vmul.f32 %v11954_v33, %v11954_v33  ;;  %v3956_v49 = vmul.f32 %v11957_v47, %v11957_v47 }
0x1205   :  { %v11966_v23 = vsub.f32 %v11863_v43, %v3925_v21  ;;  %v4022_v10 = vadd.f32 1e-05, %v4006_v62  ;;  %v3997_v31 = vsel %vm307_vm2, %v3955_v57, 0.0  ;;  %v4000_v58 = vsel %vm307_vm2, %v3956_v49, 0.0 }
0x1206   :  { %3998 = vadd.xlane.f32.xlu0 %v3997_v31  ;;  %v3963_v40 = vpop.xlane.xlu0 %3962  ;;  %4001 = vadd.xlane.f32.xlu1 %v4000_v58  ;;  %v3966_v37 = vpop.xlane.xlu1 %3965 }
0x1207   :  { %v4007_v52 = vmul.f32 0.03125, %v3963_v40  ;;  %v4008_v54 = vmul.f32 0.03125, %v3966_v37  ;;  %v3957_v46 = vmul.f32 %v11966_v23, %v11966_v23  ;;  %9807 = vrsqrt.f32 %v4022_v10 }
0x1209   :  { %v4023_v22 = vadd.f32 1e-05, %v4007_v52  ;;  %v4024_v41 = vadd.f32 1e-05, %v4008_v54  ;;  %v4003_v43 = vsel %vm307_vm2, %v3957_v46, 0.0 }
0x120a   :  { %4004 = vadd.xlane.f32.xlu0 %v4003_v43  ;;  %v3969_v38 = vpop.xlane.xlu0 %3968  ;;  %v3972_v20 = vpop.xlane.xlu1 %3971 }
0x120b   :  { %9809 = vrsqrt.f32 %v4023_v22  ;;  %v4009_v14 = vmul.f32 0.03125, %v3969_v38  ;;  %v4010_v48 = vmul.f32 0.03125, %v3972_v20 }
0x120c   :  { %9811 = vrsqrt.f32 %v4024_v41 }
0x120d   :  { %v4025_v45 = vadd.f32 1e-05, %v4009_v14  ;;  %v4026_v59 = vadd.f32 1e-05, %v4010_v48 }
0x120e   :  { %v3975_v12 = vpop.xlane.xlu0 %3974  ;;  %v3978_v11 = vpop.xlane.xlu1 %3977 }
0x120f   :  { %9813 = vrsqrt.f32 %v4025_v45  ;;  %v4011_v32 = vmul.f32 0.03125, %v3975_v12  ;;  %v4012_v7 = vmul.f32 0.03125, %v3978_v11 }
0x1210   :  { %9815 = vrsqrt.f32 %v4026_v59 }
0x1211   :  { %v4027_v16 = vadd.f32 1e-05, %v4011_v32  ;;  %v4028_v35 = vadd.f32 1e-05, %v4012_v7 }
0x1212   :  { %v3981_v27 = vpop.xlane.xlu0 %3980 }
0x1213   :  { %9817 = vrsqrt.f32 %v4027_v16  ;;  %v4013_v25 = vmul.f32 0.03125, %v3981_v27 }
0x1214   :  { %9819 = vrsqrt.f32 %v4028_v35  ;;  %v9808_v18 = vpop.eup %9807 }
0x1215   :  { %v4029_v63 = vadd.f32 1e-05, %v4013_v25  ;;  %v11974_v24 = vmul.f32 %v9808_v18, %v11866_v26 }
0x1217   :  { %9821 = vrsqrt.f32 %v4029_v63  ;;  %13690 = vst [vmem:[#allocation6_spill] sm:$0xff] %v11974_v24 }
0x1218   :  { %v9810_v28 = vpop.eup %9809 }
0x1219   :  { %v11977_v0 = vmul.f32 %v9810_v28, %v11875_v6  ;;  %v9812_v42 = vpop.eup %9811 }
0x121a   :  { %v11982_v34 = vmul.f32 %v9812_v42, %v11878_v44 }
0x121b   :  { %13691 = vst [vmem:[#allocation5_spill] sm:$0xff] %v11977_v0  ;;  %v4094_v13 = vpack.c.bf16 %v11977_v0, %v11974_v24 }
0x121c   :  { %v9814_v51 = vpop.eup %9813  ;;  %13692 = vst [vmem:[#allocation10_spill] sm:$0xff] %v11982_v34 }
0x121d   :  { %v11985_v36 = vmul.f32 %v9814_v51, %v11888_v5  ;;  %9029 = vmatprep.mubr.msk.bf16.mxu0 %vm307_vm2, %v4094_v13  ;;  %v9816_v50 = vpop.eup %9815 }
0x121e   :  { %v11992_v6 = vmul.f32 %v9816_v50, %v11891_v30 }
0x121f   :  { %13693 = vst [vmem:[#allocation8_spill] sm:$0xff] %v11985_v36  ;;  %v4095_v26 = vpack.c.bf16 %v11985_v36, %v11982_v34 }
0x1220   :  { %v9818_v29 = vpop.eup %9817  ;;  %13694 = vst [vmem:[#allocation22_spill] sm:$0xff] %v11992_v6 }
0x1221   :  { %9030 = vmatmul.mubr.msk.bf16.vlgmr.msra.gmra.mxu0 %vm307_vm2, %v4095_v26  ;;  %v11995_v39 = vmul.f32 %v9818_v29, %v11900_v61  ;;  %v9820_v44 = vpop.eup %9819 }
0x1222   :  { %v12001_v15 = vmul.f32 %v9820_v44, %v11903_v1 }
0x1223   :  { %13695 = vst [vmem:[#allocation19_spill] sm:$0xff] %v11995_v39  ;;  %v4096_v5 = vpack.c.bf16 %v11995_v39, %v11992_v6 }
0x1224   :  { %v9822_v8 = vpop.eup %9821  ;;  %13696 = vst [vmem:[#allocation9_spill] sm:$0xff] %v12001_v15 }
0x1225   :  { %9033 = vmatprep.mubr.msk.bf16.mxu0 %vm307_vm2, %v4096_v5  ;;  %v12004_v9 = vmul.f32 %v9822_v8, %v11915_v17 }
0x1227   :  { %13697 = vst [vmem:[#allocation7_spill] sm:$0xff] %v12004_v9  ;;  %v4097_v30 = vpack.c.bf16 %v12004_v9, %v12001_v15 }
0x1229   :  { %9034 = vmatmul.mubr.msk.bf16.gmra.mxu0 %vm307_vm2, %v4097_v30 }
0x1283   :  { %v3984_v61 = vpop.xlane.xlu1 %3983 }
0x1284   :  { %v4014_v2 = vmul.f32 0.03125, %v3984_v61 }
0x1286   :  { %v4030_v60 = vadd.f32 1e-05, %v4014_v2 }
0x1287   :  { %v3987_v55 = vpop.xlane.xlu0 %3986  ;;  %v3990_v21 = vpop.xlane.xlu1 %3989 }
0x1288   :  { %v4015_v62 = vmul.f32 0.03125, %v3987_v55  ;;  %v4016_v57 = vmul.f32 0.03125, %v3990_v21  ;;  %9823 = vrsqrt.f32 %v4030_v60 }
0x128a   :  { %v4031_v49 = vadd.f32 1e-05, %v4015_v62  ;;  %v4032_v10 = vadd.f32 1e-05, %v4016_v57 }
0x128b   :  { %v3993_v1 = vpop.xlane.xlu0 %3992  ;;  %v3996_v31 = vpop.xlane.xlu1 %3995 }
0x128c   :  { %9825 = vrsqrt.f32 %v4031_v49  ;;  %v4017_v17 = vmul.f32 0.03125, %v3993_v1  ;;  %v4018_v58 = vmul.f32 0.03125, %v3996_v31 }
0x128d   :  { %9827 = vrsqrt.f32 %v4032_v10 }
0x128e   :  { %v4033_v40 = vadd.f32 1e-05, %v4017_v17  ;;  %v4034_v37 = vadd.f32 1e-05, %v4018_v58 }
0x128f   :  { %v3999_v52 = vpop.xlane.xlu0 %3998  ;;  %v4002_v54 = vpop.xlane.xlu1 %4001 }
0x1290   :  { %9829 = vrsqrt.f32 %v4033_v40  ;;  %v4019_v46 = vmul.f32 0.03125, %v3999_v52  ;;  %v4020_v22 = vmul.f32 0.03125, %v4002_v54 }
0x1291   :  { %9831 = vrsqrt.f32 %v4034_v37 }
0x1292   :  { %v4035_v41 = vadd.f32 1e-05, %v4019_v46  ;;  %v4036_v43 = vadd.f32 1e-05, %v4020_v22 }
0x1293   :  { %v4005_v38 = vpop.xlane.xlu0 %4004 }
0x1294   :  { %9833 = vrsqrt.f32 %v4035_v41  ;;  %v4021_v20 = vmul.f32 0.03125, %v4005_v38 }
0x1295   :  { %9835 = vrsqrt.f32 %v4036_v43  ;;  %v9824_v48 = vpop.eup %9823 }
0x1296   :  { %v4037_v14 = vadd.f32 1e-05, %v4021_v20  ;;  %v12010_v59 = vmul.f32 %v9824_v48, %v11926_v53 }
0x1298   :  { %9837 = vrsqrt.f32 %v4037_v14  ;;  %13698 = vst [vmem:[#allocation14_spill] sm:$0xff] %v12010_v59 }
0x1299   :  { %v9826_v45 = vpop.eup %9825 }
0x129a   :  { %v12013_v12 = vmul.f32 %v9826_v45, %v11931_v56  ;;  %v9828_v11 = vpop.eup %9827 }
0x129b   :  { %v12019_v16 = vmul.f32 %v9828_v11, %v11934_v4 }
0x129c   :  { %13699 = vst [vmem:[#allocation12_spill] sm:$0xff] %v12013_v12  ;;  %v4098_v32 = vpack.c.bf16 %v12013_v12, %v12010_v59 }
0x129d   :  { %v9830_v7 = vpop.eup %9829  ;;  %13700 = vst [vmem:[#allocation23_spill] sm:$0xff] %v12019_v16 }
0x129e   :  { %9037 = vmatprep.mubr.msk.bf16.mxu0 %vm307_vm2, %v4098_v32  ;;  %v12022_v35 = vmul.f32 %v9830_v7, %v11942_v3  ;;  %v9832_v27 = vpop.eup %9831 }
0x129f   :  { %v12028_v56 = vmul.f32 %v9832_v27, %v11945_v19 }
0x12a0   :  { %13701 = vst [vmem:[#allocation20_spill] sm:$0xff] %v12022_v35  ;;  %v4099_v53 = vpack.c.bf16 %v12022_v35, %v12019_v16 }
0x12a1   :  { %v9834_v25 = vpop.eup %9833  ;;  %13702 = vst [vmem:[#allocation13_spill] sm:$0xff] %v12028_v56 }
0x12a2   :  { %9038 = vmatmul.mubr.msk.bf16.gmra.mxu0 %vm307_vm2, %v4099_v53  ;;  %v12031_v63 = vmul.f32 %v9834_v25, %v11954_v33  ;;  %v9836_v18 = vpop.eup %9835 }
0x12a3   :  { %v12037_v3 = vmul.f32 %v9836_v18, %v11957_v47 }
0x12a4   :  { %13703 = vst [vmem:[#allocation11_spill] sm:$0xff] %v12031_v63  ;;  %v4100_v4 = vpack.c.bf16 %v12031_v63, %v12028_v56 }
0x12a5   :  { %v9838_v28 = vpop.eup %9837  ;;  %13704 = vst [vmem:[#allocation18_spill] sm:$0xff] %v12037_v3 }
0x12a6   :  { %9041 = vmatprep.mubr.msk.bf16.mxu0 %vm307_vm2, %v4100_v4  ;;  %v12040_v42 = vmul.f32 %v9838_v28, %v11966_v23 }
0x12a8   :  { %13705 = vst [vmem:[#allocation16_spill] sm:$0xff] %v12040_v42  ;;  %v4101_v19 = vpack.c.bf16 %v12040_v42, %v12037_v3 }
0x12aa   :  { %9042 = vmatmul.mubr.msk.bf16.gmra.mxu0 %vm307_vm2, %v4101_v19 }
0x12e1   :  { %v9031_v33 = vpop.f32.mrf.mxu0 }
0x12e3   :  { %v4172_v13 = vpop.f32.mrf.mxu0 }
0x12e5   :  { %v9032_v51 = vpop.f32.mrf.mxu0 }
0x12e6   :  { %v12055_v30 = vpack.c.bf16 %v9032_v51, %v9031_v33 }
0x12e7   :  { %v4175_v50 = vpop.f32.mrf.mxu0 }
0x12e8   :  { %v12045_v26 = vpack.c.bf16 %v4175_v50, %v4172_v13 }
0x12e9   :  { %v9035_v29 = vpop.f32.mrf.mxu0 }
0x12ea   :  { %9053 = vmatprep.mubr.msk.bf16.mxu1 %vm449_vm3, %v12045_v26 }
0x12eb   :  { %v4188_v47 = vpop.f32.mrf.mxu0 }
0x12ed   :  { %v9036_v44 = vpop.f32.mrf.mxu0 }
0x12ee   :  { %v12049_v5 = vpack.c.bf16 %v9036_v44, %v9035_v29 }
0x12ef   :  { %v4191_v23 = vpop.f32.mrf.mxu0 }
0x12f0   :  { %v12051_v8 = vpack.c.bf16 %v4191_v23, %v4188_v47  ;;  %4253 = vrot.lane.b32.xlu1 %v12049_v5, %s10181_s2 }
0x12f2   :  { %4251 = vrot.lane.b32.xlu0 %v12051_v8, %s10181_s2 }
0x12f4   :  { %4249 = vrot.lane.b32.xlu1 %v12055_v30, %s10181_s2 }
0x12f6   :  { %4247 = vrot.lane.b32.xlu0 %v12045_v26, %s10181_s2 }
0x1362   :  { %v9039_v61 = vpop.f32.mrf.mxu0  ;;  %v4254_v2 = vpop.permute.xlu1 %4253 }
0x1363   :  { %9453 = vmatprep.subr.msk.bf16.mxu1 %vm449_vm3, %v4254_v2  ;;  %v4277_v60 = vsel %vm449_vm3, %v4254_v2, 0 }
0x1364   :  { %v4252_v55 = vpop.permute.xlu0 %4251  ;;  %v4204_v21 = vpop.f32.mrf.mxu0  ;;  %9046 = vmatpush3.bf16.xpose.msra.mxu1 %v4277_v60 }
0x1365   :  { %9454 = vmatprep.subr.msk.bf16.mxu1 %vm449_vm3, %v4252_v55  ;;  %v4274_v31 = vsel %vm449_vm3, %v4252_v55, 0 }
0x1366   :  { %v9040_v62 = vpop.f32.mrf.mxu0  ;;  %v4250_v17 = vpop.permute.xlu1 %4249 }
0x1367   :  { %v12066_v57 = vpack.c.bf16 %v9040_v62, %v9039_v61  ;;  %v4271_v46 = vsel %vm449_vm3, %v4250_v17, 0 }
0x1368   :  { %v4207_v49 = vpop.f32.mrf.mxu0  ;;  %v4248_v22 = vpop.permute.xlu0 %4247 }
0x1369   :  { %v12068_v10 = vpack.c.bf16 %v4207_v49, %v4204_v21  ;;  %4350 = vrot.lane.b32.xlu0 %v12066_v57, %s10181_s2  ;;  %v4268_v41 = vsel %vm449_vm3, %v4248_v22, 0 }
0x136a   :  { %v9043_v1 = vpop.f32.mrf.mxu0 }
0x136b   :  { %13706 = vst [vmem:[#allocation24_spill] sm:$0xff] %v12068_v10  ;;  %9069 = vmatprep.mubr.msk.bf16.mxu0 %vm449_vm3, %v12068_v10 }
0x136c   :  { %v4220_v58 = vpop.f32.mrf.mxu0  ;;  %9048 = vmatpush3.bf16.xpose.msra.mxu1 %v4274_v31 }
0x136d   :  { %9455 = vmatprep.subr.msk.bf16.mxu1 %vm449_vm3, %v4250_v17 }
0x136e   :  { %v9044_v40 = vpop.f32.mrf.mxu0 }
0x136f   :  { %v12076_v37 = vpack.c.bf16 %v9044_v40, %v9043_v1 }
0x1370   :  { %v4223_v52 = vpop.f32.mrf.mxu0 }
0x1371   :  { %13707 = vst [vmem:[#allocation21_spill] sm:$0xff] %v12076_v37  ;;  %4354 = vrot.lane.b32.xlu1 %v12076_v37, %s10181_s2  ;;  %v12080_v54 = vpack.c.bf16 %v4223_v52, %v4220_v58 }
0x1374   :  { %9050 = vmatpush3.bf16.xpose.msra.mxu1 %v4271_v46 }
0x1375   :  { %4352 = vrot.lane.b32.xlu1 %v12080_v54, %s10181_s2  ;;  %9456 = vmatprep.subr.msk.bf16.mxu1 %vm449_vm3, %v4248_v22 }
0x1379   :  { %4348 = vrot.lane.b32.xlu1 %v12068_v10, %s10181_s2 }
0x137c   :  { %9052 = vmatpush3.bf16.xpose.msra.mxu1 %v4268_v41 }
0x1383   :  { %9054 = vmatmul.mubr.msk.bf16.vlgmr.msra.gmra.mxu1 %vm449_vm3, %v12055_v30 }
0x1384   :  { %9057 = vmatprep.mubr.msk.bf16.mxu1 %vm449_vm3, %v12051_v8 }
0x138b   :  { %9058 = vmatmul.mubr.msk.bf16.gmra.mxu1 %vm449_vm3, %v12049_v5 }
0x13db   :  { %v4351_v48 = vpop.permute.xlu0 %4350 }
0x13dc   :  { %v4372_v45 = vsel %vm449_vm3, %v4351_v48, 0 }
0x13e3   :  { %v4355_v43 = vpop.permute.xlu1 %4354 }
0x13e4   :  { %9457 = vmatprep.subr.msk.bf16.mxu0 %vm449_vm3, %v4355_v43  ;;  %v4378_v38 = vsel %vm449_vm3, %v4355_v43, 0 }
0x13e5   :  { %9062 = vmatpush3.bf16.xpose.msra.mxu0 %v4378_v38 }
0x13e7   :  { %v4353_v20 = vpop.permute.xlu1 %4352 }
0x13e8   :  { %9458 = vmatprep.subr.msk.bf16.mxu0 %vm449_vm3, %v4353_v20  ;;  %v4375_v14 = vsel %vm449_vm3, %v4353_v20, 0 }
0x13eb   :  { %v4349_v11 = vpop.permute.xlu1 %4348 }
0x13ec   :  { %v4369_v32 = vsel %vm449_vm3, %v4349_v11, 0 }
0x13ed   :  { %9064 = vmatpush3.bf16.xpose.msra.mxu0 %v4375_v14 }
0x13ee   :  { %9459 = vmatprep.subr.msk.bf16.mxu0 %vm449_vm3, %v4351_v48 }
0x13f5   :  { %9066 = vmatpush3.bf16.xpose.msra.mxu0 %v4372_v45 }
0x13f6   :  { %9460 = vmatprep.subr.msk.bf16.mxu0 %vm449_vm3, %v4349_v11 }
0x13fd   :  { %9068 = vmatpush3.bf16.xpose.msra.mxu0 %v4369_v32 }
0x1404   :  { %9070 = vmatmul.mubr.msk.bf16.vlgmr.msra.gmra.mxu0 %vm449_vm3, %v12066_v57 }
0x1405   :  { %9073 = vmatprep.mubr.msk.bf16.mxu0 %vm449_vm3, %v12080_v54 }
0x140c   :  { %9074 = vmatmul.mubr.msk.bf16.gmra.mxu0 %vm449_vm3, %v12076_v37 }
0x1443   :  { %v9055_v7 = vpop.f32.mrf.mxu1 }
0x1444   :  { %v4451_v4 = vsel %vm640_vm4, %v9055_v7, -inf }
0x1445   :  { %v4313_v27 = vpop.f32.mrf.mxu1 }
0x1446   :  { %v4445_v53 = vsel %vm640_vm4, %v4313_v27, -inf }
0x1447   :  { %4446 = vmax.xlane.f32.xlu0 %v4445_v53  ;;  %v9056_v25 = vpop.f32.mrf.mxu1 }
0x1448   :  { %v4454_v13 = vsel %vm640_vm4, %v9056_v25, -inf }
0x1449   :  { %v4316_v18 = vpop.f32.mrf.mxu1 }
0x144a   :  { %v4448_v28 = vsel %vm640_vm4, %v4316_v18, -inf }
0x144b   :  { %4452 = vmax.xlane.f32.xlu0 %v4451_v4  ;;  %4449 = vmax.xlane.f32.xlu1 %v4448_v28  ;;  %v9059_v19 = vpop.f32.mrf.mxu1 }
0x144c   :  { %v4463_v47 = vsel %vm640_vm4, %v9059_v19, -inf }
0x144d   :  { %v4329_v33 = vpop.f32.mrf.mxu1 }
0x144e   :  { %v4457_v51 = vsel %vm640_vm4, %v4329_v33, -inf }
0x144f   :  { %4455 = vmax.xlane.f32.xlu0 %v4454_v13  ;;  %4458 = vmax.xlane.f32.xlu1 %v4457_v51  ;;  %v9060_v50 = vpop.f32.mrf.mxu1 }
0x1450   :  { %v4466_v23 = vsel %vm640_vm4, %v9060_v50, -inf }
0x1451   :  { %v4332_v29 = vpop.f32.mrf.mxu1 }
0x1452   :  { %v4460_v44 = vsel %vm640_vm4, %v4332_v29, -inf }
0x1453   :  { %4464 = vmax.xlane.f32.xlu1 %v4463_v47  ;;  %4461 = vmax.xlane.f32.xlu0 %v4460_v44 }
0x1457   :  { %4467 = vmax.xlane.f32.xlu0 %v4466_v23 }
0x1464   :  { %4635 = vrot.lane.b32.xlu1 %v12049_v5, %s10182_s29 }
0x1468   :  { %4633 = vrot.lane.b32.xlu1 %v12051_v8, %s10182_s29 }
0x146d   :  { %4631 = vrot.lane.b32.xlu0 %v12055_v30, %s10182_s29 }
0x14d0   :  { %v4447_v61 = vpop.xlane.xlu0 %4446 }
0x14d1   :  { %v4493_v2 = vsub.f32 %v4313_v27, %v4447_v61 }
0x14d3   :  { %v4509_v62 = vmul.f32 1.442695, %v4493_v2 }
0x14d4   :  { %v4453_v60 = vpop.xlane.xlu0 %4452  ;;  %v4450_v55 = vpop.xlane.xlu1 %4449 }
0x14d5   :  { %v4495_v21 = vsub.f32 %v9055_v7, %v4453_v60  ;;  %v4494_v1 = vsub.f32 %v4316_v18, %v4450_v55  ;;  %v12155_v55 = vpop.f32.mrf.mxu0 }
0x14d7   :  { %v4513_v49 = vmul.f32 1.442695, %v4495_v21  ;;  %v4511_v40 = vmul.f32 1.442695, %v4494_v1  ;;  %v4475_v21 = vsel %vm640_vm4, %v12155_v55, -inf }
0x14d8   :  { %v4456_v31 = vpop.xlane.xlu0 %4455  ;;  %v4459_v17 = vpop.xlane.xlu1 %4458 }
0x14d9   :  { %9839 = vpow2.f32 %v4513_v49  ;;  %v4496_v58 = vsub.f32 %v9056_v25, %v4456_v31  ;;  %v4497_v46 = vsub.f32 %v4329_v33, %v4459_v17 }
0x14da   :  { %9841 = vpow2.f32 %v4509_v62  ;;  %v12159_v62 = vpop.f32.mrf.mxu0 }
0x14db   :  { %v4515_v52 = vmul.f32 1.442695, %v4496_v58  ;;  %v4517_v48 = vmul.f32 1.442695, %v4497_v46  ;;  %v4469_v49 = vsel %vm640_vm4, %v12159_v62, -inf }
0x14dc   :  { %v4462_v22 = vpop.xlane.xlu0 %4461  ;;  %v4465_v41 = vpop.xlane.xlu1 %4464 }
0x14dd   :  { %9843 = vpow2.f32 %v4515_v52  ;;  %v4498_v43 = vsub.f32 %v4332_v29, %v4462_v22  ;;  %v4499_v38 = vsub.f32 %v9059_v19, %v4465_v41  ;;  %v12167_v1 = vpop.f32.mrf.mxu0 }
0x14de   :  { %9845 = vpow2.f32 %v4511_v40  ;;  %v4478_v31 = vsel %vm640_vm4, %v12167_v1, -inf }
0x14df   :  { %v4519_v20 = vmul.f32 1.442695, %v4498_v43  ;;  %v4521_v14 = vmul.f32 1.442695, %v4499_v38  ;;  %v12171_v17 = vpop.f32.mrf.mxu0 }
0x14e0   :  { %v4468_v45 = vpop.xlane.xlu0 %4467  ;;  %v4636_v11 = vpop.permute.xlu1 %4635  ;;  %v4472_v58 = vsel %vm640_vm4, %v12171_v17, -inf }
0x14e1   :  { %v4500_v32 = vsub.f32 %v9060_v50, %v4468_v45  ;;  %9077 = vmatprep.subr.bf16.mxu1 %v4636_v11  ;;  %9847 = vpow2.f32 %v4521_v14  ;;  %v12175_v40 = vpop.f32.mrf.mxu0 }
0x14e2   :  { %9078 = vmatpush3.bf16.msra.mxu1 %v4636_v11  ;;  %9849 = vpow2.f32 %v4519_v20  ;;  %v4487_v52 = vsel %vm640_vm4, %v12175_v40, -inf }
0x14e3   :  { %9851 = vpow2.f32 %v4517_v48  ;;  %v4523_v7 = vmul.f32 1.442695, %v4500_v32  ;;  %v12179_v46 = vpop.f32.mrf.mxu0 }
0x14e4   :  { %v4634_v27 = vpop.permute.xlu1 %4633  ;;  %v4632_v25 = vpop.permute.xlu0 %4631  ;;  %v4481_v22 = vsel %vm640_vm4, %v12179_v46, -inf }
0x14e5   :  { %9079 = vmatprep.subr.bf16.mxu1 %v4634_v27  ;;  %9853 = vpow2.f32 %v4523_v7  ;;  %v12203_v41 = vpop.f32.mrf.mxu0 }
0x14e6   :  { %v12123_v53 = vpop.eup %9839  ;;  %9080 = vmatpush3.bf16.msra.mxu1 %v4634_v27  ;;  %v4490_v43 = vsel %vm640_vm4, %v12203_v41, -inf }
0x14e7   :  { %9081 = vmatprep.subr.bf16.mxu1 %v4632_v25  ;;  %v4547_v18 = vsel %vm640_vm4, %v12123_v53, 0.0  ;;  %v12127_v4 = vpop.eup %9841  ;;  %v12209_v38 = vpop.f32.mrf.mxu0 }
0x14e8   :  { %4548 = vadd.xlane.f32.xlu1 %v4547_v18  ;;  %v4541_v19 = vsel %vm640_vm4, %v12127_v4, 0.0  ;;  %v4484_v20 = vsel %vm640_vm4, %v12209_v38, -inf }
0x14ea   :  { %v12129_v28 = vpop.eup %9843  ;;  %9082 = vmatpush3.bf16.msra.mxu1 %v4632_v25 }
0x14eb   :  { %v4550_v33 = vsel %vm640_vm4, %v12129_v28, 0.0  ;;  %v12135_v13 = vpop.eup %9845 }
0x14ec   :  { %4542 = vadd.xlane.f32.xlu1 %v4541_v19  ;;  %4551 = vadd.xlane.f32.xlu0 %v4550_v33  ;;  %v4544_v50 = vsel %vm640_vm4, %v12135_v13, 0.0 }
0x14ee   :  { %v12137_v51 = vpop.eup %9847 }
0x14ef   :  { %v12141_v29 = vpop.eup %9849  ;;  %v4559_v47 = vsel %vm640_vm4, %v12137_v51, 0.0 }
0x14f0   :  { %4545 = vadd.xlane.f32.xlu0 %v4544_v50  ;;  %v12145_v44 = vpop.eup %9851  ;;  %4560 = vadd.xlane.f32.xlu1 %v4559_v47  ;;  %v4556_v23 = vsel %vm640_vm4, %v12141_v29, 0.0 }
0x14f1   :  { %v4553_v61 = vsel %vm640_vm4, %v12145_v44, 0.0 }
0x14f2   :  { %v12151_v2 = vpop.eup %9853 }
0x14f3   :  { %v4562_v60 = vsel %vm640_vm4, %v12151_v2, 0.0 }
0x14f4   :  { %4557 = vadd.xlane.f32.xlu0 %v4556_v23  ;;  %4554 = vadd.xlane.f32.xlu1 %v4553_v61 }
0x14f8   :  { %4563 = vadd.xlane.f32.xlu1 %v4562_v60 }
0x14fc   :  { %4476 = vmax.xlane.f32.xlu1 %v4475_v21 }
0x1500   :  { %4470 = vmax.xlane.f32.xlu1 %v4469_v49 }
0x150a   :  { %4724 = vrot.lane.b32.xlu0 %v12076_v37, %s10182_s29 }
0x1511   :  { %4629 = vrot.lane.b32.xlu1 %v12045_v26, %s10182_s29 }
0x1529   :  { %4479 = vmax.xlane.f32.xlu0 %v4478_v31 }
0x152d   :  { %4473 = vmax.xlane.f32.xlu0 %v4472_v58 }
0x1535   :  { %4488 = vmax.xlane.f32.xlu1 %v4487_v52 }
0x1539   :  { %4482 = vmax.xlane.f32.xlu1 %v4481_v22 }
0x1543   :  { %4827 = vrot.lane.b32.xlu0 %v12051_v8, %s10183_s30 }
0x1547   :  { %4718 = vrot.lane.b32.xlu0 %v12068_v10, %s10182_s29 }
0x154a   :  { %4829 = vrot.lane.b32.xlu1 %v12049_v5, %s10183_s30 }
0x154b   :  { %4823 = vrot.lane.b32.xlu0 %v12045_v26, %s10183_s30 }
0x154e   :  { %4722 = vrot.lane.b32.xlu1 %v12080_v54, %s10182_s29 }
0x1552   :  { %4720 = vrot.lane.b32.xlu1 %v12066_v57, %s10182_s29 }
0x1556   :  { %4825 = vrot.lane.b32.xlu1 %v12055_v30, %s10183_s30 }
0x155a   :  { %4934 = vrot.lane.b32.xlu1 %v12076_v37, %s10183_s30 }
0x155e   :  { %4932 = vrot.lane.b32.xlu1 %v12080_v54, %s10183_s30 }
0x1562   :  { %4817 = vrot.lane.b32.xlu1 %v12055_v30, %s10184_s8 }
0x1566   :  { %4819 = vrot.lane.b32.xlu1 %v12051_v8, %s10184_s8 }
0x156a   :  { %4491 = vmax.xlane.f32.xlu0 %v4490_v43 }
0x156e   :  { %4485 = vmax.xlane.f32.xlu0 %v4484_v20 }
0x1571   :  { %v4549_v14 = vpop.xlane.xlu1 %4548 }
0x1575   :  { %v4552_v48 = vpop.xlane.xlu0 %4551  ;;  %v4543_v45 = vpop.xlane.xlu1 %4542 }
0x1576   :  { %9855 = vrcp.f32 %v4543_v45 }
0x1579   :  { %v4546_v11 = vpop.xlane.xlu0 %4545  ;;  %v4561_v32 = vpop.xlane.xlu1 %4560 }
0x157a   :  { %9857 = vrcp.f32 %v4546_v11 }
0x157b   :  { %9859 = vrcp.f32 %v4549_v14 }
0x157c   :  { %9861 = vrcp.f32 %v4552_v48 }
0x157d   :  { %v4558_v7 = vpop.xlane.xlu0 %4557  ;;  %v4555_v27 = vpop.xlane.xlu1 %4554 }
0x157e   :  { %9863 = vrcp.f32 %v4558_v7 }
0x157f   :  { %9865 = vrcp.f32 %v4555_v27 }
0x1581   :  { %v4725_v25 = vpop.permute.xlu0 %4724  ;;  %v4564_v18 = vpop.xlane.xlu1 %4563 }
0x1582   :  { %9093 = vmatprep.subr.bf16.mxu0 %v4725_v25  ;;  %9867 = vrcp.f32 %v4564_v18 }
0x1583   :  { %9094 = vmatpush3.bf16.msra.mxu0 %v4725_v25  ;;  %v9856_v19 = vpop.eup %9855  ;;  %9869 = vrcp.f32 %v4561_v32 }
0x1584   :  { %4815 = vrot.lane.b32.xlu0 %v12045_v26, %s10184_s8  ;;  %v4605_v47 = vmul.f32 %v9856_v19, %v12127_v4 }
0x1585   :  { %v4477_v33 = vpop.xlane.xlu1 %4476 }
0x1586   :  { %v4503_v21 = vsub.f32 %v12155_v55, %v4477_v33 }
0x1587   :  { %v9858_v50 = vpop.eup %9857 }
0x1588   :  { %v4606_v23 = vmul.f32 %v9858_v50, %v12135_v13  ;;  %v9860_v61 = vpop.eup %9859  ;;  %v4529_v43 = vmul.f32 1.442695, %v4503_v21 }
0x1589   :  { %v9862_v60 = vpop.eup %9861  ;;  %v4471_v49 = vpop.xlane.xlu1 %4470  ;;  %v4607_v48 = vmul.f32 %v9860_v61, %v12123_v53 }
0x158a   :  { %v4621_v31 = vpack.c.bf16 %v4606_v23, %v4605_v47  ;;  %v4608_v22 = vmul.f32 %v9862_v60, %v12129_v28  ;;  %v4501_v20 = vsub.f32 %v12159_v62, %v4471_v49  ;;  %9871 = vpow2.f32 %v4529_v43 }
0x158b   :  { %v9864_v58 = vpop.eup %9863 }
0x158c   :  { %v9866_v52 = vpop.eup %9865  ;;  %9085 = vmatprep.mubr.msk.bf16.mxu1 %vm640_vm4, %v4621_v31  ;;  %v4610_v13 = vmul.f32 %v9864_v58, %v12141_v29  ;;  %v4622_v55 = vpack.c.bf16 %v4608_v22, %v4607_v48  ;;  %v4525_v11 = vmul.f32 1.442695, %v4501_v20 }
0x158d   :  { %v4630_v14 = vpop.permute.xlu1 %4629  ;;  %v4609_v4 = vmul.f32 %v9866_v52, %v12145_v44 }
0x158e   :  { %9083 = vmatprep.subr.bf16.mxu1 %v4630_v14  ;;  %9873 = vpow2.f32 %v4525_v11 }
0x158f   :  { %9084 = vmatpush3.bf16.msra.mxu1 %v4630_v14  ;;  %v9868_v45 = vpop.eup %9867  ;;  %v4623_v32 = vpack.c.bf16 %v4610_v13, %v4609_v4 }
0x1590   :  { %v9870_v28 = vpop.eup %9869  ;;  %v4612_v62 = vmul.f32 %v9868_v45, %v12151_v2 }
0x1591   :  { %v4611_v44 = vmul.f32 %v9870_v28, %v12137_v51 }
0x1592   :  { %9086 = vmatmul.mubr.msk.bf16.vlgmr.msra.gmra.mxu1 %vm640_vm4, %v4622_v55 }
0x1593   :  { %9089 = vmatprep.mubr.msk.bf16.mxu1 %vm640_vm4, %v4623_v32  ;;  %v4624_v29 = vpack.c.bf16 %v4612_v62, %v4611_v44 }
0x1597   :  { %v12229_v53 = vpop.eup %9871 }
0x1598   :  { %v4571_v7 = vsel %vm640_vm4, %v12229_v53, 0.0 }
0x159a   :  { %9090 = vmatmul.mubr.msk.bf16.gmra.mxu1 %vm640_vm4, %v4624_v29 }
0x159b   :  { %v12233_v27 = vpop.eup %9873 }
0x159c   :  { %v4565_v25 = vsel %vm640_vm4, %v12233_v27, 0.0 }
0x15a3   :  { %4572 = vadd.xlane.f32.xlu0 %v4571_v7 }
0x15a7   :  { %4566 = vadd.xlane.f32.xlu0 %v4565_v25 }
0x15b2   :  { %v4480_v18 = vpop.xlane.xlu0 %4479 }
0x15b3   :  { %v4504_v2 = vsub.f32 %v12167_v1, %v4480_v18 }
0x15b5   :  { %v4531_v19 = vmul.f32 1.442695, %v4504_v2 }
0x15b6   :  { %v4474_v51 = vpop.xlane.xlu0 %4473 }
0x15b7   :  { %9875 = vpow2.f32 %v4531_v19  ;;  %v4502_v33 = vsub.f32 %v12171_v17, %v4474_v51 }
0x15b9   :  { %v4527_v50 = vmul.f32 1.442695, %v4502_v33 }
0x15ba   :  { %v4828_v58 = vpop.permute.xlu0 %4827 }
0x15bb   :  { %9877 = vpow2.f32 %v4527_v50  ;;  %v4850_v43 = vsel %vm449_vm3, %v4828_v58, 0 }
0x15be   :  { %v4489_v47 = vpop.xlane.xlu1 %4488  ;;  %v4719_v20 = vpop.permute.xlu0 %4718 }
0x15bf   :  { %v4507_v32 = vsub.f32 %v12175_v40, %v4489_v47 }
0x15c1   :  { %v4537_v28 = vmul.f32 1.442695, %v4507_v32 }
0x15c2   :  { %v4483_v23 = vpop.xlane.xlu1 %4482  ;;  %v4824_v45 = vpop.permute.xlu0 %4823 }
0x15c3   :  { %v4505_v60 = vsub.f32 %v12179_v46, %v4483_v23  ;;  %v4844_v11 = vsel %vm449_vm3, %v4824_v45, 0 }
0x15c4   :  { %v12239_v61 = vpop.eup %9875 }
0x15c5   :  { %v4574_v21 = vsel %vm640_vm4, %v12239_v61, 0.0  ;;  %v4533_v49 = vmul.f32 1.442695, %v4505_v60 }
0x15c6   :  { %4575 = vadd.xlane.f32.xlu0 %v4574_v21  ;;  %v4830_v31 = vpop.permute.xlu1 %4829 }
0x15c7   :  { %9879 = vpow2.f32 %v4533_v49  ;;  %9461 = vmatprep.subr.msk.bf16.mxu1 %vm449_vm3, %v4830_v31  ;;  %v4853_v17 = vsel %vm449_vm3, %v4830_v31, 0 }
0x15c8   :  { %v12244_v1 = vpop.eup %9877  ;;  %9110 = vmatpush3.bf16.xpose.msra.mxu1 %v4853_v17  ;;  %9881 = vpow2.f32 %v4537_v28 }
0x15c9   :  { %v4568_v52 = vsel %vm640_vm4, %v12244_v1, 0.0  ;;  %9462 = vmatprep.subr.msk.bf16.mxu1 %vm449_vm3, %v4828_v58 }
0x15ca   :  { %4569 = vadd.xlane.f32.xlu0 %v4568_v52  ;;  %v4723_v46 = vpop.permute.xlu1 %4722 }
0x15cb   :  { %9095 = vmatprep.subr.bf16.mxu0 %v4723_v46 }
0x15cc   :  { %9096 = vmatpush3.bf16.msra.mxu0 %v4723_v46 }
0x15ce   :  { %v4721_v22 = vpop.permute.xlu1 %4720 }
0x15cf   :  { %9097 = vmatprep.subr.bf16.mxu0 %v4721_v22 }
0x15d0   :  { %9098 = vmatpush3.bf16.msra.mxu0 %v4721_v22  ;;  %9112 = vmatpush3.bf16.xpose.msra.mxu1 %v4850_v43 }
0x15d1   :  { %9099 = vmatprep.subr.bf16.mxu0 %v4719_v20 }
0x15d2   :  { %v4826_v14 = vpop.permute.xlu1 %4825 }
0x15d3   :  { %9463 = vmatprep.subr.msk.bf16.mxu1 %vm449_vm3, %v4826_v14  ;;  %v4847_v55 = vsel %vm449_vm3, %v4826_v14, 0 }
0x15d4   :  { %v12253_v4 = vpop.eup %9879  ;;  %9100 = vmatpush3.bf16.msra.mxu0 %v4719_v20 }
0x15d5   :  { %v4577_v13 = vsel %vm640_vm4, %v12253_v4, 0.0  ;;  %v12271_v51 = vpop.eup %9881 }
0x15d6   :  { %4578 = vadd.xlane.f32.xlu1 %v4577_v13  ;;  %v12257_v48 = vpop.permute.xlu1 %4934 }
0x15d7   :  { %9465 = vmatprep.subr.msk.bf16.mxu0 %vm449_vm3, %v12257_v48 }
0x15d8   :  { %9114 = vmatpush3.bf16.xpose.msra.mxu1 %v4847_v55 }
0x15d9   :  { %9464 = vmatprep.subr.msk.bf16.mxu1 %vm449_vm3, %v4824_v45 }
0x15da   :  { %v12267_v62 = vpop.permute.xlu1 %4932 }
0x15de   :  { %v4818_v25 = vpop.permute.xlu1 %4817 }
0x15e0   :  { %4930 = vrot.lane.b32.xlu0 %v12066_v57, %s10183_s30  ;;  %9116 = vmatpush3.bf16.xpose.msra.mxu1 %v4844_v11 }
0x15e2   :  { %v4820_v40 = vpop.permute.xlu1 %4819 }
0x15f3   :  { %v4492_v44 = vpop.xlane.xlu0 %4491 }
0x15f4   :  { %v4508_v29 = vsub.f32 %v12203_v41, %v4492_v44  ;;  %v4583_v41 = vsel %vm640_vm4, %v12271_v51, 0.0 }
0x15f6   :  { %v4539_v7 = vmul.f32 1.442695, %v4508_v29 }
0x15f7   :  { %v4486_v18 = vpop.xlane.xlu0 %4485 }
0x15f8   :  { %9883 = vpow2.f32 %v4539_v7  ;;  %v4506_v2 = vsub.f32 %v12209_v38, %v4486_v18 }
0x15fa   :  { %v4535_v19 = vmul.f32 1.442695, %v4506_v2 }
0x15fb   :  { %v4816_v33 = vpop.permute.xlu0 %4815 }
0x15fc   :  { %9885 = vpow2.f32 %v4535_v19  ;;  %9117 = vmatprep.mubr.msk.bf16.mxu1 %vm449_vm3, %v4816_v33  ;;  %v4958_v19 = vsel %vm449_vm3, %v12257_v48, 0 }
0x15fd   :  { %9118 = vmatmul.mubr.msk.bf16.vlgmr.msra.gmra.mxu1 %vm449_vm3, %v4818_v25 }
0x15fe   :  { %9121 = vmatprep.mubr.msk.bf16.mxu1 %vm449_vm3, %v4820_v40 }
0x15ff   :  { %4584 = vadd.xlane.f32.xlu0 %v4583_v41 }
0x1605   :  { %v12278_v50 = vpop.eup %9883 }
0x1606   :  { %v4586_v38 = vsel %vm640_vm4, %v12278_v50, 0.0 }
0x1607   :  { %4587 = vadd.xlane.f32.xlu1 %v4586_v38 }
0x1609   :  { %v12282_v47 = vpop.eup %9885 }
0x160a   :  { %v4580_v23 = vsel %vm640_vm4, %v12282_v47, 0.0 }
0x160b   :  { %4581 = vadd.xlane.f32.xlu0 %v4580_v23 }
0x1618   :  { %4928 = vrot.lane.b32.xlu1 %v12068_v10, %s10183_s30 }
0x161c   :  { %4922 = vrot.lane.b32.xlu1 %v12066_v57, %s10184_s8 }
0x1620   :  { %4926 = vrot.lane.b32.xlu1 %v12076_v37, %s10184_s8 }
0x1621   :  { %4821 = vrot.lane.b32.xlu0 %v12049_v5, %s10184_s8 }
0x1624   :  { %5215 = vrot.lane.b32.xlu1 %v12049_v5, %s10185_s1 }
0x1625   :  { %4920 = vrot.lane.b32.xlu0 %v12068_v10, %s10184_s8 }
0x1629   :  { %4924 = vrot.lane.b32.xlu0 %v12080_v54, %s10184_s8 }
0x162c   :  { %v4573_v60 = vpop.xlane.xlu0 %4572 }
0x1630   :  { %v4567_v21 = vpop.xlane.xlu0 %4566 }
0x164f   :  { %v4576_v49 = vpop.xlane.xlu0 %4575 }
0x1650   :  { %9887 = vrcp.f32 %v4576_v49 }
0x1651   :  { %9889 = vrcp.f32 %v4567_v21 }
0x1652   :  { %9891 = vrcp.f32 %v4573_v60  ;;  %v12300_v31 = vpop.f32.mrf.mxu1 }
0x1653   :  { %v4570_v17 = vpop.xlane.xlu0 %4569 }
0x1654   :  { %9893 = vrcp.f32 %v4570_v17  ;;  %v12302_v58 = vpop.f32.mrf.mxu1 }
0x1656   :  { %v12304_v52 = vpop.f32.mrf.mxu1 }
0x1658   :  { %v12308_v22 = vpop.f32.mrf.mxu1 }
0x165a   :  { %v12312_v20 = vpop.f32.mrf.mxu1 }
0x165c   :  { %v12314_v14 = vpop.f32.mrf.mxu1 }
0x165d   :  { %v9888_v13 = vpop.eup %9887 }
0x165e   :  { %v9890_v55 = vpop.eup %9889  ;;  %v12316_v45 = vpop.f32.mrf.mxu1  ;;  %v4616_v44 = vmul.f32 %v9888_v13, %v12239_v61 }
0x165f   :  { %v9892_v11 = vpop.eup %9891  ;;  %v4613_v29 = vmul.f32 %v9890_v55, %v12233_v27  ;;  %v4955_v27 = vsel %vm449_vm3, %v12267_v62, 0  ;;  %v4931_v61 = vpop.permute.xlu0 %4930 }
0x1660   :  { %v4615_v25 = vmul.f32 %v9892_v11, %v12229_v53  ;;  %v4952_v53 = vsel %vm449_vm3, %v4931_v61, 0 }
0x1661   :  { %v9894_v28 = vpop.eup %9893 }
0x1662   :  { %v4614_v7 = vmul.f32 %v9894_v28, %v12244_v1  ;;  %v4626_v2 = vpack.c.bf16 %v4616_v44, %v4615_v25  ;;  %v4579_v1 = vpop.xlane.xlu1 %4578 }
0x1664   :  { %v4625_v18 = vpack.c.bf16 %v4614_v7, %v4613_v29 }
0x1666   :  { %9101 = vmatprep.mubr.msk.bf16.mxu0 %vm640_vm4, %v4625_v18 }
0x1667   :  { %9102 = vmatmul.mubr.msk.bf16.vlgmr.msra.gmra.mxu0 %vm640_vm4, %v4626_v2 }
0x1668   :  { %9126 = vmatpush3.bf16.xpose.msra.mxu0 %v4958_v19 }
0x1669   :  { %9466 = vmatprep.subr.msk.bf16.mxu0 %vm449_vm3, %v12267_v62 }
0x1670   :  { %9128 = vmatpush3.bf16.xpose.msra.mxu0 %v4955_v27 }
0x1671   :  { %9467 = vmatprep.subr.msk.bf16.mxu0 %vm449_vm3, %v4931_v61 }
0x1678   :  { %9130 = vmatpush3.bf16.xpose.msra.mxu0 %v4952_v53 }
0x1688   :  { %v4585_v33 = vpop.xlane.xlu0 %4584 }
0x1690   :  { %v4588_v40 = vpop.xlane.xlu1 %4587 }
0x1691   :  { %9895 = vrcp.f32 %v4588_v40 }
0x1692   :  { %9897 = vrcp.f32 %v4579_v1 }
0x1693   :  { %9899 = vrcp.f32 %v4585_v33 }
0x1694   :  { %v4582_v48 = vpop.xlane.xlu0 %4581  ;;  %v4929_v41 = vpop.permute.xlu1 %4928 }
0x1695   :  { %9901 = vrcp.f32 %v4582_v48  ;;  %9468 = vmatprep.subr.msk.bf16.mxu0 %vm449_vm3, %v4929_v41  ;;  %v4949_v62 = vsel %vm449_vm3, %v4929_v41, 0 }
0x1696   :  { %9132 = vmatpush3.bf16.xpose.msra.mxu0 %v4949_v62 }
0x1698   :  { %v4822_v38 = vpop.permute.xlu0 %4821  ;;  %v4923_v23 = vpop.permute.xlu1 %4922 }
0x1699   :  { %9122 = vmatmul.mubr.msk.bf16.gmra.mxu1 %vm449_vm3, %v4822_v38 }
0x169c   :  { %v4927_v60 = vpop.permute.xlu1 %4926  ;;  %v4921_v18 = vpop.permute.xlu0 %4920 }
0x169e   :  { %v9896_v21 = vpop.eup %9895 }
0x169f   :  { %v9898_v49 = vpop.eup %9897  ;;  %v4620_v11 = vmul.f32 %v9896_v21, %v12278_v50 }
0x16a0   :  { %v5216_v17 = vpop.permute.xlu1 %5215  ;;  %v9900_v13 = vpop.eup %9899  ;;  %v4617_v28 = vmul.f32 %v9898_v49, %v12253_v4 }
0x16a1   :  { %9141 = vmatprep.subr.bf16.mxu1 %v5216_v17  ;;  %v4619_v29 = vmul.f32 %v9900_v13, %v12271_v51  ;;  %v4925_v2 = vpop.permute.xlu0 %4924  ;;  %v12347_v4 = vpop.f32.mrf.mxu1 }
0x16a2   :  { %v9902_v55 = vpop.eup %9901  ;;  %9142 = vmatpush3.bf16.msra.mxu1 %v5216_v17 }
0x16a3   :  { %v4618_v44 = vmul.f32 %v9902_v55, %v12282_v47  ;;  %v4628_v25 = vpack.c.bf16 %v4620_v11, %v4619_v29 }
0x16a5   :  { %v4627_v7 = vpack.c.bf16 %v4618_v44, %v4617_v28 }
0x16a7   :  { %9105 = vmatprep.mubr.msk.bf16.mxu0 %vm640_vm4, %v4627_v7 }
0x16a8   :  { %9106 = vmatmul.mubr.msk.bf16.gmra.mxu0 %vm640_vm4, %v4628_v25 }
0x16a9   :  { %9133 = vmatprep.mubr.msk.bf16.mxu0 %vm449_vm3, %v4921_v18 }
0x16b0   :  { %9134 = vmatmul.mubr.msk.bf16.vlgmr.msra.gmra.mxu0 %vm449_vm3, %v4923_v23 }
0x16b1   :  { %9137 = vmatprep.mubr.msk.bf16.mxu0 %vm449_vm3, %v4925_v2 }
0x16b8   :  { %9138 = vmatmul.mubr.msk.bf16.gmra.mxu0 %vm449_vm3, %v4927_v60 }
0x16bd   :  { %v9119_v50 = vpop.f32.mrf.mxu1 }
0x16be   :  { %v5031_v51 = vsel %vm640_vm4, %v9119_v50, -inf }
0x16bf   :  { %5032 = vmax.xlane.f32.xlu0 %v5031_v51  ;;  %v4889_v47 = vpop.f32.mrf.mxu1 }
0x16c0   :  { %v5025_v27 = vsel %vm640_vm4, %v4889_v47, -inf }
0x16c1   :  { %v9120_v19 = vpop.f32.mrf.mxu1 }
0x16c2   :  { %v5034_v1 = vsel %vm640_vm4, %v9120_v19, -inf }
0x16c3   :  { %5026 = vmax.xlane.f32.xlu0 %v5025_v27  ;;  %v4892_v61 = vpop.f32.mrf.mxu1 }
0x16c4   :  { %v5028_v53 = vsel %vm640_vm4, %v4892_v61, -inf }
0x16c5   :  { %5029 = vmax.xlane.f32.xlu1 %v5028_v53 }
0x16c7   :  { %5035 = vmax.xlane.f32.xlu0 %v5034_v1 }
0x1727   :  { %v12353_v33 = vpop.f32.mrf.mxu0 }
0x1729   :  { %v12355_v40 = vpop.f32.mrf.mxu0 }
0x172b   :  { %v12357_v48 = vpop.f32.mrf.mxu0 }
0x172d   :  { %v12361_v62 = vpop.f32.mrf.mxu0 }
0x1748   :  { %v5033_v23 = vpop.xlane.xlu0 %5032 }
0x1749   :  { %v5075_v60 = vsub.f32 %v9119_v50, %v5033_v23 }
0x174b   :  { %v5093_v17 = vmul.f32 1.442695, %v5075_v60 }
0x174c   :  { %v5027_v21 = vpop.xlane.xlu0 %5026 }
0x174d   :  { %v5073_v49 = vsub.f32 %v4889_v47, %v5027_v21  ;;  %9903 = vpow2.f32 %v5093_v17 }
0x174e   :  { %v5030_v13 = vpop.xlane.xlu1 %5029 }
0x174f   :  { %v5089_v11 = vmul.f32 1.442695, %v5073_v49  ;;  %v5074_v44 = vsub.f32 %v4892_v61, %v5030_v13 }
0x1750   :  { %v5036_v55 = vpop.xlane.xlu0 %5035 }
0x1751   :  { %v5076_v28 = vsub.f32 %v9120_v19, %v5036_v55  ;;  %9905 = vpow2.f32 %v5089_v11  ;;  %v5091_v7 = vmul.f32 1.442695, %v5074_v44 }
0x1753   :  { %v5095_v29 = vmul.f32 1.442695, %v5076_v28 }
0x1755   :  { %9907 = vpow2.f32 %v5095_v29 }
0x1756   :  { %9909 = vpow2.f32 %v5091_v7 }
0x1759   :  { %v9123_v25 = vpop.f32.mrf.mxu1 }
0x175a   :  { %v5043_v18 = vsel %vm640_vm4, %v9123_v25, -inf  ;;  %v12368_v27 = vpop.eup %9903 }
0x175b   :  { %5044 = vmax.xlane.f32.xlu1 %v5043_v18  ;;  %v4905_v2 = vpop.f32.mrf.mxu1  ;;  %v5127_v53 = vsel %vm640_vm4, %v12368_v27, 0.0 }
0x175c   :  { %v5037_v51 = vsel %vm640_vm4, %v4905_v2, -inf }
0x175d   :  { %v9124_v50 = vpop.f32.mrf.mxu1 }
0x175e   :  { %v5046_v47 = vsel %vm640_vm4, %v9124_v50, -inf  ;;  %v12370_v61 = vpop.eup %9905 }
0x175f   :  { %5038 = vmax.xlane.f32.xlu1 %v5037_v51  ;;  %5047 = vmax.xlane.f32.xlu0 %v5046_v47  ;;  %v4908_v19 = vpop.f32.mrf.mxu1  ;;  %v5121_v60 = vsel %vm640_vm4, %v12370_v61, 0.0 }
0x1760   :  { %v5040_v1 = vsel %vm640_vm4, %v4908_v19, -inf }
0x1762   :  { %v12375_v23 = vpop.eup %9907 }
0x1763   :  { %5128 = vadd.xlane.f32.xlu1 %v5127_v53  ;;  %5041 = vmax.xlane.f32.xlu0 %v5040_v1  ;;  %v5130_v21 = vsel %vm640_vm4, %v12375_v23, 0.0  ;;  %v9910_v49 = vpop.eup %9909 }
0x1764   :  { %v5124_v55 = vsel %vm640_vm4, %v9910_v49, 0.0 }
0x1767   :  { %5122 = vadd.xlane.f32.xlu1 %v5121_v60  ;;  %5131 = vadd.xlane.f32.xlu0 %v5130_v21 }
0x1768   :  { %v12381_v17 = vpop.f32.mrf.mxu0 }
0x176a   :  { %v12383_v13 = vpop.f32.mrf.mxu0 }
0x176b   :  { %5125 = vadd.xlane.f32.xlu0 %v5124_v55 }
0x176c   :  { %v12386_v11 = vpop.f32.mrf.mxu0 }
0x176e   :  { %v12390_v44 = vpop.f32.mrf.mxu0 }
0x1770   :  { %v9135_v32 = vpop.f32.mrf.mxu0 }
0x17e4   :  { %v5045_v7 = vpop.xlane.xlu1 %5044 }
0x17e5   :  { %v5079_v18 = vsub.f32 %v9123_v25, %v5045_v7  ;;  %v4994_v25 = vpop.f32.mrf.mxu0 }
0x17e7   :  { %v5101_v51 = vmul.f32 1.442695, %v5079_v18 }
0x17e8   :  { %v5048_v47 = vpop.xlane.xlu0 %5047  ;;  %v5039_v53 = vpop.xlane.xlu1 %5038 }
0x17e9   :  { %9911 = vpow2.f32 %v5101_v51  ;;  %v5080_v1 = vsub.f32 %v9124_v50, %v5048_v47  ;;  %v5077_v60 = vsub.f32 %v4905_v2, %v5039_v53  ;;  %v9136_v50 = vpop.f32.mrf.mxu0 }
0x17eb   :  { %v5103_v21 = vmul.f32 1.442695, %v5080_v1  ;;  %v5097_v55 = vmul.f32 1.442695, %v5077_v60  ;;  %v5055_v60 = vsel %vm640_vm4, %v9135_v32, -inf }
0x17ec   :  { %v5042_v41 = vpop.xlane.xlu0 %5041  ;;  %v12394_v38 = vpop.xlane.xlu1 %5128 }
0x17ed   :  { %9913 = vpow2.f32 %v5103_v21  ;;  %v5078_v28 = vsub.f32 %v4908_v19, %v5042_v41 }
0x17ee   :  { %9915 = vpow2.f32 %v5097_v55  ;;  %v5058_v55 = vsel %vm640_vm4, %v9136_v50, -inf }
0x17ef   :  { %v5099_v46 = vmul.f32 1.442695, %v5078_v28  ;;  %v4997_v28 = vpop.f32.mrf.mxu0 }
0x17f0   :  { %v5132_v43 = vpop.xlane.xlu0 %5131  ;;  %v5123_v29 = vpop.xlane.xlu1 %5122  ;;  %v5052_v42 = vsel %vm640_vm4, %v4997_v28, -inf }
0x17f1   :  { %9917 = vpow2.f32 %v5099_v46  ;;  %v9139_v1 = vpop.f32.mrf.mxu0 }
0x17f2   :  { %9919 = vrcp.f32 %v5123_v29 }
0x17f4   :  { %v5126_v7 = vpop.xlane.xlu0 %5125 }
0x17f5   :  { %9921 = vrcp.f32 %v5126_v7 }
0x17f6   :  { %v12396_v18 = vpop.eup %9911 }
0x17f7   :  { %v5139_v2 = vsel %vm640_vm4, %v12396_v18, 0.0 }
0x17f8   :  { %5140 = vadd.xlane.f32.xlu1 %v5139_v2 }
0x17fa   :  { %v12400_v51 = vpop.eup %9913 }
0x17fb   :  { %v12402_v41 = vpop.eup %9915  ;;  %v5142_v19 = vsel %vm640_vm4, %v12400_v51, 0.0 }
0x17fc   :  { %5143 = vadd.xlane.f32.xlu0 %v5142_v19  ;;  %v5133_v46 = vsel %vm640_vm4, %v12402_v41, 0.0  ;;  %v5010_v19 = vpop.f32.mrf.mxu0 }
0x17fd   :  { %5134 = vadd.xlane.f32.xlu1 %v5133_v46  ;;  %v5049_v46 = vsel %vm640_vm4, %v4994_v25, -inf }
0x17fe   :  { %v12408_v29 = vpop.eup %9917 }
0x17ff   :  { %v5136_v47 = vsel %vm640_vm4, %v12408_v29, 0.0  ;;  %v9920_v53 = vpop.eup %9919 }
0x1800   :  { %5137 = vadd.xlane.f32.xlu0 %v5136_v47  ;;  %v5185_v7 = vmul.f32 %v9920_v53, %v12370_v61  ;;  %v9140_v47 = vpop.f32.mrf.mxu0  ;;  %v5061_v61 = vsel %vm640_vm4, %v5010_v19, -inf }
0x1801   :  { %5056 = vmax.xlane.f32.xlu1 %v5055_v60  ;;  %v5067_v60 = vsel %vm640_vm4, %v9139_v1, -inf  ;;  %v5070_v56 = vsel %vm640_vm4, %v9140_v47, -inf }
0x1802   :  { %v9922_v21 = vpop.eup %9921  ;;  %v5013_v3 = vpop.f32.mrf.mxu0 }
0x1803   :  { %v5186_v2 = vmul.f32 %v9922_v21, %v9910_v49  ;;  %v5064_v49 = vsel %vm640_vm4, %v5013_v3, -inf }
0x1804   :  { %5059 = vmax.xlane.f32.xlu0 %v5058_v55 }
0x1805   :  { %5050 = vmax.xlane.f32.xlu1 %v5049_v46  ;;  %v5201_v63 = vpack.c.bf16 %v5186_v2, %v5185_v7 }
0x1807   :  { %9149 = vmatprep.mubr.msk.bf16.mxu1 %vm640_vm4, %v5201_v63 }
0x1808   :  { %5053 = vmax.xlane.f32.xlu0 %v5052_v42 }
0x1809   :  { %5068 = vmax.xlane.f32.xlu1 %v5067_v60 }
0x180c   :  { %5071 = vmax.xlane.f32.xlu0 %v5070_v56 }
0x180d   :  { %5062 = vmax.xlane.f32.xlu1 %v5061_v61 }
0x1810   :  { %5065 = vmax.xlane.f32.xlu0 %v5064_v49 }
0x181e   :  { %5213 = vrot.lane.b32.xlu1 %v12051_v8, %s10185_s1 }
0x1822   :  { %5209 = vrot.lane.b32.xlu1 %v12045_v26, %s10185_s1 }
0x1826   :  { %5211 = vrot.lane.b32.xlu0 %v12055_v30, %s10185_s1 }
0x1881   :  { %v5141_v63 = vpop.xlane.xlu1 %5140 }
0x1885   :  { %v5144_v42 = vpop.xlane.xlu0 %5143 }
0x1886   :  { %v5135_v53 = vpop.xlane.xlu1 %5134 }
0x1889   :  { %v5138_v21 = vpop.xlane.xlu0 %5137 }
0x188a   :  { %v5057_v56 = vpop.xlane.xlu1 %5056 }
0x188b   :  { %v5083_v55 = vsub.f32 %v9135_v32, %v5057_v56 }
0x188d   :  { %v5109_v7 = vmul.f32 1.442695, %v5083_v55  ;;  %v5060_v2 = vpop.xlane.xlu0 %5059 }
0x188e   :  { %v5084_v46 = vsub.f32 %v9136_v50, %v5060_v2  ;;  %v5051_v60 = vpop.xlane.xlu1 %5050 }
0x188f   :  { %9923 = vpow2.f32 %v5109_v7  ;;  %v5081_v61 = vsub.f32 %v4994_v25, %v5051_v60 }
0x1890   :  { %9925 = vrcp.f32 %v12394_v38  ;;  %v5111_v49 = vmul.f32 1.442695, %v5084_v46 }
0x1891   :  { %9927 = vrcp.f32 %v5132_v43  ;;  %v5105_v12 = vmul.f32 1.442695, %v5081_v61  ;;  %v5054_v35 = vpop.xlane.xlu0 %5053 }
0x1892   :  { %9929 = vrcp.f32 %v5138_v21  ;;  %v5082_v59 = vsub.f32 %v4997_v28, %v5054_v35  ;;  %v5069_v16 = vpop.xlane.xlu1 %5068 }
0x1893   :  { %9931 = vpow2.f32 %v5105_v12  ;;  %v5087_v39 = vsub.f32 %v9139_v1, %v5069_v16 }
0x1894   :  { %9933 = vrcp.f32 %v5135_v53  ;;  %v5107_v32 = vmul.f32 1.442695, %v5082_v59 }
0x1895   :  { %9935 = vpow2.f32 %v5111_v49  ;;  %v5117_v56 = vmul.f32 1.442695, %v5087_v39  ;;  %v5072_v55 = vpop.xlane.xlu0 %5071 }
0x1896   :  { %v5088_v50 = vsub.f32 %v9140_v47, %v5072_v55  ;;  %v5063_v2 = vpop.xlane.xlu1 %5062 }
0x1897   :  { %9937 = vpow2.f32 %v5117_v56  ;;  %v5085_v25 = vsub.f32 %v5010_v19, %v5063_v2 }
0x1898   :  { %9939 = vrcp.f32 %v5144_v42  ;;  %v5119_v43 = vmul.f32 1.442695, %v5088_v50 }
0x1899   :  { %9941 = vpow2.f32 %v5107_v32  ;;  %v5113_v38 = vmul.f32 1.442695, %v5085_v25  ;;  %v5066_v7 = vpop.xlane.xlu0 %5065 }
0x189a   :  { %9943 = vrcp.f32 %v5141_v63  ;;  %v5086_v21 = vsub.f32 %v5013_v3, %v5066_v7  ;;  %v5214_v35 = vpop.permute.xlu1 %5213 }
0x189b   :  { %9945 = vpow2.f32 %v5113_v38  ;;  %9143 = vmatprep.subr.bf16.mxu1 %v5214_v35 }
0x189c   :  { %v12429_v12 = vpop.eup %9923  ;;  %v5115_v16 = vmul.f32 1.442695, %v5086_v21  ;;  %9144 = vmatpush3.bf16.msra.mxu1 %v5214_v35  ;;  %9947 = vpow2.f32 %v5119_v43 }
0x189d   :  { %v9926_v39 = vpop.eup %9925  ;;  %v5212_v59 = vpop.permute.xlu0 %5211  ;;  %v5151_v28 = vsel %vm640_vm4, %v12429_v12, 0.0 }
0x189e   :  { %v9928_v1 = vpop.eup %9927  ;;  %9949 = vpow2.f32 %v5115_v16  ;;  %5152 = vadd.xlane.f32.xlu0 %v5151_v28  ;;  %9145 = vmatprep.subr.bf16.mxu1 %v5212_v59  ;;  %v5210_v3 = vpop.permute.xlu1 %5209  ;;  %v5187_v61 = vmul.f32 %v9926_v39, %v12368_v27 }
0x189f   :  { %v9930_v19 = vpop.eup %9929  ;;  %v5188_v42 = vmul.f32 %v9928_v1, %v12375_v23 }
0x18a0   :  { %v12433_v47 = vpop.eup %9931  ;;  %9146 = vmatpush3.bf16.msra.mxu1 %v5212_v59  ;;  %v5190_v60 = vmul.f32 %v9930_v19, %v12408_v29 }
0x18a1   :  { %v9934_v63 = vpop.eup %9933  ;;  %9147 = vmatprep.subr.bf16.mxu1 %v5210_v3  ;;  %v5145_v53 = vsel %vm640_vm4, %v12433_v47, 0.0  ;;  %v5202_v55 = vpack.c.bf16 %v5188_v42, %v5187_v61 }
0x18a2   :  { %v12438_v46 = vpop.eup %9935  ;;  %5146 = vadd.xlane.f32.xlu0 %v5145_v53  ;;  %v5189_v32 = vmul.f32 %v9934_v63, %v12402_v41 }
0x18a3   :  { %v5154_v23 = vsel %vm640_vm4, %v12438_v46, 0.0 }
0x18a4   :  { %v12442_v49 = vpop.eup %9937  ;;  %9148 = vmatpush3.bf16.msra.mxu1 %v5210_v3  ;;  %v5203_v29 = vpack.c.bf16 %v5190_v60, %v5189_v32 }
0x18a5   :  { %v9940_v56 = vpop.eup %9939  ;;  %v5163_v50 = vsel %vm640_vm4, %v12442_v49, 0.0 }
0x18a6   :  { %v12449_v2 = vpop.eup %9941  ;;  %5155 = vadd.xlane.f32.xlu0 %v5154_v23  ;;  %5164 = vadd.xlane.f32.xlu1 %v5163_v50  ;;  %v5192_v38 = vmul.f32 %v9940_v56, %v12400_v51  ;;  %v8055_v51 = vld [vmem:[%s13610_s4 + $0x14] sm:$0xf] }
0x18a7   :  { %v9944_v25 = vpop.eup %9943  ;;  %9150 = vmatmul.mubr.msk.bf16.vlgmr.msra.gmra.mxu1 %vm640_vm4, %v5202_v55  ;;  %v5148_v41 = vsel %vm640_vm4, %v12449_v2, 0.0  ;;  %9469 = vmatprep.subr.msk.bf16.mxu1 %vm94_vm0, %v8055_v51 }
0x18a8   :  { %v12452_v27 = vpop.eup %9945  ;;  %9153 = vmatprep.mubr.msk.bf16.mxu1 %vm640_vm4, %v5203_v29  ;;  %v5191_v35 = vmul.f32 %v9944_v25, %v12396_v18  ;;  %v5420_v18 = vsel %vm94_vm0, %v8055_v51, 0 }
0x18a9   :  { %v5157_v43 = vsel %vm640_vm4, %v12452_v27, 0.0  ;;  %v12460_v7 = vpop.eup %9947  ;;  %9174 = vmatpush3.bf16.msra.mxu1 %v5420_v18 }
0x18aa   :  { %5149 = vadd.xlane.f32.xlu0 %v5148_v41  ;;  %5158 = vadd.xlane.f32.xlu1 %v5157_v43  ;;  %v5166_v39 = vsel %vm640_vm4, %v12460_v7, 0.0  ;;  %v5204_v59 = vpack.c.bf16 %v5192_v38, %v5191_v35 }
0x18ab   :  { %v12462_v21 = vpop.eup %9949 }
0x18ac   :  { %v5160_v16 = vsel %vm640_vm4, %v12462_v21, 0.0 }
0x18ae   :  { %5161 = vadd.xlane.f32.xlu0 %v5160_v16  ;;  %5167 = vadd.xlane.f32.xlu1 %v5166_v39 }
0x18af   :  { %9154 = vmatmul.mubr.msk.bf16.gmra.mxu1 %vm640_vm4, %v5204_v59 }
0x18bf   :  { %5302 = vrot.lane.b32.xlu1 %v12080_v54, %s10185_s1 }
0x18c3   :  { %5300 = vrot.lane.b32.xlu1 %v12066_v57, %s10185_s1 }
0x18c4   :  { %5304 = vrot.lane.b32.xlu0 %v12076_v37, %s10185_s1 }
0x18c7   :  { %5298 = vrot.lane.b32.xlu1 %v12068_v10, %s10185_s1 }
0x18c8   :  { %5657 = vrot.lane.b32.xlu0 %v12049_v5, %s10186_s11 }
0x18cb   :  { %5655 = vrot.lane.b32.xlu1 %v12051_v8, %s10186_s11 }
0x18cc   :  { %5653 = vrot.lane.b32.xlu0 %v12055_v30, %s10186_s11 }
0x18cf   :  { %5762 = vrot.lane.b32.xlu1 %v12076_v37, %s10186_s11 }
0x18d0   :  { %5651 = vrot.lane.b32.xlu0 %v12045_v26, %s10186_s11 }
0x18d3   :  { %5760 = vrot.lane.b32.xlu1 %v12080_v54, %s10186_s11 }
0x18d4   :  { %5643 = vrot.lane.b32.xlu0 %v12045_v26, %s10187_s12 }
0x18d7   :  { %5645 = vrot.lane.b32.xlu1 %v12055_v30, %s10187_s12 }
0x18d8   :  { %5758 = vrot.lane.b32.xlu0 %v12066_v57, %s10186_s11 }
0x18db   :  { %5647 = vrot.lane.b32.xlu1 %v12051_v8, %s10187_s12 }
0x18dc   :  { %5649 = vrot.lane.b32.xlu0 %v12049_v5, %s10187_s12 }
0x18df   :  { %5756 = vrot.lane.b32.xlu1 %v12068_v10, %s10186_s11 }
0x18e0   :  { %5748 = vrot.lane.b32.xlu0 %v12068_v10, %s10187_s12 }
0x18e3   :  { %5750 = vrot.lane.b32.xlu1 %v12066_v57, %s10187_s12 }
0x18e4   :  { %5752 = vrot.lane.b32.xlu0 %v12080_v54, %s10187_s12 }
0x18e7   :  { %5754 = vrot.lane.b32.xlu1 %v12076_v37, %s10187_s12 }
0x18eb   :  { %6043 = vrot.lane.b32.xlu1 %v12049_v5, %s10188_s13 }
0x1927   :  { %v5153_v28 = vpop.xlane.xlu0 %5152 }
0x192b   :  { %v5147_v1 = vpop.xlane.xlu0 %5146 }
0x192c   :  { %9951 = vrcp.f32 %v5147_v1 }
0x192f   :  { %v5156_v19 = vpop.xlane.xlu0 %5155  ;;  %v5165_v3 = vpop.xlane.xlu1 %5164 }
0x1933   :  { %v5150_v63 = vpop.xlane.xlu0 %5149  ;;  %v5159_v42 = vpop.xlane.xlu1 %5158 }
0x1934   :  { %9953 = vrcp.f32 %v5150_v63 }
0x1935   :  { %9955 = vrcp.f32 %v5156_v19 }
0x1936   :  { %9957 = vrcp.f32 %v5153_v28 }
0x1937   :  { %v5162_v53 = vpop.xlane.xlu0 %5161  ;;  %v5168_v60 = vpop.xlane.xlu1 %5167 }
0x1938   :  { %9959 = vrcp.f32 %v5162_v53 }
0x1939   :  { %9961 = vrcp.f32 %v5159_v42  ;;  %v9952_v56 = vpop.eup %9951 }
0x193a   :  { %9963 = vrcp.f32 %v5168_v60  ;;  %v5193_v29 = vmul.f32 %v9952_v56, %v12433_v47  ;;  %v8054_v47 = vld [vmem:[%s13610_s4 + $0x10] sm:$0xf]  ;;  %v13708_v60 = vpack.c.bf16 %v12308_v22, %v12302_v58 }
0x193b   :  { %v5305_v61 = vpop.permute.xlu0 %5304  ;;  %v5303_v32 = vpop.permute.xlu1 %5302  ;;  %9965 = vrcp.f32 %v5165_v3 }
0x193c   :  { %9157 = vmatprep.subr.bf16.mxu0 %v5305_v61 }
0x193d   :  { %9158 = vmatpush3.bf16.msra.mxu0 %v5305_v61 }
0x193e   :  { %9159 = vmatprep.subr.bf16.mxu0 %v5303_v32 }
0x193f   :  { %v12517_v55 = vpop.permute.xlu0 %5657  ;;  %v5301_v23 = vpop.permute.xlu1 %5300 }
0x1940   :  { %9471 = vmatprep.subr.msk.bf16.mxu1 %vm449_vm3, %v12517_v55 }
0x1941   :  { %v9954_v50 = vpop.eup %9953  ;;  %9160 = vmatpush3.bf16.msra.mxu0 %v5303_v32  ;;  %v4809_v32 = vpack.c.bf16 %v12347_v4, %v12314_v14  ;;  %v13710_v14 = vpack.c.bf16 %v12316_v45, %v12312_v20  ;;  %v13711_v4 = vpack.c.bf16 %v12361_v62, %v12355_v40  ;;  %v13712_v20 = vpack.c.bf16 %v12357_v48, %v12353_v33 }
0x1942   :  { %9161 = vmatprep.subr.bf16.mxu0 %v5301_v23  ;;  %v5194_v25 = vmul.f32 %v9954_v50, %v12449_v2  ;;  %v9956_v41 = vpop.eup %9955  ;;  %v13713_v40 = vpack.c.bf16 %v12390_v44, %v12383_v13  ;;  %v5681_v48 = vsel %vm449_vm3, %v12517_v55, 0 }
0x1943   :  { %v5299_v43 = vpop.permute.xlu1 %5298  ;;  %v9958_v38 = vpop.eup %9957  ;;  %v5196_v59 = vmul.f32 %v9956_v41, %v12438_v46  ;;  %v5544_v46 = vsel %vm94_vm0, %v8054_v47, 0 }
0x1944   :  { %v5205_v35 = vpack.c.bf16 %v5194_v25, %v5193_v29  ;;  %v5195_v18 = vmul.f32 %v9958_v38, %v12429_v12  ;;  %v5654_v53 = vpop.permute.xlu0 %5653 }
0x1945   :  { %v9960_v16 = vpop.eup %9959  ;;  %9162 = vmatpush3.bf16.msra.mxu0 %v5301_v23  ;;  %v13709_v23 = vpack.c.bf16 %v12304_v52, %v12300_v31 }
0x1946   :  { %v9962_v39 = vpop.eup %9961  ;;  %9163 = vmatprep.subr.bf16.mxu0 %v5299_v43  ;;  %9165 = vmatprep.mubr.msk.bf16.mxu0 %vm640_vm4, %v5205_v35  ;;  %v5198_v2 = vmul.f32 %v9960_v16, %v12462_v21  ;;  %v5206_v1 = vpack.c.bf16 %v5196_v59, %v5195_v18 }
0x1947   :  { %v12525_v51 = vpop.permute.xlu1 %5655  ;;  %v5197_v28 = vmul.f32 %v9962_v39, %v12452_v27  ;;  %v9964_v19 = vpop.eup %9963  ;;  %v13714_v39 = vpack.c.bf16 %v12386_v11, %v12381_v17  ;;  %v5675_v11 = vsel %vm449_vm3, %v5654_v53, 0 }
0x1948   :  { %v9966_v63 = vpop.eup %9965  ;;  %v5200_v12 = vmul.f32 %v9964_v19, %v12460_v7  ;;  %v5652_v61 = vpop.permute.xlu0 %5651  ;;  %v5678_v55 = vsel %vm449_vm3, %v12525_v51, 0 }
0x1949   :  { %9164 = vmatpush3.bf16.msra.mxu0 %v5299_v43  ;;  %v5207_v3 = vpack.c.bf16 %v5198_v2, %v5197_v28  ;;  %v5199_v27 = vmul.f32 %v9966_v63, %v12442_v49 }
0x194a   :  { %9470 = vmatprep.subr.msk.bf16.mxu0 %vm94_vm0, %v8054_v47 }
0x194b   :  { %v5763_v42 = vpop.permute.xlu1 %5762  ;;  %v5208_v21 = vpack.c.bf16 %v5200_v12, %v5199_v27 }
0x194c   :  { %9166 = vmatmul.mubr.msk.bf16.vlgmr.msra.gmra.mxu0 %vm640_vm4, %v5206_v1  ;;  %v5786_v49 = vsel %vm449_vm3, %v5763_v42, 0  ;;  %v12554_v58 = vpop.permute.xlu0 %5643 }
0x194d   :  { %9169 = vmatprep.mubr.msk.bf16.mxu0 %vm640_vm4, %v5207_v3  ;;  %9192 = vmatpush3.bf16.msra.mxu0 %v5544_v46  ;;  %v5672_v46 = vsel %vm449_vm3, %v5652_v61, 0 }
0x194e   :  { %9475 = vmatprep.subr.msk.bf16.mxu0 %vm449_vm3, %v5763_v42 }
0x194f   :  { %v5761_v56 = vpop.permute.xlu1 %5760 }
0x1950   :  { %v5783_v31 = vsel %vm449_vm3, %v5761_v56, 0  ;;  %v5759_v52 = vpop.permute.xlu0 %5758 }
0x1951   :  { %v5780_v45 = vsel %vm449_vm3, %v5759_v52, 0 }
0x1953   :  { %v12556_v22 = vpop.permute.xlu1 %5645 }
0x1954   :  { %9170 = vmatmul.mubr.msk.bf16.gmra.mxu0 %vm640_vm4, %v5208_v21  ;;  %v12579_v62 = vpop.permute.xlu0 %5649 }
0x1955   :  { %9193 = vmatprep.mubr.msk.bf16.mxu0 %vm449_vm3, %v13708_v60 }
0x1957   :  { %v12568_v7 = vpop.permute.xlu1 %5647 }
0x1958   :  { %v5749_v44 = vpop.permute.xlu0 %5748 }
0x195b   :  { %v5757_v41 = vpop.permute.xlu1 %5756 }
0x195c   :  { %9194 = vmatmul.mubr.msk.bf16.vlgmr.msra.gmra.mxu0 %vm449_vm3, %v13709_v23  ;;  %v5777_v59 = vsel %vm449_vm3, %v5757_v41, 0  ;;  %v5753_v17 = vpop.permute.xlu0 %5752 }
0x195d   :  { %9226 = vmatpush3.bf16.xpose.msra.mxu0 %v5786_v49  ;;  %9197 = vmatprep.mubr.msk.bf16.mxu0 %vm449_vm3, %v4809_v32 }
0x195e   :  { %9476 = vmatprep.subr.msk.bf16.mxu0 %vm449_vm3, %v5761_v56 }
0x195f   :  { %v5751_v28 = vpop.permute.xlu1 %5750 }
0x1963   :  { %v5755_v1 = vpop.permute.xlu1 %5754 }
0x1964   :  { %9198 = vmatmul.mubr.msk.bf16.gmra.mxu0 %vm449_vm3, %v13710_v14 }
0x1965   :  { %9228 = vmatpush3.bf16.xpose.msra.mxu0 %v5783_v31  ;;  %9201 = vmatprep.mubr.msk.bf16.mxu0 %vm449_vm3, %v13711_v4 }
0x1966   :  { %9477 = vmatprep.subr.msk.bf16.mxu0 %vm449_vm3, %v5759_v52 }
0x1967   :  { %v9151_v50 = vpop.f32.mrf.mxu1 }
0x1969   :  { %v5267_v29 = vpop.f32.mrf.mxu1 }
0x196b   :  { %v9152_v25 = vpop.f32.mrf.mxu1 }
0x196c   :  { %9202 = vmatmul.mubr.msk.bf16.gmra.mxu0 %vm449_vm3, %v13712_v20  ;;  %v5388_v35 = vpack.c.bf16 %v9152_v25, %v9151_v50 }
0x196d   :  { %9230 = vmatpush3.bf16.xpose.msra.mxu0 %v5780_v45  ;;  %v5270_v43 = vpop.f32.mrf.mxu1  ;;  %9205 = vmatprep.mubr.msk.bf16.mxu0 %vm449_vm3, %v13713_v40 }
0x196e   :  { %v5387_v38 = vpack.c.bf16 %v5270_v43, %v5267_v29  ;;  %9478 = vmatprep.subr.msk.bf16.mxu0 %vm449_vm3, %v5757_v41 }
0x196f   :  { %v9155_v16 = vpop.f32.mrf.mxu1 }
0x1970   :  { %9175 = vmatprep.mubr.msk.bf16.mxu1 %vm449_vm3, %v5387_v38 }
0x1971   :  { %v5283_v33 = vpop.f32.mrf.mxu1  ;;  %9176 = vmatmul.mubr.msk.bf16.vlgmr.msra.gmra.mxu1 %vm449_vm3, %v5388_v35 }
0x1972   :  { %9210 = vmatpush3.bf16.xpose.msra.mxu1 %v5681_v48 }
0x1973   :  { %9472 = vmatprep.subr.msk.bf16.mxu1 %vm449_vm3, %v12525_v51  ;;  %v9156_v13 = vpop.f32.mrf.mxu1  ;;  %v6044_v51 = vpop.permute.xlu1 %6043 }
0x1974   :  { %9206 = vmatmul.mubr.msk.bf16.gmra.mxu0 %vm449_vm3, %v13714_v39  ;;  %v5390_v18 = vpack.c.bf16 %v9156_v13, %v9155_v16 }
0x1975   :  { %9232 = vmatpush3.bf16.xpose.msra.mxu0 %v5777_v59  ;;  %v5286_v47 = vpop.f32.mrf.mxu1  ;;  %9233 = vmatprep.mubr.msk.bf16.mxu0 %vm449_vm3, %v5749_v44 }
0x1976   :  { %v5389_v2 = vpack.c.bf16 %v5286_v47, %v5283_v33 }
0x1978   :  { %9179 = vmatprep.mubr.msk.bf16.mxu1 %vm449_vm3, %v5389_v2 }
0x1979   :  { %9180 = vmatmul.mubr.msk.bf16.gmra.mxu1 %vm449_vm3, %v5390_v18 }
0x197a   :  { %9212 = vmatpush3.bf16.xpose.msra.mxu1 %v5678_v55 }
0x197b   :  { %9473 = vmatprep.subr.msk.bf16.mxu1 %vm449_vm3, %v5654_v53 }
0x197c   :  { %9234 = vmatmul.mubr.msk.bf16.vlgmr.msra.gmra.mxu0 %vm449_vm3, %v5751_v28 }
0x197d   :  { %9237 = vmatprep.mubr.msk.bf16.mxu0 %vm449_vm3, %v5753_v17 }
0x1982   :  { %9214 = vmatpush3.bf16.xpose.msra.mxu1 %v5675_v11 }
0x1983   :  { %9474 = vmatprep.subr.msk.bf16.mxu1 %vm449_vm3, %v5652_v61 }
0x1984   :  { %9238 = vmatmul.mubr.msk.bf16.gmra.mxu0 %vm449_vm3, %v5755_v1 }
0x198a   :  { %9216 = vmatpush3.bf16.xpose.msra.mxu1 %v5672_v46 }
0x198b   :  { %9241 = vmatprep.subr.bf16.mxu1 %v6044_v51 }
0x1a0c   :  { %v9167_v19 = vpop.f32.mrf.mxu0 }
0x1a0e   :  { %v5356_v3 = vpop.f32.mrf.mxu0 }
0x1a10   :  { %v9168_v63 = vpop.f32.mrf.mxu0 }
0x1a11   :  { %v5392_v27 = vpack.c.bf16 %v9168_v63, %v9167_v19 }
0x1a12   :  { %v5359_v42 = vpop.f32.mrf.mxu0 }
0x1a13   :  { %v5391_v12 = vpack.c.bf16 %v5359_v42, %v5356_v3 }
0x1a14   :  { %v9171_v21 = vpop.f32.mrf.mxu0 }
0x1a15   :  { %9183 = vmatprep.mubr.msk.bf16.mxu1 %vm449_vm3, %v5391_v12 }
0x1a16   :  { %v5372_v53 = vpop.f32.mrf.mxu0  ;;  %9184 = vmatmul.mubr.msk.bf16.gmra.mxu1 %vm449_vm3, %v5392_v27 }
0x1a18   :  { %v9172_v60 = vpop.f32.mrf.mxu0 }
0x1a19   :  { %v5394_v23 = vpack.c.bf16 %v9172_v60, %v9171_v21 }
0x1a1a   :  { %v5375_v32 = vpop.f32.mrf.mxu0 }
0x1a1b   :  { %v5393_v56 = vpack.c.bf16 %v5375_v32, %v5372_v53 }
0x1a1c   :  { %v9195_v61 = vpop.f32.mrf.mxu0 }
0x1a1d   :  { %9187 = vmatprep.mubr.msk.bf16.mxu1 %vm449_vm3, %v5393_v56 }
0x1a1e   :  { %9188 = vmatmul.mubr.msk.bf16.gmra.mxu1 %vm449_vm3, %v5394_v23  ;;  %v5580_v49 = vpop.f32.mrf.mxu0 }
0x1a1f   :  { %9217 = vmatprep.mubr.msk.bf16.mxu1 %vm449_vm3, %v12554_v58 }
0x1a20   :  { %v9196_v14 = vpop.f32.mrf.mxu0 }
0x1a22   :  { %v5583_v31 = vpop.f32.mrf.mxu0 }
0x1a24   :  { %v9199_v52 = vpop.f32.mrf.mxu0 }
0x1a26   :  { %v5596_v4 = vpop.f32.mrf.mxu0  ;;  %9218 = vmatmul.mubr.msk.bf16.vlgmr.msra.gmra.mxu1 %vm449_vm3, %v12556_v22 }
0x1a27   :  { %9242 = vmatpush3.bf16.msra.mxu1 %v6044_v51  ;;  %9221 = vmatprep.mubr.msk.bf16.mxu1 %vm449_vm3, %v12568_v7 }
0x1a28   :  { %v9200_v50 = vpop.f32.mrf.mxu0 }
0x1a2a   :  { %v12615_v29 = vpop.f32.mrf.mxu0 }
0x1a2c   :  { %v12617_v25 = vpop.f32.mrf.mxu0 }
0x1a2e   :  { %v12619_v20 = vpop.f32.mrf.mxu0  ;;  %9222 = vmatmul.mubr.msk.bf16.gmra.mxu1 %vm449_vm3, %v12579_v62 }
0x1a30   :  { %v12623_v58 = vpop.f32.mrf.mxu0 }
0x1a31   :  { %v9177_v45 = vpop.f32.mrf.mxu1 }
0x1a32   :  { %v12625_v41 = vadd.f32 %v9195_v61, %v9177_v45  ;;  %v12627_v22 = vpop.f32.mrf.mxu0 }
0x1a33   :  { %v5456_v43 = vpop.f32.mrf.mxu1 }
0x1a34   :  { %v12629_v40 = vadd.f32 %v5580_v49, %v5456_v43  ;;  %v12631_v7 = vpop.f32.mrf.mxu0 }
0x1a35   :  { %v9178_v38 = vpop.f32.mrf.mxu1 }
0x1a36   :  { %v12633_v35 = vadd.f32 %v9196_v14, %v9178_v38  ;;  %v12635_v16 = vpop.f32.mrf.mxu0 }
0x1a37   :  { %v5459_v33 = vpop.f32.mrf.mxu1 }
0x1a38   :  { %v12637_v48 = vadd.f32 %v5583_v31, %v5459_v33  ;;  %v12639_v62 = vpop.f32.mrf.mxu0 }
0x1a39   :  { %v9181_v13 = vpop.f32.mrf.mxu1 }
0x1a3a   :  { %v12641_v44 = vadd.f32 %v9199_v52, %v9181_v13  ;;  %v12643_v39 = vpop.f32.mrf.mxu0 }
0x1a3b   :  { %13715 = vst [vmem:[#allocation17_spill] sm:$0xff] %v12643_v39  ;;  %v5472_v59 = vpop.f32.mrf.mxu1 }
0x1a3c   :  { %v12645_v47 = vadd.f32 %v5596_v4, %v5472_v59  ;;  %v9235_v2 = vpop.f32.mrf.mxu0 }
0x1a3d   :  { %v9182_v18 = vpop.f32.mrf.mxu1  ;;  %v5883_v55 = vsel %vm640_vm4, %v9235_v2, -inf }
0x1a3e   :  { %v12648_v28 = vadd.f32 %v9200_v50, %v9182_v18  ;;  %5884 = vmax.xlane.f32.xlu1 %v5883_v55  ;;  %v5822_v17 = vpop.f32.mrf.mxu0 }
0x1a3f   :  { %v5877_v1 = vsel %vm640_vm4, %v5822_v17, -inf  ;;  %v12669_v49 = vpop.f32.mrf.mxu1 }
0x1a40   :  { %v9236_v11 = vpop.f32.mrf.mxu0 }
0x1a41   :  { %v5886_v46 = vsel %vm640_vm4, %v9236_v11, -inf }
0x1a42   :  { %5878 = vmax.xlane.f32.xlu1 %v5877_v1  ;;  %5887 = vmax.xlane.f32.xlu0 %v5886_v46  ;;  %v5825_v51 = vpop.f32.mrf.mxu0 }
0x1a43   :  { %v5880_v3 = vsel %vm640_vm4, %v5825_v51, -inf }
0x1a44   :  { %v12652_v19 = vpop.f32.mrf.mxu0 }
0x1a45   :  { %v5895_v63 = vsel %vm640_vm4, %v12652_v19, -inf }
0x1a46   :  { %5881 = vmax.xlane.f32.xlu0 %v5880_v3  ;;  %5896 = vmax.xlane.f32.xlu1 %v5895_v63  ;;  %v12657_v42 = vpop.f32.mrf.mxu0 }
0x1a47   :  { %v5889_v27 = vsel %vm640_vm4, %v12657_v42, -inf }
0x1a48   :  { %v12659_v12 = vpop.f32.mrf.mxu0 }
0x1a49   :  { %v5898_v21 = vsel %vm640_vm4, %v12659_v12, -inf }
0x1a4a   :  { %5890 = vmax.xlane.f32.xlu1 %v5889_v27  ;;  %5899 = vmax.xlane.f32.xlu0 %v5898_v21  ;;  %v12665_v53 = vpop.f32.mrf.mxu0 }
0x1a4b   :  { %v5892_v60 = vsel %vm640_vm4, %v12665_v53, -inf }
0x1a4e   :  { %5893 = vmax.xlane.f32.xlu0 %v5892_v60 }
0x1ac7   :  { %v5885_v32 = vpop.xlane.xlu1 %5884 }
0x1ac8   :  { %v5911_v1 = vsub.f32 %v9235_v2, %v5885_v32 }
0x1aca   :  { %v5937_v21 = vmul.f32 1.442695, %v5911_v1 }
0x1acb   :  { %v5879_v56 = vpop.xlane.xlu1 %5878  ;;  %v5888_v52 = vpop.xlane.xlu0 %5887 }
0x1acc   :  { %v5909_v23 = vsub.f32 %v5822_v17, %v5879_v56  ;;  %v5912_v60 = vsub.f32 %v9236_v11, %v5888_v52 }
0x1ace   :  { %v5933_v61 = vmul.f32 1.442695, %v5909_v23  ;;  %v5939_v23 = vmul.f32 1.442695, %v5912_v60 }
0x1acf   :  { %v5882_v33 = vpop.xlane.xlu0 %5881 }
0x1ad0   :  { %9967 = vpow2.f32 %v5933_v61  ;;  %v5910_v18 = vsub.f32 %v5825_v51, %v5882_v33 }
0x1ad2   :  { %v5935_v46 = vmul.f32 1.442695, %v5910_v18 }
0x1ad4   :  { %9969 = vpow2.f32 %v5935_v46 }
0x1ad5   :  { %9971 = vpow2.f32 %v5937_v21 }
0x1ad6   :  { %v12671_v14 = vpop.f32.mrf.mxu1  ;;  %9973 = vpow2.f32 %v5939_v23 }
0x1ad8   :  { %v12673_v31 = vpop.f32.mrf.mxu1 }
0x1ada   :  { %v12675_v4 = vpop.f32.mrf.mxu1 }
0x1adc   :  { %v12677_v50 = vpop.f32.mrf.mxu1 }
0x1add   :  { %v12679_v45 = vpop.eup %9967 }
0x1ade   :  { %v12681_v43 = vpop.f32.mrf.mxu1  ;;  %v5973_v38 = vsel %vm640_vm4, %v12679_v45, 0.0 }
0x1adf   :  { %5974 = vadd.xlane.f32.xlu0 %v5973_v38 }
0x1ae0   :  { %v12685_v13 = vpop.f32.mrf.mxu1 }
0x1ae2   :  { %v12687_v59 = vpop.f32.mrf.mxu1 }
0x1ae4   :  { %v12689_v55 = vpop.f32.mrf.mxu1 }
0x1ae6   :  { %v12691_v17 = vpop.f32.mrf.mxu1 }
0x1ae7   :  { %v5859_v3 = vsel %vm640_vm4, %v12691_v17, -inf }
0x1ae8   :  { %v12695_v63 = vpop.f32.mrf.mxu1  ;;  %5860 = vmax.xlane.f32.xlu0 %v5859_v3  ;;  %v12723_v3 = vpop.eup %9969 }
0x1ae9   :  { %v5853_v51 = vsel %vm640_vm4, %v12695_v63, -inf  ;;  %v5976_v21 = vsel %vm640_vm4, %v12723_v3, 0.0  ;;  %v12727_v60 = vpop.eup %9971 }
0x1aea   :  { %v12697_v27 = vpop.f32.mrf.mxu1 }
0x1aeb   :  { %v5862_v61 = vsel %vm640_vm4, %v12697_v27, -inf }
0x1aec   :  { %v12701_v56 = vpop.f32.mrf.mxu1  ;;  %5854 = vmax.xlane.f32.xlu0 %v5853_v51  ;;  %v5979_v51 = vsel %vm640_vm4, %v12727_v60, 0.0 }
0x1aed   :  { %v5856_v2 = vsel %vm640_vm4, %v12701_v56, -inf }
0x1aee   :  { %v12705_v32 = vpop.f32.mrf.mxu1  ;;  %5857 = vmax.xlane.f32.xlu1 %v5856_v2  ;;  %v12731_v2 = vpop.eup %9973 }
0x1aef   :  { %v5871_v11 = vsel %vm640_vm4, %v12705_v32, -inf  ;;  %v5982_v23 = vsel %vm640_vm4, %v12731_v2, 0.0 }
0x1af0   :  { %v12709_v38 = vpop.f32.mrf.mxu1  ;;  %5863 = vmax.xlane.f32.xlu0 %v5862_v61  ;;  %v5897_v61 = vpop.xlane.xlu1 %5896 }
0x1af1   :  { %v5865_v1 = vsel %vm640_vm4, %v12709_v38, -inf }
0x1af2   :  { %v12713_v52 = vpop.f32.mrf.mxu1  ;;  %5872 = vmax.xlane.f32.xlu1 %v5871_v11 }
0x1af3   :  { %v5874_v33 = vsel %vm640_vm4, %v12713_v52, -inf }
0x1af4   :  { %v12717_v18 = vpop.f32.mrf.mxu1  ;;  %5875 = vmax.xlane.f32.xlu0 %v5874_v33  ;;  %v5891_v11 = vpop.xlane.xlu1 %5890 }
0x1af5   :  { %v5868_v46 = vsel %vm640_vm4, %v12717_v18, -inf  ;;  %v5913_v33 = vsub.f32 %v12657_v42, %v5891_v11 }
0x1af6   :  { %5866 = vmax.xlane.f32.xlu1 %v5865_v1  ;;  %v5915_v1 = vsub.f32 %v12652_v19, %v5897_v61 }
0x1af8   :  { %5869 = vmax.xlane.f32.xlu0 %v5868_v46  ;;  %v5941_v46 = vmul.f32 1.442695, %v5913_v33  ;;  %v5945_v9 = vmul.f32 1.442695, %v5915_v1 }
0x1afa   :  { %9975 = vpow2.f32 %v5941_v46 }
0x1afb   :  { %9977 = vpow2.f32 %v5945_v9 }
0x1afc   :  { %5977 = vadd.xlane.f32.xlu0 %v5976_v21  ;;  %v5900_v21 = vpop.xlane.xlu0 %5899 }
0x1afd   :  { %v5916_v6 = vsub.f32 %v12659_v12, %v5900_v21 }
0x1b00   :  { %5980 = vadd.xlane.f32.xlu0 %v5979_v51  ;;  %v5894_v51 = vpop.xlane.xlu0 %5893 }
0x1b01   :  { %v5914_v15 = vsub.f32 %v12665_v53, %v5894_v51 }
0x1b03   :  { %v5943_v0 = vmul.f32 1.442695, %v5914_v15 }
0x1b04   :  { %5983 = vadd.xlane.f32.xlu0 %v5982_v23  ;;  %v5947_v23 = vmul.f32 1.442695, %v5916_v6 }
0x1b06   :  { %9979 = vpow2.f32 %v5947_v23 }
0x1b07   :  { %6041 = vrot.lane.b32.xlu1 %v12051_v8, %s10188_s13  ;;  %v12743_v36 = vpop.eup %9975  ;;  %9981 = vpow2.f32 %v5943_v0 }
0x1b08   :  { %v5985_v19 = vsel %vm640_vm4, %v12743_v36, 0.0  ;;  %v12747_v42 = vpop.eup %9977 }
0x1b09   :  { %v5991_v12 = vsel %vm640_vm4, %v12747_v42, 0.0 }
0x1b13   :  { %v12751_v61 = vpop.eup %9979 }
0x1b14   :  { %v5994_v6 = vsel %vm640_vm4, %v12751_v61, 0.0  ;;  %v12755_v15 = vpop.eup %9981 }
0x1b15   :  { %v5988_v0 = vsel %vm640_vm4, %v12755_v15, 0.0 }
0x1b1a   :  { %6039 = vrot.lane.b32.xlu0 %v12055_v30, %s10188_s13 }
0x1b2b   :  { %5986 = vadd.xlane.f32.xlu1 %v5985_v19 }
0x1b2f   :  { %5992 = vadd.xlane.f32.xlu1 %v5991_v12 }
0x1b33   :  { %5995 = vadd.xlane.f32.xlu1 %v5994_v6 }
0x1b39   :  { %5989 = vadd.xlane.f32.xlu0 %v5988_v0 }
0x1b44   :  { %6037 = vrot.lane.b32.xlu1 %v12045_v26, %s10188_s13 }
0x1b68   :  { %v5975_v9 = vpop.xlane.xlu0 %5974 }
0x1b71   :  { %v5861_v53 = vpop.xlane.xlu0 %5860 }
0x1b72   :  { %v5903_v11 = vsub.f32 %v12691_v17, %v5861_v53 }
0x1b74   :  { %v5921_v33 = vmul.f32 1.442695, %v5903_v11 }
0x1b75   :  { %v5855_v1 = vpop.xlane.xlu0 %5854 }
0x1b76   :  { %9983 = vpow2.f32 %v5921_v33  ;;  %v5901_v46 = vsub.f32 %v12695_v63, %v5855_v1 }
0x1b77   :  { %v5858_v21 = vpop.xlane.xlu1 %5857 }
0x1b78   :  { %v5917_v51 = vmul.f32 1.442695, %v5901_v46  ;;  %v5902_v23 = vsub.f32 %v12701_v56, %v5858_v21 }
0x1b79   :  { %v5864_v19 = vpop.xlane.xlu0 %5863 }
0x1b7a   :  { %9985 = vpow2.f32 %v5917_v51  ;;  %v5904_v12 = vsub.f32 %v12697_v27, %v5864_v19  ;;  %v5919_v6 = vmul.f32 1.442695, %v5902_v23 }
0x1b7b   :  { %v5873_v0 = vpop.xlane.xlu1 %5872 }
0x1b7c   :  { %v5923_v24 = vmul.f32 1.442695, %v5904_v12  ;;  %v5907_v34 = vsub.f32 %v12705_v32, %v5873_v0 }
0x1b7d   :  { %v5876_v39 = vpop.xlane.xlu0 %5875 }
0x1b7e   :  { %9987 = vpow2.f32 %v5923_v24  ;;  %v5929_v17 = vmul.f32 1.442695, %v5907_v34  ;;  %v5908_v53 = vsub.f32 %v12713_v52, %v5876_v39 }
0x1b7f   :  { %9989 = vpow2.f32 %v5919_v6  ;;  %v5867_v63 = vpop.xlane.xlu1 %5866 }
0x1b80   :  { %9991 = vpow2.f32 %v5929_v17  ;;  %v5931_v11 = vmul.f32 1.442695, %v5908_v53  ;;  %v5905_v56 = vsub.f32 %v12709_v38, %v5867_v63 }
0x1b81   :  { %v5870_v33 = vpop.xlane.xlu0 %5869 }
0x1b82   :  { %v5925_v1 = vmul.f32 1.442695, %v5905_v56  ;;  %v5906_v27 = vsub.f32 %v12717_v18, %v5870_v33  ;;  %9993 = vpow2.f32 %v5931_v11 }
0x1b83   :  { %v12769_v46 = vpop.eup %9983  ;;  %v6042_v21 = vpop.permute.xlu1 %6041 }
0x1b84   :  { %9995 = vpow2.f32 %v5925_v1  ;;  %v5927_v32 = vmul.f32 1.442695, %v5906_v27  ;;  %9243 = vmatprep.subr.bf16.mxu1 %v6042_v21  ;;  %v5955_v24 = vsel %vm640_vm4, %v12769_v46, 0.0 }
0x1b85   :  { %9997 = vrcp.f32 %v5975_v9  ;;  %v5978_v34 = vpop.xlane.xlu0 %5977  ;;  %5956 = vadd.xlane.f32.xlu1 %v5955_v24  ;;  %9244 = vmatpush3.bf16.msra.mxu1 %v6042_v21 }
0x1b86   :  { %9999 = vrcp.f32 %v5978_v34 }
0x1b87   :  { %v12773_v39 = vpop.eup %9985  ;;  %10001 = vpow2.f32 %v5927_v32 }
0x1b88   :  { %v5949_v38 = vsel %vm640_vm4, %v12773_v39, 0.0 }
0x1b89   :  { %v12777_v52 = vpop.xlane.xlu0 %5980  ;;  %5950 = vadd.xlane.f32.xlu1 %v5949_v38 }
0x1b8b   :  { %v12779_v18 = vpop.eup %9987 }
0x1b8c   :  { %v12781_v51 = vpop.eup %9989  ;;  %v5958_v9 = vsel %vm640_vm4, %v12779_v18, 0.0 }
0x1b8d   :  { %v12785_v23 = vpop.eup %9991  ;;  %5959 = vadd.xlane.f32.xlu0 %v5958_v9  ;;  %v12787_v19 = vpop.xlane.xlu0 %5983  ;;  %v5952_v0 = vsel %vm640_vm4, %v12781_v51, 0.0  ;;  %v8056_v9 = vld [vmem:[%s13610_s4 + $0x18] sm:$0xf] }
0x1b8e   :  { %v5967_v12 = vsel %vm640_vm4, %v12785_v23, 0.0 }
0x1b8f   :  { %5968 = vadd.xlane.f32.xlu1 %v5967_v12  ;;  %v12791_v6 = vpop.eup %9993 }
0x1b90   :  { %v5970_v33 = vsel %vm640_vm4, %v12791_v6, 0.0 }
0x1b91   :  { %v12795_v17 = vpop.eup %9995  ;;  %v6040_v53 = vpop.permute.xlu0 %6039  ;;  %5953 = vadd.xlane.f32.xlu0 %v5952_v0 }
0x1b92   :  { %v9998_v63 = vpop.eup %9997  ;;  %9245 = vmatprep.subr.bf16.mxu1 %v6040_v53  ;;  %v5961_v11 = vsel %vm640_vm4, %v12795_v17, 0.0 }
0x1b93   :  { %5962 = vadd.xlane.f32.xlu1 %v5961_v11  ;;  %9246 = vmatpush3.bf16.msra.mxu1 %v6040_v53  ;;  %v10000_v56 = vpop.eup %9999  ;;  %v6021_v27 = vmul.f32 %v9998_v63, %v12679_v45 }
0x1b94   :  { %v12801_v1 = vpop.eup %10001  ;;  %v6022_v21 = vmul.f32 %v10000_v56, %v12723_v3 }
0x1b95   :  { %5971 = vadd.xlane.f32.xlu0 %v5970_v33  ;;  %v5964_v24 = vsel %vm640_vm4, %v12801_v1, 0.0 }
0x1b96   :  { %v6033_v32 = vpack.c.bf16 %v6022_v21, %v6021_v27 }
0x1b98   :  { %9265 = vmatprep.mubr.msk.bf16.mxu0 %vm640_vm4, %v6033_v32 }
0x1b99   :  { %5965 = vadd.xlane.f32.xlu0 %v5964_v24 }
0x1ba4   :  { %6130 = vrot.lane.b32.xlu1 %v12080_v54, %s10188_s13 }
0x1ba8   :  { %6128 = vrot.lane.b32.xlu1 %v12066_v57, %s10188_s13 }
0x1bac   :  { %6126 = vrot.lane.b32.xlu1 %v12068_v10, %s10188_s13 }
0x1baf   :  { %6132 = vrot.lane.b32.xlu0 %v12076_v37, %s10188_s13 }
0x1bb0   :  { %6375 = vrot.lane.b32.xlu1 %v12051_v8, %s10189_s0 }
0x1bb3   :  { %6377 = vrot.lane.b32.xlu0 %v12049_v5, %s10189_s0 }
0x1bb4   :  { %6482 = vrot.lane.b32.xlu1 %v12076_v37, %s10189_s0  ;;  %v5987_v45 = vpop.xlane.xlu1 %5986 }
0x1bb7   :  { %6373 = vrot.lane.b32.xlu0 %v12055_v30, %s10189_s0 }
0x1bb8   :  { %6480 = vrot.lane.b32.xlu1 %v12080_v54, %s10189_s0  ;;  %v5993_v3 = vpop.xlane.xlu1 %5992 }
0x1bbb   :  { %6371 = vrot.lane.b32.xlu0 %v12045_v26, %s10189_s0 }
0x1bbc   :  { %6365 = vrot.lane.b32.xlu1 %v12055_v30, %s10190_s16  ;;  %v5996_v34 = vpop.xlane.xlu1 %5995 }
0x1bbf   :  { %6363 = vrot.lane.b32.xlu0 %v12045_v26, %s10190_s16 }
0x1bc0   :  { %6367 = vrot.lane.b32.xlu1 %v12051_v8, %s10190_s16  ;;  %v6038_v38 = vpop.permute.xlu1 %6037 }
0x1bc1   :  { %9247 = vmatprep.subr.bf16.mxu1 %v6038_v38 }
0x1bc2   :  { %9248 = vmatpush3.bf16.msra.mxu1 %v6038_v38  ;;  %v5990_v0 = vpop.xlane.xlu0 %5989 }
0x1bc3   :  { %6478 = vrot.lane.b32.xlu0 %v12066_v57, %s10189_s0  ;;  %9479 = vmatprep.subr.msk.bf16.mxu1 %vm94_vm0, %v8056_v9 }
0x1bc4   :  { %6476 = vrot.lane.b32.xlu1 %v12068_v10, %s10189_s0 }
0x1bc7   :  { %6369 = vrot.lane.b32.xlu0 %v12049_v5, %s10190_s16 }
0x1bc8   :  { %6470 = vrot.lane.b32.xlu1 %v12066_v57, %s10190_s16 }
0x1bcb   :  { %6468 = vrot.lane.b32.xlu0 %v12068_v10, %s10190_s16 }
0x1bcc   :  { %6474 = vrot.lane.b32.xlu1 %v12076_v37, %s10190_s16 }
0x1bcf   :  { %6472 = vrot.lane.b32.xlu0 %v12080_v54, %s10190_s16 }
0x1bd0   :  { %6763 = vrot.lane.b32.xlu1 %v12049_v5, %s10191_s19 }
0x1c0e   :  { %v5957_v12 = vpop.xlane.xlu1 %5956 }
0x1c12   :  { %v5951_v53 = vpop.xlane.xlu1 %5950 }
0x1c16   :  { %v5960_v63 = vpop.xlane.xlu0 %5959 }
0x1c17   :  { %10003 = vrcp.f32 %v5960_v63 }
0x1c18   :  { %v5969_v11 = vpop.xlane.xlu1 %5968  ;;  %10005 = vrcp.f32 %v5951_v53 }
0x1c19   :  { %10007 = vrcp.f32 %v5957_v12 }
0x1c1a   :  { %v5954_v56 = vpop.xlane.xlu0 %5953 }
0x1c1b   :  { %10009 = vrcp.f32 %v5954_v56 }
0x1c1c   :  { %v5963_v33 = vpop.xlane.xlu1 %5962  ;;  %10011 = vrcp.f32 %v12777_v52 }
0x1c1d   :  { %10013 = vrcp.f32 %v12787_v19 }
0x1c1e   :  { %v5972_v27 = vpop.xlane.xlu0 %5971  ;;  %10015 = vrcp.f32 %v5990_v0 }
0x1c1f   :  { %10017 = vrcp.f32 %v5972_v27 }
0x1c20   :  { %v6131_v21 = vpop.permute.xlu1 %6130  ;;  %10019 = vrcp.f32 %v5963_v33 }
0x1c21   :  { %10021 = vrcp.f32 %v5969_v11 }
0x1c22   :  { %v5966_v5 = vpop.xlane.xlu0 %5965 }
0x1c23   :  { %10023 = vrcp.f32 %v5966_v5 }
0x1c24   :  { %10025 = vrcp.f32 %v5987_v45  ;;  %v6129_v32 = vpop.permute.xlu1 %6128  ;;  %v10004_v24 = vpop.eup %10003 }
0x1c25   :  { %v10006_v38 = vpop.eup %10005  ;;  %v6016_v52 = vmul.f32 %v10004_v24, %v12779_v18  ;;  %10027 = vrcp.f32 %v5996_v34  ;;  %v6248_v18 = vsel %vm94_vm0, %v8056_v9, 0 }
0x1c26   :  { %v6133_v12 = vpop.permute.xlu0 %6132  ;;  %v10008_v53 = vpop.eup %10007  ;;  %v6013_v0 = vmul.f32 %v10006_v38, %v12773_v39  ;;  %10029 = vrcp.f32 %v5993_v3 }
0x1c27   :  { %9257 = vmatprep.subr.bf16.mxu0 %v6133_v12  ;;  %v6015_v45 = vmul.f32 %v10008_v53, %v12769_v46 }
0x1c28   :  { %v10010_v63 = vpop.eup %10009  ;;  %9258 = vmatpush3.bf16.msra.mxu0 %v6133_v12  ;;  %v6127_v19 = vpop.permute.xlu1 %6126 }
0x1c29   :  { %9259 = vmatprep.subr.bf16.mxu0 %v6131_v21  ;;  %v6014_v11 = vmul.f32 %v10010_v63, %v12781_v51  ;;  %v10012_v56 = vpop.eup %10011  ;;  %v6030_v10 = vpack.c.bf16 %v6016_v52, %v6015_v45 }
0x1c2a   :  { %v10014_v33 = vpop.eup %10013  ;;  %v6378_v12 = vpop.permute.xlu0 %6377 }
0x1c2b   :  { %v6029_v27 = vpack.c.bf16 %v6014_v11, %v6013_v0  ;;  %v10016_v5 = vpop.eup %10015  ;;  %v6024_v38 = vmul.f32 %v10014_v33, %v12731_v2 }
0x1c2c   :  { %9260 = vmatpush3.bf16.msra.mxu0 %v6131_v21  ;;  %v6376_v37 = vpop.permute.xlu1 %6375  ;;  %v10018_v24 = vpop.eup %10017  ;;  %v6026_v63 = vmul.f32 %v10016_v5, %v12755_v15 }
0x1c2d   :  { %9249 = vmatprep.mubr.msk.bf16.mxu1 %vm640_vm4, %v6029_v27  ;;  %9261 = vmatprep.subr.bf16.mxu0 %v6129_v32  ;;  %v10020_v39 = vpop.eup %10019  ;;  %v6020_v34 = vmul.f32 %v10018_v24, %v12791_v6 }
0x1c2e   :  { %9250 = vmatmul.mubr.msk.bf16.vlgmr.msra.gmra.mxu1 %vm640_vm4, %v6030_v10  ;;  %v10022_v51 = vpop.eup %10021  ;;  %v6017_v9 = vmul.f32 %v10020_v39, %v12795_v17  ;;  %v6374_v52 = vpop.permute.xlu0 %6373 }
0x1c2f   :  { %9274 = vmatpush3.bf16.msra.mxu1 %v6248_v18  ;;  %v6019_v10 = vmul.f32 %v10022_v51, %v12785_v23  ;;  %v6398_v18 = vsel %vm449_vm3, %v6376_v37, 0  ;;  %v6395_v39 = vsel %vm449_vm3, %v6374_v52, 0 }
0x1c30   :  { %v10024_v46 = vpop.eup %10023  ;;  %9262 = vmatpush3.bf16.msra.mxu0 %v6129_v32  ;;  %v12863_v3 = vpop.permute.xlu1 %6482  ;;  %v6023_v32 = vmul.f32 %v10012_v56, %v12727_v60  ;;  %v6401_v60 = vsel %vm449_vm3, %v6378_v12, 0 }
0x1c31   :  { %v10026_v21 = vpop.eup %10025  ;;  %9263 = vmatprep.subr.bf16.mxu0 %v6127_v19  ;;  %9484 = vmatprep.subr.msk.bf16.mxu1 %vm449_vm3, %v12863_v3  ;;  %v6018_v53 = vmul.f32 %v10024_v46, %v12801_v1  ;;  %v6032_v2 = vpack.c.bf16 %v6020_v34, %v6019_v10 }
0x1c32   :  { %v6025_v11 = vmul.f32 %v10026_v21, %v12743_v36  ;;  %v6034_v45 = vpack.c.bf16 %v6024_v38, %v6023_v32  ;;  %v10028_v17 = vpop.eup %10027 }
0x1c33   :  { %v6031_v0 = vpack.c.bf16 %v6018_v53, %v6017_v9  ;;  %v10030_v15 = vpop.eup %10029  ;;  %v6028_v36 = vmul.f32 %v10028_v17, %v12751_v61 }
0x1c34   :  { %9264 = vmatpush3.bf16.msra.mxu0 %v6127_v19  ;;  %v12874_v6 = vpop.permute.xlu1 %6480  ;;  %v6035_v23 = vpack.c.bf16 %v6026_v63, %v6025_v11  ;;  %v6372_v19 = vpop.permute.xlu0 %6371  ;;  %v6027_v56 = vmul.f32 %v10030_v15, %v12747_v42 }
0x1c35   :  { %9253 = vmatprep.mubr.msk.bf16.mxu1 %vm640_vm4, %v6031_v0  ;;  %9480 = vmatprep.subr.msk.bf16.mxu0 %vm449_vm3, %v6378_v12  ;;  %v6392_v61 = vsel %vm449_vm3, %v6372_v19, 0  ;;  %v6506_v0 = vsel %vm449_vm3, %v12863_v3, 0  ;;  %v6503_v3 = vsel %vm449_vm3, %v12874_v6, 0 }
0x1c36   :  { %9254 = vmatmul.mubr.msk.bf16.gmra.mxu1 %vm640_vm4, %v6032_v2  ;;  %v6036_v27 = vpack.c.bf16 %v6028_v36, %v6027_v56 }
0x1c37   :  { %9266 = vmatmul.mubr.msk.bf16.vlgmr.msra.gmra.mxu0 %vm640_vm4, %v6034_v45 }
0x1c38   :  { %9269 = vmatprep.mubr.msk.bf16.mxu0 %vm640_vm4, %v6035_v23  ;;  %9292 = vmatpush3.bf16.xpose.msra.mxu0 %v6401_v60  ;;  %v6366_v1 = vpop.permute.xlu1 %6365  ;;  %v6364_v5 = vpop.permute.xlu0 %6363 }
0x1c39   :  { %9481 = vmatprep.subr.msk.bf16.mxu0 %vm449_vm3, %v6376_v37 }
0x1c3c   :  { %v6368_v33 = vpop.permute.xlu1 %6367  ;;  %v6479_v37 = vpop.permute.xlu0 %6478 }
0x1c3f   :  { %9270 = vmatmul.mubr.msk.bf16.gmra.mxu0 %vm640_vm4, %v6036_v27 }
0x1c40   :  { %9294 = vmatpush3.bf16.xpose.msra.mxu0 %v6398_v18  ;;  %9299 = vmatprep.mubr.msk.bf16.mxu0 %vm449_vm3, %v6364_v5  ;;  %v6477_v24 = vpop.permute.xlu1 %6476  ;;  %v6370_v46 = vpop.permute.xlu0 %6369  ;;  %v6500_v18 = vsel %vm449_vm3, %v6479_v37, 0 }
0x1c41   :  { %9482 = vmatprep.subr.msk.bf16.mxu0 %vm449_vm3, %v6374_v52 }
0x1c44   :  { %v6471_v12 = vpop.permute.xlu1 %6470 }
0x1c48   :  { %9296 = vmatpush3.bf16.xpose.msra.mxu0 %v6395_v39  ;;  %v12892_v42 = vpop.permute.xlu1 %6474  ;;  %v6469_v39 = vpop.permute.xlu0 %6468 }
0x1c49   :  { %9483 = vmatprep.subr.msk.bf16.mxu0 %vm449_vm3, %v6372_v19 }
0x1c4c   :  { %v6764_v51 = vpop.permute.xlu1 %6763 }
0x1c50   :  { %9298 = vmatpush3.bf16.xpose.msra.mxu0 %v6392_v61  ;;  %v6497_v61 = vsel %vm449_vm3, %v6477_v24, 0 }
0x1c51   :  { %9323 = vmatprep.subr.bf16.mxu0 %v6764_v51 }
0x1c57   :  { %9300 = vmatmul.mubr.msk.bf16.vlgmr.msra.gmra.mxu0 %vm449_vm3, %v6366_v1 }
0x1c58   :  { %9303 = vmatprep.mubr.msk.bf16.mxu0 %vm449_vm3, %v6368_v33  ;;  %9324 = vmatpush3.bf16.msra.mxu0 %v6764_v51 }
0x1c5f   :  { %9304 = vmatmul.mubr.msk.bf16.gmra.mxu0 %vm449_vm3, %v6370_v46  ;;  %v6473_v46 = vpop.permute.xlu0 %6472 }
0x1cee   :  { %v9251_v34 = vpop.f32.mrf.mxu1 }
0x1cf0   :  { %v6095_v21 = vpop.f32.mrf.mxu1 }
0x1cf2   :  { %v9252_v38 = vpop.f32.mrf.mxu1 }
0x1cf3   :  { %v6216_v10 = vpack.c.bf16 %v9252_v38, %v9251_v34 }
0x1cf4   :  { %v6098_v9 = vpop.f32.mrf.mxu1 }
0x1cf5   :  { %v6215_v53 = vpack.c.bf16 %v6098_v9, %v6095_v21 }
0x1cf6   :  { %v9255_v63 = vpop.f32.mrf.mxu1 }
0x1cf7   :  { %v9267_v32 = vpop.f32.mrf.mxu0  ;;  %9275 = vmatprep.mubr.msk.bf16.mxu1 %vm449_vm3, %v6215_v53 }
0x1cf8   :  { %v6111_v52 = vpop.f32.mrf.mxu1  ;;  %9276 = vmatmul.mubr.msk.bf16.vlgmr.msra.gmra.mxu1 %vm449_vm3, %v6216_v10 }
0x1cf9   :  { %9308 = vmatpush3.bf16.xpose.msra.mxu1 %v6506_v0  ;;  %v6184_v2 = vpop.f32.mrf.mxu0 }
0x1cfa   :  { %9485 = vmatprep.subr.msk.bf16.mxu1 %vm449_vm3, %v12874_v6  ;;  %v9256_v11 = vpop.f32.mrf.mxu1 }
0x1cfb   :  { %v9268_v45 = vpop.f32.mrf.mxu0  ;;  %v6218_v15 = vpack.c.bf16 %v9256_v11, %v9255_v63 }
0x1cfc   :  { %v6114_v17 = vpop.f32.mrf.mxu1  ;;  %v6220_v27 = vpack.c.bf16 %v9268_v45, %v9267_v32 }
0x1cfd   :  { %v6217_v23 = vpack.c.bf16 %v6114_v17, %v6111_v52  ;;  %v6187_v60 = vpop.f32.mrf.mxu0 }
0x1cfe   :  { %v6219_v1 = vpack.c.bf16 %v6187_v60, %v6184_v2 }
0x1cff   :  { %v9271_v19 = vpop.f32.mrf.mxu0  ;;  %9279 = vmatprep.mubr.msk.bf16.mxu1 %vm449_vm3, %v6217_v23 }
0x1d00   :  { %9280 = vmatmul.mubr.msk.bf16.gmra.mxu1 %vm449_vm3, %v6218_v15 }
0x1d01   :  { %9310 = vmatpush3.bf16.xpose.msra.mxu1 %v6503_v3  ;;  %v6200_v36 = vpop.f32.mrf.mxu0  ;;  %9283 = vmatprep.mubr.msk.bf16.mxu1 %vm449_vm3, %v6219_v1 }
0x1d02   :  { %9486 = vmatprep.subr.msk.bf16.mxu1 %vm449_vm3, %v6479_v37 }
0x1d03   :  { %v9272_v56 = vpop.f32.mrf.mxu0 }
0x1d04   :  { %v6222_v6 = vpack.c.bf16 %v9272_v56, %v9271_v19 }
0x1d05   :  { %v6203_v33 = vpop.f32.mrf.mxu0 }
0x1d06   :  { %v6221_v5 = vpack.c.bf16 %v6203_v33, %v6200_v36 }
0x1d08   :  { %9284 = vmatmul.mubr.msk.bf16.gmra.mxu1 %vm449_vm3, %v6220_v27 }
0x1d09   :  { %9312 = vmatpush3.bf16.xpose.msra.mxu1 %v6500_v18  ;;  %9287 = vmatprep.mubr.msk.bf16.mxu1 %vm449_vm3, %v6221_v5 }
0x1d0a   :  { %9487 = vmatprep.subr.msk.bf16.mxu1 %vm449_vm3, %v6477_v24 }
0x1d10   :  { %9288 = vmatmul.mubr.msk.bf16.gmra.mxu1 %vm449_vm3, %v6222_v6 }
0x1d11   :  { %9314 = vmatpush3.bf16.xpose.msra.mxu1 %v6497_v61  ;;  %9315 = vmatprep.mubr.msk.bf16.mxu1 %vm449_vm3, %v6469_v39 }
0x1d17   :  { %v9301_v51 = vpop.f32.mrf.mxu0 }
0x1d18   :  { %9316 = vmatmul.mubr.msk.bf16.vlgmr.msra.gmra.mxu1 %vm449_vm3, %v6471_v12  ;;  %v6579_v37 = vsel %vm640_vm4, %v9301_v51, -inf }
0x1d19   :  { %6580 = vmax.xlane.f32.xlu0 %v6579_v37  ;;  %v6437_v34 = vpop.f32.mrf.mxu0  ;;  %9319 = vmatprep.mubr.msk.bf16.mxu1 %vm449_vm3, %v6473_v46 }
0x1d1a   :  { %v6573_v38 = vsel %vm640_vm4, %v6437_v34, -inf }
0x1d1b   :  { %v9302_v21 = vpop.f32.mrf.mxu0 }
0x1d1c   :  { %v6582_v12 = vsel %vm640_vm4, %v9302_v21, -inf }
0x1d1d   :  { %6574 = vmax.xlane.f32.xlu0 %v6573_v38  ;;  %v6440_v9 = vpop.f32.mrf.mxu0 }
0x1d1e   :  { %v6576_v24 = vsel %vm640_vm4, %v6440_v9, -inf }
0x1d1f   :  { %6577 = vmax.xlane.f32.xlu1 %v6576_v24  ;;  %v9305_v53 = vpop.f32.mrf.mxu0 }
0x1d20   :  { %9320 = vmatmul.mubr.msk.bf16.gmra.mxu1 %vm449_vm3, %v12892_v42  ;;  %v6591_v63 = vsel %vm640_vm4, %v9305_v53, -inf }
0x1d21   :  { %6583 = vmax.xlane.f32.xlu0 %v6582_v12  ;;  %v6453_v10 = vpop.f32.mrf.mxu0 }
0x1d22   :  { %v6585_v2 = vsel %vm640_vm4, %v6453_v10, -inf }
0x1d23   :  { %6592 = vmax.xlane.f32.xlu1 %v6591_v63  ;;  %v9306_v32 = vpop.f32.mrf.mxu0 }
0x1d24   :  { %v6594_v52 = vsel %vm640_vm4, %v9306_v32, -inf }
0x1d25   :  { %6595 = vmax.xlane.f32.xlu0 %v6594_v52  ;;  %v6456_v0 = vpop.f32.mrf.mxu0 }
0x1d26   :  { %v6588_v11 = vsel %vm640_vm4, %v6456_v0, -inf }
0x1d27   :  { %6586 = vmax.xlane.f32.xlu1 %v6585_v2 }
0x1d29   :  { %6589 = vmax.xlane.f32.xlu0 %v6588_v11 }
0x1da2   :  { %v6581_v45 = vpop.xlane.xlu0 %6580 }
0x1da3   :  { %v6623_v42 = vsub.f32 %v9301_v51, %v6581_v45 }
0x1da5   :  { %v6641_v17 = vmul.f32 1.442695, %v6623_v42 }
0x1da6   :  { %v6575_v23 = vpop.xlane.xlu0 %6574 }
0x1da7   :  { %10031 = vpow2.f32 %v6641_v17  ;;  %v6621_v60 = vsub.f32 %v6437_v34, %v6575_v23 }
0x1da8   :  { %v6578_v15 = vpop.xlane.xlu1 %6577 }
0x1da9   :  { %v6637_v1 = vmul.f32 1.442695, %v6621_v60  ;;  %v6622_v19 = vsub.f32 %v6440_v9, %v6578_v15 }
0x1daa   :  { %v6584_v3 = vpop.xlane.xlu0 %6583 }
0x1dab   :  { %10033 = vpow2.f32 %v6637_v1  ;;  %v6624_v36 = vsub.f32 %v9302_v21, %v6584_v3  ;;  %v6639_v56 = vmul.f32 1.442695, %v6622_v19 }
0x1dac   :  { %v6593_v33 = vpop.xlane.xlu1 %6592 }
0x1dad   :  { %v6643_v27 = vmul.f32 1.442695, %v6624_v36  ;;  %v6627_v5 = vsub.f32 %v9305_v53, %v6593_v33  ;;  %v5600_v33 = vadd.f32 %v12615_v29, %v12669_v49 }
0x1dae   :  { %v6596_v18 = vpop.xlane.xlu0 %6595 }
0x1daf   :  { %10035 = vpow2.f32 %v6643_v27  ;;  %v6649_v6 = vmul.f32 1.442695, %v6627_v5  ;;  %v6628_v39 = vsub.f32 %v9306_v32, %v6596_v18 }
0x1db0   :  { %10037 = vpow2.f32 %v6639_v56  ;;  %v6587_v61 = vpop.xlane.xlu1 %6586 }
0x1db1   :  { %10039 = vpow2.f32 %v6649_v6  ;;  %v6651_v51 = vmul.f32 1.442695, %v6628_v39  ;;  %v6625_v46 = vsub.f32 %v6453_v10, %v6587_v61  ;;  %v5613_v61 = vadd.f32 %v12619_v20, %v12673_v31 }
0x1db2   :  { %v6590_v37 = vpop.xlane.xlu0 %6589  ;;  %v5637_v20 = vadd.f32 %v12631_v7, %v12681_v43 }
0x1db3   :  { %v6645_v34 = vmul.f32 1.442695, %v6625_v46  ;;  %v6626_v38 = vsub.f32 %v6456_v0, %v6590_v37  ;;  %10041 = vpow2.f32 %v6651_v51  ;;  %v5624_v51 = vadd.f32 %v12623_v58, %v12675_v4 }
0x1db4   :  { %v12929_v9 = vpop.eup %10031  ;;  %v5640_v4 = vadd.f32 %v12639_v62, %v12687_v59 }
0x1db5   :  { %10043 = vpow2.f32 %v6645_v34  ;;  %v6647_v21 = vmul.f32 1.442695, %v6626_v38  ;;  %v6675_v24 = vsel %vm640_vm4, %v12929_v9, 0.0 }
0x1db6   :  { %6676 = vadd.xlane.f32.xlu1 %v6675_v24 }
0x1db7   :  { %10045 = vpow2.f32 %v6647_v21  ;;  %v5629_v21 = vadd.f32 %v12635_v16, %v12685_v13 }
0x1db8   :  { %v12933_v53 = vpop.eup %10033  ;;  %v9277_v12 = vpop.f32.mrf.mxu1 }
0x1db9   :  { %v12936_v63 = vadd.f32 %v9277_v12, %v12625_v41  ;;  %v6669_v10 = vsel %vm640_vm4, %v12933_v53, 0.0 }
0x1dba   :  { %v6284_v32 = vpop.f32.mrf.mxu1  ;;  %6670 = vadd.xlane.f32.xlu1 %v6669_v10 }
0x1dbb   :  { %v12941_v52 = vadd.f32 %v6284_v32, %v12629_v40 }
0x1dbc   :  { %v12943_v0 = vpop.eup %10035  ;;  %v9278_v2 = vpop.f32.mrf.mxu1 }
0x1dbd   :  { %v12945_v11 = vpop.eup %10037  ;;  %v12948_v45 = vadd.f32 %v9278_v2, %v12633_v35  ;;  %v6678_v41 = vsel %vm640_vm4, %v12943_v0, 0.0 }
0x1dbe   :  { %v12952_v42 = vpop.eup %10039  ;;  %v6287_v17 = vpop.f32.mrf.mxu1  ;;  %6679 = vadd.xlane.f32.xlu0 %v6678_v41  ;;  %v6672_v1 = vsel %vm640_vm4, %v12945_v11, 0.0 }
0x1dbf   :  { %v12955_v23 = vadd.f32 %v6287_v17, %v12637_v48  ;;  %v6687_v40 = vsel %vm640_vm4, %v12952_v42, 0.0 }
0x1dc0   :  { %v9281_v60 = vpop.f32.mrf.mxu1  ;;  %6688 = vadd.xlane.f32.xlu1 %v6687_v40  ;;  %v12959_v15 = vpop.eup %10041 }
0x1dc1   :  { %v12962_v35 = vadd.f32 %v9281_v60, %v12641_v44  ;;  %v6690_v27 = vsel %vm640_vm4, %v12959_v15, 0.0 }
0x1dc2   :  { %v12966_v19 = vpop.eup %10043  ;;  %v6300_v3 = vpop.f32.mrf.mxu1  ;;  %6673 = vadd.xlane.f32.xlu0 %v6672_v1 }
0x1dc3   :  { %v12969_v48 = vadd.f32 %v6300_v3, %v12645_v47  ;;  %v6681_v36 = vsel %vm640_vm4, %v12966_v19, 0.0  ;;  %v5621_v47 = vadd.f32 %v12617_v25, %v12671_v14  ;;  %v5616_v25 = vadd.f32 %v12627_v22, %v12677_v50  ;;  %v13716_v50 = vld [vmem:[#allocation17_spill] sm:$0xff] }
0x1dc4   :  { %v9282_v56 = vpop.f32.mrf.mxu1  ;;  %6682 = vadd.xlane.f32.xlu1 %v6681_v36  ;;  %v12980_v5 = vpop.eup %10045  ;;  %v5632_v10 = vadd.f32 %v13716_v50, %v12689_v55 }
0x1dc5   :  { %v12976_v44 = vadd.f32 %v9282_v56, %v12648_v28  ;;  %v6684_v28 = vsel %vm640_vm4, %v12980_v5, 0.0 }
0x1dc6   :  { %v6303_v18 = vpop.f32.mrf.mxu1  ;;  %6691 = vadd.xlane.f32.xlu0 %v6690_v27 }
0x1dc7   :  { %v12984_v6 = vadd.f32 %v6303_v18, %v5600_v33 }
0x1dc8   :  { %v9285_v39 = vpop.f32.mrf.mxu1 }
0x1dc9   :  { %v12988_v29 = vadd.f32 %v9285_v39, %v5621_v47 }
0x1dca   :  { %v6316_v49 = vpop.f32.mrf.mxu1  ;;  %6685 = vadd.xlane.f32.xlu0 %v6684_v28 }
0x1dcb   :  { %v12994_v46 = vadd.f32 %v6316_v49, %v5613_v61 }
0x1dcc   :  { %v9286_v37 = vpop.f32.mrf.mxu1 }
0x1dcd   :  { %v12998_v14 = vadd.f32 %v9286_v37, %v5624_v51 }
0x1dce   :  { %v6319_v34 = vpop.f32.mrf.mxu1 }
0x1dcf   :  { %v13002_v31 = vadd.f32 %v6319_v34, %v5616_v25 }
0x1dd0   :  { %v9289_v38 = vpop.f32.mrf.mxu1 }
0x1dd1   :  { %v13006_v24 = vadd.f32 %v9289_v38, %v5637_v20 }
0x1dd2   :  { %v6332_v58 = vpop.f32.mrf.mxu1 }
0x1dd3   :  { %v13010_v12 = vadd.f32 %v6332_v58, %v5629_v21 }
0x1dd4   :  { %v9290_v22 = vpop.f32.mrf.mxu1 }
0x1dd5   :  { %v13014_v32 = vadd.f32 %v9290_v22, %v5640_v4 }
0x1dd6   :  { %v6335_v7 = vpop.f32.mrf.mxu1 }
0x1dd7   :  { %v13016_v43 = vadd.f32 %v6335_v7, %v5632_v10 }
0x1dd8   :  { %v9317_v2 = vpop.f32.mrf.mxu1 }
0x1dd9   :  { %v6603_v16 = vsel %vm640_vm4, %v9317_v2, -inf }
0x1dda   :  { %v6542_v13 = vpop.f32.mrf.mxu1  ;;  %6604 = vmax.xlane.f32.xlu1 %v6603_v16 }
0x1ddb   :  { %v6597_v62 = vsel %vm640_vm4, %v6542_v13, -inf }
0x1ddc   :  { %v9318_v41 = vpop.f32.mrf.mxu1 }
0x1ddd   :  { %v6606_v17 = vsel %vm640_vm4, %v9318_v41, -inf }
0x1dde   :  { %v6545_v59 = vpop.f32.mrf.mxu1  ;;  %6607 = vmax.xlane.f32.xlu0 %v6606_v17  ;;  %6598 = vmax.xlane.f32.xlu1 %v6597_v62 }
0x1ddf   :  { %v6600_v55 = vsel %vm640_vm4, %v6545_v59, -inf }
0x1de0   :  { %v9321_v40 = vpop.f32.mrf.mxu1 }
0x1de1   :  { %v6615_v60 = vsel %vm640_vm4, %v9321_v40, -inf }
0x1de2   :  { %v6558_v1 = vpop.f32.mrf.mxu1  ;;  %6601 = vmax.xlane.f32.xlu0 %v6600_v55  ;;  %6616 = vmax.xlane.f32.xlu1 %v6615_v60 }
0x1de3   :  { %v6609_v56 = vsel %vm640_vm4, %v6558_v1, -inf }
0x1de4   :  { %v9322_v3 = vpop.f32.mrf.mxu1 }
0x1de5   :  { %v6618_v36 = vsel %vm640_vm4, %v9322_v3, -inf }
0x1de6   :  { %v13025_v33 = vpop.f32.mrf.mxu1  ;;  %6619 = vmax.xlane.f32.xlu0 %v6618_v36  ;;  %6610 = vmax.xlane.f32.xlu1 %v6609_v56 }
0x1de7   :  { %v6612_v27 = vsel %vm640_vm4, %v13025_v33, -inf }
0x1dea   :  { %6613 = vmax.xlane.f32.xlu0 %v6612_v27 }
0x1df7   :  { %6761 = vrot.lane.b32.xlu1 %v12051_v8, %s10191_s19 }
0x1dfb   :  { %6757 = vrot.lane.b32.xlu1 %v12045_v26, %s10191_s19 }
0x1e00   :  { %6759 = vrot.lane.b32.xlu0 %v12055_v30, %s10191_s19 }
0x1e3f   :  { %v6677_v18 = vpop.xlane.xlu1 %6676 }
0x1e43   :  { %v6671_v47 = vpop.xlane.xlu1 %6670 }
0x1e44   :  { %10047 = vrcp.f32 %v6671_v47 }
0x1e47   :  { %v6680_v39 = vpop.xlane.xlu0 %6679 }
0x1e49   :  { %v6689_v51 = vpop.xlane.xlu1 %6688 }
0x1e4b   :  { %v6674_v61 = vpop.xlane.xlu0 %6673 }
0x1e4c   :  { %10049 = vrcp.f32 %v6674_v61 }
0x1e4d   :  { %v6683_v26 = vpop.xlane.xlu1 %6682 }
0x1e4f   :  { %v6692_v34 = vpop.xlane.xlu0 %6691 }
0x1e51   :  { %v10048_v28 = vpop.eup %10047 }
0x1e52   :  { %v6733_v37 = vmul.f32 %v10048_v28, %v12933_v53 }
0x1e53   :  { %v6686_v20 = vpop.xlane.xlu0 %6685 }
0x1e59   :  { %v10050_v49 = vpop.eup %10049 }
0x1e5a   :  { %v6734_v25 = vmul.f32 %v10050_v49, %v12945_v11 }
0x1e5c   :  { %v6749_v8 = vpack.c.bf16 %v6734_v25, %v6733_v37 }
0x1e5e   :  { %9331 = vmatprep.mubr.msk.bf16.mxu0 %vm640_vm4, %v6749_v8 }
0x1e63   :  { %v6605_v30 = vpop.xlane.xlu1 %6604 }
0x1e64   :  { %v6631_v38 = vsub.f32 %v9317_v2, %v6605_v30 }
0x1e66   :  { %v6657_v21 = vmul.f32 1.442695, %v6631_v38 }
0x1e67   :  { %v6608_v58 = vpop.xlane.xlu0 %6607  ;;  %v6599_v4 = vpop.xlane.xlu1 %6598 }
0x1e68   :  { %10051 = vpow2.f32 %v6657_v21  ;;  %v6632_v22 = vsub.f32 %v9318_v41, %v6608_v58  ;;  %v6629_v50 = vsub.f32 %v6542_v13, %v6599_v4 }
0x1e69   :  { %10053 = vrcp.f32 %v6677_v18 }
0x1e6a   :  { %v6653_v10 = vmul.f32 1.442695, %v6629_v50  ;;  %10055 = vrcp.f32 %v6680_v39  ;;  %v6659_v53 = vmul.f32 1.442695, %v6632_v22 }
0x1e6b   :  { %v6602_v7 = vpop.xlane.xlu0 %6601  ;;  %v6617_v11 = vpop.xlane.xlu1 %6616  ;;  %10057 = vrcp.f32 %v6686_v20 }
0x1e6c   :  { %v6630_v16 = vsub.f32 %v6545_v59, %v6602_v7  ;;  %v6635_v17 = vsub.f32 %v9321_v40, %v6617_v11  ;;  %10059 = vpow2.f32 %v6653_v10 }
0x1e6d   :  { %10061 = vrcp.f32 %v6683_v26 }
0x1e6e   :  { %v6665_v62 = vmul.f32 1.442695, %v6635_v17  ;;  %10063 = vpow2.f32 %v6659_v53  ;;  %v6655_v2 = vmul.f32 1.442695, %v6630_v16 }
0x1e6f   :  { %v6620_v55 = vpop.xlane.xlu0 %6619  ;;  %v6611_v60 = vpop.xlane.xlu1 %6610 }
0x1e70   :  { %v6636_v36 = vsub.f32 %v9322_v3, %v6620_v55  ;;  %v6633_v56 = vsub.f32 %v6558_v1, %v6611_v60  ;;  %10065 = vpow2.f32 %v6665_v62 }
0x1e71   :  { %10067 = vrcp.f32 %v6692_v34 }
0x1e72   :  { %v6661_v13 = vmul.f32 1.442695, %v6633_v56  ;;  %10069 = vpow2.f32 %v6655_v2  ;;  %v6667_v41 = vmul.f32 1.442695, %v6636_v36  ;;  %v8057_v2 = vld [vmem:[%s13610_s4 + $0x1c] sm:$0xf] }
0x1e73   :  { %v6614_v27 = vpop.xlane.xlu0 %6613  ;;  %v6762_v18 = vpop.permute.xlu1 %6761  ;;  %10071 = vrcp.f32 %v6689_v51  ;;  %v6968_v55 = vsel %vm94_vm0, %v8057_v2, 0 }
0x1e74   :  { %v6634_v59 = vsub.f32 %v13025_v33, %v6614_v27  ;;  %9325 = vmatprep.subr.bf16.mxu0 %v6762_v18  ;;  %10073 = vpow2.f32 %v6661_v13 }
0x1e75   :  { %v13039_v40 = vpop.eup %10051  ;;  %9326 = vmatpush3.bf16.msra.mxu0 %v6762_v18  ;;  %10075 = vpow2.f32 %v6667_v41 }
0x1e76   :  { %v6663_v47 = vmul.f32 1.442695, %v6634_v59  ;;  %v6699_v3 = vsel %vm640_vm4, %v13039_v40, 0.0  ;;  %v10054_v1 = vpop.eup %10053 }
0x1e77   :  { %v6760_v39 = vpop.permute.xlu0 %6759  ;;  %6700 = vadd.xlane.f32.xlu0 %v6699_v3  ;;  %v10056_v61 = vpop.eup %10055  ;;  %v6735_v26 = vmul.f32 %v10054_v1, %v12929_v9 }
0x1e78   :  { %10077 = vpow2.f32 %v6663_v47  ;;  %9327 = vmatprep.subr.bf16.mxu0 %v6760_v39  ;;  %v10058_v28 = vpop.eup %10057  ;;  %v6758_v49 = vpop.permute.xlu1 %6757  ;;  %v6736_v37 = vmul.f32 %v10056_v61, %v12943_v0 }
0x1e79   :  { %9328 = vmatpush3.bf16.msra.mxu0 %v6760_v39  ;;  %v13043_v33 = vpop.eup %10059  ;;  %v6738_v34 = vmul.f32 %v10058_v28, %v12980_v5 }
0x1e7a   :  { %9329 = vmatprep.subr.bf16.mxu0 %v6758_v49  ;;  %v10062_v51 = vpop.eup %10061  ;;  %v6693_v25 = vsel %vm640_vm4, %v13043_v33, 0.0  ;;  %v6750_v21 = vpack.c.bf16 %v6736_v37, %v6735_v26 }
0x1e7b   :  { %v13048_v8 = vpop.eup %10063  ;;  %6694 = vadd.xlane.f32.xlu0 %v6693_v25  ;;  %v6737_v30 = vmul.f32 %v10062_v51, %v12966_v19 }
0x1e7c   :  { %v6702_v0 = vsel %vm640_vm4, %v13048_v8, 0.0 }
0x1e7d   :  { %9330 = vmatpush3.bf16.msra.mxu0 %v6758_v49  ;;  %v13052_v20 = vpop.eup %10065  ;;  %v6751_v22 = vpack.c.bf16 %v6738_v34, %v6737_v30 }
0x1e7e   :  { %v10068_v38 = vpop.eup %10067  ;;  %v6711_v58 = vsel %vm640_vm4, %v13052_v20, 0.0  ;;  %9488 = vmatprep.subr.msk.bf16.mxu0 %vm94_vm0, %v8057_v2 }
0x1e7f   :  { %v10070_v4 = vpop.eup %10069  ;;  %6703 = vadd.xlane.f32.xlu0 %v6702_v0  ;;  %6712 = vadd.xlane.f32.xlu1 %v6711_v58  ;;  %v6740_v10 = vmul.f32 %v10068_v38, %v12959_v15  ;;  %v13717_v15 = vld [vmem:[#allocation21_spill] sm:$0xff] }
0x1e80   :  { %v10072_v5 = vpop.eup %10071  ;;  %9332 = vmatmul.mubr.msk.bf16.vlgmr.msra.gmra.mxu0 %vm640_vm4, %v6750_v21  ;;  %v6696_v19 = vsel %vm640_vm4, %v10070_v4, 0.0 }
0x1e81   :  { %v13060_v9 = vpop.eup %10073  ;;  %9335 = vmatprep.mubr.msk.bf16.mxu0 %vm640_vm4, %v6751_v22  ;;  %v6739_v11 = vmul.f32 %v10072_v5, %v12952_v42  ;;  %v13718_v42 = vld [vmem:[#allocation24_spill] sm:$0xff]  ;;  %9356 = vmatpush3.bf16.msra.mxu0 %v6968_v55 }
0x1e82   :  { %v6705_v50 = vsel %vm640_vm4, %v13060_v9, 0.0  ;;  %v13067_v53 = vpop.eup %10075 }
0x1e83   :  { %6697 = vadd.xlane.f32.xlu0 %v6696_v19  ;;  %6706 = vadd.xlane.f32.xlu1 %v6705_v50  ;;  %v6714_v17 = vsel %vm640_vm4, %v13067_v53, 0.0  ;;  %v6752_v62 = vpack.c.bf16 %v6740_v10, %v6739_v11 }
0x1e85   :  { %v10078_v7 = vpop.eup %10077 }
0x1e86   :  { %v6708_v16 = vsel %vm640_vm4, %v10078_v7, 0.0 }
0x1e87   :  { %6709 = vadd.xlane.f32.xlu0 %v6708_v16  ;;  %6715 = vadd.xlane.f32.xlu1 %v6714_v17 }
0x1e88   :  { %9336 = vmatmul.mubr.msk.bf16.gmra.mxu0 %vm640_vm4, %v6752_v62 }
0x1e98   :  { %6850 = vrot.lane.b32.xlu1 %v12080_v54, %s10191_s19 }
0x1e9c   :  { %6848 = vrot.lane.b32.xlu1 %v12066_v57, %s10191_s19 }
0x1e9d   :  { %6852 = vrot.lane.b32.xlu0 %v13717_v15, %s10191_s19 }
0x1ea0   :  { %6846 = vrot.lane.b32.xlu1 %v13718_v42, %s10191_s19 }
0x1f00   :  { %v6701_v60 = vpop.xlane.xlu0 %6700 }
0x1f04   :  { %v6695_v54 = vpop.xlane.xlu0 %6694 }
0x1f05   :  { %10079 = vrcp.f32 %v6695_v54 }
0x1f08   :  { %v6704_v36 = vpop.xlane.xlu0 %6703  ;;  %v6713_v56 = vpop.xlane.xlu1 %6712 }
0x1f0c   :  { %v6698_v57 = vpop.xlane.xlu0 %6697  ;;  %v6707_v13 = vpop.xlane.xlu1 %6706 }
0x1f0d   :  { %10081 = vrcp.f32 %v6698_v57 }
0x1f0e   :  { %10083 = vrcp.f32 %v6704_v36 }
0x1f0f   :  { %10085 = vrcp.f32 %v6701_v60 }
0x1f10   :  { %v6710_v41 = vpop.xlane.xlu0 %6709  ;;  %v6716_v27 = vpop.xlane.xlu1 %6715 }
0x1f11   :  { %10087 = vrcp.f32 %v6710_v41 }
0x1f12   :  { %10089 = vrcp.f32 %v6707_v13  ;;  %v10080_v47 = vpop.eup %10079 }
0x1f13   :  { %10091 = vrcp.f32 %v6716_v27  ;;  %v6741_v39 = vmul.f32 %v10080_v47, %v13043_v33  ;;  %v13719_v47 = vld [vmem:[#allocation10_spill] sm:$0xff] }
0x1f14   :  { %v6853_v18 = vpop.permute.xlu0 %6852  ;;  %v6851_v59 = vpop.permute.xlu1 %6850  ;;  %10093 = vrcp.f32 %v6713_v56 }
0x1f15   :  { %9339 = vmatprep.subr.bf16.mxu1 %v6853_v18 }
0x1f16   :  { %9340 = vmatpush3.bf16.msra.mxu1 %v6853_v18 }
0x1f17   :  { %9341 = vmatprep.subr.bf16.mxu1 %v6851_v59 }
0x1f18   :  { %v6849_v3 = vpop.permute.xlu1 %6848 }
0x1f1a   :  { %v10082_v1 = vpop.eup %10081  ;;  %9342 = vmatpush3.bf16.msra.mxu1 %v6851_v59 }
0x1f1b   :  { %9343 = vmatprep.subr.bf16.mxu1 %v6849_v3  ;;  %v6742_v61 = vmul.f32 %v10082_v1, %v10070_v4  ;;  %v10084_v28 = vpop.eup %10083 }
0x1f1c   :  { %v10086_v49 = vpop.eup %10085  ;;  %v6847_v25 = vpop.permute.xlu1 %6846  ;;  %v6744_v26 = vmul.f32 %v10084_v28, %v13048_v8  ;;  %v13720_v28 = vld [vmem:[#allocation6_spill] sm:$0xff] }
0x1f1d   :  { %v6753_v51 = vpack.c.bf16 %v6742_v61, %v6741_v39  ;;  %v6743_v38 = vmul.f32 %v10086_v49, %v13039_v40  ;;  %v7083_v49 = vmul.f32 1.4142135, %v13720_v28 }
0x1f1e   :  { %v10088_v37 = vpop.eup %10087  ;;  %9344 = vmatpush3.bf16.msra.mxu1 %v6849_v3  ;;  %v7085_v3 = vmul.f32 1.4142135, %v13719_v47 }
0x1f1f   :  { %v10090_v34 = vpop.eup %10089  ;;  %9345 = vmatprep.subr.bf16.mxu1 %v6847_v25  ;;  %9347 = vmatprep.mubr.msk.bf16.mxu1 %vm640_vm4, %v6753_v51  ;;  %v6746_v30 = vmul.f32 %v10088_v37, %v10078_v7  ;;  %v6754_v33 = vpack.c.bf16 %v6744_v26, %v6743_v38 }
0x1f20   :  { %v6745_v21 = vmul.f32 %v10090_v34, %v13060_v9  ;;  %v10092_v0 = vpop.eup %10091  ;;  %v13721_v34 = vld [vmem:[#allocation8_spill] sm:$0xff] }
0x1f21   :  { %v10094_v4 = vpop.eup %10093  ;;  %v6748_v22 = vmul.f32 %v10092_v0, %v13067_v53  ;;  %v7086_v26 = vmul.f32 1.4142135, %v13721_v34  ;;  %v13730_v34 = vld [vmem:[#allocation12_spill] sm:$0xff] }
0x1f22   :  { %9346 = vmatpush3.bf16.msra.mxu1 %v6847_v25  ;;  %v6755_v58 = vpack.c.bf16 %v6746_v30, %v6745_v21  ;;  %v6747_v8 = vmul.f32 %v10094_v4, %v13052_v20  ;;  %v13722_v21 = vld [vmem:[#allocation5_spill] sm:$0xff] }
0x1f24   :  { %v6756_v5 = vpack.c.bf16 %v6748_v22, %v6747_v8  ;;  %v13723_v22 = vld [vmem:[#allocation9_spill] sm:$0xff] }
0x1f25   :  { %9348 = vmatmul.mubr.msk.bf16.vlgmr.msra.gmra.mxu1 %vm640_vm4, %v6754_v33  ;;  %v7084_v33 = vmul.f32 1.4142135, %v13722_v21 }
0x1f26   :  { %9351 = vmatprep.mubr.msk.bf16.mxu1 %vm640_vm4, %v6755_v58 }
0x1f2d   :  { %9352 = vmatmul.mubr.msk.bf16.gmra.mxu1 %vm640_vm4, %v6756_v5  ;;  %v13724_v5 = vld [vmem:[#allocation22_spill] sm:$0xff] }
0x1f40   :  { %v9333_v19 = vpop.f32.mrf.mxu0 }
0x1f42   :  { %v6815_v40 = vpop.f32.mrf.mxu0 }
0x1f44   :  { %v9334_v50 = vpop.f32.mrf.mxu0 }
0x1f45   :  { %v6936_v7 = vpack.c.bf16 %v9334_v50, %v9333_v19  ;;  %v7087_v19 = vmul.f32 1.4142135, %v13724_v5 }
0x1f46   :  { %v6818_v10 = vpop.f32.mrf.mxu0 }
0x1f47   :  { %v6935_v9 = vpack.c.bf16 %v6818_v10, %v6815_v40 }
0x1f48   :  { %v9337_v11 = vpop.f32.mrf.mxu0 }
0x1f49   :  { %9357 = vmatprep.mubr.msk.bf16.mxu0 %vm449_vm3, %v6935_v9 }
0x1f4a   :  { %v6831_v16 = vpop.f32.mrf.mxu0  ;;  %9358 = vmatmul.mubr.msk.bf16.vlgmr.msra.gmra.mxu0 %vm449_vm3, %v6936_v7 }
0x1f4c   :  { %v9338_v17 = vpop.f32.mrf.mxu0 }
0x1f4d   :  { %v6938_v15 = vpack.c.bf16 %v9338_v17, %v9337_v11  ;;  %v13725_v11 = vld [vmem:[#allocation7_spill] sm:$0xff] }
0x1f4e   :  { %v6834_v62 = vpop.f32.mrf.mxu0 }
0x1f4f   :  { %v6937_v53 = vpack.c.bf16 %v6834_v62, %v6831_v16  ;;  %v7090_v16 = vmul.f32 1.4142135, %v13725_v11  ;;  %v13726_v62 = vld [vmem:[#allocation19_spill] sm:$0xff] }
0x1f51   :  { %9361 = vmatprep.mubr.msk.bf16.mxu0 %vm449_vm3, %v6937_v53  ;;  %v7088_v53 = vmul.f32 1.4142135, %v13726_v62 }
0x1f52   :  { %9362 = vmatmul.mubr.msk.bf16.gmra.mxu0 %vm449_vm3, %v6938_v15 }
0x1fe5   :  { %v9349_v20 = vpop.f32.mrf.mxu1 }
0x1fe7   :  { %v6904_v42 = vpop.f32.mrf.mxu1 }
0x1fe9   :  { %v9350_v2 = vpop.f32.mrf.mxu1 }
0x1fea   :  { %v6940_v54 = vpack.c.bf16 %v9350_v2, %v9349_v20 }
0x1feb   :  { %v6907_v55 = vpop.f32.mrf.mxu1 }
0x1fec   :  { %v6939_v60 = vpack.c.bf16 %v6907_v55, %v6904_v42 }
0x1fed   :  { %v9353_v36 = vpop.f32.mrf.mxu1 }
0x1fee   :  { %9365 = vmatprep.mubr.msk.bf16.mxu0 %vm449_vm3, %v6939_v60 }
0x1fef   :  { %v6920_v56 = vpop.f32.mrf.mxu1  ;;  %9366 = vmatmul.mubr.msk.bf16.gmra.mxu0 %vm449_vm3, %v6940_v54 }
0x1ff1   :  { %v9354_v57 = vpop.f32.mrf.mxu1 }
0x1ff2   :  { %v6942_v27 = vpack.c.bf16 %v9354_v57, %v9353_v36 }
0x1ff3   :  { %v6923_v13 = vpop.f32.mrf.mxu1 }
0x1ff4   :  { %v6941_v41 = vpack.c.bf16 %v6923_v13, %v6920_v56  ;;  %v13727_v56 = vld [vmem:[#allocation23_spill] sm:$0xff] }
0x1ff5   :  { %v7093_v57 = vmul.f32 1.4142135, %v13727_v56 }
0x1ff6   :  { %9369 = vmatprep.mubr.msk.bf16.mxu0 %vm449_vm3, %v6941_v41 }
0x1ff7   :  { %9370 = vmatmul.mubr.msk.bf16.gmra.mxu0 %vm449_vm3, %v6942_v27 }
0x200a   :  { %v9359_v18 = vpop.f32.mrf.mxu0 }
0x200b   :  { %v7069_v59 = vadd.f32 %v9359_v18, %v12936_v63  ;;  %v13728_v18 = vld [vmem:[#allocation14_spill] sm:$0xff] }
0x200c   :  { %v7004_v1 = vpop.f32.mrf.mxu0 }
0x200d   :  { %v13107_v39 = vadd.f32 %v7085_v3, %v7069_v59  ;;  %v7067_v61 = vadd.f32 %v7004_v1, %v12941_v52  ;;  %v7091_v59 = vmul.f32 1.4142135, %v13728_v18 }
0x200e   :  { %v9360_v51 = vpop.f32.mrf.mxu0 }
0x200f   :  { %v13111_v37 = vadd.f32 %v7083_v49, %v7067_v61  ;;  %v7070_v25 = vadd.f32 %v9360_v51, %v12948_v45  ;;  %v7089_v45 = vmul.f32 1.4142135, %v13723_v22  ;;  %v7121_v50 = vsel %vm307_vm2, %v13107_v39, 0.0  ;;  %v13729_v61 = vld [vmem:[#allocation20_spill] sm:$0xff]  ;;  %v13732_v22 = vld [vmem:[#allocation13_spill] sm:$0xff] }
0x2010   :  { %v7007_v30 = vpop.f32.mrf.mxu0  ;;  %v7094_v28 = vmul.f32 1.4142135, %v13729_v61 }
0x2011   :  { %v13115_v38 = vadd.f32 %v7086_v26, %v7070_v25  ;;  %v7068_v63 = vadd.f32 %v7007_v30, %v12955_v23  ;;  %v7115_v0 = vsel %vm307_vm2, %v13111_v37, 0.0  ;;  %v7092_v26 = vmul.f32 1.4142135, %v13730_v34 }
0x2012   :  { %7116 = vadd.xlane.f32.xlu0 %v7115_v0  ;;  %v9363_v52 = vpop.f32.mrf.mxu0 }
0x2013   :  { %v13121_v58 = vadd.f32 %v7084_v33, %v7068_v63  ;;  %v7073_v4 = vadd.f32 %v9363_v52, %v12962_v35  ;;  %v7124_v20 = vsel %vm307_vm2, %v13115_v38, 0.0  ;;  %v13731_v33 = vld [vmem:[#allocation18_spill] sm:$0xff] }
0x2014   :  { %v7020_v8 = vpop.f32.mrf.mxu0  ;;  %v7097_v0 = vmul.f32 1.4142135, %v13731_v33 }
0x2015   :  { %v13126_v40 = vadd.f32 %v7089_v45, %v7073_v4  ;;  %v7071_v23 = vadd.f32 %v7020_v8, %v12969_v48  ;;  %v7118_v10 = vsel %vm307_vm2, %v13121_v58, 0.0  ;;  %v7095_v45 = vmul.f32 1.4142135, %v13732_v22 }
0x2016   :  { %7122 = vadd.xlane.f32.xlu0 %v7121_v50  ;;  %7119 = vadd.xlane.f32.xlu1 %v7118_v10  ;;  %v9364_v9 = vpop.f32.mrf.mxu0 }
0x2017   :  { %v13133_v7 = vadd.f32 %v7087_v19, %v7071_v23  ;;  %v7074_v35 = vadd.f32 %v9364_v9, %v12976_v44  ;;  %v7133_v44 = vsel %vm307_vm2, %v13126_v40, 0.0  ;;  %v13733_v9 = vld [vmem:[#allocation16_spill] sm:$0xff] }
0x2018   :  { %v7023_v17 = vpop.f32.mrf.mxu0 }
0x2019   :  { %v13138_v15 = vadd.f32 %v7090_v16, %v7074_v35  ;;  %v7072_v48 = vadd.f32 %v7023_v17, %v12984_v6  ;;  %v7127_v42 = vsel %vm307_vm2, %v13133_v7, 0.0  ;;  %v7098_v35 = vmul.f32 1.4142135, %v13733_v9 }
0x201a   :  { %7125 = vadd.xlane.f32.xlu0 %v7124_v20  ;;  %7128 = vadd.xlane.f32.xlu1 %v7127_v42 }
0x201b   :  { %v13145_v2 = vadd.f32 %v7088_v53, %v7072_v48  ;;  %v7136_v6 = vsel %vm307_vm2, %v13138_v15, 0.0  ;;  %v13734_v53 = vld [vmem:[#allocation11_spill] sm:$0xff] }
0x201c   :  { %v7096_v48 = vmul.f32 1.4142135, %v13734_v53 }
0x201d   :  { %v7130_v55 = vsel %vm307_vm2, %v13145_v2, 0.0 }
0x201e   :  { %7134 = vadd.xlane.f32.xlu1 %v7133_v44  ;;  %7131 = vadd.xlane.f32.xlu0 %v7130_v55 }
0x2022   :  { %7137 = vadd.xlane.f32.xlu0 %v7136_v6 }
0x209b   :  { %v7117_v60 = vpop.xlane.xlu0 %7116 }
0x209c   :  { %v7163_v52 = vmul.f32 0.03125, %v7117_v60 }
0x209e   :  { %v13186_v11 = vsub.f32 %v13111_v37, %v7163_v52  ;;  %v9513_v52 = vld [vmem:[%s13611_s5 + $0x18] sm:$0xff]  }
0x209f   :  { %v7123_v49 = vpop.xlane.xlu0 %7122  ;;  %v7120_v30 = vpop.xlane.xlu1 %7119  ;;  %9373 = vmatprep.subr.bf16.mxu1 %v9513_v52 }
0x20a0   :  { %v7164_v16 = vmul.f32 0.03125, %v7120_v30  ;;  %9374 = vmatpush3.bf16.msra.mxu1 %v9513_v52 }
0x20a2   :  { %v13202_v6 = vsub.f32 %v13121_v58, %v7164_v16 }
0x20a3   :  { %v7126_v23 = vpop.xlane.xlu0 %7125  ;;  %v7129_v17 = vpop.xlane.xlu1 %7128 }
0x20a4   :  { %v7166_v60 = vmul.f32 0.03125, %v7126_v23  ;;  %v7196_v18 = vmul.f32 %v13202_v6, %v13202_v6 }
0x20af   :  { %v9367_v54 = vpop.f32.mrf.mxu0 }
0x20b0   :  { %v7077_v36 = vadd.f32 %v9367_v54, %v12988_v29  ;;  %v7132_v54 = vpop.xlane.xlu0 %7131 }
0x20b1   :  { %v7036_v13 = vpop.f32.mrf.mxu0 }
0x20b2   :  { %v13155_v41 = vadd.f32 %v7093_v57, %v7077_v36  ;;  %v7075_v27 = vadd.f32 %v7036_v13, %v12994_v46  ;;  %v7167_v36 = vmul.f32 0.03125, %v7129_v17  ;;  %v7135_v13 = vpop.xlane.xlu1 %7134 }
0x20b3   :  { %v9368_v47 = vpop.f32.mrf.mxu0 }
0x20b4   :  { %v13159_v3 = vadd.f32 %v7091_v59, %v7075_v27  ;;  %v7078_v1 = vadd.f32 %v9368_v47, %v12998_v14  ;;  %v7145_v5 = vsel %vm307_vm2, %v13155_v41, 0.0  ;;  %v13219_v59 = vsub.f32 %v13133_v7, %v7167_v36 }
0x20b5   :  { %v7039_v51 = vpop.f32.mrf.mxu0  ;;  %v7168_v47 = vmul.f32 0.03125, %v7132_v54 }
0x20b6   :  { %v13163_v25 = vadd.f32 %v7094_v28, %v7078_v1  ;;  %v7076_v29 = vadd.f32 %v7039_v51, %v13002_v31  ;;  %v7139_v46 = vsel %vm307_vm2, %v13159_v3, 0.0  ;;  %v7169_v1 = vmul.f32 0.03125, %v7135_v13  ;;  %v7138_v28 = vpop.xlane.xlu0 %7137 }
0x20b7   :  { %7140 = vadd.xlane.f32.xlu1 %v7139_v46  ;;  %v9371_v63 = vpop.f32.mrf.mxu0  ;;  %v7170_v34 = vmul.f32 0.03125, %v7138_v28 }
0x20b8   :  { %v13169_v21 = vadd.f32 %v7092_v26, %v7076_v29  ;;  %v7081_v14 = vadd.f32 %v9371_v63, %v13006_v24  ;;  %v7148_v44 = vsel %vm307_vm2, %v13163_v25, 0.0  ;;  %v13228_v29 = vsub.f32 %v13145_v2, %v7168_v47 }
0x20b9   :  { %v7052_v4 = vpop.f32.mrf.mxu0  ;;  %v13231_v7 = vsub.f32 %v13126_v40, %v7169_v1  ;;  %v7199_v26 = vmul.f32 %v13219_v59, %v13219_v59  ;;  %v13237_v30 = vsub.f32 %v13138_v15, %v7170_v34 }
0x20ba   :  { %v13174_v8 = vadd.f32 %v7097_v0, %v7081_v14  ;;  %v7079_v31 = vadd.f32 %v7052_v4, %v13010_v12  ;;  %v7142_v19 = vsel %vm307_vm2, %v13169_v21, 0.0  ;;  %v7165_v12 = vmul.f32 0.03125, %v7123_v49  ;;  %v9514_v4 = vld [vmem:[%s13611_s5 + $0x10] sm:$0xff]  }
0x20bb   :  { %7146 = vadd.xlane.f32.xlu1 %v7145_v5  ;;  %7143 = vadd.xlane.f32.xlu0 %v7142_v19  ;;  %v9372_v24 = vpop.f32.mrf.mxu0  ;;  %v7214_v49 = vsel %vm307_vm2, %v7196_v18, 0.0  ;;  %v7223_v63 = vsel %vm307_vm2, %v7199_v26, 0.0  ;;  %v7200_v2 = vmul.f32 %v13228_v29, %v13228_v29  ;;  %v7201_v40 = vmul.f32 %v13231_v7, %v13231_v7 }
0x20bc   :  { %v13181_v50 = vadd.f32 %v7095_v45, %v7079_v31  ;;  %v7082_v10 = vadd.f32 %v9372_v24, %v13014_v32  ;;  %v13199_v55 = vsub.f32 %v13107_v39, %v7165_v12  ;;  %v7157_v56 = vsel %vm307_vm2, %v13174_v8, 0.0  ;;  %9375 = vmatprep.subr.bf16.mxu1 %v9514_v4 }
0x20bd   :  { %v7055_v62 = vpop.f32.mrf.mxu0  ;;  %v13211_v39 = vsub.f32 %v13115_v38, %v7166_v60  ;;  %v7226_v14 = vsel %vm307_vm2, %v7200_v2, 0.0  ;;  %v7229_v33 = vsel %vm307_vm2, %v7201_v40, 0.0  ;;  %v7202_v0 = vmul.f32 %v13237_v30, %v13237_v30  ;;  %9376 = vmatpush3.bf16.msra.mxu1 %v9514_v4 }
0x20be   :  { %v13189_v20 = vadd.f32 %v7098_v35, %v7082_v10  ;;  %v7080_v42 = vadd.f32 %v7055_v62, %v13016_v43  ;;  %v7151_v32 = vsel %vm307_vm2, %v13181_v50, 0.0  ;;  %v7195_v43 = vmul.f32 %v13186_v11, %v13186_v11 }
0x20bf   :  { %7149 = vadd.xlane.f32.xlu0 %v7148_v44  ;;  %7152 = vadd.xlane.f32.xlu1 %v7151_v32  ;;  %v7197_v27 = vmul.f32 %v13199_v55, %v13199_v55  ;;  %v7198_v51 = vmul.f32 %v13211_v39, %v13211_v39  ;;  %v7232_v15 = vsel %vm307_vm2, %v7202_v0, 0.0 }
0x20c0   :  { %v13196_v37 = vadd.f32 %v7096_v48, %v7080_v42  ;;  %v7211_v58 = vsel %vm307_vm2, %v7195_v43, 0.0  ;;  %v7160_v61 = vsel %vm307_vm2, %v13189_v20, 0.0 }
0x20c1   :  { %v7217_v38 = vsel %vm307_vm2, %v7197_v27, 0.0  ;;  %v7220_v46 = vsel %vm307_vm2, %v7198_v51, 0.0 }
0x20c2   :  { %v7154_v57 = vsel %vm307_vm2, %v13196_v37, 0.0 }
0x20c3   :  { %7158 = vadd.xlane.f32.xlu1 %v7157_v56  ;;  %7155 = vadd.xlane.f32.xlu0 %v7154_v57 }
0x20c7   :  { %7212 = vadd.xlane.f32.xlu1 %v7211_v58  ;;  %7161 = vadd.xlane.f32.xlu0 %v7160_v61 }
0x20cb   :  { %7218 = vadd.xlane.f32.xlu1 %v7217_v38  ;;  %7215 = vadd.xlane.f32.xlu0 %v7214_v49 }
0x20cf   :  { %7221 = vadd.xlane.f32.xlu0 %v7220_v46  ;;  %7224 = vadd.xlane.f32.xlu1 %v7223_v63 }
0x20d3   :  { %7227 = vadd.xlane.f32.xlu0 %v7226_v14  ;;  %7230 = vadd.xlane.f32.xlu1 %v7229_v33 }
0x20d7   :  { %7233 = vadd.xlane.f32.xlu0 %v7232_v15 }
0x2140   :  { %v7141_v22 = vpop.xlane.xlu1 %7140 }
0x2141   :  { %v7171_v45 = vmul.f32 0.03125, %v7141_v22 }
0x2143   :  { %v13256_v31 = vsub.f32 %v13159_v3, %v7171_v45 }
0x2144   :  { %v7144_v5 = vpop.xlane.xlu0 %7143  ;;  %v7147_v19 = vpop.xlane.xlu1 %7146 }
0x2145   :  { %v7172_v23 = vmul.f32 0.03125, %v7144_v5  ;;  %v7173_v24 = vmul.f32 0.03125, %v7147_v19  ;;  %v7203_v10 = vmul.f32 %v13256_v31, %v13256_v31 }
0x2147   :  { %v13261_v9 = vsub.f32 %v13169_v21, %v7172_v23  ;;  %v13264_v35 = vsub.f32 %v13155_v41, %v7173_v24  ;;  %v7235_v12 = vsel %vm307_vm2, %v7203_v10, 0.0 }
0x2148   :  { %v7150_v16 = vpop.xlane.xlu0 %7149  ;;  %7236 = vadd.xlane.f32.xlu1 %v7235_v12  ;;  %v7153_v17 = vpop.xlane.xlu1 %7152 }
0x2149   :  { %v7174_v3 = vmul.f32 0.03125, %v7150_v16  ;;  %v7175_v62 = vmul.f32 0.03125, %v7153_v17  ;;  %v7204_v53 = vmul.f32 %v13261_v9, %v13261_v9  ;;  %v7205_v48 = vmul.f32 %v13264_v35, %v13264_v35 }
0x214b   :  { %v13272_v42 = vsub.f32 %v13163_v25, %v7174_v3  ;;  %v13275_v21 = vsub.f32 %v13181_v50, %v7175_v62  ;;  %v7238_v41 = vsel %vm307_vm2, %v7204_v53, 0.0  ;;  %v7241_v44 = vsel %vm307_vm2, %v7205_v48, 0.0 }
0x214c   :  { %v7156_v32 = vpop.xlane.xlu0 %7155  ;;  %7239 = vadd.xlane.f32.xlu0 %v7238_v41  ;;  %7242 = vadd.xlane.f32.xlu1 %v7241_v44  ;;  %v7159_v60 = vpop.xlane.xlu1 %7158 }
0x214d   :  { %v7176_v54 = vmul.f32 0.03125, %v7156_v32  ;;  %v7177_v43 = vmul.f32 0.03125, %v7159_v60  ;;  %v7206_v36 = vmul.f32 %v13272_v42, %v13272_v42  ;;  %v7207_v25 = vmul.f32 %v13275_v21, %v13275_v21 }
0x214f   :  { %v13284_v56 = vsub.f32 %v13196_v37, %v7176_v54  ;;  %v13287_v50 = vsub.f32 %v13174_v8, %v7177_v43  ;;  %v7244_v57 = vsel %vm307_vm2, %v7206_v36, 0.0  ;;  %v7247_v13 = vsel %vm307_vm2, %v7207_v25, 0.0 }
0x2150   :  { %v7162_v58 = vpop.xlane.xlu0 %7161  ;;  %7245 = vadd.xlane.f32.xlu0 %v7244_v57  ;;  %7248 = vadd.xlane.f32.xlu1 %v7247_v13  ;;  %v7213_v27 = vpop.xlane.xlu1 %7212  ;;  %v9516_v13 = vld [vmem:[%s13612_s6 + $0x30] sm:$0xff]  }
0x2151   :  { %v7178_v18 = vmul.f32 0.03125, %v7162_v58  ;;  %v7259_v47 = vmul.f32 0.03125, %v7213_v27  ;;  %v7208_v1 = vmul.f32 %v13284_v56, %v13284_v56  ;;  %v7209_v37 = vmul.f32 %v13287_v50, %v13287_v50 }
0x2153   :  { %v13296_v61 = vsub.f32 %v13189_v20, %v7178_v18  ;;  %v7275_v8 = vadd.f32 1e-05, %v7259_v47  ;;  %v7250_v28 = vsel %vm307_vm2, %v7208_v1, 0.0  ;;  %v7253_v38 = vsel %vm307_vm2, %v7209_v37, 0.0 }
0x2154   :  { %7251 = vadd.xlane.f32.xlu0 %v7250_v28  ;;  %v7216_v49 = vpop.xlane.xlu0 %7215  ;;  %7254 = vadd.xlane.f32.xlu1 %v7253_v38  ;;  %v7219_v51 = vpop.xlane.xlu1 %7218 }
0x2155   :  { %v7260_v34 = vmul.f32 0.03125, %v7216_v49  ;;  %v7261_v26 = vmul.f32 0.03125, %v7219_v51  ;;  %v7210_v46 = vmul.f32 %v13296_v61, %v13296_v61  ;;  %10095 = vrsqrt.f32 %v7275_v8 }
0x2157   :  { %v7276_v63 = vadd.f32 1e-05, %v7260_v34  ;;  %v7277_v2 = vadd.f32 1e-05, %v7261_v26  ;;  %v7256_v20 = vsel %vm307_vm2, %v7210_v46, 0.0 }
0x2158   :  { %7257 = vadd.xlane.f32.xlu0 %v7256_v20  ;;  %v7222_v40 = vpop.xlane.xlu0 %7221  ;;  %v7225_v14 = vpop.xlane.xlu1 %7224 }
0x2159   :  { %10097 = vrsqrt.f32 %v7276_v63  ;;  %v7262_v33 = vmul.f32 0.03125, %v7222_v40  ;;  %v7263_v0 = vmul.f32 0.03125, %v7225_v14 }
0x215a   :  { %10099 = vrsqrt.f32 %v7277_v2 }
0x215b   :  { %v7278_v15 = vadd.f32 1e-05, %v7262_v33  ;;  %v7279_v52 = vadd.f32 1e-05, %v7263_v0 }
0x215c   :  { %v7228_v4 = vpop.xlane.xlu0 %7227  ;;  %v7231_v22 = vpop.xlane.xlu1 %7230 }
0x215d   :  { %10101 = vrsqrt.f32 %v7278_v15  ;;  %v7264_v45 = vmul.f32 0.03125, %v7228_v4  ;;  %v7265_v5 = vmul.f32 0.03125, %v7231_v22 }
0x215e   :  { %10103 = vrsqrt.f32 %v7279_v52 }
0x215f   :  { %v7280_v19 = vadd.f32 1e-05, %v7264_v45  ;;  %v7281_v23 = vadd.f32 1e-05, %v7265_v5 }
0x2160   :  { %v7234_v24 = vpop.xlane.xlu0 %7233 }
0x2161   :  { %10105 = vrsqrt.f32 %v7280_v19  ;;  %v7266_v10 = vmul.f32 0.03125, %v7234_v24 }
0x2162   :  { %10107 = vrsqrt.f32 %v7281_v23  ;;  %v10096_v16 = vpop.eup %10095 }
0x2163   :  { %v7282_v12 = vadd.f32 1e-05, %v7266_v10  ;;  %v13304_v3 = vmul.f32 %v10096_v16, %v13186_v11 }
0x2165   :  { %10109 = vrsqrt.f32 %v7282_v12 }
0x2166   :  { %v10098_v17 = vpop.eup %10097 }
0x2167   :  { %v13307_v62 = vmul.f32 %v10098_v17, %v13202_v6  ;;  %v10100_v53 = vpop.eup %10099 }
0x2168   :  { %v13312_v44 = vmul.f32 %v10100_v53, %v13199_v55 }
0x2169   :  { %v7323_v48 = vpack.c.bf16 %v13307_v62, %v13304_v3 }
0x216a   :  { %v10102_v41 = vpop.eup %10101 }
0x216b   :  { %v13315_v32 = vmul.f32 %v10102_v41, %v13211_v39  ;;  %9377 = vmatprep.mubr.msk.bf16.mxu1 %vm307_vm2, %v7323_v48  ;;  %v10104_v60 = vpop.eup %10103 }
0x216c   :  { %v13322_v6 = vmul.f32 %v10104_v60, %v13219_v59 }
0x216d   :  { %v7324_v11 = vpack.c.bf16 %v13315_v32, %v13312_v44 }
0x216e   :  { %v10106_v54 = vpop.eup %10105 }
0x216f   :  { %9378 = vmatmul.mubr.msk.bf16.vlgmr.msra.gmra.mxu1 %vm307_vm2, %v7324_v11  ;;  %v13325_v43 = vmul.f32 %v10106_v54, %v13228_v29  ;;  %v10108_v55 = vpop.eup %10107  ;;  %v9515_v29 = vld [vmem:[%s13612_s6 + $0x38] sm:$0xff]  }
0x2170   :  { %v13331_v25 = vmul.f32 %v10108_v55, %v13231_v7  ;;  %9393 = vmatprep.subr.bf16.mxu0 %v9515_v29  ;;  %v9517_v7 = vld [vmem:[%s13612_s6 + $0x28] sm:$0xff]  }
0x2171   :  { %v7325_v39 = vpack.c.bf16 %v13325_v43, %v13322_v6  ;;  %9394 = vmatpush3.bf16.msra.mxu0 %v9515_v29 }
0x2172   :  { %v10110_v36 = vpop.eup %10109  ;;  %9395 = vmatprep.subr.bf16.mxu0 %v9516_v13 }
0x2173   :  { %9381 = vmatprep.mubr.msk.bf16.mxu1 %vm307_vm2, %v7325_v39  ;;  %v13334_v57 = vmul.f32 %v10110_v36, %v13237_v30  ;;  %v9518_v30 = vld [vmem:[%s13612_s6 + $0x20] sm:$0xff]   ;;  %s10192_s6 = smov [#allocation2]  }
0x2174   :  { %s7894_s9 = sshll.u32 %s10192_s6, 4  ;;  %s7895_s9 = int_to_ptr.vmem [resolvable:$true] %s7894_s9 }
0x2175   :  { %v7326_v59 = vpack.c.bf16 %v13334_v57, %v13331_v25  ;;  %9396 = vmatpush3.bf16.msra.mxu0 %v9516_v13  ;;  %s10159_s10 = scalar_lea.vmem %s7895_s9, 2048  ;;  %p10164_p1 = scmp.lt.s32.totalorder %s7895_s9, %s7895_s9 }
0x2176   :  { %9397 = vmatprep.subr.bf16.mxu0 %v9517_v7  ;;  %p10160_p0 = scmp.ne.s32.totalorder %s7895_s9, %s10159_s10  ;;  %p10165_p2 = scmp.lt.s32.totalorder %s10159_s10, %s10159_s10 }
0x2177   :  { %9382 = vmatmul.mubr.msk.bf16.gmra.mxu1 %vm307_vm2, %v7326_v59 }
0x2178   :  { %p10166_p3 = por %p10165_p2, %p10164_p1 }
0x2179   :  { %9398 = vmatpush3.bf16.msra.mxu0 %v9517_v7 }
0x217a   :  { %9399 = vmatprep.subr.bf16.mxu0 %v9518_v30  ;;  %p10167_p4 = pnand %p10166_p3, %p10160_p0 }
0x217d   :  { %9400 = vmatpush3.bf16.msra.mxu0 %v9518_v30 }
0x21d1   :  { %v7237_v58 = vpop.xlane.xlu1 %7236 }
0x21d2   :  { %v7267_v27 = vmul.f32 0.03125, %v7237_v58 }
0x21d4   :  { %v7283_v18 = vadd.f32 1e-05, %v7267_v27 }
0x21d5   :  { %v7240_v47 = vpop.xlane.xlu0 %7239  ;;  %v7243_v1 = vpop.xlane.xlu1 %7242 }
0x21d6   :  { %v7268_v37 = vmul.f32 0.03125, %v7240_v47  ;;  %v7269_v8 = vmul.f32 0.03125, %v7243_v1  ;;  %10111 = vrsqrt.f32 %v7283_v18 }
0x21d8   :  { %v7284_v28 = vadd.f32 1e-05, %v7268_v37  ;;  %v7285_v38 = vadd.f32 1e-05, %v7269_v8 }
0x21d9   :  { %v7246_v49 = vpop.xlane.xlu0 %7245  ;;  %v7249_v51 = vpop.xlane.xlu1 %7248 }
0x21da   :  { %10113 = vrsqrt.f32 %v7284_v28  ;;  %v7270_v34 = vmul.f32 0.03125, %v7246_v49  ;;  %v7271_v26 = vmul.f32 0.03125, %v7249_v51 }
0x21db   :  { %10115 = vrsqrt.f32 %v7285_v38 }
0x21dc   :  { %v7286_v46 = vadd.f32 1e-05, %v7270_v34  ;;  %v7287_v63 = vadd.f32 1e-05, %v7271_v26 }
0x21dd   :  { %v7252_v2 = vpop.xlane.xlu0 %7251  ;;  %v7255_v20 = vpop.xlane.xlu1 %7254 }
0x21de   :  { %10117 = vrsqrt.f32 %v7286_v46  ;;  %v7272_v40 = vmul.f32 0.03125, %v7252_v2  ;;  %v7273_v14 = vmul.f32 0.03125, %v7255_v20 }
0x21df   :  { %10119 = vrsqrt.f32 %v7287_v63 }
0x21e0   :  { %v7288_v33 = vadd.f32 1e-05, %v7272_v40  ;;  %v7289_v0 = vadd.f32 1e-05, %v7273_v14 }
0x21e1   :  { %v7258_v15 = vpop.xlane.xlu0 %7257 }
0x21e2   :  { %10121 = vrsqrt.f32 %v7288_v33  ;;  %v7274_v52 = vmul.f32 0.03125, %v7258_v15 }
0x21e3   :  { %10123 = vrsqrt.f32 %v7289_v0  ;;  %v10112_v22 = vpop.eup %10111 }
0x21e4   :  { %v7290_v4 = vadd.f32 1e-05, %v7274_v52  ;;  %v13352_v5 = vmul.f32 %v10112_v22, %v13256_v31 }
0x21e6   :  { %10125 = vrsqrt.f32 %v7290_v4 }
0x21e7   :  { %v10114_v45 = vpop.eup %10113 }
0x21e8   :  { %v13355_v19 = vmul.f32 %v10114_v45, %v13261_v9  ;;  %v10116_v23 = vpop.eup %10115 }
0x21e9   :  { %v13361_v12 = vmul.f32 %v10116_v23, %v13264_v35 }
0x21ea   :  { %v7327_v24 = vpack.c.bf16 %v13355_v19, %v13352_v5 }
0x21eb   :  { %v10118_v10 = vpop.eup %10117 }
0x21ec   :  { %9385 = vmatprep.mubr.msk.bf16.mxu1 %vm307_vm2, %v7327_v24  ;;  %v13364_v16 = vmul.f32 %v10118_v10, %v13272_v42  ;;  %v10120_v17 = vpop.eup %10119  ;;  %v7635_v10 = vmul.f32 1.4142135, %v13312_v44 }
0x21ed   :  { %v13370_v9 = vmul.f32 %v10120_v17, %v13275_v21 }
0x21ee   :  { %v7328_v31 = vpack.c.bf16 %v13364_v16, %v13361_v12 }
0x21ef   :  { %v10122_v53 = vpop.eup %10121 }
0x21f0   :  { %9386 = vmatmul.mubr.msk.bf16.gmra.mxu1 %vm307_vm2, %v7328_v31  ;;  %v13373_v48 = vmul.f32 %v10122_v53, %v13284_v56  ;;  %v10124_v41 = vpop.eup %10123  ;;  %v7633_v53 = vmul.f32 1.4142135, %v13304_v3 }
0x21f1   :  { %v13379_v42 = vmul.f32 %v10124_v41, %v13287_v50 }
0x21f2   :  { %v7329_v35 = vpack.c.bf16 %v13373_v48, %v13370_v9 }
0x21f3   :  { %v10126_v60 = vpop.eup %10125 }
0x21f4   :  { %9389 = vmatprep.mubr.msk.bf16.mxu1 %vm307_vm2, %v7329_v35  ;;  %v13382_v11 = vmul.f32 %v10126_v60, %v13296_v61 }
0x21f6   :  { %v7330_v21 = vpack.c.bf16 %v13382_v11, %v13379_v42 }
0x21f8   :  { %9390 = vmatmul.mubr.msk.bf16.gmra.mxu1 %vm307_vm2, %v7330_v21  ;;  %v7636_v21 = vmul.f32 1.4142135, %v13315_v32 }
0x222f   :  { %v9379_v56 = vpop.f32.mrf.mxu1 }
0x2230   :  { %v7466_v13 = vmax.f32 %v9379_v56, 0.0 }
0x2231   :  { %v7401_v54 = vpop.f32.mrf.mxu1 }
0x2232   :  { %v7464_v59 = vmax.f32 %v7401_v54, 0.0 }
0x2233   :  { %v9380_v55 = vpop.f32.mrf.mxu1 }
0x2234   :  { %v7467_v39 = vmax.f32 %v9380_v55, 0.0  ;;  %v7634_v55 = vmul.f32 1.4142135, %v13307_v62 }
0x2235   :  { %v7404_v36 = vpop.f32.mrf.mxu1 }
0x2236   :  { %v7465_v29 = vmax.f32 %v7404_v36, 0.0  ;;  %v7481_v50 = vpack.c.bf16 %v7467_v39, %v7466_v13  ;;  %v7637_v13 = vmul.f32 1.4142135, %v13322_v6 }
0x2237   :  { %v9383_v7 = vpop.f32.mrf.mxu1 }
0x2238   :  { %v7480_v30 = vpack.c.bf16 %v7465_v29, %v7464_v59  ;;  %v7470_v37 = vmax.f32 %v9383_v7, 0.0  ;;  %v7639_v59 = vmul.f32 1.4142135, %v13331_v25 }
0x2239   :  { %v7417_v58 = vpop.f32.mrf.mxu1 }
0x223a   :  { %9401 = vmatprep.mubr.msk.bf16.mxu0 %vm640_vm4, %v7480_v30  ;;  %v7468_v47 = vmax.f32 %v7417_v58, 0.0  ;;  %v7640_v58 = vmul.f32 1.4142135, %v13334_v57 }
0x223b   :  { %v9384_v61 = vpop.f32.mrf.mxu1  ;;  %9402 = vmatmul.mubr.msk.bf16.vlgmr.msra.gmra.mxu0 %vm640_vm4, %v7481_v50 }
0x223c   :  { %v7471_v27 = vmax.f32 %v9384_v61, 0.0 }
0x223d   :  { %v7420_v18 = vpop.f32.mrf.mxu1 }
0x223e   :  { %v7469_v1 = vmax.f32 %v7420_v18, 0.0  ;;  %v7483_v28 = vpack.c.bf16 %v7471_v27, %v7470_v37  ;;  %v7638_v27 = vmul.f32 1.4142135, %v13325_v43  ;;  %v7643_v37 = vmul.f32 1.4142135, %v13361_v12 }
0x223f   :  { %v7641_v43 = vmul.f32 1.4142135, %v13352_v5 }
0x2240   :  { %v7482_v8 = vpack.c.bf16 %v7469_v1, %v7468_v47 }
0x2242   :  { %9405 = vmatprep.mubr.msk.bf16.mxu0 %vm640_vm4, %v7482_v8 }
0x2243   :  { %9406 = vmatmul.mubr.msk.bf16.gmra.mxu0 %vm640_vm4, %v7483_v28 }
0x22b0   :  { %v9387_v38 = vpop.f32.mrf.mxu1 }
0x22b1   :  { %v7474_v2 = vmax.f32 %v9387_v38, 0.0 }
0x22b2   :  { %v7433_v49 = vpop.f32.mrf.mxu1 }
0x22b3   :  { %v7472_v46 = vmax.f32 %v7433_v49, 0.0 }
0x22b4   :  { %v9388_v51 = vpop.f32.mrf.mxu1 }
0x22b5   :  { %v7475_v34 = vmax.f32 %v9388_v51, 0.0 }
0x22b6   :  { %v7436_v26 = vpop.f32.mrf.mxu1 }
0x22b7   :  { %v7473_v63 = vmax.f32 %v7436_v26, 0.0  ;;  %v7485_v14 = vpack.c.bf16 %v7475_v34, %v7474_v2  ;;  %v7644_v34 = vmul.f32 1.4142135, %v13364_v16  ;;  %v7645_v16 = vmul.f32 1.4142135, %v13370_v9 }
0x22b8   :  { %v9391_v20 = vpop.f32.mrf.mxu1 }
0x22b9   :  { %v7484_v40 = vpack.c.bf16 %v7473_v63, %v7472_v46  ;;  %v7478_v45 = vmax.f32 %v9391_v20, 0.0  ;;  %v7642_v63 = vmul.f32 1.4142135, %v13355_v19 }
0x22ba   :  { %v7449_v33 = vpop.f32.mrf.mxu1 }
0x22bb   :  { %9409 = vmatprep.mubr.msk.bf16.mxu0 %vm640_vm4, %v7484_v40  ;;  %v7476_v4 = vmax.f32 %v7449_v33, 0.0  ;;  %v7647_v33 = vmul.f32 1.4142135, %v13379_v42  ;;  %v7648_v42 = vmul.f32 1.4142135, %v13382_v11 }
0x22bc   :  { %v9392_v0 = vpop.f32.mrf.mxu1  ;;  %9410 = vmatmul.mubr.msk.bf16.gmra.mxu0 %vm640_vm4, %v7485_v14 }
0x22bd   :  { %v7479_v15 = vmax.f32 %v9392_v0, 0.0 }
0x22be   :  { %v7452_v52 = vpop.f32.mrf.mxu1 }
0x22bf   :  { %v7477_v22 = vmax.f32 %v7452_v52, 0.0  ;;  %v7487_v24 = vpack.c.bf16 %v7479_v15, %v7478_v45  ;;  %v7646_v45 = vmul.f32 1.4142135, %v13373_v48 }
0x22c1   :  { %v7486_v23 = vpack.c.bf16 %v7477_v22, %v7476_v4 }
0x22c3   :  { %9413 = vmatprep.mubr.msk.bf16.mxu0 %vm640_vm4, %v7486_v23 }
0x22c4   :  { %9414 = vmatmul.mubr.msk.bf16.gmra.mxu0 %vm640_vm4, %v7487_v24 }
0x22fb   :  { %v9403_v17 = vpop.f32.mrf.mxu0 }
0x22fc   :  { %v13396_v31 = vadd.f32 %v9403_v17, %v7635_v10 }
0x22fd   :  { %v7570_v41 = vpop.f32.mrf.mxu0 }
0x22fe   :  { %v13399_v35 = vadd.f32 %v7633_v53, %v7570_v41  ;;  %v7671_v60 = vsel %vm307_vm2, %v13396_v31, 0.0 }
0x22ff   :  { %7672 = vadd.xlane.f32.xlu1 %v7671_v60  ;;  %v9404_v56 = vpop.f32.mrf.mxu0 }
0x2300   :  { %v13404_v54 = vadd.f32 %v9404_v56, %v7636_v21  ;;  %v7665_v3 = vsel %vm307_vm2, %v13399_v35, 0.0 }
0x2301   :  { %v7573_v44 = vpop.f32.mrf.mxu0 }
0x2302   :  { %v13407_v39 = vadd.f32 %v7634_v55, %v7573_v44  ;;  %v7674_v36 = vsel %vm307_vm2, %v13404_v54, 0.0 }
0x2303   :  { %7666 = vadd.xlane.f32.xlu1 %v7665_v3  ;;  %7675 = vadd.xlane.f32.xlu0 %v7674_v36  ;;  %v9407_v32 = vpop.f32.mrf.mxu0 }
0x2304   :  { %v13414_v29 = vadd.f32 %v9407_v32, %v7639_v59  ;;  %v7668_v30 = vsel %vm307_vm2, %v13407_v39, 0.0 }
0x2305   :  { %v7586_v7 = vpop.f32.mrf.mxu0 }
0x2306   :  { %v13417_v62 = vadd.f32 %v7637_v13, %v7586_v7  ;;  %v7683_v50 = vsel %vm307_vm2, %v13414_v29, 0.0 }
0x2307   :  { %7669 = vadd.xlane.f32.xlu0 %v7668_v30  ;;  %7684 = vadd.xlane.f32.xlu1 %v7683_v50  ;;  %v9408_v25 = vpop.f32.mrf.mxu0 }
0x2308   :  { %v13424_v61 = vadd.f32 %v9408_v25, %v7640_v58  ;;  %v7677_v47 = vsel %vm307_vm2, %v13417_v62, 0.0 }
0x2309   :  { %v7589_v18 = vpop.f32.mrf.mxu0 }
0x230a   :  { %v13427_v6 = vadd.f32 %v7638_v27, %v7589_v18  ;;  %v7686_v1 = vsel %vm307_vm2, %v13424_v61, 0.0 }
0x230b   :  { %7678 = vadd.xlane.f32.xlu1 %v7677_v47  ;;  %7687 = vadd.xlane.f32.xlu0 %v7686_v1 }
0x230c   :  { %v7680_v57 = vsel %vm307_vm2, %v13427_v6, 0.0 }
0x230f   :  { %7681 = vadd.xlane.f32.xlu0 %v7680_v57 }
0x237c   :  { %v9411_v8 = vpop.f32.mrf.mxu0 }
0x237d   :  { %v13436_v28 = vadd.f32 %v9411_v8, %v7643_v37 }
0x237e   :  { %v7602_v38 = vpop.f32.mrf.mxu0 }
0x237f   :  { %v13439_v49 = vadd.f32 %v7641_v43, %v7602_v38  ;;  %v7695_v51 = vsel %vm307_vm2, %v13436_v28, 0.0 }
0x2380   :  { %7696 = vadd.xlane.f32.xlu1 %v7695_v51  ;;  %v9412_v26 = vpop.f32.mrf.mxu0 }
0x2381   :  { %v13444_v46 = vadd.f32 %v9412_v26, %v7644_v34  ;;  %v7689_v5 = vsel %vm307_vm2, %v13439_v49, 0.0 }
0x2382   :  { %v7605_v12 = vpop.f32.mrf.mxu0 }
0x2383   :  { %v13447_v2 = vadd.f32 %v7642_v63, %v7605_v12  ;;  %v7698_v20 = vsel %vm307_vm2, %v13444_v46, 0.0 }
0x2384   :  { %7690 = vadd.xlane.f32.xlu1 %v7689_v5  ;;  %7699 = vadd.xlane.f32.xlu0 %v7698_v20  ;;  %v9415_v40 = vpop.f32.mrf.mxu0 }
0x2385   :  { %v7692_v19 = vsel %vm307_vm2, %v13447_v2, 0.0  ;;  %v13459_v4 = vadd.f32 %v9415_v40, %v7647_v33 }
0x2386   :  { %v7618_v14 = vpop.f32.mrf.mxu0 }
0x2387   :  { %v13455_v0 = vadd.f32 %v7645_v16, %v7618_v14  ;;  %v7707_v60 = vsel %vm307_vm2, %v13459_v4, 0.0 }
0x2388   :  { %7693 = vadd.xlane.f32.xlu0 %v7692_v19  ;;  %v9416_v15 = vpop.f32.mrf.mxu0  ;;  %v7673_v52 = vpop.xlane.xlu1 %7672 }
0x2389   :  { %v7701_v22 = vsel %vm307_vm2, %v13455_v0, 0.0  ;;  %v7715_v23 = vmul.f32 0.03125, %v7673_v52  ;;  %v13467_v53 = vadd.f32 %v9416_v15, %v7648_v42 }
0x238a   :  { %7702 = vadd.xlane.f32.xlu1 %v7701_v22  ;;  %v7621_v9 = vpop.f32.mrf.mxu0 }
0x238b   :  { %v13465_v24 = vadd.f32 %v7646_v45, %v7621_v9  ;;  %v13474_v48 = vsub.f32 %v13396_v31, %v7715_v23  ;;  %v7710_v36 = vsel %vm307_vm2, %v13467_v53, 0.0 }
0x238c   :  { %v7676_v10 = vpop.xlane.xlu0 %7675  ;;  %v7667_v17 = vpop.xlane.xlu1 %7666 }
0x238d   :  { %v7713_v41 = vmul.f32 0.03125, %v7667_v17  ;;  %v7704_v21 = vsel %vm307_vm2, %v13465_v24, 0.0  ;;  %v7716_v56 = vmul.f32 0.03125, %v7676_v10  ;;  %v7747_v31 = vmul.f32 %v13474_v48, %v13474_v48 }
0x238e   :  { %7708 = vadd.xlane.f32.xlu1 %v7707_v60  ;;  %7705 = vadd.xlane.f32.xlu0 %v7704_v21 }
0x238f   :  { %v13477_v11 = vsub.f32 %v13399_v35, %v7713_v41  ;;  %v13484_v32 = vsub.f32 %v13404_v54, %v7716_v56  ;;  %v7767_v54 = vsel %vm307_vm2, %v7747_v31, 0.0 }
0x2390   :  { %v7670_v55 = vpop.xlane.xlu0 %7669  ;;  %v7685_v44 = vpop.xlane.xlu1 %7684 }
0x2391   :  { %v7714_v3 = vmul.f32 0.03125, %v7670_v55  ;;  %v7745_v59 = vmul.f32 %v13477_v11, %v13477_v11  ;;  %v7719_v35 = vmul.f32 0.03125, %v7685_v44  ;;  %v7748_v27 = vmul.f32 %v13484_v32, %v13484_v32 }
0x2392   :  { %7711 = vadd.xlane.f32.xlu0 %v7710_v36 }
0x2393   :  { %v13489_v13 = vsub.f32 %v13407_v39, %v7714_v3  ;;  %v7761_v7 = vsel %vm307_vm2, %v7745_v59, 0.0  ;;  %v13498_v18 = vsub.f32 %v13414_v29, %v7719_v35  ;;  %v7770_v43 = vsel %vm307_vm2, %v7748_v27, 0.0 }
0x2394   :  { %v7688_v30 = vpop.xlane.xlu0 %7687  ;;  %7762 = vadd.xlane.f32.xlu1 %v7761_v7  ;;  %v7679_v50 = vpop.xlane.xlu1 %7678 }
0x2395   :  { %v7717_v58 = vmul.f32 0.03125, %v7679_v50  ;;  %v7746_v25 = vmul.f32 %v13489_v13, %v13489_v13  ;;  %v7720_v39 = vmul.f32 0.03125, %v7688_v30  ;;  %v7751_v51 = vmul.f32 %v13498_v18, %v13498_v18 }
0x2397   :  { %v13501_v47 = vsub.f32 %v13417_v62, %v7717_v58  ;;  %v7764_v1 = vsel %vm307_vm2, %v7746_v25, 0.0  ;;  %v13508_v38 = vsub.f32 %v13424_v61, %v7720_v39  ;;  %v7779_v63 = vsel %vm307_vm2, %v7751_v51, 0.0 }
0x2398   :  { %v7682_v57 = vpop.xlane.xlu0 %7681  ;;  %7765 = vadd.xlane.f32.xlu0 %v7764_v1  ;;  %7768 = vadd.xlane.f32.xlu1 %v7767_v54 }
0x2399   :  { %v7718_v37 = vmul.f32 0.03125, %v7682_v57  ;;  %v7749_v8 = vmul.f32 %v13501_v47, %v13501_v47  ;;  %v7752_v61 = vmul.f32 %v13508_v38, %v13508_v38 }
0x239b   :  { %v13511_v29 = vsub.f32 %v13427_v6, %v7718_v37  ;;  %v7773_v62 = vsel %vm307_vm2, %v7749_v8, 0.0  ;;  %v7782_v6 = vsel %vm307_vm2, %v7752_v61, 0.0 }
0x239c   :  { %7771 = vadd.xlane.f32.xlu0 %v7770_v43  ;;  %7774 = vadd.xlane.f32.xlu1 %v7773_v62 }
0x239d   :  { %v7750_v34 = vmul.f32 %v13511_v29, %v13511_v29 }
0x239f   :  { %v7776_v26 = vsel %vm307_vm2, %v7750_v34, 0.0 }
0x23a0   :  { %7777 = vadd.xlane.f32.xlu0 %v7776_v26  ;;  %7780 = vadd.xlane.f32.xlu1 %v7779_v63 }
0x23a4   :  { %7783 = vadd.xlane.f32.xlu0 %v7782_v6 }
0x2409   :  { %v7697_v12 = vpop.xlane.xlu1 %7696 }
0x240a   :  { %v7723_v5 = vmul.f32 0.03125, %v7697_v12 }
0x240c   :  { %v13524_v20 = vsub.f32 %v13436_v28, %v7723_v5 }
0x240d   :  { %v7700_v40 = vpop.xlane.xlu0 %7699  ;;  %v7691_v16 = vpop.xlane.xlu1 %7690 }
0x240e   :  { %v7724_v14 = vmul.f32 0.03125, %v7700_v40  ;;  %v7721_v33 = vmul.f32 0.03125, %v7691_v16  ;;  %v7755_v19 = vmul.f32 %v13524_v20, %v13524_v20 }
0x2410   :  { %v13529_v15 = vsub.f32 %v13444_v46, %v7724_v14  ;;  %v13532_v52 = vsub.f32 %v13439_v49, %v7721_v33  ;;  %v7791_v22 = vsel %vm307_vm2, %v7755_v19, 0.0 }
0x2411   :  { %v7694_v45 = vpop.xlane.xlu0 %7693  ;;  %7792 = vadd.xlane.f32.xlu1 %v7791_v22 }
0x2412   :  { %v7722_v23 = vmul.f32 0.03125, %v7694_v45  ;;  %v7756_v28 = vmul.f32 %v13529_v15, %v13529_v15  ;;  %v7753_v9 = vmul.f32 %v13532_v52, %v13532_v52 }
0x2413   :  { %v7703_v42 = vpop.xlane.xlu1 %7702 }
0x2414   :  { %v13540_v10 = vsub.f32 %v13447_v2, %v7722_v23  ;;  %v7725_v46 = vmul.f32 0.03125, %v7703_v42  ;;  %v7794_v17 = vsel %vm307_vm2, %v7756_v28, 0.0  ;;  %v7785_v49 = vsel %vm307_vm2, %v7753_v9, 0.0 }
0x2415   :  { %7795 = vadd.xlane.f32.xlu0 %v7794_v17  ;;  %7786 = vadd.xlane.f32.xlu1 %v7785_v49 }
0x2416   :  { %v13545_v41 = vsub.f32 %v13455_v0, %v7725_v46  ;;  %v7754_v60 = vmul.f32 %v13540_v10, %v13540_v10 }
0x2417   :  { %v7706_v21 = vpop.xlane.xlu0 %7705  ;;  %v7709_v56 = vpop.xlane.xlu1 %7708 }
0x2418   :  { %v7726_v55 = vmul.f32 0.03125, %v7706_v21  ;;  %v7727_v44 = vmul.f32 0.03125, %v7709_v56  ;;  %v7788_v2 = vsel %vm307_vm2, %v7754_v60, 0.0  ;;  %v7757_v3 = vmul.f32 %v13545_v41, %v13545_v41 }
0x2419   :  { %7789 = vadd.xlane.f32.xlu0 %v7788_v2 }
0x241a   :  { %v13553_v36 = vsub.f32 %v13465_v24, %v7726_v55  ;;  %v13556_v59 = vsub.f32 %v13459_v4, %v7727_v44  ;;  %v7797_v0 = vsel %vm307_vm2, %v7757_v3, 0.0 }
0x241b   :  { %v7712_v31 = vpop.xlane.xlu0 %7711  ;;  %7798 = vadd.xlane.f32.xlu1 %v7797_v0 }
0x241c   :  { %v7728_v35 = vmul.f32 0.03125, %v7712_v31  ;;  %v7758_v7 = vmul.f32 %v13553_v36, %v13553_v36  ;;  %v7759_v30 = vmul.f32 %v13556_v59, %v13556_v59 }
0x241d   :  { %v7763_v50 = vpop.xlane.xlu1 %7762 }
0x241e   :  { %v13564_v58 = vsub.f32 %v13467_v53, %v7728_v35  ;;  %v7809_v24 = vmul.f32 0.03125, %v7763_v50  ;;  %v7800_v25 = vsel %vm307_vm2, %v7758_v7, 0.0  ;;  %v7803_v4 = vsel %vm307_vm2, %v7759_v30, 0.0 }
0x241f   :  { %7801 = vadd.xlane.f32.xlu0 %v7800_v25  ;;  %7804 = vadd.xlane.f32.xlu1 %v7803_v4 }
0x2420   :  { %v7825_v54 = vadd.f32 1e-05, %v7809_v24  ;;  %v7760_v27 = vmul.f32 %v13564_v58, %v13564_v58 }
0x2421   :  { %v7766_v39 = vpop.xlane.xlu0 %7765  ;;  %v7769_v1 = vpop.xlane.xlu1 %7768 }
0x2422   :  { %10127 = vrsqrt.f32 %v7825_v54  ;;  %v7810_v57 = vmul.f32 0.03125, %v7766_v39  ;;  %v7811_v37 = vmul.f32 0.03125, %v7769_v1  ;;  %v7806_v8 = vsel %vm307_vm2, %v7760_v27, 0.0 }
0x2423   :  { %7807 = vadd.xlane.f32.xlu0 %v7806_v8 }
0x2424   :  { %v7826_v53 = vadd.f32 1e-05, %v7810_v57  ;;  %v7827_v43 = vadd.f32 1e-05, %v7811_v37 }
0x2425   :  { %v7772_v62 = vpop.xlane.xlu0 %7771  ;;  %v7775_v51 = vpop.xlane.xlu1 %7774 }
0x2426   :  { %10129 = vrsqrt.f32 %v7826_v53  ;;  %v7812_v34 = vmul.f32 0.03125, %v7772_v62  ;;  %v7813_v26 = vmul.f32 0.03125, %v7775_v51 }
0x2427   :  { %10131 = vrsqrt.f32 %v7827_v43 }
0x2428   :  { %v7828_v63 = vadd.f32 1e-05, %v7812_v34  ;;  %v7829_v61 = vadd.f32 1e-05, %v7813_v26 }
0x2429   :  { %v7778_v6 = vpop.xlane.xlu0 %7777  ;;  %v7781_v12 = vpop.xlane.xlu1 %7780 }
0x242a   :  { %10133 = vrsqrt.f32 %v7828_v63  ;;  %v7814_v5 = vmul.f32 0.03125, %v7778_v6  ;;  %v7815_v40 = vmul.f32 0.03125, %v7781_v12 }
0x242b   :  { %10135 = vrsqrt.f32 %v7829_v61 }
0x242c   :  { %v7830_v16 = vadd.f32 1e-05, %v7814_v5  ;;  %v7831_v14 = vadd.f32 1e-05, %v7815_v40 }
0x242d   :  { %v7784_v33 = vpop.xlane.xlu0 %7783 }
0x242e   :  { %10137 = vrsqrt.f32 %v7830_v16  ;;  %v7816_v19 = vmul.f32 0.03125, %v7784_v33 }
0x242f   :  { %v10128_v22 = vpop.eup %10127  ;;  %10139 = vrsqrt.f32 %v7831_v14 }
0x2430   :  { %v7857_v45 = vmul.f32 %v10128_v22, %v13477_v11  ;;  %v7832_v23 = vadd.f32 1e-05, %v7816_v19 }
0x2432   :  { %7873 = vst.msk [vmem:[#allocation2] sm:$0xff] %vm307_vm2, %v7857_v45  ;;  %10141 = vrsqrt.f32 %v7832_v23 }
0x2433   :  { %v10130_v28 = vpop.eup %10129 }
0x2434   :  { %v10132_v9 = vpop.eup %10131  ;;  %v7858_v42 = vmul.f32 %v10130_v28, %v13489_v13 }
0x2435   :  { %v7859_v46 = vmul.f32 %v10132_v9, %v13474_v48 }
0x2436   :  { %7874 = vst.msk [vmem:[#allocation2 + $0x8] sm:$0xff] %vm307_vm2, %v7858_v42 }
0x2437   :  { %v10134_v17 = vpop.eup %10133  ;;  %7875 = vst.msk [vmem:[#allocation2 + $0x10] sm:$0xff] %vm307_vm2, %v7859_v46 }
0x2438   :  { %v10136_v49 = vpop.eup %10135  ;;  %v7860_v60 = vmul.f32 %v10134_v17, %v13484_v32 }
0x2439   :  { %v7861_v11 = vmul.f32 %v10136_v49, %v13501_v47 }
0x243a   :  { %7876 = vst.msk [vmem:[#allocation2 + $0x18] sm:$0xff] %vm307_vm2, %v7860_v60 }
0x243b   :  { %v10138_v21 = vpop.eup %10137  ;;  %7877 = vst.msk [vmem:[#allocation2 + $0x20] sm:$0xff] %vm307_vm2, %v7861_v11 }
0x243c   :  { %v10140_v56 = vpop.eup %10139  ;;  %v7862_v13 = vmul.f32 %v10138_v21, %v13511_v29 }
0x243d   :  { %v7863_v48 = vmul.f32 %v10140_v56, %v13498_v18 }
0x243e   :  { %7878 = vst.msk [vmem:[#allocation2 + $0x28] sm:$0xff] %vm307_vm2, %v7862_v13 }
0x243f   :  { %v10142_v55 = vpop.eup %10141  ;;  %7879 = vst.msk [vmem:[#allocation2 + $0x30] sm:$0xff] %vm307_vm2, %v7863_v48 }
0x2440   :  { %v7864_v44 = vmul.f32 %v10142_v55, %v13508_v38 }
0x2442   :  { %7880 = vst.msk [vmem:[#allocation2 + $0x38] sm:$0xff] %vm307_vm2, %v7864_v44 }
0x249a   :  { %v7793_v32 = vpop.xlane.xlu1 %7792 }
0x249b   :  { %v7819_v47 = vmul.f32 0.03125, %v7793_v32 }
0x249d   :  { %v7835_v2 = vadd.f32 1e-05, %v7819_v47 }
0x249e   :  { %v7796_v3 = vpop.xlane.xlu0 %7795  ;;  %v7787_v0 = vpop.xlane.xlu1 %7786 }
0x249f   :  { %10143 = vrsqrt.f32 %v7835_v2  ;;  %v7820_v31 = vmul.f32 0.03125, %v7796_v3  ;;  %v7817_v35 = vmul.f32 0.03125, %v7787_v0 }
0x24a1   :  { %v7836_v29 = vadd.f32 1e-05, %v7820_v31  ;;  %v7833_v7 = vadd.f32 1e-05, %v7817_v35 }
0x24a2   :  { %v7790_v18 = vpop.xlane.xlu0 %7789 }
0x24a3   :  { %10145 = vrsqrt.f32 %v7836_v29  ;;  %v7818_v30 = vmul.f32 0.03125, %v7790_v18 }
0x24a4   :  { %10147 = vrsqrt.f32 %v7833_v7  ;;  %v7799_v50 = vpop.xlane.xlu1 %7798 }
0x24a5   :  { %v7834_v24 = vadd.f32 1e-05, %v7818_v30  ;;  %v7821_v25 = vmul.f32 0.03125, %v7799_v50 }
0x24a7   :  { %10149 = vrsqrt.f32 %v7834_v24  ;;  %v7837_v38 = vadd.f32 1e-05, %v7821_v25 }
0x24a8   :  { %v7802_v4 = vpop.xlane.xlu0 %7801  ;;  %v7805_v54 = vpop.xlane.xlu1 %7804 }
0x24a9   :  { %10151 = vrsqrt.f32 %v7837_v38  ;;  %v7822_v27 = vmul.f32 0.03125, %v7802_v4  ;;  %v7823_v39 = vmul.f32 0.03125, %v7805_v54 }
0x24ab   :  { %v7838_v1 = vadd.f32 1e-05, %v7822_v27  ;;  %v7839_v57 = vadd.f32 1e-05, %v7823_v39 }
0x24ac   :  { %v10144_v37 = vpop.eup %10143  ;;  %v7808_v8 = vpop.xlane.xlu0 %7807 }
0x24ad   :  { %v7867_v53 = vmul.f32 %v10144_v37, %v13524_v20  ;;  %10153 = vrsqrt.f32 %v7838_v1  ;;  %v7824_v43 = vmul.f32 0.03125, %v7808_v8 }
0x24ae   :  { %10155 = vrsqrt.f32 %v7839_v57 }
0x24af   :  { %7883 = vst.msk [vmem:[#allocation2 + $0x50] sm:$0xff] %vm307_vm2, %v7867_v53  ;;  %v7840_v62 = vadd.f32 1e-05, %v7824_v43 }
0x24b0   :  { %v10146_v51 = vpop.eup %10145 }
0x24b1   :  { %v10148_v34 = vpop.eup %10147  ;;  %v7868_v26 = vmul.f32 %v10146_v51, %v13529_v15  ;;  %10157 = vrsqrt.f32 %v7840_v62 }
0x24b2   :  { %v7865_v63 = vmul.f32 %v10148_v34, %v13532_v52 }
0x24b3   :  { %7884 = vst.msk [vmem:[#allocation2 + $0x58] sm:$0xff] %vm307_vm2, %v7868_v26 }
0x24b4   :  { %v10150_v61 = vpop.eup %10149  ;;  %7881 = vst.msk [vmem:[#allocation2 + $0x40] sm:$0xff] %vm307_vm2, %v7865_v63 }
0x24b5   :  { %v7866_v20 = vmul.f32 %v10150_v61, %v13540_v10 }
0x24b6   :  { %v10152_v6 = vpop.eup %10151 }
0x24b7   :  { %7882 = vst.msk [vmem:[#allocation2 + $0x48] sm:$0xff] %vm307_vm2, %v7866_v20  ;;  %v7869_v12 = vmul.f32 %v10152_v6, %v13545_v41 }
0x24b9   :  { %7885 = vst.msk [vmem:[#allocation2 + $0x60] sm:$0xff] %vm307_vm2, %v7869_v12 }
0x24ba   :  { %v10154_v5 = vpop.eup %10153 }
0x24bb   :  { %v10156_v40 = vpop.eup %10155  ;;  %v7870_v15 = vmul.f32 %v10154_v5, %v13553_v36 }
0x24bc   :  { %v7871_v52 = vmul.f32 %v10156_v40, %v13556_v59 }
0x24bd   :  { %7886 = vst.msk [vmem:[#allocation2 + $0x68] sm:$0xff] %vm307_vm2, %v7870_v15 }
0x24be   :  { %v10158_v16 = vpop.eup %10157  ;;  %7887 = vst.msk [vmem:[#allocation2 + $0x70] sm:$0xff] %vm307_vm2, %v7871_v52 }
0x24bf   :  { %v7872_v10 = vmul.f32 %v10158_v16, %v13564_v58 }
0x24c1   :  { %7888 = vst.msk [vmem:[#allocation2 + $0x78] sm:$0xff] %vm307_vm2, %v7872_v10 }
0x24c2   :  { %10170 = shalt.err (!%p10167_p4)
}
0x24c3   :  { %s10193_s14 = smov 128   ;;  %s10194_s15 = smov 8  }
0x24c4   :  { %7900 = dma.vmem_to_hbm [thread:$0]  %s7895_s9, 2048, %s13613_s7, [#allocation3], %s10193_s14, %s10193_s14, %s10194_s15  }
0x24c5   :  { %10179 = dma.done.wait [#allocation3], 2048  }
0x24c6   :  { %10180 = vsyncadd [#allocation3], 4294965248 }
0x24c7   :  { %7904 = vsyncpa [#allocation3], 1 }

</bundles_post_ra>
